<compile_context>
chip_gen: v7x
topology: tpu7x:2x2x1
jax: 0.10.0
libtpu: 0.0.40
codegen_flags: <defaults>
</compile_context>

<pallas_src>
import jax
import jax.numpy as jnp
from jax.experimental import pallas as pl
from jax.experimental.pallas import tpu as pltpu

HIDDEN = 128
DEC_STEPS = 24
TIME_FEAT = 6   # 134 = 128 (decoder hidden) + 6 (time features)


# ----------------------------------------------------------------------------
# Kernel 1: fused 3-layer graph-convolution stack (single launch, no HBM
# intermediates, one fixed (rows, channels) layout throughout).
# ----------------------------------------------------------------------------
def _gcn_stack_kernel(x_ref, a_ref, w1_ref, b1_ref, w2_ref, b2_ref,
                      w3_ref, b3_ref, o_ref):
    a = a_ref[...]                                    # (R, R) bf16, R = T*B*V

    def layer(x, w_ref, b_ref):
        k = w_ref.shape[0]
        # p = 0 term (adj^0 = I)
        acc = jnp.dot(x.astype(jnp.bfloat16), w_ref[0].astype(jnp.bfloat16),
                      preferred_element_type=jnp.float32)
        s = x
        for p in range(1, k):                          # k is static (k = 3)
            s = jnp.dot(a, s.astype(jnp.bfloat16),
                        preferred_element_type=jnp.float32)
            acc = acc + jnp.dot(s.astype(jnp.bfloat16),
                                w_ref[p].astype(jnp.bfloat16),
                                preferred_element_type=jnp.float32)
        # fused bias + ReLU (f32 elementwise)
        return jnp.maximum(acc + b_ref[...], 0.0)

    h = layer(x_ref[...], w1_ref, b1_ref)              # -> 16
    h = layer(h, w2_ref, b2_ref)                       # -> 32
    o_ref[...] = layer(h, w3_ref, b3_ref)              # -> 64


def gcn_stack(x2d, a_blockdiag, w1, b1, w2, b2, w3, b3):
    rows = x2d.shape[0]
    cout = w3.shape[2]
    return pl.pallas_call(
        _gcn_stack_kernel,
        out_shape=jax.ShapeDtypeStruct((rows, cout), jnp.float32),
    )(x2d, a_blockdiag, w1, b1, w2, b2, w3, b3)


# ----------------------------------------------------------------------------
# Kernel 2: fused encoder GRU (PyTorch gate order r, z, n; dual biases; h0=0).
# Single launch; input projection hoisted out of the recurrence.
# ----------------------------------------------------------------------------
def _enc_gru_kernel(x_ref, wih_ref, whh_ref, bih_ref, bhh_ref, o_ref):
    n, h_dim = o_ref.shape
    t_steps = x_ref.shape[0] // n                      # static
    # One big lane-dense input projection for all T steps at once.
    gi_all = (jnp.dot(x_ref[...].astype(jnp.bfloat16), wih_ref[...],
                      preferred_element_type=jnp.float32) + bih_ref[...])
    whh = whh_ref[...]
    bhh = bhh_ref[...]
    h = jnp.zeros((n, h_dim), jnp.float32)
    for t in range(t_steps):                           # unrolled serial recurrence
        gi = gi_all[t * n:(t + 1) * n, :]
        gh = (jnp.dot(h.astype(jnp.bfloat16), whh,
                      preferred_element_type=jnp.float32) + bhh)
        r = jax.nn.sigmoid(gi[:, :h_dim] + gh[:, :h_dim])
        z = jax.nn.sigmoid(gi[:, h_dim:2 * h_dim] + gh[:, h_dim:2 * h_dim])
        c = jnp.tanh(gi[:, 2 * h_dim:] + r * gh[:, 2 * h_dim:])
        h = (1.0 - z) * c + z * h
    o_ref[...] = h


def encoder_gru(x2d, wih, whh, bih, bhh, n):
    h_dim = whh.shape[0]
    return pl.pallas_call(
        _enc_gru_kernel,
        out_shape=jax.ShapeDtypeStruct((n, h_dim), jnp.float32),
    )(x2d, wih, whh, bih, bhh)


# ----------------------------------------------------------------------------
# Kernel 3: fused decoder GRU + fc1 hidden-state half.  Single launch; the
# decoder input is ctx at every step, so gi is computed once before the loop.
# Hidden states are stacked into a lane-dense (24*N, 128) VMEM scratch and the
# fc1 hidden half is one matmul + one final write.
# ----------------------------------------------------------------------------
def _dec_gru_fc_kernel(ctx_ref, wih_ref, whh_ref, bih_ref, bhh_ref, fcw_ref,
                       o_ref, hs_ref):
    n, h_dim = ctx_ref.shape
    steps = hs_ref.shape[0] // n                       # static
    gi = (jnp.dot(ctx_ref[...].astype(jnp.bfloat16), wih_ref[...],
                  preferred_element_type=jnp.float32) + bih_ref[...])
    whh = whh_ref[...]
    bhh = bhh_ref[...]
    h = jnp.zeros((n, h_dim), jnp.float32)
    for t in range(steps):                             # unrolled serial recurrence
        gh = (jnp.dot(h.astype(jnp.bfloat16), whh,
                      preferred_element_type=jnp.float32) + bhh)
        r = jax.nn.sigmoid(gi[:, :h_dim] + gh[:, :h_dim])
        z = jax.nn.sigmoid(gi[:, h_dim:2 * h_dim] + gh[:, h_dim:2 * h_dim])
        c = jnp.tanh(gi[:, 2 * h_dim:] + r * gh[:, 2 * h_dim:])
        h = (1.0 - z) * c + z * h
        hs_ref[pl.ds(t * n, n), :] = h                 # lane-dense 128-wide store
    # fc1 hidden-state half: one matmul over all steps, one final write.
    o_ref[...] = jnp.dot(hs_ref[...], fcw_ref[...],
                         preferred_element_type=jnp.float32)


def decoder_gru_fc(ctx, wih, whh, bih, bhh, fcw_h, steps):
    n, h_dim = ctx.shape
    return pl.pallas_call(
        _dec_gru_fc_kernel,
        out_shape=jax.ShapeDtypeStruct((steps * n, 1), jnp.float32),
        scratch_shapes=[pltpu.VMEM((steps * n, h_dim), jnp.float32)],
    )(ctx, wih, whh, bih, bhh, fcw_h)


# ----------------------------------------------------------------------------
# Full GCN forward
# ----------------------------------------------------------------------------
def gcn_forward(params, X, adj, time_feature):
    # X: (T, B, V, Cin)  (== python list X of length T in the torch code)
    T, B, V, Cin = X.shape
    N = B * V
    M = T * B

    # pad the degenerate input-channel dim (Cin=1) to a clean contraction dim;
    # zero rows added to the weight keep the result exact.
    w1, b1 = params["gc1_w"], params["gc1_b"]
    pad = (-Cin) % 8
    if pad:
        X = jnp.pad(X, ((0, 0), (0, 0), (0, 0), (0, pad)))
        w1 = jnp.pad(w1, ((0, 0), (0, pad), (0, 0)))
        Cin += pad

    # Single fixed row layout r = (t*B + b)*V + v for the whole GCN stack and
    # the encoder input: no relayouts between kernels.
    x2d = X.reshape(M * V, Cin)

    # Block-diagonal propagation operator kron(I_{T*B}, adj): adjacency
    # propagation becomes a plain 2-D matmul in the fixed row layout.
    # TODO(synk): at production sizes (V=194, large T*B) replace this with a
    #             tiled vertex-major formulation + grid/BlockSpecs and an
    #             explicit vmem_limit (v7x has only 64 MiB VMEM).
    a_bd = jnp.kron(jnp.eye(M, dtype=jnp.float32), adj).astype(jnp.bfloat16)

    feat = gcn_stack(x2d, a_bd, w1, b1,
                     params["gc2_w"], params["gc2_b"],
                     params["gc3_w"], params["gc3_b"])          # (T*N, 64)

    # feat rows are exactly (t, n = b*V + v): feed the encoder directly.
    ctx = encoder_gru(feat, params["enc_wih"], params["enc_whh"],
                      params["enc_bih"], params["enc_bhh"], N)   # (N, 128)

    fc_w = params["fc1_w"]                                       # (134, 1)
    y_all = decoder_gru_fc(ctx, params["dec_wih"], params["dec_whh"],
                           params["dec_bih"], params["dec_bhh"],
                           fc_w[:HIDDEN], DEC_STEPS)             # (24*N, 1)
    dec_part = y_all.reshape(DEC_STEPS, N).T                     # (N, 24)

    # remaining fc1 pieces (time-feature half + bias): tiny, leave to XLA.
    tf_part = jnp.einsum("ntc,co->nt", time_feature, fc_w[HIDDEN:])  # (N, 24)
    return dec_part + tf_part + params["fc1_b"][0, 0]                # (N, 24)


# ----------------------------------------------------------------------------
# Deterministic parameter init (shapes from GCN.__init__)
# ----------------------------------------------------------------------------
def init_params(key, input_dim=1, k=3):
    keys = jax.random.split(key, 16)
    s = 0.1

    def nrm(kk, shape, dtype=jnp.float32):
        return (s * jax.random.normal(kk, shape)).astype(dtype)

    dims = [(input_dim, 16), (16, 32), (32, 64)]
    p = {}
    for li, (cin, cout) in enumerate(dims, start=1):
        p[f"gc{li}_w"] = nrm(keys[2 * li - 2], (k, cin, cout))
        p[f"gc{li}_b"] = nrm(keys[2 * li - 1], (1, cout))
    # GRU weights stored transposed (In, 3H), gate order (r, z, n); weight
    # matrices in bf16 for the MXU, biases / elementwise math stay f32.
    p["enc_wih"] = nrm(keys[6], (64, 3 * HIDDEN), jnp.bfloat16)
    p["enc_whh"] = nrm(keys[7], (HIDDEN, 3 * HIDDEN), jnp.bfloat16)
    p["enc_bih"] = nrm(keys[8], (1, 3 * HIDDEN))
    p["enc_bhh"] = nrm(keys[9], (1, 3 * HIDDEN))
    p["dec_wih"] = nrm(keys[10], (HIDDEN, 3 * HIDDEN), jnp.bfloat16)
    p["dec_whh"] = nrm(keys[11], (HIDDEN, 3 * HIDDEN), jnp.bfloat16)
    p["dec_bih"] = nrm(keys[12], (1, 3 * HIDDEN))
    p["dec_bhh"] = nrm(keys[13], (1, 3 * HIDDEN))
    # fc1: Linear(134, 1)
    p["fc1_w"] = nrm(keys[14], (HIDDEN + TIME_FEAT, 1))
    p["fc1_b"] = nrm(keys[15], (1, 1))
    return p


if __name__ == "__main__":
    key = jax.random.PRNGKey(0)
    k_param, k_x, k_adj, k_tf = jax.random.split(key, 4)

    # small shapes consistent with the module: T=4 timesteps, batch=2,
    # vertex_num=8, input_dim=1, time_feature last dim 6 (134 - 128)
    T, B, V, CIN = 4, 2, 8, 1
    N = B * V

    params = init_params(k_param, input_dim=CIN, k=3)

    X = jax.random.normal(k_x, (T, B, V, CIN), dtype=jnp.float32)
    adj_raw = jnp.abs(jax.random.normal(k_adj, (V, V), dtype=jnp.float32))
    adj = adj_raw / jnp.sum(adj_raw, axis=1, keepdims=True)      # row-normalized
    time_feature = jax.random.normal(k_tf, (N, DEC_STEPS, TIME_FEAT),
                                     dtype=jnp.float32)

    out = jax.jit(gcn_forward)(params, X, adj, time_feature)
    out = jax.block_until_ready(out)
    assert out.shape == (N, DEC_STEPS), out.shape
    assert jnp.all(jnp.isfinite(out))
    print("KERNEL_OK")
</pallas_src>

<mosaic_0001>
module attributes {stable_mosaic.version = 11 : i64} {
  func.func @_gcn_stack_kernel(%arg0: memref<64x8xf32, #tpu.memory_space<vmem>>, %arg1: memref<64x64xbf16, #tpu.memory_space<vmem>>, %arg2: memref<3x8x16xf32, #tpu.memory_space<vmem>>, %arg3: memref<1x16xf32, #tpu.memory_space<vmem>>, %arg4: memref<3x16x32xf32, #tpu.memory_space<vmem>>, %arg5: memref<1x32xf32, #tpu.memory_space<vmem>>, %arg6: memref<3x32x64xf32, #tpu.memory_space<vmem>>, %arg7: memref<1x64xf32, #tpu.memory_space<vmem>>, %arg8: memref<64x64xf32, #tpu.memory_space<vmem>>) attributes {dimension_semantics = [], scalar_prefetch = 0 : i64, scratch_operands = 0 : i64, tpu.core_type = #tpu.core_type<tc>} {
    %c0 = arith.constant 0 : index
    %c0_0 = arith.constant 0 : index
    %0 = vector.load %arg1[%c0, %c0_0] : memref<64x64xbf16, #tpu.memory_space<vmem>>, vector<64x64xbf16>
    %c0_1 = arith.constant 0 : index
    %c0_2 = arith.constant 0 : index
    %1 = vector.load %arg0[%c0_1, %c0_2] : memref<64x8xf32, #tpu.memory_space<vmem>>, vector<64x8xf32>
    %2 = arith.truncf %1 : vector<64x8xf32> to vector<64x8xbf16>
    %c0_3 = arith.constant 0 : index
    %c0_4 = arith.constant 0 : index
    %c0_5 = arith.constant 0 : index
    %3 = vector.load %arg2[%c0_3, %c0_4, %c0_5] : memref<3x8x16xf32, #tpu.memory_space<vmem>>, vector<1x8x16xf32>
    %4 = vector.shape_cast %3 : vector<1x8x16xf32> to vector<8x16xf32>
    %5 = arith.truncf %4 : vector<8x16xf32> to vector<8x16xbf16>
    %cst = arith.constant dense<0.000000e+00> : vector<64x16xf32>
    %6 = tpu.matmul %2, %5, %cst {dimension_numbers = #tpu.dot_dimension_numbers<[1], [0], [0], [1], [0, 0, 1, 1], [], []>} : vector<64x8xbf16>, vector<8x16xbf16>, vector<64x16xf32> -> vector<64x16xf32>
    %7 = arith.truncf %1 : vector<64x8xf32> to vector<64x8xbf16>
    %cst_6 = arith.constant dense<0.000000e+00> : vector<64x8xf32>
    %8 = tpu.matmul %0, %7, %cst_6 {dimension_numbers = #tpu.dot_dimension_numbers<[1], [0], [0], [1], [0, 0, 1, 1], [], []>} : vector<64x64xbf16>, vector<64x8xbf16>, vector<64x8xf32> -> vector<64x8xf32>
    %9 = arith.truncf %8 : vector<64x8xf32> to vector<64x8xbf16>
    %c1 = arith.constant 1 : index
    %c0_7 = arith.constant 0 : index
    %c0_8 = arith.constant 0 : index
    %10 = vector.load %arg2[%c1, %c0_7, %c0_8] : memref<3x8x16xf32, #tpu.memory_space<vmem>>, vector<1x8x16xf32>
    %11 = vector.shape_cast %10 : vector<1x8x16xf32> to vector<8x16xf32>
    %12 = arith.truncf %11 : vector<8x16xf32> to vector<8x16xbf16>
    %cst_9 = arith.constant dense<0.000000e+00> : vector<64x16xf32>
    %13 = tpu.matmul %9, %12, %cst_9 {dimension_numbers = #tpu.dot_dimension_numbers<[1], [0], [0], [1], [0, 0, 1, 1], [], []>} : vector<64x8xbf16>, vector<8x16xbf16>, vector<64x16xf32> -> vector<64x16xf32>
    %14 = arith.addf %6, %13 : vector<64x16xf32>
    %15 = arith.truncf %8 : vector<64x8xf32> to vector<64x8xbf16>
    %cst_10 = arith.constant dense<0.000000e+00> : vector<64x8xf32>
    %16 = tpu.matmul %0, %15, %cst_10 {dimension_numbers = #tpu.dot_dimension_numbers<[1], [0], [0], [1], [0, 0, 1, 1], [], []>} : vector<64x64xbf16>, vector<64x8xbf16>, vector<64x8xf32> -> vector<64x8xf32>
    %17 = arith.truncf %16 : vector<64x8xf32> to vector<64x8xbf16>
    %c2 = arith.constant 2 : index
    %c0_11 = arith.constant 0 : index
    %c0_12 = arith.constant 0 : index
    %18 = vector.load %arg2[%c2, %c0_11, %c0_12] : memref<3x8x16xf32, #tpu.memory_space<vmem>>, vector<1x8x16xf32>
    %19 = vector.shape_cast %18 : vector<1x8x16xf32> to vector<8x16xf32>
    %20 = arith.truncf %19 : vector<8x16xf32> to vector<8x16xbf16>
    %cst_13 = arith.constant dense<0.000000e+00> : vector<64x16xf32>
    %21 = tpu.matmul %17, %20, %cst_13 {dimension_numbers = #tpu.dot_dimension_numbers<[1], [0], [0], [1], [0, 0, 1, 1], [], []>} : vector<64x8xbf16>, vector<8x16xbf16>, vector<64x16xf32> -> vector<64x16xf32>
    %22 = arith.addf %14, %21 : vector<64x16xf32>
    %c0_14 = arith.constant 0 : index
    %c0_15 = arith.constant 0 : index
    %23 = vector.load %arg3[%c0_14, %c0_15] : memref<1x16xf32, #tpu.memory_space<vmem>>, vector<1x16xf32>
    %24 = vector.broadcast %23 : vector<1x16xf32> to vector<64x16xf32>
    %25 = arith.addf %22, %24 : vector<64x16xf32>
    %cst_16 = arith.constant 0.000000e+00 : f32
    %26 = vector.broadcast %cst_16 : f32 to vector<64x16xf32>
    %27 = arith.maximumf %25, %26 : vector<64x16xf32>
    %28 = arith.truncf %27 : vector<64x16xf32> to vector<64x16xbf16>
    %c0_17 = arith.constant 0 : index
    %c0_18 = arith.constant 0 : index
    %c0_19 = arith.constant 0 : index
    %29 = vector.load %arg4[%c0_17, %c0_18, %c0_19] : memref<3x16x32xf32, #tpu.memory_space<vmem>>, vector<1x16x32xf32>
    %30 = vector.shape_cast %29 : vector<1x16x32xf32> to vector<16x32xf32>
    %31 = arith.truncf %30 : vector<16x32xf32> to vector<16x32xbf16>
    %cst_20 = arith.constant dense<0.000000e+00> : vector<64x32xf32>
    %32 = tpu.matmul %28, %31, %cst_20 {dimension_numbers = #tpu.dot_dimension_numbers<[1], [0], [0], [1], [0, 0, 1, 1], [], []>} : vector<64x16xbf16>, vector<16x32xbf16>, vector<64x32xf32> -> vector<64x32xf32>
    %33 = arith.truncf %27 : vector<64x16xf32> to vector<64x16xbf16>
    %cst_21 = arith.constant dense<0.000000e+00> : vector<64x16xf32>
    %34 = tpu.matmul %0, %33, %cst_21 {dimension_numbers = #tpu.dot_dimension_numbers<[1], [0], [0], [1], [0, 0, 1, 1], [], []>} : vector<64x64xbf16>, vector<64x16xbf16>, vector<64x16xf32> -> vector<64x16xf32>
    %35 = arith.truncf %34 : vector<64x16xf32> to vector<64x16xbf16>
    %c1_22 = arith.constant 1 : index
    %c0_23 = arith.constant 0 : index
    %c0_24 = arith.constant 0 : index
    %36 = vector.load %arg4[%c1_22, %c0_23, %c0_24] : memref<3x16x32xf32, #tpu.memory_space<vmem>>, vector<1x16x32xf32>
    %37 = vector.shape_cast %36 : vector<1x16x32xf32> to vector<16x32xf32>
    %38 = arith.truncf %37 : vector<16x32xf32> to vector<16x32xbf16>
    %cst_25 = arith.constant dense<0.000000e+00> : vector<64x32xf32>
    %39 = tpu.matmul %35, %38, %cst_25 {dimension_numbers = #tpu.dot_dimension_numbers<[1], [0], [0], [1], [0, 0, 1, 1], [], []>} : vector<64x16xbf16>, vector<16x32xbf16>, vector<64x32xf32> -> vector<64x32xf32>
    %40 = arith.addf %32, %39 : vector<64x32xf32>
    %41 = arith.truncf %34 : vector<64x16xf32> to vector<64x16xbf16>
    %cst_26 = arith.constant dense<0.000000e+00> : vector<64x16xf32>
    %42 = tpu.matmul %0, %41, %cst_26 {dimension_numbers = #tpu.dot_dimension_numbers<[1], [0], [0], [1], [0, 0, 1, 1], [], []>} : vector<64x64xbf16>, vector<64x16xbf16>, vector<64x16xf32> -> vector<64x16xf32>
    %43 = arith.truncf %42 : vector<64x16xf32> to vector<64x16xbf16>
    %c2_27 = arith.constant 2 : index
    %c0_28 = arith.constant 0 : index
    %c0_29 = arith.constant 0 : index
    %44 = vector.load %arg4[%c2_27, %c0_28, %c0_29] : memref<3x16x32xf32, #tpu.memory_space<vmem>>, vector<1x16x32xf32>
    %45 = vector.shape_cast %44 : vector<1x16x32xf32> to vector<16x32xf32>
    %46 = arith.truncf %45 : vector<16x32xf32> to vector<16x32xbf16>
    %cst_30 = arith.constant dense<0.000000e+00> : vector<64x32xf32>
    %47 = tpu.matmul %43, %46, %cst_30 {dimension_numbers = #tpu.dot_dimension_numbers<[1], [0], [0], [1], [0, 0, 1, 1], [], []>} : vector<64x16xbf16>, vector<16x32xbf16>, vector<64x32xf32> -> vector<64x32xf32>
    %48 = arith.addf %40, %47 : vector<64x32xf32>
    %c0_31 = arith.constant 0 : index
    %c0_32 = arith.constant 0 : index
    %49 = vector.load %arg5[%c0_31, %c0_32] : memref<1x32xf32, #tpu.memory_space<vmem>>, vector<1x32xf32>
    %50 = vector.broadcast %49 : vector<1x32xf32> to vector<64x32xf32>
    %51 = arith.addf %48, %50 : vector<64x32xf32>
    %cst_33 = arith.constant 0.000000e+00 : f32
    %52 = vector.broadcast %cst_33 : f32 to vector<64x32xf32>
    %53 = arith.maximumf %51, %52 : vector<64x32xf32>
    %54 = arith.truncf %53 : vector<64x32xf32> to vector<64x32xbf16>
    %c0_34 = arith.constant 0 : index
    %c0_35 = arith.constant 0 : index
    %c0_36 = arith.constant 0 : index
    %55 = vector.load %arg6[%c0_34, %c0_35, %c0_36] : memref<3x32x64xf32, #tpu.memory_space<vmem>>, vector<1x32x64xf32>
    %56 = vector.shape_cast %55 : vector<1x32x64xf32> to vector<32x64xf32>
    %57 = arith.truncf %56 : vector<32x64xf32> to vector<32x64xbf16>
    %cst_37 = arith.constant dense<0.000000e+00> : vector<64x64xf32>
    %58 = tpu.matmul %54, %57, %cst_37 {dimension_numbers = #tpu.dot_dimension_numbers<[1], [0], [0], [1], [0, 0, 1, 1], [], []>} : vector<64x32xbf16>, vector<32x64xbf16>, vector<64x64xf32> -> vector<64x64xf32>
    %59 = arith.truncf %53 : vector<64x32xf32> to vector<64x32xbf16>
    %cst_38 = arith.constant dense<0.000000e+00> : vector<64x32xf32>
    %60 = tpu.matmul %0, %59, %cst_38 {dimension_numbers = #tpu.dot_dimension_numbers<[1], [0], [0], [1], [0, 0, 1, 1], [], []>} : vector<64x64xbf16>, vector<64x32xbf16>, vector<64x32xf32> -> vector<64x32xf32>
    %61 = arith.truncf %60 : vector<64x32xf32> to vector<64x32xbf16>
    %c1_39 = arith.constant 1 : index
    %c0_40 = arith.constant 0 : index
    %c0_41 = arith.constant 0 : index
    %62 = vector.load %arg6[%c1_39, %c0_40, %c0_41] : memref<3x32x64xf32, #tpu.memory_space<vmem>>, vector<1x32x64xf32>
    %63 = vector.shape_cast %62 : vector<1x32x64xf32> to vector<32x64xf32>
    %64 = arith.truncf %63 : vector<32x64xf32> to vector<32x64xbf16>
    %cst_42 = arith.constant dense<0.000000e+00> : vector<64x64xf32>
    %65 = tpu.matmul %61, %64, %cst_42 {dimension_numbers = #tpu.dot_dimension_numbers<[1], [0], [0], [1], [0, 0, 1, 1], [], []>} : vector<64x32xbf16>, vector<32x64xbf16>, vector<64x64xf32> -> vector<64x64xf32>
    %66 = arith.addf %58, %65 : vector<64x64xf32>
    %67 = arith.truncf %60 : vector<64x32xf32> to vector<64x32xbf16>
    %cst_43 = arith.constant dense<0.000000e+00> : vector<64x32xf32>
    %68 = tpu.matmul %0, %67, %cst_43 {dimension_numbers = #tpu.dot_dimension_numbers<[1], [0], [0], [1], [0, 0, 1, 1], [], []>} : vector<64x64xbf16>, vector<64x32xbf16>, vector<64x32xf32> -> vector<64x32xf32>
    %69 = arith.truncf %68 : vector<64x32xf32> to vector<64x32xbf16>
    %c2_44 = arith.constant 2 : index
    %c0_45 = arith.constant 0 : index
    %c0_46 = arith.constant 0 : index
    %70 = vector.load %arg6[%c2_44, %c0_45, %c0_46] : memref<3x32x64xf32, #tpu.memory_space<vmem>>, vector<1x32x64xf32>
    %71 = vector.shape_cast %70 : vector<1x32x64xf32> to vector<32x64xf32>
    %72 = arith.truncf %71 : vector<32x64xf32> to vector<32x64xbf16>
    %cst_47 = arith.constant dense<0.000000e+00> : vector<64x64xf32>
    %73 = tpu.matmul %69, %72, %cst_47 {dimension_numbers = #tpu.dot_dimension_numbers<[1], [0], [0], [1], [0, 0, 1, 1], [], []>} : vector<64x32xbf16>, vector<32x64xbf16>, vector<64x64xf32> -> vector<64x64xf32>
    %74 = arith.addf %66, %73 : vector<64x64xf32>
    %c0_48 = arith.constant 0 : index
    %c0_49 = arith.constant 0 : index
    %75 = vector.load %arg7[%c0_48, %c0_49] : memref<1x64xf32, #tpu.memory_space<vmem>>, vector<1x64xf32>
    %76 = vector.broadcast %75 : vector<1x64xf32> to vector<64x64xf32>
    %77 = arith.addf %74, %76 : vector<64x64xf32>
    %cst_50 = arith.constant 0.000000e+00 : f32
    %78 = vector.broadcast %cst_50 : f32 to vector<64x64xf32>
    %79 = arith.maximumf %77, %78 : vector<64x64xf32>
    %c0_51 = arith.constant 0 : index
    %c0_52 = arith.constant 0 : index
    %80 = vector.load %arg8[%c0_51, %c0_52] : memref<64x64xf32, #tpu.memory_space<vmem>>, vector<64x64xf32>
    tpu.vector_store %arg8[%c0_51, %c0_52], %79 {strides = array<i32>} : memref<64x64xf32, #tpu.memory_space<vmem>>, vector<64x64xf32>,
    return
  }
}

module attributes {stable_mosaic.version = 11 : i64} {
  func.func @_enc_gru_kernel(%arg0: memref<64x64xf32, #tpu.memory_space<vmem>>, %arg1: memref<64x384xbf16, #tpu.memory_space<vmem>>, %arg2: memref<128x384xbf16, #tpu.memory_space<vmem>>, %arg3: memref<1x384xf32, #tpu.memory_space<vmem>>, %arg4: memref<1x384xf32, #tpu.memory_space<vmem>>, %arg5: memref<16x128xf32, #tpu.memory_space<vmem>>) attributes {dimension_semantics = [], scalar_prefetch = 0 : i64, scratch_operands = 0 : i64, tpu.core_type = #tpu.core_type<tc>} {
    %c0 = arith.constant 0 : index
    %c0_0 = arith.constant 0 : index
    %0 = vector.load %arg0[%c0, %c0_0] : memref<64x64xf32, #tpu.memory_space<vmem>>, vector<64x64xf32>
    %1 = arith.truncf %0 : vector<64x64xf32> to vector<64x64xbf16>
    %c0_1 = arith.constant 0 : index
    %c0_2 = arith.constant 0 : index
    %2 = vector.load %arg1[%c0_1, %c0_2] : memref<64x384xbf16, #tpu.memory_space<vmem>>, vector<64x384xbf16>
    %cst = arith.constant dense<0.000000e+00> : vector<64x384xf32>
    %3 = tpu.matmul %1, %2, %cst {dimension_numbers = #tpu.dot_dimension_numbers<[1], [0], [0], [1], [0, 0, 1, 1], [], []>} : vector<64x64xbf16>, vector<64x384xbf16>, vector<64x384xf32> -> vector<64x384xf32>
    %c0_3 = arith.constant 0 : index
    %c0_4 = arith.constant 0 : index
    %4 = vector.load %arg3[%c0_3, %c0_4] : memref<1x384xf32, #tpu.memory_space<vmem>>, vector<1x384xf32>
    %5 = vector.broadcast %4 : vector<1x384xf32> to vector<64x384xf32>
    %6 = arith.addf %3, %5 : vector<64x384xf32>
    %c0_5 = arith.constant 0 : index
    %c0_6 = arith.constant 0 : index
    %7 = vector.load %arg2[%c0_5, %c0_6] : memref<128x384xbf16, #tpu.memory_space<vmem>>, vector<128x384xbf16>
    %c0_7 = arith.constant 0 : index
    %c0_8 = arith.constant 0 : index
    %8 = vector.load %arg4[%c0_7, %c0_8] : memref<1x384xf32, #tpu.memory_space<vmem>>, vector<1x384xf32>
    %cst_9 = arith.constant 0.000000e+00 : f32
    %9 = vector.broadcast %cst_9 : f32 to vector<16x128xf32>
    %10 = vector.extract_strided_slice %6 {offsets = [0, 0], sizes = [16, 384], strides = [1, 1]} : vector<64x384xf32> to vector<16x384xf32>
    %11 = arith.truncf %9 : vector<16x128xf32> to vector<16x128xbf16>
    %cst_10 = arith.constant dense<0.000000e+00> : vector<16x384xf32>
    %12 = tpu.matmul %11, %7, %cst_10 {dimension_numbers = #tpu.dot_dimension_numbers<[1], [0], [0], [1], [0, 0, 1, 1], [], []>} : vector<16x128xbf16>, vector<128x384xbf16>, vector<16x384xf32> -> vector<16x384xf32>
    %13 = vector.broadcast %8 : vector<1x384xf32> to vector<16x384xf32>
    %14 = arith.addf %12, %13 : vector<16x384xf32>
    %15 = vector.extract_strided_slice %10 {offsets = [0, 0], sizes = [16, 128], strides = [1, 1]} : vector<16x384xf32> to vector<16x128xf32>
    %16 = vector.extract_strided_slice %14 {offsets = [0, 0], sizes = [16, 128], strides = [1, 1]} : vector<16x384xf32> to vector<16x128xf32>
    %17 = arith.addf %15, %16 : vector<16x128xf32>
    %18 = arith.negf %17 : vector<16x128xf32>
    %19 = math.exp %18 : vector<16x128xf32>
    %cst_11 = arith.constant 1.000000e+00 : f32
    %20 = vector.broadcast %cst_11 : f32 to vector<16x128xf32>
    %21 = arith.addf %20, %19 : vector<16x128xf32>
    %22 = arith.divf %20, %21 : vector<16x128xf32>
    %23 = vector.extract_strided_slice %10 {offsets = [0, 128], sizes = [16, 128], strides = [1, 1]} : vector<16x384xf32> to vector<16x128xf32>
    %24 = vector.extract_strided_slice %14 {offsets = [0, 128], sizes = [16, 128], strides = [1, 1]} : vector<16x384xf32> to vector<16x128xf32>
    %25 = arith.addf %23, %24 : vector<16x128xf32>
    %26 = arith.negf %25 : vector<16x128xf32>
    %27 = math.exp %26 : vector<16x128xf32>
    %cst_12 = arith.constant 1.000000e+00 : f32
    %28 = vector.broadcast %cst_12 : f32 to vector<16x128xf32>
    %29 = arith.addf %28, %27 : vector<16x128xf32>
    %30 = arith.divf %28, %29 : vector<16x128xf32>
    %31 = vector.extract_strided_slice %10 {offsets = [0, 256], sizes = [16, 128], strides = [1, 1]} : vector<16x384xf32> to vector<16x128xf32>
    %32 = vector.extract_strided_slice %14 {offsets = [0, 256], sizes = [16, 128], strides = [1, 1]} : vector<16x384xf32> to vector<16x128xf32>
    %33 = arith.mulf %22, %32 : vector<16x128xf32>
    %34 = arith.addf %31, %33 : vector<16x128xf32>
    %35 = math.tanh %34 : vector<16x128xf32>
    %cst_13 = arith.constant 1.000000e+00 : f32
    %36 = vector.broadcast %cst_13 : f32 to vector<16x128xf32>
    %37 = arith.subf %36, %30 : vector<16x128xf32>
    %38 = arith.mulf %37, %35 : vector<16x128xf32>
    %39 = arith.mulf %30, %9 : vector<16x128xf32>
    %40 = arith.addf %38, %39 : vector<16x128xf32>
    %41 = vector.extract_strided_slice %6 {offsets = [16, 0], sizes = [16, 384], strides = [1, 1]} : vector<64x384xf32> to vector<16x384xf32>
    %42 = arith.truncf %40 : vector<16x128xf32> to vector<16x128xbf16>
    %cst_14 = arith.constant dense<0.000000e+00> : vector<16x384xf32>
    %43 = tpu.matmul %42, %7, %cst_14 {dimension_numbers = #tpu.dot_dimension_numbers<[1], [0], [0], [1], [0, 0, 1, 1], [], []>} : vector<16x128xbf16>, vector<128x384xbf16>, vector<16x384xf32> -> vector<16x384xf32>
    %44 = vector.broadcast %8 : vector<1x384xf32> to vector<16x384xf32>
    %45 = arith.addf %43, %44 : vector<16x384xf32>
    %46 = vector.extract_strided_slice %41 {offsets = [0, 0], sizes = [16, 128], strides = [1, 1]} : vector<16x384xf32> to vector<16x128xf32>
    %47 = vector.extract_strided_slice %45 {offsets = [0, 0], sizes = [16, 128], strides = [1, 1]} : vector<16x384xf32> to vector<16x128xf32>
    %48 = arith.addf %46, %47 : vector<16x128xf32>
    %49 = arith.negf %48 : vector<16x128xf32>
    %50 = math.exp %49 : vector<16x128xf32>
    %cst_15 = arith.constant 1.000000e+00 : f32
    %51 = vector.broadcast %cst_15 : f32 to vector<16x128xf32>
    %52 = arith.addf %51, %50 : vector<16x128xf32>
    %53 = arith.divf %51, %52 : vector<16x128xf32>
    %54 = vector.extract_strided_slice %41 {offsets = [0, 128], sizes = [16, 128], strides = [1, 1]} : vector<16x384xf32> to vector<16x128xf32>
    %55 = vector.extract_strided_slice %45 {offsets = [0, 128], sizes = [16, 128], strides = [1, 1]} : vector<16x384xf32> to vector<16x128xf32>
    %56 = arith.addf %54, %55 : vector<16x128xf32>
    %57 = arith.negf %56 : vector<16x128xf32>
    %58 = math.exp %57 : vector<16x128xf32>
    %cst_16 = arith.constant 1.000000e+00 : f32
    %59 = vector.broadcast %cst_16 : f32 to vector<16x128xf32>
    %60 = arith.addf %59, %58 : vector<16x128xf32>
    %61 = arith.divf %59, %60 : vector<16x128xf32>
    %62 = vector.extract_strided_slice %41 {offsets = [0, 256], sizes = [16, 128], strides = [1, 1]} : vector<16x384xf32> to vector<16x128xf32>
    %63 = vector.extract_strided_slice %45 {offsets = [0, 256], sizes = [16, 128], strides = [1, 1]} : vector<16x384xf32> to vector<16x128xf32>
    %64 = arith.mulf %53, %63 : vector<16x128xf32>
    %65 = arith.addf %62, %64 : vector<16x128xf32>
    %66 = math.tanh %65 : vector<16x128xf32>
    %cst_17 = arith.constant 1.000000e+00 : f32
    %67 = vector.broadcast %cst_17 : f32 to vector<16x128xf32>
    %68 = arith.subf %67, %61 : vector<16x128xf32>
    %69 = arith.mulf %68, %66 : vector<16x128xf32>
    %70 = arith.mulf %61, %40 : vector<16x128xf32>
    %71 = arith.addf %69, %70 : vector<16x128xf32>
    %72 = vector.extract_strided_slice %6 {offsets = [32, 0], sizes = [16, 384], strides = [1, 1]} : vector<64x384xf32> to vector<16x384xf32>
    %73 = arith.truncf %71 : vector<16x128xf32> to vector<16x128xbf16>
    %cst_18 = arith.constant dense<0.000000e+00> : vector<16x384xf32>
    %74 = tpu.matmul %73, %7, %cst_18 {dimension_numbers = #tpu.dot_dimension_numbers<[1], [0], [0], [1], [0, 0, 1, 1], [], []>} : vector<16x128xbf16>, vector<128x384xbf16>, vector<16x384xf32> -> vector<16x384xf32>
    %75 = vector.broadcast %8 : vector<1x384xf32> to vector<16x384xf32>
    %76 = arith.addf %74, %75 : vector<16x384xf32>
    %77 = vector.extract_strided_slice %72 {offsets = [0, 0], sizes = [16, 128], strides = [1, 1]} : vector<16x384xf32> to vector<16x128xf32>
    %78 = vector.extract_strided_slice %76 {offsets = [0, 0], sizes = [16, 128], strides = [1, 1]} : vector<16x384xf32> to vector<16x128xf32>
    %79 = arith.addf %77, %78 : vector<16x128xf32>
    %80 = arith.negf %79 : vector<16x128xf32>
    %81 = math.exp %80 : vector<16x128xf32>
    %cst_19 = arith.constant 1.000000e+00 : f32
    %82 = vector.broadcast %cst_19 : f32 to vector<16x128xf32>
    %83 = arith.addf %82, %81 : vector<16x128xf32>
    %84 = arith.divf %82, %83 : vector<16x128xf32>
    %85 = vector.extract_strided_slice %72 {offsets = [0, 128], sizes = [16, 128], strides = [1, 1]} : vector<16x384xf32> to vector<16x128xf32>
    %86 = vector.extract_strided_slice %76 {offsets = [0, 128], sizes = [16, 128], strides = [1, 1]} : vector<16x384xf32> to vector<16x128xf32>
    %87 = arith.addf %85, %86 : vector<16x128xf32>
    %88 = arith.negf %87 : vector<16x128xf32>
    %89 = math.exp %88 : vector<16x128xf32>
    %cst_20 = arith.constant 1.000000e+00 : f32
    %90 = vector.broadcast %cst_20 : f32 to vector<16x128xf32>
    %91 = arith.addf %90, %89 : vector<16x128xf32>
    %92 = arith.divf %90, %91 : vector<16x128xf32>
    %93 = vector.extract_strided_slice %72 {offsets = [0, 256], sizes = [16, 128], strides = [1, 1]} : vector<16x384xf32> to vector<16x128xf32>
    %94 = vector.extract_strided_slice %76 {offsets = [0, 256], sizes = [16, 128], strides = [1, 1]} : vector<16x384xf32> to vector<16x128xf32>
    %95 = arith.mulf %84, %94 : vector<16x128xf32>
    %96 = arith.addf %93, %95 : vector<16x128xf32>
    %97 = math.tanh %96 : vector<16x128xf32>
    %cst_21 = arith.constant 1.000000e+00 : f32
    %98 = vector.broadcast %cst_21 : f32 to vector<16x128xf32>
    %99 = arith.subf %98, %92 : vector<16x128xf32>
    %100 = arith.mulf %99, %97 : vector<16x128xf32>
    %101 = arith.mulf %92, %71 : vector<16x128xf32>
    %102 = arith.addf %100, %101 : vector<16x128xf32>
    %103 = vector.extract_strided_slice %6 {offsets = [48, 0], sizes = [16, 384], strides = [1, 1]} : vector<64x384xf32> to vector<16x384xf32>
    %104 = arith.truncf %102 : vector<16x128xf32> to vector<16x128xbf16>
    %cst_22 = arith.constant dense<0.000000e+00> : vector<16x384xf32>
    %105 = tpu.matmul %104, %7, %cst_22 {dimension_numbers = #tpu.dot_dimension_numbers<[1], [0], [0], [1], [0, 0, 1, 1], [], []>} : vector<16x128xbf16>, vector<128x384xbf16>, vector<16x384xf32> -> vector<16x384xf32>
    %106 = vector.broadcast %8 : vector<1x384xf32> to vector<16x384xf32>
    %107 = arith.addf %105, %106 : vector<16x384xf32>
    %108 = vector.extract_strided_slice %103 {offsets = [0, 0], sizes = [16, 128], strides = [1, 1]} : vector<16x384xf32> to vector<16x128xf32>
    %109 = vector.extract_strided_slice %107 {offsets = [0, 0], sizes = [16, 128], strides = [1, 1]} : vector<16x384xf32> to vector<16x128xf32>
    %110 = arith.addf %108, %109 : vector<16x128xf32>
    %111 = arith.negf %110 : vector<16x128xf32>
    %112 = math.exp %111 : vector<16x128xf32>
    %cst_23 = arith.constant 1.000000e+00 : f32
    %113 = vector.broadcast %cst_23 : f32 to vector<16x128xf32>
    %114 = arith.addf %113, %112 : vector<16x128xf32>
    %115 = arith.divf %113, %114 : vector<16x128xf32>
    %116 = vector.extract_strided_slice %103 {offsets = [0, 128], sizes = [16, 128], strides = [1, 1]} : vector<16x384xf32> to vector<16x128xf32>
    %117 = vector.extract_strided_slice %107 {offsets = [0, 128], sizes = [16, 128], strides = [1, 1]} : vector<16x384xf32> to vector<16x128xf32>
    %118 = arith.addf %116, %117 : vector<16x128xf32>
    %119 = arith.negf %118 : vector<16x128xf32>
    %120 = math.exp %119 : vector<16x128xf32>
    %cst_24 = arith.constant 1.000000e+00 : f32
    %121 = vector.broadcast %cst_24 : f32 to vector<16x128xf32>
    %122 = arith.addf %121, %120 : vector<16x128xf32>
    %123 = arith.divf %121, %122 : vector<16x128xf32>
    %124 = vector.extract_strided_slice %103 {offsets = [0, 256], sizes = [16, 128], strides = [1, 1]} : vector<16x384xf32> to vector<16x128xf32>
    %125 = vector.extract_strided_slice %107 {offsets = [0, 256], sizes = [16, 128], strides = [1, 1]} : vector<16x384xf32> to vector<16x128xf32>
    %126 = arith.mulf %115, %125 : vector<16x128xf32>
    %127 = arith.addf %124, %126 : vector<16x128xf32>
    %128 = math.tanh %127 : vector<16x128xf32>
    %cst_25 = arith.constant 1.000000e+00 : f32
    %129 = vector.broadcast %cst_25 : f32 to vector<16x128xf32>
    %130 = arith.subf %129, %123 : vector<16x128xf32>
    %131 = arith.mulf %130, %128 : vector<16x128xf32>
    %132 = arith.mulf %123, %102 : vector<16x128xf32>
    %133 = arith.addf %131, %132 : vector<16x128xf32>
    %c0_26 = arith.constant 0 : index
    %c0_27 = arith.constant 0 : index
    %134 = vector.load %arg5[%c0_26, %c0_27] : memref<16x128xf32, #tpu.memory_space<vmem>>, vector<16x128xf32>
    tpu.vector_store %arg5[%c0_26, %c0_27], %133 {strides = array<i32>} : memref<16x128xf32, #tpu.memory_space<vmem>>, vector<16x128xf32>,
    return
  }
}

module attributes {stable_mosaic.version = 11 : i64} {
  func.func @_dec_gru_fc_kernel(%arg0: memref<16x128xf32, #tpu.memory_space<vmem>>, %arg1: memref<128x384xbf16, #tpu.memory_space<vmem>>, %arg2: memref<128x384xbf16, #tpu.memory_space<vmem>>, %arg3: memref<1x384xf32, #tpu.memory_space<vmem>>, %arg4: memref<1x384xf32, #tpu.memory_space<vmem>>, %arg5: memref<128x1xf32, #tpu.memory_space<vmem>>, %arg6: memref<384x1xf32, #tpu.memory_space<vmem>>, %arg7: memref<384x128xf32, #tpu.memory_space<vmem>>) attributes {dimension_semantics = [], scalar_prefetch = 0 : i64, scratch_operands = 1 : i64, tpu.core_type = #tpu.core_type<tc>} {
    %c0 = arith.constant 0 : index
    %c0_0 = arith.constant 0 : index
    %0 = vector.load %arg0[%c0, %c0_0] : memref<16x128xf32, #tpu.memory_space<vmem>>, vector<16x128xf32>
    %1 = arith.truncf %0 : vector<16x128xf32> to vector<16x128xbf16>
    %c0_1 = arith.constant 0 : index
    %c0_2 = arith.constant 0 : index
    %2 = vector.load %arg1[%c0_1, %c0_2] : memref<128x384xbf16, #tpu.memory_space<vmem>>, vector<128x384xbf16>
    %cst = arith.constant dense<0.000000e+00> : vector<16x384xf32>
    %3 = tpu.matmul %1, %2, %cst {dimension_numbers = #tpu.dot_dimension_numbers<[1], [0], [0], [1], [0, 0, 1, 1], [], []>} : vector<16x128xbf16>, vector<128x384xbf16>, vector<16x384xf32> -> vector<16x384xf32>
    %c0_3 = arith.constant 0 : index
    %c0_4 = arith.constant 0 : index
    %4 = vector.load %arg3[%c0_3, %c0_4] : memref<1x384xf32, #tpu.memory_space<vmem>>, vector<1x384xf32>
    %5 = vector.broadcast %4 : vector<1x384xf32> to vector<16x384xf32>
    %6 = arith.addf %3, %5 : vector<16x384xf32>
    %c0_5 = arith.constant 0 : index
    %c0_6 = arith.constant 0 : index
    %7 = vector.load %arg2[%c0_5, %c0_6] : memref<128x384xbf16, #tpu.memory_space<vmem>>, vector<128x384xbf16>
    %c0_7 = arith.constant 0 : index
    %c0_8 = arith.constant 0 : index
    %8 = vector.load %arg4[%c0_7, %c0_8] : memref<1x384xf32, #tpu.memory_space<vmem>>, vector<1x384xf32>
    %cst_9 = arith.constant 0.000000e+00 : f32
    %9 = vector.broadcast %cst_9 : f32 to vector<16x128xf32>
    %10 = arith.truncf %9 : vector<16x128xf32> to vector<16x128xbf16>
    %cst_10 = arith.constant dense<0.000000e+00> : vector<16x384xf32>
    %11 = tpu.matmul %10, %7, %cst_10 {dimension_numbers = #tpu.dot_dimension_numbers<[1], [0], [0], [1], [0, 0, 1, 1], [], []>} : vector<16x128xbf16>, vector<128x384xbf16>, vector<16x384xf32> -> vector<16x384xf32>
    %12 = vector.broadcast %8 : vector<1x384xf32> to vector<16x384xf32>
    %13 = arith.addf %11, %12 : vector<16x384xf32>
    %14 = vector.extract_strided_slice %6 {offsets = [0, 0], sizes = [16, 128], strides = [1, 1]} : vector<16x384xf32> to vector<16x128xf32>
    %15 = vector.extract_strided_slice %13 {offsets = [0, 0], sizes = [16, 128], strides = [1, 1]} : vector<16x384xf32> to vector<16x128xf32>
    %16 = arith.addf %14, %15 : vector<16x128xf32>
    %17 = arith.negf %16 : vector<16x128xf32>
    %18 = math.exp %17 : vector<16x128xf32>
    %cst_11 = arith.constant 1.000000e+00 : f32
    %19 = vector.broadcast %cst_11 : f32 to vector<16x128xf32>
    %20 = arith.addf %19, %18 : vector<16x128xf32>
    %21 = arith.divf %19, %20 : vector<16x128xf32>
    %22 = vector.extract_strided_slice %6 {offsets = [0, 128], sizes = [16, 128], strides = [1, 1]} : vector<16x384xf32> to vector<16x128xf32>
    %23 = vector.extract_strided_slice %13 {offsets = [0, 128], sizes = [16, 128], strides = [1, 1]} : vector<16x384xf32> to vector<16x128xf32>
    %24 = arith.addf %22, %23 : vector<16x128xf32>
    %25 = arith.negf %24 : vector<16x128xf32>
    %26 = math.exp %25 : vector<16x128xf32>
    %cst_12 = arith.constant 1.000000e+00 : f32
    %27 = vector.broadcast %cst_12 : f32 to vector<16x128xf32>
    %28 = arith.addf %27, %26 : vector<16x128xf32>
    %29 = arith.divf %27, %28 : vector<16x128xf32>
    %30 = vector.extract_strided_slice %6 {offsets = [0, 256], sizes = [16, 128], strides = [1, 1]} : vector<16x384xf32> to vector<16x128xf32>
    %31 = vector.extract_strided_slice %13 {offsets = [0, 256], sizes = [16, 128], strides = [1, 1]} : vector<16x384xf32> to vector<16x128xf32>
    %32 = arith.mulf %21, %31 : vector<16x128xf32>
    %33 = arith.addf %30, %32 : vector<16x128xf32>
    %34 = math.tanh %33 : vector<16x128xf32>
    %cst_13 = arith.constant 1.000000e+00 : f32
    %35 = vector.broadcast %cst_13 : f32 to vector<16x128xf32>
    %36 = arith.subf %35, %29 : vector<16x128xf32>
    %37 = arith.mulf %36, %34 : vector<16x128xf32>
    %38 = arith.mulf %29, %9 : vector<16x128xf32>
    %39 = arith.addf %37, %38 : vector<16x128xf32>
    %c0_14 = arith.constant 0 : index
    %c0_15 = arith.constant 0 : index
    %40 = vector.load %arg7[%c0_14, %c0_15] : memref<384x128xf32, #tpu.memory_space<vmem>>, vector<16x128xf32>
    tpu.vector_store %arg7[%c0_14, %c0_15], %39 {strides = array<i32>} : memref<384x128xf32, #tpu.memory_space<vmem>>, vector<16x128xf32>,
    %41 = arith.truncf %39 : vector<16x128xf32> to vector<16x128xbf16>
    %cst_16 = arith.constant dense<0.000000e+00> : vector<16x384xf32>
    %42 = tpu.matmul %41, %7, %cst_16 {dimension_numbers = #tpu.dot_dimension_numbers<[1], [0], [0], [1], [0, 0, 1, 1], [], []>} : vector<16x128xbf16>, vector<128x384xbf16>, vector<16x384xf32> -> vector<16x384xf32>
    %43 = vector.broadcast %8 : vector<1x384xf32> to vector<16x384xf32>
    %44 = arith.addf %42, %43 : vector<16x384xf32>
    %45 = vector.extract_strided_slice %6 {offsets = [0, 0], sizes = [16, 128], strides = [1, 1]} : vector<16x384xf32> to vector<16x128xf32>
    %46 = vector.extract_strided_slice %44 {offsets = [0, 0], sizes = [16, 128], strides = [1, 1]} : vector<16x384xf32> to vector<16x128xf32>
    %47 = arith.addf %45, %46 : vector<16x128xf32>
    %48 = arith.negf %47 : vector<16x128xf32>
    %49 = math.exp %48 : vector<16x128xf32>
    %cst_17 = arith.constant 1.000000e+00 : f32
    %50 = vector.broadcast %cst_17 : f32 to vector<16x128xf32>
    %51 = arith.addf %50, %49 : vector<16x128xf32>
    %52 = arith.divf %50, %51 : vector<16x128xf32>
    %53 = vector.extract_strided_slice %6 {offsets = [0, 128], sizes = [16, 128], strides = [1, 1]} : vector<16x384xf32> to vector<16x128xf32>
    %54 = vector.extract_strided_slice %44 {offsets = [0, 128], sizes = [16, 128], strides = [1, 1]} : vector<16x384xf32> to vector<16x128xf32>
    %55 = arith.addf %53, %54 : vector<16x128xf32>
    %56 = arith.negf %55 : vector<16x128xf32>
    %57 = math.exp %56 : vector<16x128xf32>
    %cst_18 = arith.constant 1.000000e+00 : f32
    %58 = vector.broadcast %cst_18 : f32 to vector<16x128xf32>
    %59 = arith.addf %58, %57 : vector<16x128xf32>
    %60 = arith.divf %58, %59 : vector<16x128xf32>
    %61 = vector.extract_strided_slice %6 {offsets = [0, 256], sizes = [16, 128], strides = [1, 1]} : vector<16x384xf32> to vector<16x128xf32>
    %62 = vector.extract_strided_slice %44 {offsets = [0, 256], sizes = [16, 128], strides = [1, 1]} : vector<16x384xf32> to vector<16x128xf32>
    %63 = arith.mulf %52, %62 : vector<16x128xf32>
    %64 = arith.addf %61, %63 : vector<16x128xf32>
    %65 = math.tanh %64 : vector<16x128xf32>
    %cst_19 = arith.constant 1.000000e+00 : f32
    %66 = vector.broadcast %cst_19 : f32 to vector<16x128xf32>
    %67 = arith.subf %66, %60 : vector<16x128xf32>
    %68 = arith.mulf %67, %65 : vector<16x128xf32>
    %69 = arith.mulf %60, %39 : vector<16x128xf32>
    %70 = arith.addf %68, %69 : vector<16x128xf32>
    %c16 = arith.constant 16 : index
    %c0_20 = arith.constant 0 : index
    %71 = vector.load %arg7[%c16, %c0_20] : memref<384x128xf32, #tpu.memory_space<vmem>>, vector<16x128xf32>
    tpu.vector_store %arg7[%c16, %c0_20], %70 {strides = array<i32>} : memref<384x128xf32, #tpu.memory_space<vmem>>, vector<16x128xf32>,
    %72 = arith.truncf %70 : vector<16x128xf32> to vector<16x128xbf16>
    %cst_21 = arith.constant dense<0.000000e+00> : vector<16x384xf32>
    %73 = tpu.matmul %72, %7, %cst_21 {dimension_numbers = #tpu.dot_dimension_numbers<[1], [0], [0], [1], [0, 0, 1, 1], [], []>} : vector<16x128xbf16>, vector<128x384xbf16>, vector<16x384xf32> -> vector<16x384xf32>
    %74 = vector.broadcast %8 : vector<1x384xf32> to vector<16x384xf32>
    %75 = arith.addf %73, %74 : vector<16x384xf32>
    %76 = vector.extract_strided_slice %6 {offsets = [0, 0], sizes = [16, 128], strides = [1, 1]} : vector<16x384xf32> to vector<16x128xf32>
    %77 = vector.extract_strided_slice %75 {offsets = [0, 0], sizes = [16, 128], strides = [1, 1]} : vector<16x384xf32> to vector<16x128xf32>
    %78 = arith.addf %76, %77 : vector<16x128xf32>
    %79 = arith.negf %78 : vector<16x128xf32>
    %80 = math.exp %79 : vector<16x128xf32>
    %cst_22 = arith.constant 1.000000e+00 : f32
    %81 = vector.broadcast %cst_22 : f32 to vector<16x128xf32>
    %82 = arith.addf %81, %80 : vector<16x128xf32>
    %83 = arith.divf %81, %82 : vector<16x128xf32>
    %84 = vector.extract_strided_slice %6 {offsets = [0, 128], sizes = [16, 128], strides = [1, 1]} : vector<16x384xf32> to vector<16x128xf32>
    %85 = vector.extract_strided_slice %75 {offsets = [0, 128], sizes = [16, 128], strides = [1, 1]} : vector<16x384xf32> to vector<16x128xf32>
    %86 = arith.addf %84, %85 : vector<16x128xf32>
    %87 = arith.negf %86 : vector<16x128xf32>
    %88 = math.exp %87 : vector<16x128xf32>
    %cst_23 = arith.constant 1.000000e+00 : f32
    %89 = vector.broadcast %cst_23 : f32 to vector<16x128xf32>
    %90 = arith.addf %89, %88 : vector<16x128xf32>
    %91 = arith.divf %89, %90 : vector<16x128xf32>
    %92 = vector.extract_strided_slice %6 {offsets = [0, 256], sizes = [16, 128], strides = [1, 1]} : vector<16x384xf32> to vector<16x128xf32>
    %93 = vector.extract_strided_slice %75 {offsets = [0, 256], sizes = [16, 128], strides = [1, 1]} : vector<16x384xf32> to vector<16x128xf32>
    %94 = arith.mulf %83, %93 : vector<16x128xf32>
    %95 = arith.addf %92, %94 : vector<16x128xf32>
    %96 = math.tanh %95 : vector<16x128xf32>
    %cst_24 = arith.constant 1.000000e+00 : f32
    %97 = vector.broadcast %cst_24 : f32 to vector<16x128xf32>
    %98 = arith.subf %97, %91 : vector<16x128xf32>
    %99 = arith.mulf %98, %96 : vector<16x128xf32>
    %100 = arith.mulf %91, %70 : vector<16x128xf32>
    %101 = arith.addf %99, %100 : vector<16x128xf32>
    %c32 = arith.constant 32 : index
    %c0_25 = arith.constant 0 : index
    %102 = vector.load %arg7[%c32, %c0_25] : memref<384x128xf32, #tpu.memory_space<vmem>>, vector<16x128xf32>
    tpu.vector_store %arg7[%c32, %c0_25], %101 {strides = array<i32>} : memref<384x128xf32, #tpu.memory_space<vmem>>, vector<16x128xf32>,
    %103 = arith.truncf %101 : vector<16x128xf32> to vector<16x128xbf16>
    %cst_26 = arith.constant dense<0.000000e+00> : vector<16x384xf32>
    %104 = tpu.matmul %103, %7, %cst_26 {dimension_numbers = #tpu.dot_dimension_numbers<[1], [0], [0], [1], [0, 0, 1, 1], [], []>} : vector<16x128xbf16>, vector<128x384xbf16>, vector<16x384xf32> -> vector<16x384xf32>
    %105 = vector.broadcast %8 : vector<1x384xf32> to vector<16x384xf32>
    %106 = arith.addf %104, %105 : vector<16x384xf32>
    %107 = vector.extract_strided_slice %6 {offsets = [0, 0], sizes = [16, 128], strides = [1, 1]} : vector<16x384xf32> to vector<16x128xf32>
    %108 = vector.extract_strided_slice %106 {offsets = [0, 0], sizes = [16, 128], strides = [1, 1]} : vector<16x384xf32> to vector<16x128xf32>
    %109 = arith.addf %107, %108 : vector<16x128xf32>
    %110 = arith.negf %109 : vector<16x128xf32>
    %111 = math.exp %110 : vector<16x128xf32>
    %cst_27 = arith.constant 1.000000e+00 : f32
    %112 = vector.broadcast %cst_27 : f32 to vector<16x128xf32>
    %113 = arith.addf %112, %111 : vector<16x128xf32>
    %114 = arith.divf %112, %113 : vector<16x128xf32>
    %115 = vector.extract_strided_slice %6 {offsets = [0, 128], sizes = [16, 128], strides = [1, 1]} : vector<16x384xf32> to vector<16x128xf32>
    %116 = vector.extract_strided_slice %106 {offsets = [0, 128], sizes = [16, 128], strides = [1, 1]} : vector<16x384xf32> to vector<16x128xf32>
    %117 = arith.addf %115, %116 : vector<16x128xf32>
    %118 = arith.negf %117 : vector<16x128xf32>
    %119 = math.exp %118 : vector<16x128xf32>
    %cst_28 = arith.constant 1.000000e+00 : f32
    %120 = vector.broadcast %cst_28 : f32 to vector<16x128xf32>
    %121 = arith.addf %120, %119 : vector<16x128xf32>
    %122 = arith.divf %120, %121 : vector<16x128xf32>
    %123 = vector.extract_strided_slice %6 {offsets = [0, 256], sizes = [16, 128], strides = [1, 1]} : vector<16x384xf32> to vector<16x128xf32>
    %124 = vector.extract_strided_slice %106 {offsets = [0, 256], sizes = [16, 128], strides = [1, 1]} : vector<16x384xf32> to vector<16x128xf32>
    %125 = arith.mulf %114, %124 : vector<16x128xf32>
    %126 = arith.addf %123, %125 : vector<16x128xf32>
    %127 = math.tanh %126 : vector<16x128xf32>
    %cst_29 = arith.constant 1.000000e+00 : f32
    %128 = vector.broadcast %cst_29 : f32 to vector<16x128xf32>
    %129 = arith.subf %128, %122 : vector<16x128xf32>
    %130 = arith.mulf %129, %127 : vector<16x128xf32>
    %131 = arith.mulf %122, %101 : vector<16x128xf32>
    %132 = arith.addf %130, %131 : vector<16x128xf32>
    %c48 = arith.constant 48 : index
    %c0_30 = arith.constant 0 : index
    %133 = vector.load %arg7[%c48, %c0_30] : memref<384x128xf32, #tpu.memory_space<vmem>>, vector<16x128xf32>
    tpu.vector_store %arg7[%c48, %c0_30], %132 {strides = array<i32>} : memref<384x128xf32, #tpu.memory_space<vmem>>, vector<16x128xf32>,
    %134 = arith.truncf %132 : vector<16x128xf32> to vector<16x128xbf16>
    %cst_31 = arith.constant dense<0.000000e+00> : vector<16x384xf32>
    %135 = tpu.matmul %134, %7, %cst_31 {dimension_numbers = #tpu.dot_dimension_numbers<[1], [0], [0], [1], [0, 0, 1, 1], [], []>} : vector<16x128xbf16>, vector<128x384xbf16>, vector<16x384xf32> -> vector<16x384xf32>
    %136 = vector.broadcast %8 : vector<1x384xf32> to vector<16x384xf32>
    %137 = arith.addf %135, %136 : vector<16x384xf32>
    %138 = vector.extract_strided_slice %6 {offsets = [0, 0], sizes = [16, 128], strides = [1, 1]} : vector<16x384xf32> to vector<16x128xf32>
    %139 = vector.extract_strided_slice %137 {offsets = [0, 0], sizes = [16, 128], strides = [1, 1]} : vector<16x384xf32> to vector<16x128xf32>
    %140 = arith.addf %138, %139 : vector<16x128xf32>
    %141 = arith.negf %140 : vector<16x128xf32>
    %142 = math.exp %141 : vector<16x128xf32>
    %cst_32 = arith.constant 1.000000e+00 : f32
    %143 = vector.broadcast %cst_32 : f32 to vector<16x128xf32>
    %144 = arith.addf %143, %142 : vector<16x128xf32>
    %145 = arith.divf %143, %144 : vector<16x128xf32>
    %146 = vector.extract_strided_slice %6 {offsets = [0, 128], sizes = [16, 128], strides = [1, 1]} : vector<16x384xf32> to vector<16x128xf32>
    %147 = vector.extract_strided_slice %137 {offsets = [0, 128], sizes = [16, 128], strides = [1, 1]} : vector<16x384xf32> to vector<16x128xf32>
    %148 = arith.addf %146, %147 : vector<16x128xf32>
    %149 = arith.negf %148 : vector<16x128xf32>
    %150 = math.exp %149 : vector<16x128xf32>
    %cst_33 = arith.constant 1.000000e+00 : f32
    %151 = vector.broadcast %cst_33 : f32 to vector<16x128xf32>
    %152 = arith.addf %151, %150 : vector<16x128xf32>
    %153 = arith.divf %151, %152 : vector<16x128xf32>
    %154 = vector.extract_strided_slice %6 {offsets = [0, 256], sizes = [16, 128], strides = [1, 1]} : vector<16x384xf32> to vector<16x128xf32>
    %155 = vector.extract_strided_slice %137 {offsets = [0, 256], sizes = [16, 128], strides = [1, 1]} : vector<16x384xf32> to vector<16x128xf32>
    %156 = arith.mulf %145, %155 : vector<16x128xf32>
    %157 = arith.addf %154, %156 : vector<16x128xf32>
    %158 = math.tanh %157 : vector<16x128xf32>
    %cst_34 = arith.constant 1.000000e+00 : f32
    %159 = vector.broadcast %cst_34 : f32 to vector<16x128xf32>
    %160 = arith.subf %159, %153 : vector<16x128xf32>
    %161 = arith.mulf %160, %158 : vector<16x128xf32>
    %162 = arith.mulf %153, %132 : vector<16x128xf32>
    %163 = arith.addf %161, %162 : vector<16x128xf32>
    %c64 = arith.constant 64 : index
    %c0_35 = arith.constant 0 : index
    %164 = vector.load %arg7[%c64, %c0_35] : memref<384x128xf32, #tpu.memory_space<vmem>>, vector<16x128xf32>
    tpu.vector_store %arg7[%c64, %c0_35], %163 {strides = array<i32>} : memref<384x128xf32, #tpu.memory_space<vmem>>, vector<16x128xf32>,
    %165 = arith.truncf %163 : vector<16x128xf32> to vector<16x128xbf16>
    %cst_36 = arith.constant dense<0.000000e+00> : vector<16x384xf32>
    %166 = tpu.matmul %165, %7, %cst_36 {dimension_numbers = #tpu.dot_dimension_numbers<[1], [0], [0], [1], [0, 0, 1, 1], [], []>} : vector<16x128xbf16>, vector<128x384xbf16>, vector<16x384xf32> -> vector<16x384xf32>
    %167 = vector.broadcast %8 : vector<1x384xf32> to vector<16x384xf32>
    %168 = arith.addf %166, %167 : vector<16x384xf32>
    %169 = vector.extract_strided_slice %6 {offsets = [0, 0], sizes = [16, 128], strides = [1, 1]} : vector<16x384xf32> to vector<16x128xf32>
    %170 = vector.extract_strided_slice %168 {offsets = [0, 0], sizes = [16, 128], strides = [1, 1]} : vector<16x384xf32> to vector<16x128xf32>
    %171 = arith.addf %169, %170 : vector<16x128xf32>
    %172 = arith.negf %171 : vector<16x128xf32>
    %173 = math.exp %172 : vector<16x128xf32>
    %cst_37 = arith.constant 1.000000e+00 : f32
    %174 = vector.broadcast %cst_37 : f32 to vector<16x128xf32>
    %175 = arith.addf %174, %173 : vector<16x128xf32>
    %176 = arith.divf %174, %175 : vector<16x128xf32>
    %177 = vector.extract_strided_slice %6 {offsets = [0, 128], sizes = [16, 128], strides = [1, 1]} : vector<16x384xf32> to vector<16x128xf32>
    %178 = vector.extract_strided_slice %168 {offsets = [0, 128], sizes = [16, 128], strides = [1, 1]} : vector<16x384xf32> to vector<16x128xf32>
    %179 = arith.addf %177, %178 : vector<16x128xf32>
    %180 = arith.negf %179 : vector<16x128xf32>
    %181 = math.exp %180 : vector<16x128xf32>
    %cst_38 = arith.constant 1.000000e+00 : f32
    %182 = vector.broadcast %cst_38 : f32 to vector<16x128xf32>
    %183 = arith.addf %182, %181 : vector<16x128xf32>
    %184 = arith.divf %182, %183 : vector<16x128xf32>
    %185 = vector.extract_strided_slice %6 {offsets = [0, 256], sizes = [16, 128], strides = [1, 1]} : vector<16x384xf32> to vector<16x128xf32>
    %186 = vector.extract_strided_slice %168 {offsets = [0, 256], sizes = [16, 128], strides = [1, 1]} : vector<16x384xf32> to vector<16x128xf32>
    %187 = arith.mulf %176, %186 : vector<16x128xf32>
    %188 = arith.addf %185, %187 : vector<16x128xf32>
    %189 = math.tanh %188 : vector<16x128xf32>
    %cst_39 = arith.constant 1.000000e+00 : f32
    %190 = vector.broadcast %cst_39 : f32 to vector<16x128xf32>
    %191 = arith.subf %190, %184 : vector<16x128xf32>
    %192 = arith.mulf %191, %189 : vector<16x128xf32>
    %193 = arith.mulf %184, %163 : vector<16x128xf32>
    %194 = arith.addf %192, %193 : vector<16x128xf32>
    %c80 = arith.constant 80 : index
    %c0_40 = arith.constant 0 : index
    %195 = vector.load %arg7[%c80, %c0_40] : memref<384x128xf32, #tpu.memory_space<vmem>>, vector<16x128xf32>
    tpu.vector_store %arg7[%c80, %c0_40], %194 {strides = array<i32>} : memref<384x128xf32, #tpu.memory_space<vmem>>, vector<16x128xf32>,
    %196 = arith.truncf %194 : vector<16x128xf32> to vector<16x128xbf16>
    %cst_41 = arith.constant dense<0.000000e+00> : vector<16x384xf32>
    %197 = tpu.matmul %196, %7, %cst_41 {dimension_numbers = #tpu.dot_dimension_numbers<[1], [0], [0], [1], [0, 0, 1, 1], [], []>} : vector<16x128xbf16>, vector<128x384xbf16>, vector<16x384xf32> -> vector<16x384xf32>
    %198 = vector.broadcast %8 : vector<1x384xf32> to vector<16x384xf32>
    %199 = arith.addf %197, %198 : vector<16x384xf32>
    %200 = vector.extract_strided_slice %6 {offsets = [0, 0], sizes = [16, 128], strides = [1, 1]} : vector<16x384xf32> to vector<16x128xf32>
    %201 = vector.extract_strided_slice %199 {offsets = [0, 0], sizes = [16, 128], strides = [1, 1]} : vector<16x384xf32> to vector<16x128xf32>
    %202 = arith.addf %200, %201 : vector<16x128xf32>
    %203 = arith.negf %202 : vector<16x128xf32>
    %204 = math.exp %203 : vector<16x128xf32>
    %cst_42 = arith.constant 1.000000e+00 : f32
    %205 = vector.broadcast %cst_42 : f32 to vector<16x128xf32>
    %206 = arith.addf %205, %204 : vector<16x128xf32>
    %207 = arith.divf %205, %206 : vector<16x128xf32>
    %208 = vector.extract_strided_slice %6 {offsets = [0, 128], sizes = [16, 128], strides = [1, 1]} : vector<16x384xf32> to vector<16x128xf32>
    %209 = vector.extract_strided_slice %199 {offsets = [0, 128], sizes = [16, 128], strides = [1, 1]} : vector<16x384xf32> to vector<16x128xf32>
    %210 = arith.addf %208, %209 : vector<16x128xf32>
    %211 = arith.negf %210 : vector<16x128xf32>
    %212 = math.exp %211 : vector<16x128xf32>
    %cst_43 = arith.constant 1.000000e+00 : f32
    %213 = vector.broadcast %cst_43 : f32 to vector<16x128xf32>
    %214 = arith.addf %213, %212 : vector<16x128xf32>
    %215 = arith.divf %213, %214 : vector<16x128xf32>
    %216 = vector.extract_strided_slice %6 {offsets = [0, 256], sizes = [16, 128], strides = [1, 1]} : vector<16x384xf32> to vector<16x128xf32>
    %217 = vector.extract_strided_slice %199 {offsets = [0, 256], sizes = [16, 128], strides = [1, 1]} : vector<16x384xf32> to vector<16x128xf32>
    %218 = arith.mulf %207, %217 : vector<16x128xf32>
    %219 = arith.addf %216, %218 : vector<16x128xf32>
    %220 = math.tanh %219 : vector<16x128xf32>
    %cst_44 = arith.constant 1.000000e+00 : f32
    %221 = vector.broadcast %cst_44 : f32 to vector<16x128xf32>
    %222 = arith.subf %221, %215 : vector<16x128xf32>
    %223 = arith.mulf %222, %220 : vector<16x128xf32>
    %224 = arith.mulf %215, %194 : vector<16x128xf32>
    %225 = arith.addf %223, %224 : vector<16x128xf32>
    %c96 = arith.constant 96 : index
    %c0_45 = arith.constant 0 : index
    %226 = vector.load %arg7[%c96, %c0_45] : memref<384x128xf32, #tpu.memory_space<vmem>>, vector<16x128xf32>
    tpu.vector_store %arg7[%c96, %c0_45], %225 {strides = array<i32>} : memref<384x128xf32, #tpu.memory_space<vmem>>, vector<16x128xf32>,
    %227 = arith.truncf %225 : vector<16x128xf32> to vector<16x128xbf16>
    %cst_46 = arith.constant dense<0.000000e+00> : vector<16x384xf32>
    %228 = tpu.matmul %227, %7, %cst_46 {dimension_numbers = #tpu.dot_dimension_numbers<[1], [0], [0], [1], [0, 0, 1, 1], [], []>} : vector<16x128xbf16>, vector<128x384xbf16>, vector<16x384xf32> -> vector<16x384xf32>
    %229 = vector.broadcast %8 : vector<1x384xf32> to vector<16x384xf32>
    %230 = arith.addf %228, %229 : vector<16x384xf32>
    %231 = vector.extract_strided_slice %6 {offsets = [0, 0], sizes = [16, 128], strides = [1, 1]} : vector<16x384xf32> to vector<16x128xf32>
    %232 = vector.extract_strided_slice %230 {offsets = [0, 0], sizes = [16, 128], strides = [1, 1]} : vector<16x384xf32> to vector<16x128xf32>
    %233 = arith.addf %231, %232 : vector<16x128xf32>
    %234 = arith.negf %233 : vector<16x128xf32>
    %235 = math.exp %234 : vector<16x128xf32>
    %cst_47 = arith.constant 1.000000e+00 : f32
    %236 = vector.broadcast %cst_47 : f32 to vector<16x128xf32>
    %237 = arith.addf %236, %235 : vector<16x128xf32>
    %238 = arith.divf %236, %237 : vector<16x128xf32>
    %239 = vector.extract_strided_slice %6 {offsets = [0, 128], sizes = [16, 128], strides = [1, 1]} : vector<16x384xf32> to vector<16x128xf32>
    %240 = vector.extract_strided_slice %230 {offsets = [0, 128], sizes = [16, 128], strides = [1, 1]} : vector<16x384xf32> to vector<16x128xf32>
    %241 = arith.addf %239, %240 : vector<16x128xf32>
    %242 = arith.negf %241 : vector<16x128xf32>
    %243 = math.exp %242 : vector<16x128xf32>
    %cst_48 = arith.constant 1.000000e+00 : f32
    %244 = vector.broadcast %cst_48 : f32 to vector<16x128xf32>
    %245 = arith.addf %244, %243 : vector<16x128xf32>
    %246 = arith.divf %244, %245 : vector<16x128xf32>
    %247 = vector.extract_strided_slice %6 {offsets = [0, 256], sizes = [16, 128], strides = [1, 1]} : vector<16x384xf32> to vector<16x128xf32>
    %248 = vector.extract_strided_slice %230 {offsets = [0, 256], sizes = [16, 128], strides = [1, 1]} : vector<16x384xf32> to vector<16x128xf32>
    %249 = arith.mulf %238, %248 : vector<16x128xf32>
    %250 = arith.addf %247, %249 : vector<16x128xf32>
    %251 = math.tanh %250 : vector<16x128xf32>
    %cst_49 = arith.constant 1.000000e+00 : f32
    %252 = vector.broadcast %cst_49 : f32 to vector<16x128xf32>
    %253 = arith.subf %252, %246 : vector<16x128xf32>
    %254 = arith.mulf %253, %251 : vector<16x128xf32>
    %255 = arith.mulf %246, %225 : vector<16x128xf32>
    %256 = arith.addf %254, %255 : vector<16x128xf32>
    %c112 = arith.constant 112 : index
    %c0_50 = arith.constant 0 : index
    %257 = vector.load %arg7[%c112, %c0_50] : memref<384x128xf32, #tpu.memory_space<vmem>>, vector<16x128xf32>
    tpu.vector_store %arg7[%c112, %c0_50], %256 {strides = array<i32>} : memref<384x128xf32, #tpu.memory_space<vmem>>, vector<16x128xf32>,
    %258 = arith.truncf %256 : vector<16x128xf32> to vector<16x128xbf16>
    %cst_51 = arith.constant dense<0.000000e+00> : vector<16x384xf32>
    %259 = tpu.matmul %258, %7, %cst_51 {dimension_numbers = #tpu.dot_dimension_numbers<[1], [0], [0], [1], [0, 0, 1, 1], [], []>} : vector<16x128xbf16>, vector<128x384xbf16>, vector<16x384xf32> -> vector<16x384xf32>
    %260 = vector.broadcast %8 : vector<1x384xf32> to vector<16x384xf32>
    %261 = arith.addf %259, %260 : vector<16x384xf32>
    %262 = vector.extract_strided_slice %6 {offsets = [0, 0], sizes = [16, 128], strides = [1, 1]} : vector<16x384xf32> to vector<16x128xf32>
    %263 = vector.extract_strided_slice %261 {offsets = [0, 0], sizes = [16, 128], strides = [1, 1]} : vector<16x384xf32> to vector<16x128xf32>
    %264 = arith.addf %262, %263 : vector<16x128xf32>
    %265 = arith.negf %264 : vector<16x128xf32>
    %266 = math.exp %265 : vector<16x128xf32>
    %cst_52 = arith.constant 1.000000e+00 : f32
    %267 = vector.broadcast %cst_52 : f32 to vector<16x128xf32>
    %268 = arith.addf %267, %266 : vector<16x128xf32>
    %269 = arith.divf %267, %268 : vector<16x128xf32>
    %270 = vector.extract_strided_slice %6 {offsets = [0, 128], sizes = [16, 128], strides = [1, 1]} : vector<16x384xf32> to vector<16x128xf32>
    %271 = vector.extract_strided_slice %261 {offsets = [0, 128], sizes = [16, 128], strides = [1, 1]} : vector<16x384xf32> to vector<16x128xf32>
    %272 = arith.addf %270, %271 : vector<16x128xf32>
    %273 = arith.negf %272 : vector<16x128xf32>
    %274 = math.exp %273 : vector<16x128xf32>
    %cst_53 = arith.constant 1.000000e+00 : f32
    %275 = vector.broadcast %cst_53 : f32 to vector<16x128xf32>
    %276 = arith.addf %275, %274 : vector<16x128xf32>
    %277 = arith.divf %275, %276 : vector<16x128xf32>
    %278 = vector.extract_strided_slice %6 {offsets = [0, 256], sizes = [16, 128], strides = [1, 1]} : vector<16x384xf32> to vector<16x128xf32>
    %279 = vector.extract_strided_slice %261 {offsets = [0, 256], sizes = [16, 128], strides = [1, 1]} : vector<16x384xf32> to vector<16x128xf32>
    %280 = arith.mulf %269, %279 : vector<16x128xf32>
    %281 = arith.addf %278, %280 : vector<16x128xf32>
    %282 = math.tanh %281 : vector<16x128xf32>
    %cst_54 = arith.constant 1.000000e+00 : f32
    %283 = vector.broadcast %cst_54 : f32 to vector<16x128xf32>
    %284 = arith.subf %283, %277 : vector<16x128xf32>
    %285 = arith.mulf %284, %282 : vector<16x128xf32>
    %286 = arith.mulf %277, %256 : vector<16x128xf32>
    %287 = arith.addf %285, %286 : vector<16x128xf32>
    %c128 = arith.constant 128 : index
    %c0_55 = arith.constant 0 : index
    %288 = vector.load %arg7[%c128, %c0_55] : memref<384x128xf32, #tpu.memory_space<vmem>>, vector<16x128xf32>
    tpu.vector_store %arg7[%c128, %c0_55], %287 {strides = array<i32>} : memref<384x128xf32, #tpu.memory_space<vmem>>, vector<16x128xf32>,
    %289 = arith.truncf %287 : vector<16x128xf32> to vector<16x128xbf16>
    %cst_56 = arith.constant dense<0.000000e+00> : vector<16x384xf32>
    %290 = tpu.matmul %289, %7, %cst_56 {dimension_numbers = #tpu.dot_dimension_numbers<[1], [0], [0], [1], [0, 0, 1, 1], [], []>} : vector<16x128xbf16>, vector<128x384xbf16>, vector<16x384xf32> -> vector<16x384xf32>
    %291 = vector.broadcast %8 : vector<1x384xf32> to vector<16x384xf32>
    %292 = arith.addf %290, %291 : vector<16x384xf32>
    %293 = vector.extract_strided_slice %6 {offsets = [0, 0], sizes = [16, 128], strides = [1, 1]} : vector<16x384xf32> to vector<16x128xf32>
    %294 = vector.extract_strided_slice %292 {offsets = [0, 0], sizes = [16, 128], strides = [1, 1]} : vector<16x384xf32> to vector<16x128xf32>
    %295 = arith.addf %293, %294 : vector<16x128xf32>
    %296 = arith.negf %295 : vector<16x128xf32>
    %297 = math.exp %296 : vector<16x128xf32>
    %cst_57 = arith.constant 1.000000e+00 : f32
    %298 = vector.broadcast %cst_57 : f32 to vector<16x128xf32>
    %299 = arith.addf %298, %297 : vector<16x128xf32>
    %300 = arith.divf %298, %299 : vector<16x128xf32>
    %301 = vector.extract_strided_slice %6 {offsets = [0, 128], sizes = [16, 128], strides = [1, 1]} : vector<16x384xf32> to vector<16x128xf32>
    %302 = vector.extract_strided_slice %292 {offsets = [0, 128], sizes = [16, 128], strides = [1, 1]} : vector<16x384xf32> to vector<16x128xf32>
    %303 = arith.addf %301, %302 : vector<16x128xf32>
    %304 = arith.negf %303 : vector<16x128xf32>
    %305 = math.exp %304 : vector<16x128xf32>
    %cst_58 = arith.constant 1.000000e+00 : f32
    %306 = vector.broadcast %cst_58 : f32 to vector<16x128xf32>
    %307 = arith.addf %306, %305 : vector<16x128xf32>
    %308 = arith.divf %306, %307 : vector<16x128xf32>
    %309 = vector.extract_strided_slice %6 {offsets = [0, 256], sizes = [16, 128], strides = [1, 1]} : vector<16x384xf32> to vector<16x128xf32>
    %310 = vector.extract_strided_slice %292 {offsets = [0, 256], sizes = [16, 128], strides = [1, 1]} : vector<16x384xf32> to vector<16x128xf32>
    %311 = arith.mulf %300, %310 : vector<16x128xf32>
    %312 = arith.addf %309, %311 : vector<16x128xf32>
    %313 = math.tanh %312 : vector<16x128xf32>
    %cst_59 = arith.constant 1.000000e+00 : f32
    %314 = vector.broadcast %cst_59 : f32 to vector<16x128xf32>
    %315 = arith.subf %314, %308 : vector<16x128xf32>
    %316 = arith.mulf %315, %313 : vector<16x128xf32>
    %317 = arith.mulf %308, %287 : vector<16x128xf32>
    %318 = arith.addf %316, %317 : vector<16x128xf32>
    %c144 = arith.constant 144 : index
    %c0_60 = arith.constant 0 : index
    %319 = vector.load %arg7[%c144, %c0_60] : memref<384x128xf32, #tpu.memory_space<vmem>>, vector<16x128xf32>
    tpu.vector_store %arg7[%c144, %c0_60], %318 {strides = array<i32>} : memref<384x128xf32, #tpu.memory_space<vmem>>, vector<16x128xf32>,
    %320 = arith.truncf %318 : vector<16x128xf32> to vector<16x128xbf16>
    %cst_61 = arith.constant dense<0.000000e+00> : vector<16x384xf32>
    %321 = tpu.matmul %320, %7, %cst_61 {dimension_numbers = #tpu.dot_dimension_numbers<[1], [0], [0], [1], [0, 0, 1, 1], [], []>} : vector<16x128xbf16>, vector<128x384xbf16>, vector<16x384xf32> -> vector<16x384xf32>
    %322 = vector.broadcast %8 : vector<1x384xf32> to vector<16x384xf32>
    %323 = arith.addf %321, %322 : vector<16x384xf32>
    %324 = vector.extract_strided_slice %6 {offsets = [0, 0], sizes = [16, 128], strides = [1, 1]} : vector<16x384xf32> to vector<16x128xf32>
    %325 = vector.extract_strided_slice %323 {offsets = [0, 0], sizes = [16, 128], strides = [1, 1]} : vector<16x384xf32> to vector<16x128xf32>
    %326 = arith.addf %324, %325 : vector<16x128xf32>
    %327 = arith.negf %326 : vector<16x128xf32>
    %328 = math.exp %327 : vector<16x128xf32>
    %cst_62 = arith.constant 1.000000e+00 : f32
    %329 = vector.broadcast %cst_62 : f32 to vector<16x128xf32>
    %330 = arith.addf %329, %328 : vector<16x128xf32>
    %331 = arith.divf %329, %330 : vector<16x128xf32>
    %332 = vector.extract_strided_slice %6 {offsets = [0, 128], sizes = [16, 128], strides = [1, 1]} : vector<16x384xf32> to vector<16x128xf32>
    %333 = vector.extract_strided_slice %323 {offsets = [0, 128], sizes = [16, 128], strides = [1, 1]} : vector<16x384xf32> to vector<16x128xf32>
    %334 = arith.addf %332, %333 : vector<16x128xf32>
    %335 = arith.negf %334 : vector<16x128xf32>
    %336 = math.exp %335 : vector<16x128xf32>
    %cst_63 = arith.constant 1.000000e+00 : f32
    %337 = vector.broadcast %cst_63 : f32 to vector<16x128xf32>
    %338 = arith.addf %337, %336 : vector<16x128xf32>
    %339 = arith.divf %337, %338 : vector<16x128xf32>
    %340 = vector.extract_strided_slice %6 {offsets = [0, 256], sizes = [16, 128], strides = [1, 1]} : vector<16x384xf32> to vector<16x128xf32>
    %341 = vector.extract_strided_slice %323 {offsets = [0, 256], sizes = [16, 128], strides = [1, 1]} : vector<16x384xf32> to vector<16x128xf32>
    %342 = arith.mulf %331, %341 : vector<16x128xf32>
    %343 = arith.addf %340, %342 : vector<16x128xf32>
    %344 = math.tanh %343 : vector<16x128xf32>
    %cst_64 = arith.constant 1.000000e+00 : f32
    %345 = vector.broadcast %cst_64 : f32 to vector<16x128xf32>
    %346 = arith.subf %345, %339 : vector<16x128xf32>
    %347 = arith.mulf %346, %344 : vector<16x128xf32>
    %348 = arith.mulf %339, %318 : vector<16x128xf32>
    %349 = arith.addf %347, %348 : vector<16x128xf32>
    %c160 = arith.constant 160 : index
    %c0_65 = arith.constant 0 : index
    %350 = vector.load %arg7[%c160, %c0_65] : memref<384x128xf32, #tpu.memory_space<vmem>>, vector<16x128xf32>
    tpu.vector_store %arg7[%c160, %c0_65], %349 {strides = array<i32>} : memref<384x128xf32, #tpu.memory_space<vmem>>, vector<16x128xf32>,
    %351 = arith.truncf %349 : vector<16x128xf32> to vector<16x128xbf16>
    %cst_66 = arith.constant dense<0.000000e+00> : vector<16x384xf32>
    %352 = tpu.matmul %351, %7, %cst_66 {dimension_numbers = #tpu.dot_dimension_numbers<[1], [0], [0], [1], [0, 0, 1, 1], [], []>} : vector<16x128xbf16>, vector<128x384xbf16>, vector<16x384xf32> -> vector<16x384xf32>
    %353 = vector.broadcast %8 : vector<1x384xf32> to vector<16x384xf32>
    %354 = arith.addf %352, %353 : vector<16x384xf32>
    %355 = vector.extract_strided_slice %6 {offsets = [0, 0], sizes = [16, 128], strides = [1, 1]} : vector<16x384xf32> to vector<16x128xf32>
    %356 = vector.extract_strided_slice %354 {offsets = [0, 0], sizes = [16, 128], strides = [1, 1]} : vector<16x384xf32> to vector<16x128xf32>
    %357 = arith.addf %355, %356 : vector<16x128xf32>
    %358 = arith.negf %357 : vector<16x128xf32>
    %359 = math.exp %358 : vector<16x128xf32>
    %cst_67 = arith.constant 1.000000e+00 : f32
    %360 = vector.broadcast %cst_67 : f32 to vector<16x128xf32>
    %361 = arith.addf %360, %359 : vector<16x128xf32>
    %362 = arith.divf %360, %361 : vector<16x128xf32>
    %363 = vector.extract_strided_slice %6 {offsets = [0, 128], sizes = [16, 128], strides = [1, 1]} : vector<16x384xf32> to vector<16x128xf32>
    %364 = vector.extract_strided_slice %354 {offsets = [0, 128], sizes = [16, 128], strides = [1, 1]} : vector<16x384xf32> to vector<16x128xf32>
    %365 = arith.addf %363, %364 : vector<16x128xf32>
    %366 = arith.negf %365 : vector<16x128xf32>
    %367 = math.exp %366 : vector<16x128xf32>
    %cst_68 = arith.constant 1.000000e+00 : f32
    %368 = vector.broadcast %cst_68 : f32 to vector<16x128xf32>
    %369 = arith.addf %368, %367 : vector<16x128xf32>
    %370 = arith.divf %368, %369 : vector<16x128xf32>
    %371 = vector.extract_strided_slice %6 {offsets = [0, 256], sizes = [16, 128], strides = [1, 1]} : vector<16x384xf32> to vector<16x128xf32>
    %372 = vector.extract_strided_slice %354 {offsets = [0, 256], sizes = [16, 128], strides = [1, 1]} : vector<16x384xf32> to vector<16x128xf32>
    %373 = arith.mulf %362, %372 : vector<16x128xf32>
    %374 = arith.addf %371, %373 : vector<16x128xf32>
    %375 = math.tanh %374 : vector<16x128xf32>
    %cst_69 = arith.constant 1.000000e+00 : f32
    %376 = vector.broadcast %cst_69 : f32 to vector<16x128xf32>
    %377 = arith.subf %376, %370 : vector<16x128xf32>
    %378 = arith.mulf %377, %375 : vector<16x128xf32>
    %379 = arith.mulf %370, %349 : vector<16x128xf32>
    %380 = arith.addf %378, %379 : vector<16x128xf32>
    %c176 = arith.constant 176 : index
    %c0_70 = arith.constant 0 : index
    %381 = vector.load %arg7[%c176, %c0_70] : memref<384x128xf32, #tpu.memory_space<vmem>>, vector<16x128xf32>
    tpu.vector_store %arg7[%c176, %c0_70], %380 {strides = array<i32>} : memref<384x128xf32, #tpu.memory_space<vmem>>, vector<16x128xf32>,
    %382 = arith.truncf %380 : vector<16x128xf32> to vector<16x128xbf16>
    %cst_71 = arith.constant dense<0.000000e+00> : vector<16x384xf32>
    %383 = tpu.matmul %382, %7, %cst_71 {dimension_numbers = #tpu.dot_dimension_numbers<[1], [0], [0], [1], [0, 0, 1, 1], [], []>} : vector<16x128xbf16>, vector<128x384xbf16>, vector<16x384xf32> -> vector<16x384xf32>
    %384 = vector.broadcast %8 : vector<1x384xf32> to vector<16x384xf32>
    %385 = arith.addf %383, %384 : vector<16x384xf32>
    %386 = vector.extract_strided_slice %6 {offsets = [0, 0], sizes = [16, 128], strides = [1, 1]} : vector<16x384xf32> to vector<16x128xf32>
    %387 = vector.extract_strided_slice %385 {offsets = [0, 0], sizes = [16, 128], strides = [1, 1]} : vector<16x384xf32> to vector<16x128xf32>
    %388 = arith.addf %386, %387 : vector<16x128xf32>
    %389 = arith.negf %388 : vector<16x128xf32>
    %390 = math.exp %389 : vector<16x128xf32>
    %cst_72 = arith.constant 1.000000e+00 : f32
    %391 = vector.broadcast %cst_72 : f32 to vector<16x128xf32>
    %392 = arith.addf %391, %390 : vector<16x128xf32>
    %393 = arith.divf %391, %392 : vector<16x128xf32>
    %394 = vector.extract_strided_slice %6 {offsets = [0, 128], sizes = [16, 128], strides = [1, 1]} : vector<16x384xf32> to vector<16x128xf32>
    %395 = vector.extract_strided_slice %385 {offsets = [0, 128], sizes = [16, 128], strides = [1, 1]} : vector<16x384xf32> to vector<16x128xf32>
    %396 = arith.addf %394, %395 : vector<16x128xf32>
    %397 = arith.negf %396 : vector<16x128xf32>
    %398 = math.exp %397 : vector<16x128xf32>
    %cst_73 = arith.constant 1.000000e+00 : f32
    %399 = vector.broadcast %cst_73 : f32 to vector<16x128xf32>
    %400 = arith.addf %399, %398 : vector<16x128xf32>
    %401 = arith.divf %399, %400 : vector<16x128xf32>
    %402 = vector.extract_strided_slice %6 {offsets = [0, 256], sizes = [16, 128], strides = [1, 1]} : vector<16x384xf32> to vector<16x128xf32>
    %403 = vector.extract_strided_slice %385 {offsets = [0, 256], sizes = [16, 128], strides = [1, 1]} : vector<16x384xf32> to vector<16x128xf32>
    %404 = arith.mulf %393, %403 : vector<16x128xf32>
    %405 = arith.addf %402, %404 : vector<16x128xf32>
    %406 = math.tanh %405 : vector<16x128xf32>
    %cst_74 = arith.constant 1.000000e+00 : f32
    %407 = vector.broadcast %cst_74 : f32 to vector<16x128xf32>
    %408 = arith.subf %407, %401 : vector<16x128xf32>
    %409 = arith.mulf %408, %406 : vector<16x128xf32>
    %410 = arith.mulf %401, %380 : vector<16x128xf32>
    %411 = arith.addf %409, %410 : vector<16x128xf32>
    %c192 = arith.constant 192 : index
    %c0_75 = arith.constant 0 : index
    %412 = vector.load %arg7[%c192, %c0_75] : memref<384x128xf32, #tpu.memory_space<vmem>>, vector<16x128xf32>
    tpu.vector_store %arg7[%c192, %c0_75], %411 {strides = array<i32>} : memref<384x128xf32, #tpu.memory_space<vmem>>, vector<16x128xf32>,
    %413 = arith.truncf %411 : vector<16x128xf32> to vector<16x128xbf16>
    %cst_76 = arith.constant dense<0.000000e+00> : vector<16x384xf32>
    %414 = tpu.matmul %413, %7, %cst_76 {dimension_numbers = #tpu.dot_dimension_numbers<[1], [0], [0], [1], [0, 0, 1, 1], [], []>} : vector<16x128xbf16>, vector<128x384xbf16>, vector<16x384xf32> -> vector<16x384xf32>
    %415 = vector.broadcast %8 : vector<1x384xf32> to vector<16x384xf32>
    %416 = arith.addf %414, %415 : vector<16x384xf32>
    %417 = vector.extract_strided_slice %6 {offsets = [0, 0], sizes = [16, 128], strides = [1, 1]} : vector<16x384xf32> to vector<16x128xf32>
    %418 = vector.extract_strided_slice %416 {offsets = [0, 0], sizes = [16, 128], strides = [1, 1]} : vector<16x384xf32> to vector<16x128xf32>
    %419 = arith.addf %417, %418 : vector<16x128xf32>
    %420 = arith.negf %419 : vector<16x128xf32>
    %421 = math.exp %420 : vector<16x128xf32>
    %cst_77 = arith.constant 1.000000e+00 : f32
    %422 = vector.broadcast %cst_77 : f32 to vector<16x128xf32>
    %423 = arith.addf %422, %421 : vector<16x128xf32>
    %424 = arith.divf %422, %423 : vector<16x128xf32>
    %425 = vector.extract_strided_slice %6 {offsets = [0, 128], sizes = [16, 128], strides = [1, 1]} : vector<16x384xf32> to vector<16x128xf32>
    %426 = vector.extract_strided_slice %416 {offsets = [0, 128], sizes = [16, 128], strides = [1, 1]} : vector<16x384xf32> to vector<16x128xf32>
    %427 = arith.addf %425, %426 : vector<16x128xf32>
    %428 = arith.negf %427 : vector<16x128xf32>
    %429 = math.exp %428 : vector<16x128xf32>
    %cst_78 = arith.constant 1.000000e+00 : f32
    %430 = vector.broadcast %cst_78 : f32 to vector<16x128xf32>
    %431 = arith.addf %430, %429 : vector<16x128xf32>
    %432 = arith.divf %430, %431 : vector<16x128xf32>
    %433 = vector.extract_strided_slice %6 {offsets = [0, 256], sizes = [16, 128], strides = [1, 1]} : vector<16x384xf32> to vector<16x128xf32>
    %434 = vector.extract_strided_slice %416 {offsets = [0, 256], sizes = [16, 128], strides = [1, 1]} : vector<16x384xf32> to vector<16x128xf32>
    %435 = arith.mulf %424, %434 : vector<16x128xf32>
    %436 = arith.addf %433, %435 : vector<16x128xf32>
    %437 = math.tanh %436 : vector<16x128xf32>
    %cst_79 = arith.constant 1.000000e+00 : f32
    %438 = vector.broadcast %cst_79 : f32 to vector<16x128xf32>
    %439 = arith.subf %438, %432 : vector<16x128xf32>
    %440 = arith.mulf %439, %437 : vector<16x128xf32>
    %441 = arith.mulf %432, %411 : vector<16x128xf32>
    %442 = arith.addf %440, %441 : vector<16x128xf32>
    %c208 = arith.constant 208 : index
    %c0_80 = arith.constant 0 : index
    %443 = vector.load %arg7[%c208, %c0_80] : memref<384x128xf32, #tpu.memory_space<vmem>>, vector<16x128xf32>
    tpu.vector_store %arg7[%c208, %c0_80], %442 {strides = array<i32>} : memref<384x128xf32, #tpu.memory_space<vmem>>, vector<16x128xf32>,
    %444 = arith.truncf %442 : vector<16x128xf32> to vector<16x128xbf16>
    %cst_81 = arith.constant dense<0.000000e+00> : vector<16x384xf32>
    %445 = tpu.matmul %444, %7, %cst_81 {dimension_numbers = #tpu.dot_dimension_numbers<[1], [0], [0], [1], [0, 0, 1, 1], [], []>} : vector<16x128xbf16>, vector<128x384xbf16>, vector<16x384xf32> -> vector<16x384xf32>
    %446 = vector.broadcast %8 : vector<1x384xf32> to vector<16x384xf32>
    %447 = arith.addf %445, %446 : vector<16x384xf32>
    %448 = vector.extract_strided_slice %6 {offsets = [0, 0], sizes = [16, 128], strides = [1, 1]} : vector<16x384xf32> to vector<16x128xf32>
    %449 = vector.extract_strided_slice %447 {offsets = [0, 0], sizes = [16, 128], strides = [1, 1]} : vector<16x384xf32> to vector<16x128xf32>
    %450 = arith.addf %448, %449 : vector<16x128xf32>
    %451 = arith.negf %450 : vector<16x128xf32>
    %452 = math.exp %451 : vector<16x128xf32>
    %cst_82 = arith.constant 1.000000e+00 : f32
    %453 = vector.broadcast %cst_82 : f32 to vector<16x128xf32>
    %454 = arith.addf %453, %452 : vector<16x128xf32>
    %455 = arith.divf %453, %454 : vector<16x128xf32>
    %456 = vector.extract_strided_slice %6 {offsets = [0, 128], sizes = [16, 128], strides = [1, 1]} : vector<16x384xf32> to vector<16x128xf32>
    %457 = vector.extract_strided_slice %447 {offsets = [0, 128], sizes = [16, 128], strides = [1, 1]} : vector<16x384xf32> to vector<16x128xf32>
    %458 = arith.addf %456, %457 : vector<16x128xf32>
    %459 = arith.negf %458 : vector<16x128xf32>
    %460 = math.exp %459 : vector<16x128xf32>
    %cst_83 = arith.constant 1.000000e+00 : f32
    %461 = vector.broadcast %cst_83 : f32 to vector<16x128xf32>
    %462 = arith.addf %461, %460 : vector<16x128xf32>
    %463 = arith.divf %461, %462 : vector<16x128xf32>
    %464 = vector.extract_strided_slice %6 {offsets = [0, 256], sizes = [16, 128], strides = [1, 1]} : vector<16x384xf32> to vector<16x128xf32>
    %465 = vector.extract_strided_slice %447 {offsets = [0, 256], sizes = [16, 128], strides = [1, 1]} : vector<16x384xf32> to vector<16x128xf32>
    %466 = arith.mulf %455, %465 : vector<16x128xf32>
    %467 = arith.addf %464, %466 : vector<16x128xf32>
    %468 = math.tanh %467 : vector<16x128xf32>
    %cst_84 = arith.constant 1.000000e+00 : f32
    %469 = vector.broadcast %cst_84 : f32 to vector<16x128xf32>
    %470 = arith.subf %469, %463 : vector<16x128xf32>
    %471 = arith.mulf %470, %468 : vector<16x128xf32>
    %472 = arith.mulf %463, %442 : vector<16x128xf32>
    %473 = arith.addf %471, %472 : vector<16x128xf32>
    %c224 = arith.constant 224 : index
    %c0_85 = arith.constant 0 : index
    %474 = vector.load %arg7[%c224, %c0_85] : memref<384x128xf32, #tpu.memory_space<vmem>>, vector<16x128xf32>
    tpu.vector_store %arg7[%c224, %c0_85], %473 {strides = array<i32>} : memref<384x128xf32, #tpu.memory_space<vmem>>, vector<16x128xf32>,
    %475 = arith.truncf %473 : vector<16x128xf32> to vector<16x128xbf16>
    %cst_86 = arith.constant dense<0.000000e+00> : vector<16x384xf32>
    %476 = tpu.matmul %475, %7, %cst_86 {dimension_numbers = #tpu.dot_dimension_numbers<[1], [0], [0], [1], [0, 0, 1, 1], [], []>} : vector<16x128xbf16>, vector<128x384xbf16>, vector<16x384xf32> -> vector<16x384xf32>
    %477 = vector.broadcast %8 : vector<1x384xf32> to vector<16x384xf32>
    %478 = arith.addf %476, %477 : vector<16x384xf32>
    %479 = vector.extract_strided_slice %6 {offsets = [0, 0], sizes = [16, 128], strides = [1, 1]} : vector<16x384xf32> to vector<16x128xf32>
    %480 = vector.extract_strided_slice %478 {offsets = [0, 0], sizes = [16, 128], strides = [1, 1]} : vector<16x384xf32> to vector<16x128xf32>
    %481 = arith.addf %479, %480 : vector<16x128xf32>
    %482 = arith.negf %481 : vector<16x128xf32>
    %483 = math.exp %482 : vector<16x128xf32>
    %cst_87 = arith.constant 1.000000e+00 : f32
    %484 = vector.broadcast %cst_87 : f32 to vector<16x128xf32>
    %485 = arith.addf %484, %483 : vector<16x128xf32>
    %486 = arith.divf %484, %485 : vector<16x128xf32>
    %487 = vector.extract_strided_slice %6 {offsets = [0, 128], sizes = [16, 128], strides = [1, 1]} : vector<16x384xf32> to vector<16x128xf32>
    %488 = vector.extract_strided_slice %478 {offsets = [0, 128], sizes = [16, 128], strides = [1, 1]} : vector<16x384xf32> to vector<16x128xf32>
    %489 = arith.addf %487, %488 : vector<16x128xf32>
    %490 = arith.negf %489 : vector<16x128xf32>
    %491 = math.exp %490 : vector<16x128xf32>
    %cst_88 = arith.constant 1.000000e+00 : f32
    %492 = vector.broadcast %cst_88 : f32 to vector<16x128xf32>
    %493 = arith.addf %492, %491 : vector<16x128xf32>
    %494 = arith.divf %492, %493 : vector<16x128xf32>
    %495 = vector.extract_strided_slice %6 {offsets = [0, 256], sizes = [16, 128], strides = [1, 1]} : vector<16x384xf32> to vector<16x128xf32>
    %496 = vector.extract_strided_slice %478 {offsets = [0, 256], sizes = [16, 128], strides = [1, 1]} : vector<16x384xf32> to vector<16x128xf32>
    %497 = arith.mulf %486, %496 : vector<16x128xf32>
    %498 = arith.addf %495, %497 : vector<16x128xf32>
    %499 = math.tanh %498 : vector<16x128xf32>
    %cst_89 = arith.constant 1.000000e+00 : f32
    %500 = vector.broadcast %cst_89 : f32 to vector<16x128xf32>
    %501 = arith.subf %500, %494 : vector<16x128xf32>
    %502 = arith.mulf %501, %499 : vector<16x128xf32>
    %503 = arith.mulf %494, %473 : vector<16x128xf32>
    %504 = arith.addf %502, %503 : vector<16x128xf32>
    %c240 = arith.constant 240 : index
    %c0_90 = arith.constant 0 : index
    %505 = vector.load %arg7[%c240, %c0_90] : memref<384x128xf32, #tpu.memory_space<vmem>>, vector<16x128xf32>
    tpu.vector_store %arg7[%c240, %c0_90], %504 {strides = array<i32>} : memref<384x128xf32, #tpu.memory_space<vmem>>, vector<16x128xf32>,
    %506 = arith.truncf %504 : vector<16x128xf32> to vector<16x128xbf16>
    %cst_91 = arith.constant dense<0.000000e+00> : vector<16x384xf32>
    %507 = tpu.matmul %506, %7, %cst_91 {dimension_numbers = #tpu.dot_dimension_numbers<[1], [0], [0], [1], [0, 0, 1, 1], [], []>} : vector<16x128xbf16>, vector<128x384xbf16>, vector<16x384xf32> -> vector<16x384xf32>
    %508 = vector.broadcast %8 : vector<1x384xf32> to vector<16x384xf32>
    %509 = arith.addf %507, %508 : vector<16x384xf32>
    %510 = vector.extract_strided_slice %6 {offsets = [0, 0], sizes = [16, 128], strides = [1, 1]} : vector<16x384xf32> to vector<16x128xf32>
    %511 = vector.extract_strided_slice %509 {offsets = [0, 0], sizes = [16, 128], strides = [1, 1]} : vector<16x384xf32> to vector<16x128xf32>
    %512 = arith.addf %510, %511 : vector<16x128xf32>
    %513 = arith.negf %512 : vector<16x128xf32>
    %514 = math.exp %513 : vector<16x128xf32>
    %cst_92 = arith.constant 1.000000e+00 : f32
    %515 = vector.broadcast %cst_92 : f32 to vector<16x128xf32>
    %516 = arith.addf %515, %514 : vector<16x128xf32>
    %517 = arith.divf %515, %516 : vector<16x128xf32>
    %518 = vector.extract_strided_slice %6 {offsets = [0, 128], sizes = [16, 128], strides = [1, 1]} : vector<16x384xf32> to vector<16x128xf32>
    %519 = vector.extract_strided_slice %509 {offsets = [0, 128], sizes = [16, 128], strides = [1, 1]} : vector<16x384xf32> to vector<16x128xf32>
    %520 = arith.addf %518, %519 : vector<16x128xf32>
    %521 = arith.negf %520 : vector<16x128xf32>
    %522 = math.exp %521 : vector<16x128xf32>
    %cst_93 = arith.constant 1.000000e+00 : f32
    %523 = vector.broadcast %cst_93 : f32 to vector<16x128xf32>
    %524 = arith.addf %523, %522 : vector<16x128xf32>
    %525 = arith.divf %523, %524 : vector<16x128xf32>
    %526 = vector.extract_strided_slice %6 {offsets = [0, 256], sizes = [16, 128], strides = [1, 1]} : vector<16x384xf32> to vector<16x128xf32>
    %527 = vector.extract_strided_slice %509 {offsets = [0, 256], sizes = [16, 128], strides = [1, 1]} : vector<16x384xf32> to vector<16x128xf32>
    %528 = arith.mulf %517, %527 : vector<16x128xf32>
    %529 = arith.addf %526, %528 : vector<16x128xf32>
    %530 = math.tanh %529 : vector<16x128xf32>
    %cst_94 = arith.constant 1.000000e+00 : f32
    %531 = vector.broadcast %cst_94 : f32 to vector<16x128xf32>
    %532 = arith.subf %531, %525 : vector<16x128xf32>
    %533 = arith.mulf %532, %530 : vector<16x128xf32>
    %534 = arith.mulf %525, %504 : vector<16x128xf32>
    %535 = arith.addf %533, %534 : vector<16x128xf32>
    %c256 = arith.constant 256 : index
    %c0_95 = arith.constant 0 : index
    %536 = vector.load %arg7[%c256, %c0_95] : memref<384x128xf32, #tpu.memory_space<vmem>>, vector<16x128xf32>
    tpu.vector_store %arg7[%c256, %c0_95], %535 {strides = array<i32>} : memref<384x128xf32, #tpu.memory_space<vmem>>, vector<16x128xf32>,
    %537 = arith.truncf %535 : vector<16x128xf32> to vector<16x128xbf16>
    %cst_96 = arith.constant dense<0.000000e+00> : vector<16x384xf32>
    %538 = tpu.matmul %537, %7, %cst_96 {dimension_numbers = #tpu.dot_dimension_numbers<[1], [0], [0], [1], [0, 0, 1, 1], [], []>} : vector<16x128xbf16>, vector<128x384xbf16>, vector<16x384xf32> -> vector<16x384xf32>
    %539 = vector.broadcast %8 : vector<1x384xf32> to vector<16x384xf32>
    %540 = arith.addf %538, %539 : vector<16x384xf32>
    %541 = vector.extract_strided_slice %6 {offsets = [0, 0], sizes = [16, 128], strides = [1, 1]} : vector<16x384xf32> to vector<16x128xf32>
    %542 = vector.extract_strided_slice %540 {offsets = [0, 0], sizes = [16, 128], strides = [1, 1]} : vector<16x384xf32> to vector<16x128xf32>
    %543 = arith.addf %541, %542 : vector<16x128xf32>
    %544 = arith.negf %543 : vector<16x128xf32>
    %545 = math.exp %544 : vector<16x128xf32>
    %cst_97 = arith.constant 1.000000e+00 : f32
    %546 = vector.broadcast %cst_97 : f32 to vector<16x128xf32>
    %547 = arith.addf %546, %545 : vector<16x128xf32>
    %548 = arith.divf %546, %547 : vector<16x128xf32>
    %549 = vector.extract_strided_slice %6 {offsets = [0, 128], sizes = [16, 128], strides = [1, 1]} : vector<16x384xf32> to vector<16x128xf32>
    %550 = vector.extract_strided_slice %540 {offsets = [0, 128], sizes = [16, 128], strides = [1, 1]} : vector<16x384xf32> to vector<16x128xf32>
    %551 = arith.addf %549, %550 : vector<16x128xf32>
    %552 = arith.negf %551 : vector<16x128xf32>
    %553 = math.exp %552 : vector<16x128xf32>
    %cst_98 = arith.constant 1.000000e+00 : f32
    %554 = vector.broadcast %cst_98 : f32 to vector<16x128xf32>
    %555 = arith.addf %554, %553 : vector<16x128xf32>
    %556 = arith.divf %554, %555 : vector<16x128xf32>
    %557 = vector.extract_strided_slice %6 {offsets = [0, 256], sizes = [16, 128], strides = [1, 1]} : vector<16x384xf32> to vector<16x128xf32>
    %558 = vector.extract_strided_slice %540 {offsets = [0, 256], sizes = [16, 128], strides = [1, 1]} : vector<16x384xf32> to vector<16x128xf32>
    %559 = arith.mulf %548, %558 : vector<16x128xf32>
    %560 = arith.addf %557, %559 : vector<16x128xf32>
    %561 = math.tanh %560 : vector<16x128xf32>
    %cst_99 = arith.constant 1.000000e+00 : f32
    %562 = vector.broadcast %cst_99 : f32 to vector<16x128xf32>
    %563 = arith.subf %562, %556 : vector<16x128xf32>
    %564 = arith.mulf %563, %561 : vector<16x128xf32>
    %565 = arith.mulf %556, %535 : vector<16x128xf32>
    %566 = arith.addf %564, %565 : vector<16x128xf32>
    %c272 = arith.constant 272 : index
    %c0_100 = arith.constant 0 : index
    %567 = vector.load %arg7[%c272, %c0_100] : memref<384x128xf32, #tpu.memory_space<vmem>>, vector<16x128xf32>
    tpu.vector_store %arg7[%c272, %c0_100], %566 {strides = array<i32>} : memref<384x128xf32, #tpu.memory_space<vmem>>, vector<16x128xf32>,
    %568 = arith.truncf %566 : vector<16x128xf32> to vector<16x128xbf16>
    %cst_101 = arith.constant dense<0.000000e+00> : vector<16x384xf32>
    %569 = tpu.matmul %568, %7, %cst_101 {dimension_numbers = #tpu.dot_dimension_numbers<[1], [0], [0], [1], [0, 0, 1, 1], [], []>} : vector<16x128xbf16>, vector<128x384xbf16>, vector<16x384xf32> -> vector<16x384xf32>
    %570 = vector.broadcast %8 : vector<1x384xf32> to vector<16x384xf32>
    %571 = arith.addf %569, %570 : vector<16x384xf32>
    %572 = vector.extract_strided_slice %6 {offsets = [0, 0], sizes = [16, 128], strides = [1, 1]} : vector<16x384xf32> to vector<16x128xf32>
    %573 = vector.extract_strided_slice %571 {offsets = [0, 0], sizes = [16, 128], strides = [1, 1]} : vector<16x384xf32> to vector<16x128xf32>
    %574 = arith.addf %572, %573 : vector<16x128xf32>
    %575 = arith.negf %574 : vector<16x128xf32>
    %576 = math.exp %575 : vector<16x128xf32>
    %cst_102 = arith.constant 1.000000e+00 : f32
    %577 = vector.broadcast %cst_102 : f32 to vector<16x128xf32>
    %578 = arith.addf %577, %576 : vector<16x128xf32>
    %579 = arith.divf %577, %578 : vector<16x128xf32>
    %580 = vector.extract_strided_slice %6 {offsets = [0, 128], sizes = [16, 128], strides = [1, 1]} : vector<16x384xf32> to vector<16x128xf32>
    %581 = vector.extract_strided_slice %571 {offsets = [0, 128], sizes = [16, 128], strides = [1, 1]} : vector<16x384xf32> to vector<16x128xf32>
    %582 = arith.addf %580, %581 : vector<16x128xf32>
    %583 = arith.negf %582 : vector<16x128xf32>
    %584 = math.exp %583 : vector<16x128xf32>
    %cst_103 = arith.constant 1.000000e+00 : f32
    %585 = vector.broadcast %cst_103 : f32 to vector<16x128xf32>
    %586 = arith.addf %585, %584 : vector<16x128xf32>
    %587 = arith.divf %585, %586 : vector<16x128xf32>
    %588 = vector.extract_strided_slice %6 {offsets = [0, 256], sizes = [16, 128], strides = [1, 1]} : vector<16x384xf32> to vector<16x128xf32>
    %589 = vector.extract_strided_slice %571 {offsets = [0, 256], sizes = [16, 128], strides = [1, 1]} : vector<16x384xf32> to vector<16x128xf32>
    %590 = arith.mulf %579, %589 : vector<16x128xf32>
    %591 = arith.addf %588, %590 : vector<16x128xf32>
    %592 = math.tanh %591 : vector<16x128xf32>
    %cst_104 = arith.constant 1.000000e+00 : f32
    %593 = vector.broadcast %cst_104 : f32 to vector<16x128xf32>
    %594 = arith.subf %593, %587 : vector<16x128xf32>
    %595 = arith.mulf %594, %592 : vector<16x128xf32>
    %596 = arith.mulf %587, %566 : vector<16x128xf32>
    %597 = arith.addf %595, %596 : vector<16x128xf32>
    %c288 = arith.constant 288 : index
    %c0_105 = arith.constant 0 : index
    %598 = vector.load %arg7[%c288, %c0_105] : memref<384x128xf32, #tpu.memory_space<vmem>>, vector<16x128xf32>
    tpu.vector_store %arg7[%c288, %c0_105], %597 {strides = array<i32>} : memref<384x128xf32, #tpu.memory_space<vmem>>, vector<16x128xf32>,
    %599 = arith.truncf %597 : vector<16x128xf32> to vector<16x128xbf16>
    %cst_106 = arith.constant dense<0.000000e+00> : vector<16x384xf32>
    %600 = tpu.matmul %599, %7, %cst_106 {dimension_numbers = #tpu.dot_dimension_numbers<[1], [0], [0], [1], [0, 0, 1, 1], [], []>} : vector<16x128xbf16>, vector<128x384xbf16>, vector<16x384xf32> -> vector<16x384xf32>
    %601 = vector.broadcast %8 : vector<1x384xf32> to vector<16x384xf32>
    %602 = arith.addf %600, %601 : vector<16x384xf32>
    %603 = vector.extract_strided_slice %6 {offsets = [0, 0], sizes = [16, 128], strides = [1, 1]} : vector<16x384xf32> to vector<16x128xf32>
    %604 = vector.extract_strided_slice %602 {offsets = [0, 0], sizes = [16, 128], strides = [1, 1]} : vector<16x384xf32> to vector<16x128xf32>
    %605 = arith.addf %603, %604 : vector<16x128xf32>
    %606 = arith.negf %605 : vector<16x128xf32>
    %607 = math.exp %606 : vector<16x128xf32>
    %cst_107 = arith.constant 1.000000e+00 : f32
    %608 = vector.broadcast %cst_107 : f32 to vector<16x128xf32>
    %609 = arith.addf %608, %607 : vector<16x128xf32>
    %610 = arith.divf %608, %609 : vector<16x128xf32>
    %611 = vector.extract_strided_slice %6 {offsets = [0, 128], sizes = [16, 128], strides = [1, 1]} : vector<16x384xf32> to vector<16x128xf32>
    %612 = vector.extract_strided_slice %602 {offsets = [0, 128], sizes = [16, 128], strides = [1, 1]} : vector<16x384xf32> to vector<16x128xf32>
    %613 = arith.addf %611, %612 : vector<16x128xf32>
    %614 = arith.negf %613 : vector<16x128xf32>
    %615 = math.exp %614 : vector<16x128xf32>
    %cst_108 = arith.constant 1.000000e+00 : f32
    %616 = vector.broadcast %cst_108 : f32 to vector<16x128xf32>
    %617 = arith.addf %616, %615 : vector<16x128xf32>
    %618 = arith.divf %616, %617 : vector<16x128xf32>
    %619 = vector.extract_strided_slice %6 {offsets = [0, 256], sizes = [16, 128], strides = [1, 1]} : vector<16x384xf32> to vector<16x128xf32>
    %620 = vector.extract_strided_slice %602 {offsets = [0, 256], sizes = [16, 128], strides = [1, 1]} : vector<16x384xf32> to vector<16x128xf32>
    %621 = arith.mulf %610, %620 : vector<16x128xf32>
    %622 = arith.addf %619, %621 : vector<16x128xf32>
    %623 = math.tanh %622 : vector<16x128xf32>
    %cst_109 = arith.constant 1.000000e+00 : f32
    %624 = vector.broadcast %cst_109 : f32 to vector<16x128xf32>
    %625 = arith.subf %624, %618 : vector<16x128xf32>
    %626 = arith.mulf %625, %623 : vector<16x128xf32>
    %627 = arith.mulf %618, %597 : vector<16x128xf32>
    %628 = arith.addf %626, %627 : vector<16x128xf32>
    %c304 = arith.constant 304 : index
    %c0_110 = arith.constant 0 : index
    %629 = vector.load %arg7[%c304, %c0_110] : memref<384x128xf32, #tpu.memory_space<vmem>>, vector<16x128xf32>
    tpu.vector_store %arg7[%c304, %c0_110], %628 {strides = array<i32>} : memref<384x128xf32, #tpu.memory_space<vmem>>, vector<16x128xf32>,
    %630 = arith.truncf %628 : vector<16x128xf32> to vector<16x128xbf16>
    %cst_111 = arith.constant dense<0.000000e+00> : vector<16x384xf32>
    %631 = tpu.matmul %630, %7, %cst_111 {dimension_numbers = #tpu.dot_dimension_numbers<[1], [0], [0], [1], [0, 0, 1, 1], [], []>} : vector<16x128xbf16>, vector<128x384xbf16>, vector<16x384xf32> -> vector<16x384xf32>
    %632 = vector.broadcast %8 : vector<1x384xf32> to vector<16x384xf32>
    %633 = arith.addf %631, %632 : vector<16x384xf32>
    %634 = vector.extract_strided_slice %6 {offsets = [0, 0], sizes = [16, 128], strides = [1, 1]} : vector<16x384xf32> to vector<16x128xf32>
    %635 = vector.extract_strided_slice %633 {offsets = [0, 0], sizes = [16, 128], strides = [1, 1]} : vector<16x384xf32> to vector<16x128xf32>
    %636 = arith.addf %634, %635 : vector<16x128xf32>
    %637 = arith.negf %636 : vector<16x128xf32>
    %638 = math.exp %637 : vector<16x128xf32>
    %cst_112 = arith.constant 1.000000e+00 : f32
    %639 = vector.broadcast %cst_112 : f32 to vector<16x128xf32>
    %640 = arith.addf %639, %638 : vector<16x128xf32>
    %641 = arith.divf %639, %640 : vector<16x128xf32>
    %642 = vector.extract_strided_slice %6 {offsets = [0, 128], sizes = [16, 128], strides = [1, 1]} : vector<16x384xf32> to vector<16x128xf32>
    %643 = vector.extract_strided_slice %633 {offsets = [0, 128], sizes = [16, 128], strides = [1, 1]} : vector<16x384xf32> to vector<16x128xf32>
    %644 = arith.addf %642, %643 : vector<16x128xf32>
    %645 = arith.negf %644 : vector<16x128xf32>
    %646 = math.exp %645 : vector<16x128xf32>
    %cst_113 = arith.constant 1.000000e+00 : f32
    %647 = vector.broadcast %cst_113 : f32 to vector<16x128xf32>
    %648 = arith.addf %647, %646 : vector<16x128xf32>
    %649 = arith.divf %647, %648 : vector<16x128xf32>
    %650 = vector.extract_strided_slice %6 {offsets = [0, 256], sizes = [16, 128], strides = [1, 1]} : vector<16x384xf32> to vector<16x128xf32>
    %651 = vector.extract_strided_slice %633 {offsets = [0, 256], sizes = [16, 128], strides = [1, 1]} : vector<16x384xf32> to vector<16x128xf32>
    %652 = arith.mulf %641, %651 : vector<16x128xf32>
    %653 = arith.addf %650, %652 : vector<16x128xf32>
    %654 = math.tanh %653 : vector<16x128xf32>
    %cst_114 = arith.constant 1.000000e+00 : f32
    %655 = vector.broadcast %cst_114 : f32 to vector<16x128xf32>
    %656 = arith.subf %655, %649 : vector<16x128xf32>
    %657 = arith.mulf %656, %654 : vector<16x128xf32>
    %658 = arith.mulf %649, %628 : vector<16x128xf32>
    %659 = arith.addf %657, %658 : vector<16x128xf32>
    %c320 = arith.constant 320 : index
    %c0_115 = arith.constant 0 : index
    %660 = vector.load %arg7[%c320, %c0_115] : memref<384x128xf32, #tpu.memory_space<vmem>>, vector<16x128xf32>
    tpu.vector_store %arg7[%c320, %c0_115], %659 {strides = array<i32>} : memref<384x128xf32, #tpu.memory_space<vmem>>, vector<16x128xf32>,
    %661 = arith.truncf %659 : vector<16x128xf32> to vector<16x128xbf16>
    %cst_116 = arith.constant dense<0.000000e+00> : vector<16x384xf32>
    %662 = tpu.matmul %661, %7, %cst_116 {dimension_numbers = #tpu.dot_dimension_numbers<[1], [0], [0], [1], [0, 0, 1, 1], [], []>} : vector<16x128xbf16>, vector<128x384xbf16>, vector<16x384xf32> -> vector<16x384xf32>
    %663 = vector.broadcast %8 : vector<1x384xf32> to vector<16x384xf32>
    %664 = arith.addf %662, %663 : vector<16x384xf32>
    %665 = vector.extract_strided_slice %6 {offsets = [0, 0], sizes = [16, 128], strides = [1, 1]} : vector<16x384xf32> to vector<16x128xf32>
    %666 = vector.extract_strided_slice %664 {offsets = [0, 0], sizes = [16, 128], strides = [1, 1]} : vector<16x384xf32> to vector<16x128xf32>
    %667 = arith.addf %665, %666 : vector<16x128xf32>
    %668 = arith.negf %667 : vector<16x128xf32>
    %669 = math.exp %668 : vector<16x128xf32>
    %cst_117 = arith.constant 1.000000e+00 : f32
    %670 = vector.broadcast %cst_117 : f32 to vector<16x128xf32>
    %671 = arith.addf %670, %669 : vector<16x128xf32>
    %672 = arith.divf %670, %671 : vector<16x128xf32>
    %673 = vector.extract_strided_slice %6 {offsets = [0, 128], sizes = [16, 128], strides = [1, 1]} : vector<16x384xf32> to vector<16x128xf32>
    %674 = vector.extract_strided_slice %664 {offsets = [0, 128], sizes = [16, 128], strides = [1, 1]} : vector<16x384xf32> to vector<16x128xf32>
    %675 = arith.addf %673, %674 : vector<16x128xf32>
    %676 = arith.negf %675 : vector<16x128xf32>
    %677 = math.exp %676 : vector<16x128xf32>
    %cst_118 = arith.constant 1.000000e+00 : f32
    %678 = vector.broadcast %cst_118 : f32 to vector<16x128xf32>
    %679 = arith.addf %678, %677 : vector<16x128xf32>
    %680 = arith.divf %678, %679 : vector<16x128xf32>
    %681 = vector.extract_strided_slice %6 {offsets = [0, 256], sizes = [16, 128], strides = [1, 1]} : vector<16x384xf32> to vector<16x128xf32>
    %682 = vector.extract_strided_slice %664 {offsets = [0, 256], sizes = [16, 128], strides = [1, 1]} : vector<16x384xf32> to vector<16x128xf32>
    %683 = arith.mulf %672, %682 : vector<16x128xf32>
    %684 = arith.addf %681, %683 : vector<16x128xf32>
    %685 = math.tanh %684 : vector<16x128xf32>
    %cst_119 = arith.constant 1.000000e+00 : f32
    %686 = vector.broadcast %cst_119 : f32 to vector<16x128xf32>
    %687 = arith.subf %686, %680 : vector<16x128xf32>
    %688 = arith.mulf %687, %685 : vector<16x128xf32>
    %689 = arith.mulf %680, %659 : vector<16x128xf32>
    %690 = arith.addf %688, %689 : vector<16x128xf32>
    %c336 = arith.constant 336 : index
    %c0_120 = arith.constant 0 : index
    %691 = vector.load %arg7[%c336, %c0_120] : memref<384x128xf32, #tpu.memory_space<vmem>>, vector<16x128xf32>
    tpu.vector_store %arg7[%c336, %c0_120], %690 {strides = array<i32>} : memref<384x128xf32, #tpu.memory_space<vmem>>, vector<16x128xf32>,
    %692 = arith.truncf %690 : vector<16x128xf32> to vector<16x128xbf16>
    %cst_121 = arith.constant dense<0.000000e+00> : vector<16x384xf32>
    %693 = tpu.matmul %692, %7, %cst_121 {dimension_numbers = #tpu.dot_dimension_numbers<[1], [0], [0], [1], [0, 0, 1, 1], [], []>} : vector<16x128xbf16>, vector<128x384xbf16>, vector<16x384xf32> -> vector<16x384xf32>
    %694 = vector.broadcast %8 : vector<1x384xf32> to vector<16x384xf32>
    %695 = arith.addf %693, %694 : vector<16x384xf32>
    %696 = vector.extract_strided_slice %6 {offsets = [0, 0], sizes = [16, 128], strides = [1, 1]} : vector<16x384xf32> to vector<16x128xf32>
    %697 = vector.extract_strided_slice %695 {offsets = [0, 0], sizes = [16, 128], strides = [1, 1]} : vector<16x384xf32> to vector<16x128xf32>
    %698 = arith.addf %696, %697 : vector<16x128xf32>
    %699 = arith.negf %698 : vector<16x128xf32>
    %700 = math.exp %699 : vector<16x128xf32>
    %cst_122 = arith.constant 1.000000e+00 : f32
    %701 = vector.broadcast %cst_122 : f32 to vector<16x128xf32>
    %702 = arith.addf %701, %700 : vector<16x128xf32>
    %703 = arith.divf %701, %702 : vector<16x128xf32>
    %704 = vector.extract_strided_slice %6 {offsets = [0, 128], sizes = [16, 128], strides = [1, 1]} : vector<16x384xf32> to vector<16x128xf32>
    %705 = vector.extract_strided_slice %695 {offsets = [0, 128], sizes = [16, 128], strides = [1, 1]} : vector<16x384xf32> to vector<16x128xf32>
    %706 = arith.addf %704, %705 : vector<16x128xf32>
    %707 = arith.negf %706 : vector<16x128xf32>
    %708 = math.exp %707 : vector<16x128xf32>
    %cst_123 = arith.constant 1.000000e+00 : f32
    %709 = vector.broadcast %cst_123 : f32 to vector<16x128xf32>
    %710 = arith.addf %709, %708 : vector<16x128xf32>
    %711 = arith.divf %709, %710 : vector<16x128xf32>
    %712 = vector.extract_strided_slice %6 {offsets = [0, 256], sizes = [16, 128], strides = [1, 1]} : vector<16x384xf32> to vector<16x128xf32>
    %713 = vector.extract_strided_slice %695 {offsets = [0, 256], sizes = [16, 128], strides = [1, 1]} : vector<16x384xf32> to vector<16x128xf32>
    %714 = arith.mulf %703, %713 : vector<16x128xf32>
    %715 = arith.addf %712, %714 : vector<16x128xf32>
    %716 = math.tanh %715 : vector<16x128xf32>
    %cst_124 = arith.constant 1.000000e+00 : f32
    %717 = vector.broadcast %cst_124 : f32 to vector<16x128xf32>
    %718 = arith.subf %717, %711 : vector<16x128xf32>
    %719 = arith.mulf %718, %716 : vector<16x128xf32>
    %720 = arith.mulf %711, %690 : vector<16x128xf32>
    %721 = arith.addf %719, %720 : vector<16x128xf32>
    %c352 = arith.constant 352 : index
    %c0_125 = arith.constant 0 : index
    %722 = vector.load %arg7[%c352, %c0_125] : memref<384x128xf32, #tpu.memory_space<vmem>>, vector<16x128xf32>
    tpu.vector_store %arg7[%c352, %c0_125], %721 {strides = array<i32>} : memref<384x128xf32, #tpu.memory_space<vmem>>, vector<16x128xf32>,
    %723 = arith.truncf %721 : vector<16x128xf32> to vector<16x128xbf16>
    %cst_126 = arith.constant dense<0.000000e+00> : vector<16x384xf32>
    %724 = tpu.matmul %723, %7, %cst_126 {dimension_numbers = #tpu.dot_dimension_numbers<[1], [0], [0], [1], [0, 0, 1, 1], [], []>} : vector<16x128xbf16>, vector<128x384xbf16>, vector<16x384xf32> -> vector<16x384xf32>
    %725 = vector.broadcast %8 : vector<1x384xf32> to vector<16x384xf32>
    %726 = arith.addf %724, %725 : vector<16x384xf32>
    %727 = vector.extract_strided_slice %6 {offsets = [0, 0], sizes = [16, 128], strides = [1, 1]} : vector<16x384xf32> to vector<16x128xf32>
    %728 = vector.extract_strided_slice %726 {offsets = [0, 0], sizes = [16, 128], strides = [1, 1]} : vector<16x384xf32> to vector<16x128xf32>
    %729 = arith.addf %727, %728 : vector<16x128xf32>
    %730 = arith.negf %729 : vector<16x128xf32>
    %731 = math.exp %730 : vector<16x128xf32>
    %cst_127 = arith.constant 1.000000e+00 : f32
    %732 = vector.broadcast %cst_127 : f32 to vector<16x128xf32>
    %733 = arith.addf %732, %731 : vector<16x128xf32>
    %734 = arith.divf %732, %733 : vector<16x128xf32>
    %735 = vector.extract_strided_slice %6 {offsets = [0, 128], sizes = [16, 128], strides = [1, 1]} : vector<16x384xf32> to vector<16x128xf32>
    %736 = vector.extract_strided_slice %726 {offsets = [0, 128], sizes = [16, 128], strides = [1, 1]} : vector<16x384xf32> to vector<16x128xf32>
    %737 = arith.addf %735, %736 : vector<16x128xf32>
    %738 = arith.negf %737 : vector<16x128xf32>
    %739 = math.exp %738 : vector<16x128xf32>
    %cst_128 = arith.constant 1.000000e+00 : f32
    %740 = vector.broadcast %cst_128 : f32 to vector<16x128xf32>
    %741 = arith.addf %740, %739 : vector<16x128xf32>
    %742 = arith.divf %740, %741 : vector<16x128xf32>
    %743 = vector.extract_strided_slice %6 {offsets = [0, 256], sizes = [16, 128], strides = [1, 1]} : vector<16x384xf32> to vector<16x128xf32>
    %744 = vector.extract_strided_slice %726 {offsets = [0, 256], sizes = [16, 128], strides = [1, 1]} : vector<16x384xf32> to vector<16x128xf32>
    %745 = arith.mulf %734, %744 : vector<16x128xf32>
    %746 = arith.addf %743, %745 : vector<16x128xf32>
    %747 = math.tanh %746 : vector<16x128xf32>
    %cst_129 = arith.constant 1.000000e+00 : f32
    %748 = vector.broadcast %cst_129 : f32 to vector<16x128xf32>
    %749 = arith.subf %748, %742 : vector<16x128xf32>
    %750 = arith.mulf %749, %747 : vector<16x128xf32>
    %751 = arith.mulf %742, %721 : vector<16x128xf32>
    %752 = arith.addf %750, %751 : vector<16x128xf32>
    %c368 = arith.constant 368 : index
    %c0_130 = arith.constant 0 : index
    %753 = vector.load %arg7[%c368, %c0_130] : memref<384x128xf32, #tpu.memory_space<vmem>>, vector<16x128xf32>
    tpu.vector_store %arg7[%c368, %c0_130], %752 {strides = array<i32>} : memref<384x128xf32, #tpu.memory_space<vmem>>, vector<16x128xf32>,
    %c0_131 = arith.constant 0 : index
    %c0_132 = arith.constant 0 : index
    %754 = vector.load %arg7[%c0_131, %c0_132] : memref<384x128xf32, #tpu.memory_space<vmem>>, vector<384x128xf32>
    %c0_133 = arith.constant 0 : index
    %c0_134 = arith.constant 0 : index
    %755 = vector.load %arg5[%c0_133, %c0_134] : memref<128x1xf32, #tpu.memory_space<vmem>>, vector<128x1xf32>
    %cst_135 = arith.constant dense<0.000000e+00> : vector<384x1xf32>
    %756 = tpu.matmul %754, %755, %cst_135 {dimension_numbers = #tpu.dot_dimension_numbers<[1], [0], [0], [1], [0, 0, 1, 1], [], []>} : vector<384x128xf32>, vector<128x1xf32>, vector<384x1xf32> -> vector<384x1xf32>
    %c0_136 = arith.constant 0 : index
    %c0_137 = arith.constant 0 : index
    %757 = vector.load %arg6[%c0_136, %c0_137] : memref<384x1xf32, #tpu.memory_space<vmem>>, vector<384x1xf32>
    tpu.vector_store %arg6[%c0_136, %c0_137], %756 {strides = array<i32>} : memref<384x1xf32, #tpu.memory_space<vmem>>, vector<384x1xf32>,
    return
  }
}

</mosaic_0001>

<bundles_post_ra>
// kernel: gcn_forward.4
= control target key start
LH: loop header
LB: loop body
LE: loop exit
PB: predicated region body
PF: predicated region fallthrough
CT: control target
= control target key end

     0   :  { %v1350_v1 = vmov 0   ;;  %vm130_vm0 = vcmask 523264   ;;  %v1351_v29 = vmov 0.0   ;;  %vm1352_vm1 = vmmov 0   ;;  %s1803_s1 = inlined_call_operand.vmem [shape: bf16[64,384], index: 1, kind: input, shape index: {}]   ;;  %s1804_s0 = inlined_call_operand.vmem [shape: f32[64,64], index: 0, kind: input, shape index: {}]   ;;  %s1805_s2 = inlined_call_operand.vmem [shape: bf16[128,384], index: 2, kind: input, shape index: {}]   ;;  %s1806_s3 = inlined_call_operand.vmem [shape: f32[1,384], index: 3, kind: input, shape index: {}]   ;;  %s1807_s4 = inlined_call_operand.vmem [shape: f32[1,384], index: 4, kind: input, shape index: {}]   ;;  %s1808_s5 = inlined_call_operand.vmem [shape: f32[16,128], index: 5, kind: output, shape index: {}]  }
   0x1   :  { %v1222_v0 = vld [vmem:[%s1803_s1 + $0x4] ss:$12 sps:$4 sm:$0xff]   ;;  %175 = vmatprep.mubr.bf16.mxu0 %v1350_v1  ;;  %v1224_v2 = vld [vmem:[%s1803_s1] ss:$12 sps:$4 sm:$0xff]   ;;  %v1225_v3 = vld [vmem:[%s1803_s1 + $0x1c] ss:$12 sps:$4 sm:$0xff]   ;;  %v51_v50 = vlaneseq }
   0x2   :  { %143 = vmatprep.subr.bf16.mxu0 %v1222_v0  ;;  %v1227_v4 = vld [vmem:[%s1803_s1 + $0x18] ss:$12 sps:$4 sm:$0xff]   ;;  %v1228_v5 = vld [vmem:[%s1803_s1 + $0x34] ss:$12 sps:$4 sm:$0xff]   ;;  %v22_v7 = vld [vmem:[%s1804_s0 + $0x8] sm:$0xff] }
   0x3   :  { %144 = vmatpush1.bf16.msra.mxu0 %v1224_v2  ;;  %v21_v6 = vld [vmem:[%s1804_s0] sm:$0xff]  ;;  %v1230_v9 = vld [vmem:[%s1803_s1 + $0x30] ss:$12 sps:$4 sm:$0xff]   ;;  %v1231_v10 = vld [vmem:[%s1803_s1 + $0x4c] ss:$12 sps:$4 sm:$0xff]   ;;  %v52_v51 = vshrl.u32 %v51_v50, 7 }
   0x4   :  { %145 = vmatprep.subr.bf16.mxu0 %v1225_v3  ;;  %v29_v8 = vpack.c.bf16 %v22_v7, %v21_v6  ;;  %v1240_v11 = vld [vmem:[%s1803_s1 + $0x8] ss:$12 sps:$4 sm:$0xff]   ;;  %v1421_v13 = vld [vmem:[%s1805_s2 + $0x4] ss:$12 sps:$4 sm:$0xff]   ;;  %v1244_v14 = vld [vmem:[%s1803_s1 + $0x20] ss:$12 sps:$4 sm:$0xff]  }
   0x5   :  { %v1233_v12 = vld [vmem:[%s1803_s1 + $0x48] ss:$12 sps:$4 sm:$0xff]   ;;  %1075 = vmatprep.subr.bf16.mxu1 %v1240_v11  ;;  %v1429_v15 = vld [vmem:[%s1805_s2] ss:$12 sps:$4 sm:$0xff]   ;;  %v1248_v16 = vld [vmem:[%s1803_s1 + $0x38] ss:$12 sps:$4 sm:$0xff]  }
   0x6   :  { %1083 = vmatprep.mubr.msk.bf16.mxu1 %vm130_vm0, %v29_v8  ;;  %1076 = vmatpush3.bf16.msra.mxu1 %v1240_v11  ;;  %v1438_v17 = vld [vmem:[%s1805_s2 + $0x1c] ss:$12 sps:$4 sm:$0xff]   ;;  %v1448_v19 = vld [vmem:[%s1805_s2 + $0x18] ss:$12 sps:$4 sm:$0xff]   ;;  %v23_v20 = vld [vmem:[%s1804_s0 + $0x10] sm:$0xff]  ;;  %v61_v52 = vsub.s32 2, %v52_v51 }
   0x7   :  { %146 = vmatpush1.bf16.msra.mxu0 %v1227_v4  ;;  %1077 = vmatprep.subr.bf16.mxu1 %v1244_v14  ;;  %v1252_v18 = vld [vmem:[%s1803_s1 + $0x50] ss:$12 sps:$4 sm:$0xff]   ;;  %v1461_v22 = vld [vmem:[%s1805_s2 + $0x34] ss:$12 sps:$4 sm:$0xff]   ;;  %v1472_v25 = vld [vmem:[%s1805_s2 + $0x4c] ss:$12 sps:$4 sm:$0xff]  }
   0x8   :  { %147 = vmatprep.subr.bf16.mxu0 %v1228_v5  ;;  %v24_v21 = vld [vmem:[%s1804_s0 + $0x18] sm:$0xff]  ;;  %v25_v26 = vld [vmem:[%s1804_s0 + $0x20] sm:$0xff]  ;;  %v26_v27 = vld [vmem:[%s1804_s0 + $0x28] sm:$0xff]  ;;  %v53_v3 = vsub.s32 0, %v52_v51 }
   0x9   :  { %v30_v23 = vpack.c.bf16 %v24_v21, %v23_v20  ;;  %v1466_v24 = vld [vmem:[%s1805_s2 + $0x30] ss:$12 sps:$4 sm:$0xff]   ;;  %v1484_v28 = vld [vmem:[%s1805_s2 + $0x8] ss:$12 sps:$4 sm:$0xff]   ;;  %v31_v31 = vpack.c.bf16 %v26_v27, %v25_v26  ;;  %v1506_v33 = vld [vmem:[%s1805_s2 + $0x20] ss:$12 sps:$4 sm:$0xff]  }
   0xa   :  { %1078 = vmatpush3.bf16.msra.mxu1 %v1244_v14  ;;  %v1492_v30 = vld [vmem:[%s1805_s2 + $0x48] ss:$12 sps:$4 sm:$0xff]   ;;  %v1499_v32 = vld [vmem:[%s1805_s2 + $0x64] ss:$12 sps:$4 sm:$0xff]   ;;  %v1514_v34 = vld [vmem:[%s1805_s2 + $0x60] ss:$12 sps:$4 sm:$0xff]  }
   0xb   :  { %148 = vmatpush1.bf16.msra.mxu0 %v1230_v9  ;;  %1079 = vmatprep.subr.bf16.mxu1 %v1248_v16  ;;  %v27_v35 = vld [vmem:[%s1804_s0 + $0x30] sm:$0xff]  ;;  %v28_v36 = vld [vmem:[%s1804_s0 + $0x38] sm:$0xff]  ;;  %v1591_v47 = vld [vmem:[%s1805_s2 + $0x80] ss:$12 sps:$4 sm:$0xff]  }
   0xc   :  { %149 = vmatprep.subr.bf16.mxu0 %v1231_v10  ;;  %v1526_v37 = vld [vmem:[%s1805_s2 + $0x7c] ss:$12 sps:$4 sm:$0xff]   ;;  %v1532_v38 = vld [vmem:[%s1805_s2 + $0x38] ss:$12 sps:$4 sm:$0xff]   ;;  %v32_v39 = vpack.c.bf16 %v28_v36, %v27_v35  ;;  %v1547_v41 = vld [vmem:[%s1805_s2 + $0x94] ss:$12 sps:$4 sm:$0xff]  }
   0xd   :  { %v1540_v40 = vld [vmem:[%s1805_s2 + $0x78] ss:$12 sps:$4 sm:$0xff]   ;;  %v1554_v42 = vld [vmem:[%s1805_s2 + $0x50] ss:$12 sps:$4 sm:$0xff]   ;;  %v1575_v45 = vld [vmem:[%s1805_s2 + $0x68] ss:$12 sps:$4 sm:$0xff]  }
   0xe   :  { %1080 = vmatpush3.bf16.msra.mxu1 %v1248_v16  ;;  %v1563_v43 = vld [vmem:[%s1805_s2 + $0x90] ss:$12 sps:$4 sm:$0xff]   ;;  %v1569_v44 = vld [vmem:[%s1805_s2 + $0xac] ss:$12 sps:$4 sm:$0xff]   ;;  %v1583_v46 = vld [vmem:[%s1805_s2 + $0xa8] ss:$12 sps:$4 sm:$0xff]  }
   0xf   :  { %150 = vmatpush1.bf16.msra.mxu0 %v1233_v12  ;;  %1081 = vmatprep.subr.bf16.mxu1 %v1252_v18  ;;  %v1600_v48 = vld [vmem:[%s1805_s2 + $0x98] ss:$12 sps:$4 sm:$0xff]   ;;  %v1611_v49 = vld [vmem:[%s1805_s2 + $0xb0] ss:$12 sps:$4 sm:$0xff]   ;;  %v49_v53 = vld [vmem:[%s1806_s3] sm:$0x7] }
  0x10   :  { %458 = vmatprep.subr.bf16.mxu0 %v1421_v13  ;;  %v1652_v54 = vrot.slane %v49_v53, %v61_v52  ;;  %v313_v6 = vld [vmem:[%s1807_s4] sm:$0x7]  ;;  %v54_v9 = vrot.slane %v49_v53, %v53_v3 }
  0x11   :  { %v318_v10 = vrot.slane %v313_v6, %v53_v3 }
  0x12   :  { %983 = vmatmul.mubr.msk.bf16.vlgmr.msra.gmra.mrb[0].mxu0 %vm130_vm0, %v29_v8  ;;  %1082 = vmatpush3.bf16.msra.mxu1 %v1252_v18  ;;  %v57_v8 = vsub.s32 1, %v52_v51 }
  0x13   :  { %459 = vmatpush1.bf16.msra.mxu0 %v1429_v15  ;;  %185 = vmatprep.mubr.bf16.mxu0 %v1350_v1  ;;  %v1675_v14 = vadd.f32 %v318_v10, %v54_v9 }
  0x14   :  { %460 = vmatprep.subr.bf16.mxu0 %v1438_v17  ;;  %1091 = vmatprep.subr.bf16.mxu1 %v1351_v29  ;;  %v58_v11 = vrot.slane %v49_v53, %v57_v8  ;;  %v322_v12 = vrot.slane %v313_v6, %v57_v8  ;;  %v1683_v8 = vrot.slane %v313_v6, %v61_v52 }
  0x15   :  { %1084 = vmatmul.mubr.msk.bf16.vlgmr.msra.gmra.mrb[0].mxu1 %vm130_vm0, %v30_v23 }
  0x16   :  { %1092 = vmatpush3.bf16.msra.mxu1 %v1484_v28  ;;  %1087 = vmatprep.mubr.msk.bf16.mxu1 %vm130_vm0, %v31_v31  ;;  %v1677_v18 = vadd.f32 %v322_v12, %v58_v11 }
  0x17   :  { %461 = vmatpush1.bf16.msra.mxu0 %v1448_v19  ;;  %1093 = vmatprep.subr.bf16.mxu1 %v1351_v29 }
  0x18   :  { %462 = vmatprep.subr.bf16.mxu0 %v1461_v22 }
  0x1a   :  { %984 = vmatmul.mubr.msk.bf16.gmra.mrb[4].mxu0 %vm130_vm0, %v30_v23  ;;  %1094 = vmatpush3.bf16.msra.mxu1 %v1506_v33 }
  0x1b   :  { %463 = vmatpush1.bf16.msra.mxu0 %v1466_v24  ;;  %195 = vmatprep.mubr.bf16.mxu0 %v1350_v1 }
  0x1c   :  { %464 = vmatprep.subr.bf16.mxu0 %v1472_v25  ;;  %1095 = vmatprep.subr.bf16.mxu1 %v1351_v29 }
  0x1d   :  { %1088 = vmatmul.mubr.msk.bf16.gmra.mrb[4].mxu1 %vm130_vm0, %v32_v39 }
  0x1e   :  { %1096 = vmatpush3.bf16.msra.mxu1 %v1532_v38  ;;  %1107 = vmatprep.mubr.msk.bf16.mxu1 %vm1352_vm1, %v1351_v29 }
  0x1f   :  { %465 = vmatpush1.bf16.msra.mxu0 %v1492_v30  ;;  %1097 = vmatprep.subr.bf16.mxu1 %v1351_v29 }
  0x20   :  { %466 = vmatprep.subr.bf16.mxu0 %v1499_v32 }
  0x22   :  { %985 = vmatmul.mubr.msk.bf16.gmra.mrb[8].mxu0 %vm130_vm0, %v31_v31  ;;  %1098 = vmatpush3.bf16.msra.mxu1 %v1554_v42 }
  0x23   :  { %467 = vmatpush1.bf16.msra.mxu0 %v1514_v34  ;;  %205 = vmatprep.mubr.bf16.mxu0 %v1350_v1 }
  0x24   :  { %468 = vmatprep.subr.bf16.mxu0 %v1526_v37  ;;  %1099 = vmatprep.subr.bf16.mxu1 %v1351_v29 }
  0x26   :  { %1100 = vmatpush3.bf16.msra.mxu1 %v1575_v45 }
  0x27   :  { %469 = vmatpush1.bf16.msra.mxu0 %v1540_v40  ;;  %1101 = vmatprep.subr.bf16.mxu1 %v1351_v29 }
  0x28   :  { %470 = vmatprep.subr.bf16.mxu0 %v1547_v41 }
  0x2a   :  { %986 = vmatmul.mubr.msk.bf16.gmra.mrb[12].mxu0 %vm130_vm0, %v32_v39  ;;  %1102 = vmatpush3.bf16.msra.mxu1 %v1591_v47 }
  0x2b   :  { %471 = vmatpush1.bf16.msra.mxu0 %v1563_v43  ;;  %490 = vmatprep.mubr.bf16.mxu0 %v1350_v1 }
  0x2c   :  { %472 = vmatprep.subr.bf16.mxu0 %v1569_v44  ;;  %1103 = vmatprep.subr.bf16.mxu1 %v1351_v29 }
  0x2e   :  { %1104 = vmatpush3.bf16.msra.mxu1 %v1600_v48 }
  0x2f   :  { %473 = vmatpush1.bf16.msra.mxu0 %v1583_v46  ;;  %1105 = vmatprep.subr.bf16.mxu1 %v1351_v29 }
  0x30   :  { %585 = vmatprep.subr.bf16.mxu0 %v1421_v13 }
  0x32   :  { %491 = vmatmul.mubr.bf16.vlgmr.msra.gmra.mrb[0].mxu0 %v1350_v1  ;;  %1106 = vmatpush3.bf16.msra.mxu1 %v1611_v49 }
  0x33   :  { %586 = vmatpush1.bf16.msra.mxu0 %v1429_v15  ;;  %617 = vmatprep.mubr.bf16.mxu0 %v1350_v1 }
  0x34   :  { %587 = vmatprep.subr.bf16.mxu0 %v1438_v17  ;;  %1111 = vmatprep.subr.bf16.mxu1 %v1351_v29 }
  0x35   :  { %1108 = vmatmul.mubr.bf16.vlgmr.msra.gmra.mrb[8].mxu1 %v1350_v1 }
  0x36   :  { %1112 = vmatpush3.bf16.msra.mxu1 %v1484_v28  ;;  %1127 = vmatprep.mubr.msk.bf16.mxu1 %vm1352_vm1, %v1351_v29 }
  0x37   :  { %588 = vmatpush1.bf16.msra.mxu0 %v1448_v19  ;;  %1113 = vmatprep.subr.bf16.mxu1 %v1351_v29 }
  0x38   :  { %589 = vmatprep.subr.bf16.mxu0 %v1461_v22 }
  0x3a   :  { %1114 = vmatpush3.bf16.msra.mxu1 %v1506_v33 }
  0x3b   :  { %590 = vmatpush1.bf16.msra.mxu0 %v1466_v24  ;;  %1115 = vmatprep.subr.bf16.mxu1 %v1351_v29 }
  0x3c   :  { %591 = vmatprep.subr.bf16.mxu0 %v1472_v25 }
  0x3e   :  { %1116 = vmatpush3.bf16.msra.mxu1 %v1532_v38 }
  0x3f   :  { %592 = vmatpush1.bf16.msra.mxu0 %v1492_v30  ;;  %1117 = vmatprep.subr.bf16.mxu1 %v1351_v29 }
  0x40   :  { %593 = vmatprep.subr.bf16.mxu0 %v1499_v32 }
  0x42   :  { %1118 = vmatpush3.bf16.msra.mxu1 %v1554_v42 }
  0x43   :  { %594 = vmatpush1.bf16.msra.mxu0 %v1514_v34  ;;  %1119 = vmatprep.subr.bf16.mxu1 %v1351_v29 }
  0x44   :  { %595 = vmatprep.subr.bf16.mxu0 %v1526_v37 }
  0x46   :  { %1120 = vmatpush3.bf16.msra.mxu1 %v1575_v45 }
  0x47   :  { %596 = vmatpush1.bf16.msra.mxu0 %v1540_v40  ;;  %1121 = vmatprep.subr.bf16.mxu1 %v1351_v29 }
  0x48   :  { %597 = vmatprep.subr.bf16.mxu0 %v1547_v41 }
  0x4a   :  { %1122 = vmatpush3.bf16.msra.mxu1 %v1591_v47 }
  0x4b   :  { %598 = vmatpush1.bf16.msra.mxu0 %v1563_v43  ;;  %1123 = vmatprep.subr.bf16.mxu1 %v1351_v29 }
  0x4c   :  { %599 = vmatprep.subr.bf16.mxu0 %v1569_v44 }
  0x4e   :  { %1124 = vmatpush3.bf16.msra.mxu1 %v1600_v48 }
  0x4f   :  { %600 = vmatpush1.bf16.msra.mxu0 %v1583_v46  ;;  %1125 = vmatprep.subr.bf16.mxu1 %v1351_v29 }
  0x50   :  { %712 = vmatprep.subr.bf16.mxu0 %v1421_v13 }
  0x52   :  { %1126 = vmatpush3.bf16.msra.mxu1 %v1611_v49 }
  0x53   :  { %1131 = vmatprep.subr.bf16.mxu1 %v1351_v29 }
  0xe8   :  { %v1085_v55 = vpop.f32.mrb[0].mxu1 }
  0xe9   :  { %v1655_v56 = vadd.f32 %v1085_v55, %v1652_v54  ;;  %v250_v57 = vpop.f32.mrb[1].mxu1 }
  0xea   :  { %v1086_v58 = vpop.f32.mrb[2].mxu1 }
  0xeb   :  { %v1658_v59 = vadd.f32 %v1086_v58, %v1652_v54  ;;  %v253_v60 = vpop.f32.mrb[3].mxu1 }
  0xf0   :  { %v1089_v61 = vpop.f32.mrb[4].mxu1 }
  0xf1   :  { %v1661_v62 = vadd.f32 %v1089_v61, %v1652_v54  ;;  %v266_v63 = vpop.f32.mrb[5].mxu1 }
  0xf2   :  { %v1664_v0 = vadd.f32 %v266_v63, %v1652_v54  ;;  %v1090_v2 = vpop.f32.mrb[6].mxu1 }
  0xf3   :  { %v1667_v4 = vadd.f32 %v1090_v2, %v1652_v54  ;;  %v269_v5 = vpop.f32.mrb[7].mxu1 }
  0xf4   :  { %v1673_v7 = vadd.f32 %v269_v5, %v1652_v54 }
 0x105   :  { %v492_v16 = vpop.f32.mrb[0].mxu0 }
 0x106   :  { %v1172_v20 = vadd.f32 %v1675_v14, %v492_v16  ;;  %v494_v21 = vpop.f32.mrb[1].mxu0 }
 0x107   :  { %v496_v23 = vpop.f32.mrb[2].mxu0  ;;  %v1174_v35 = vadd.f32 %v1677_v18, %v494_v21  ;;  %v251_v21 = vadd.f32 %v250_v57, %v1652_v54 }
 0x108   :  { %v1015_v26 = vmul.f32 -1.442695, %v1172_v20  ;;  %v1176_v27 = vadd.f32 %v1675_v14, %v496_v23  ;;  %v498_v31 = vpop.f32.mrb[3].mxu0  ;;  %v535_v53 = vpop.f32.mrb[8].mxu1 }
 0x109   :  { %v1178_v39 = vadd.f32 %v1677_v18, %v498_v31  ;;  %v1017_v50 = vmul.f32 -1.442695, %v1174_v35  ;;  %v1109_v55 = vpop.f32.mrb[9].mxu1  ;;  %v536_v12 = vadd.f32 %v535_v53, %v1683_v8  ;;  %v254_v31 = vadd.f32 %v253_v60, %v1652_v54 }
 0x10a   :  { %1270 = vpow2.f32 %v1015_v26  ;;  %v1016_v36 = vmul.f32 -1.442695, %v1176_v27  ;;  %v538_v58 = vpop.f32.mrb[10].mxu1 }
 0x10b   :  { %v1018_v51 = vmul.f32 -1.442695, %v1178_v39  ;;  %v1110_v61 = vpop.f32.mrb[11].mxu1  ;;  %v539_v26 = vadd.f32 %v538_v58, %v1683_v8 }
 0x10c   :  { %1272 = vpow2.f32 %v1016_v36 }
 0x10d   :  { %1274 = vpow2.f32 %v1017_v50 }
 0x10e   :  { %1276 = vpow2.f32 %v1018_v51 }
 0x114   :  { %v1271_v63 = vpop.eup %1270 }
 0x115   :  { %v550_v2 = vadd.f32 1.0, %v1271_v63 }
 0x116   :  { %v1273_v3 = vpop.eup %1272 }
 0x117   :  { %1278 = vrcp.f32 %v550_v2  ;;  %v551_v5 = vadd.f32 1.0, %v1273_v3  ;;  %v1275_v9 = vpop.eup %1274 }
 0x118   :  { %v1277_v10 = vpop.eup %1276  ;;  %v564_v11 = vadd.f32 1.0, %v1275_v9 }
 0x119   :  { %1280 = vrcp.f32 %v551_v5  ;;  %v565_v16 = vadd.f32 1.0, %v1277_v10 }
 0x11a   :  { %1282 = vrcp.f32 %v564_v11 }
 0x11b   :  { %1284 = vrcp.f32 %v565_v16 }
 0x121   :  { %v1279_v20 = vpop.eup %1278 }
 0x122   :  { %v570_v23 = vmul.f32 %v1279_v20, %v536_v12 }
 0x123   :  { %v1281_v27 = vpop.eup %1280 }
 0x124   :  { %v572_v35 = vadd.f32 %v570_v23, %v251_v21  ;;  %v571_v52 = vmul.f32 %v1281_v27, %v539_v26  ;;  %v1283_v36 = vpop.eup %1282 }
 0x125   :  { %v1285_v39 = vpop.eup %1284  ;;  %v576_v50 = vsub.f32 1.0, %v1283_v36  ;;  %v580_v57 = vmul.f32 0.0, %v1283_v36 }
 0x126   :  { %1286 = vtanh.f32 %v572_v35  ;;  %v573_v6 = vadd.f32 %v571_v52, %v254_v31  ;;  %v577_v53 = vsub.f32 1.0, %v1285_v39  ;;  %v581_v2 = vmul.f32 0.0, %v1285_v39 }
 0x128   :  { %1288 = vtanh.f32 %v573_v6 }
 0x130   :  { %v1287_v51 = vpop.eup %1286 }
 0x131   :  { %v578_v55 = vmul.f32 %v1287_v51, %v576_v50 }
 0x132   :  { %v1289_v61 = vpop.eup %1288 }
 0x133   :  { %v579_v63 = vmul.f32 %v1289_v61, %v577_v53  ;;  %v1689_v58 = vadd.f32 %v580_v57, %v578_v55 }
 0x135   :  { %v1691_v3 = vadd.f32 %v581_v2, %v579_v63 }
 0x137   :  { %v584_v54 = vpack.c.bf16 %v1691_v3, %v1689_v58 }
 0x139   :  { %618 = vmatmul.mubr.bf16.vlgmr.msra.gmra.mrb[4].mxu0 %v584_v54  ;;  %1128 = vmatmul.mubr.bf16.vlgmr.msra.gmra.mrb[12].mxu1 %v584_v54 }
 0x13a   :  { %713 = vmatpush1.bf16.msra.mxu0 %v1429_v15  ;;  %1132 = vmatpush3.bf16.msra.mxu1 %v1484_v28 }
 0x13b   :  { %714 = vmatprep.subr.bf16.mxu0 %v1438_v17  ;;  %1133 = vmatprep.subr.bf16.mxu1 %v1351_v29 }
 0x13c   :  { %744 = vmatprep.mubr.bf16.mxu0 %v1350_v1  ;;  %1147 = vmatprep.mubr.msk.bf16.mxu1 %vm1352_vm1, %v1351_v29 }
 0x13e   :  { %715 = vmatpush1.bf16.msra.mxu0 %v1448_v19  ;;  %1134 = vmatpush3.bf16.msra.mxu1 %v1506_v33 }
 0x13f   :  { %716 = vmatprep.subr.bf16.mxu0 %v1461_v22  ;;  %1135 = vmatprep.subr.bf16.mxu1 %v1351_v29 }
 0x142   :  { %717 = vmatpush1.bf16.msra.mxu0 %v1466_v24  ;;  %1136 = vmatpush3.bf16.msra.mxu1 %v1532_v38 }
 0x143   :  { %718 = vmatprep.subr.bf16.mxu0 %v1472_v25  ;;  %1137 = vmatprep.subr.bf16.mxu1 %v1351_v29 }
 0x146   :  { %719 = vmatpush1.bf16.msra.mxu0 %v1492_v30  ;;  %1138 = vmatpush3.bf16.msra.mxu1 %v1554_v42 }
 0x147   :  { %720 = vmatprep.subr.bf16.mxu0 %v1499_v32  ;;  %1139 = vmatprep.subr.bf16.mxu1 %v1351_v29 }
 0x14a   :  { %721 = vmatpush1.bf16.msra.mxu0 %v1514_v34  ;;  %1140 = vmatpush3.bf16.msra.mxu1 %v1575_v45 }
 0x14b   :  { %722 = vmatprep.subr.bf16.mxu0 %v1526_v37  ;;  %1141 = vmatprep.subr.bf16.mxu1 %v1351_v29 }
 0x14e   :  { %723 = vmatpush1.bf16.msra.mxu0 %v1540_v40  ;;  %1142 = vmatpush3.bf16.msra.mxu1 %v1591_v47 }
 0x14f   :  { %724 = vmatprep.subr.bf16.mxu0 %v1547_v41  ;;  %1143 = vmatprep.subr.bf16.mxu1 %v1351_v29 }
 0x152   :  { %725 = vmatpush1.bf16.msra.mxu0 %v1563_v43  ;;  %1144 = vmatpush3.bf16.msra.mxu1 %v1600_v48 }
 0x153   :  { %726 = vmatprep.subr.bf16.mxu0 %v1569_v44  ;;  %1145 = vmatprep.subr.bf16.mxu1 %v1351_v29 }
 0x156   :  { %727 = vmatpush1.bf16.msra.mxu0 %v1583_v46  ;;  %1146 = vmatpush3.bf16.msra.mxu1 %v1611_v49 }
 0x157   :  { %839 = vmatprep.subr.bf16.mxu0 %v1421_v13  ;;  %1151 = vmatprep.subr.bf16.mxu1 %v1351_v29 }
 0x20c   :  { %v619_v60 = vpop.f32.mrb[4].mxu0  ;;  %v662_v5 = vpop.f32.mrb[12].mxu1 }
 0x20d   :  { %v1180_v9 = vadd.f32 %v1675_v14, %v619_v60  ;;  %v621_v10 = vpop.f32.mrb[5].mxu0  ;;  %v1129_v11 = vpop.f32.mrb[13].mxu1  ;;  %v663_v57 = vadd.f32 %v662_v5, %v1683_v8 }
 0x20e   :  { %v623_v12 = vpop.f32.mrb[6].mxu0  ;;  %v665_v16 = vpop.f32.mrb[14].mxu1  ;;  %v1182_v27 = vadd.f32 %v1677_v18, %v621_v10 }
 0x20f   :  { %v1019_v20 = vmul.f32 -1.442695, %v1180_v9  ;;  %v1184_v21 = vadd.f32 %v1675_v14, %v623_v12  ;;  %v625_v23 = vpop.f32.mrb[7].mxu0  ;;  %v1130_v26 = vpop.f32.mrb[15].mxu1  ;;  %v666_v54 = vadd.f32 %v665_v16, %v1683_v8 }
 0x210   :  { %v1186_v13 = vadd.f32 %v1677_v18, %v625_v23  ;;  %v1021_v35 = vmul.f32 -1.442695, %v1182_v27 }
 0x211   :  { %1290 = vpow2.f32 %v1019_v20  ;;  %v1020_v31 = vmul.f32 -1.442695, %v1184_v21 }
 0x212   :  { %v1022_v52 = vmul.f32 -1.442695, %v1186_v13 }
 0x213   :  { %1292 = vpow2.f32 %v1020_v31 }
 0x214   :  { %1294 = vpow2.f32 %v1021_v35 }
 0x215   :  { %1296 = vpow2.f32 %v1022_v52 }
 0x21b   :  { %v1291_v6 = vpop.eup %1290 }
 0x21c   :  { %v677_v36 = vadd.f32 1.0, %v1291_v6 }
 0x21d   :  { %v1293_v39 = vpop.eup %1292 }
 0x21e   :  { %1298 = vrcp.f32 %v677_v36  ;;  %v678_v50 = vadd.f32 1.0, %v1293_v39  ;;  %v1295_v51 = vpop.eup %1294 }
 0x21f   :  { %v1297_v53 = vpop.eup %1296  ;;  %v691_v55 = vadd.f32 1.0, %v1295_v51 }
 0x220   :  { %1300 = vrcp.f32 %v678_v50  ;;  %v692_v61 = vadd.f32 1.0, %v1297_v53 }
 0x221   :  { %1302 = vrcp.f32 %v691_v55 }
 0x222   :  { %1304 = vrcp.f32 %v692_v61 }
 0x228   :  { %v1299_v63 = vpop.eup %1298 }
 0x229   :  { %v697_v2 = vmul.f32 %v1299_v63, %v663_v57 }
 0x22a   :  { %v1301_v60 = vpop.eup %1300 }
 0x22b   :  { %v699_v9 = vadd.f32 %v697_v2, %v1655_v56  ;;  %v698_v10 = vmul.f32 %v1301_v60, %v666_v54  ;;  %v1303_v12 = vpop.eup %1302 }
 0x22c   :  { %v1305_v20 = vpop.eup %1304  ;;  %v703_v21 = vsub.f32 1.0, %v1303_v12  ;;  %v707_v27 = vmul.f32 %v1303_v12, %v1689_v58 }
 0x22d   :  { %1306 = vtanh.f32 %v699_v9  ;;  %v700_v11 = vadd.f32 %v698_v10, %v1658_v59  ;;  %v704_v5 = vsub.f32 1.0, %v1305_v20  ;;  %v708_v16 = vmul.f32 %v1305_v20, %v1691_v3 }
 0x22f   :  { %1308 = vtanh.f32 %v700_v11 }
 0x237   :  { %v1307_v23 = vpop.eup %1306 }
 0x238   :  { %v705_v26 = vmul.f32 %v1307_v23, %v703_v21 }
 0x239   :  { %v1309_v31 = vpop.eup %1308 }
 0x23a   :  { %v706_v13 = vmul.f32 %v1309_v31, %v704_v5  ;;  %v1740_v35 = vadd.f32 %v707_v27, %v705_v26 }
 0x23c   :  { %v1742_v56 = vadd.f32 %v708_v16, %v706_v13 }
 0x23e   :  { %v711_v59 = vpack.c.bf16 %v1742_v56, %v1740_v35 }
 0x240   :  { %745 = vmatmul.mubr.bf16.vlgmr.msra.gmra.mrb[8].mxu0 %v711_v59  ;;  %1148 = vmatmul.mubr.bf16.vlgmr.msra.gmra.mrb[16].mxu1 %v711_v59 }
 0x241   :  { %840 = vmatpush1.bf16.msra.mxu0 %v1429_v15  ;;  %1152 = vmatpush3.bf16.msra.mxu1 %v1484_v28 }
 0x242   :  { %841 = vmatprep.subr.bf16.mxu0 %v1438_v17  ;;  %1153 = vmatprep.subr.bf16.mxu1 %v1351_v29 }
 0x243   :  { %871 = vmatprep.mubr.bf16.mxu0 %v1350_v1  ;;  %1167 = vmatprep.mubr.msk.bf16.mxu1 %vm1352_vm1, %v1351_v29 }
 0x245   :  { %842 = vmatpush1.bf16.msra.mxu0 %v1448_v19  ;;  %1154 = vmatpush3.bf16.msra.mxu1 %v1506_v33 }
 0x246   :  { %843 = vmatprep.subr.bf16.mxu0 %v1461_v22  ;;  %1155 = vmatprep.subr.bf16.mxu1 %v1351_v29 }
 0x249   :  { %844 = vmatpush1.bf16.msra.mxu0 %v1466_v24  ;;  %1156 = vmatpush3.bf16.msra.mxu1 %v1532_v38 }
 0x24a   :  { %845 = vmatprep.subr.bf16.mxu0 %v1472_v25  ;;  %1157 = vmatprep.subr.bf16.mxu1 %v1351_v29 }
 0x24d   :  { %846 = vmatpush1.bf16.msra.mxu0 %v1492_v30  ;;  %1158 = vmatpush3.bf16.msra.mxu1 %v1554_v42 }
 0x24e   :  { %847 = vmatprep.subr.bf16.mxu0 %v1499_v32  ;;  %1159 = vmatprep.subr.bf16.mxu1 %v1351_v29 }
 0x251   :  { %848 = vmatpush1.bf16.msra.mxu0 %v1514_v34  ;;  %1160 = vmatpush3.bf16.msra.mxu1 %v1575_v45 }
 0x252   :  { %849 = vmatprep.subr.bf16.mxu0 %v1526_v37  ;;  %1161 = vmatprep.subr.bf16.mxu1 %v1351_v29 }
 0x255   :  { %850 = vmatpush1.bf16.msra.mxu0 %v1540_v40  ;;  %1162 = vmatpush3.bf16.msra.mxu1 %v1591_v47 }
 0x256   :  { %851 = vmatprep.subr.bf16.mxu0 %v1547_v41  ;;  %1163 = vmatprep.subr.bf16.mxu1 %v1351_v29 }
 0x259   :  { %852 = vmatpush1.bf16.msra.mxu0 %v1563_v43  ;;  %1164 = vmatpush3.bf16.msra.mxu1 %v1600_v48 }
 0x25a   :  { %853 = vmatprep.subr.bf16.mxu0 %v1569_v44  ;;  %1165 = vmatprep.subr.bf16.mxu1 %v1351_v29 }
 0x25d   :  { %854 = vmatpush1.bf16.msra.mxu0 %v1583_v46  ;;  %1166 = vmatpush3.bf16.msra.mxu1 %v1611_v49 }
 0x313   :  { %v746_v1 = vpop.f32.mrb[8].mxu0  ;;  %v789_v15 = vpop.f32.mrb[16].mxu1 }
 0x314   :  { %v1188_v17 = vadd.f32 %v1675_v14, %v746_v1  ;;  %v748_v19 = vpop.f32.mrb[9].mxu0  ;;  %v1149_v22 = vpop.f32.mrb[17].mxu1  ;;  %v790_v48 = vadd.f32 %v789_v15, %v1683_v8 }
 0x315   :  { %v750_v24 = vpop.f32.mrb[10].mxu0  ;;  %v792_v25 = vpop.f32.mrb[18].mxu1  ;;  %v1190_v34 = vadd.f32 %v1677_v18, %v748_v19 }
 0x316   :  { %v1023_v28 = vmul.f32 -1.442695, %v1188_v17  ;;  %v1192_v30 = vadd.f32 %v1675_v14, %v750_v24  ;;  %v752_v32 = vpop.f32.mrb[11].mxu0  ;;  %v1150_v33 = vpop.f32.mrb[19].mxu1  ;;  %v793_v52 = vadd.f32 %v792_v25, %v1683_v8 }
 0x317   :  { %v1194_v37 = vadd.f32 %v1677_v18, %v752_v32  ;;  %v1025_v38 = vmul.f32 -1.442695, %v1190_v34 }
 0x318   :  { %1310 = vpow2.f32 %v1023_v28  ;;  %v1024_v29 = vmul.f32 -1.442695, %v1192_v30 }
 0x319   :  { %v1026_v40 = vmul.f32 -1.442695, %v1194_v37 }
 0x31a   :  { %1312 = vpow2.f32 %v1024_v29 }
 0x31b   :  { %1314 = vpow2.f32 %v1025_v38 }
 0x31c   :  { %1316 = vpow2.f32 %v1026_v40 }
 0x322   :  { %v1311_v41 = vpop.eup %1310 }
 0x323   :  { %v804_v42 = vadd.f32 1.0, %v1311_v41 }
 0x324   :  { %v1313_v43 = vpop.eup %1312 }
 0x325   :  { %1318 = vrcp.f32 %v804_v42  ;;  %v805_v44 = vadd.f32 1.0, %v1313_v43  ;;  %v1315_v45 = vpop.eup %1314 }
 0x326   :  { %v1317_v46 = vpop.eup %1316  ;;  %v818_v47 = vadd.f32 1.0, %v1315_v45 }
 0x327   :  { %1320 = vrcp.f32 %v805_v44  ;;  %v819_v49 = vadd.f32 1.0, %v1317_v46 }
 0x328   :  { %1322 = vrcp.f32 %v818_v47 }
 0x329   :  { %1324 = vrcp.f32 %v819_v49 }
 0x32f   :  { %v1319_v58 = vpop.eup %1318 }
 0x330   :  { %v824_v3 = vmul.f32 %v1319_v58, %v790_v48 }
 0x331   :  { %v1321_v6 = vpop.eup %1320 }
 0x332   :  { %v826_v36 = vadd.f32 %v824_v3, %v1664_v0  ;;  %v825_v39 = vmul.f32 %v1321_v6, %v793_v52  ;;  %v1323_v51 = vpop.eup %1322 }
 0x333   :  { %v1325_v53 = vpop.eup %1324  ;;  %v830_v55 = vsub.f32 1.0, %v1323_v51  ;;  %v834_v2 = vmul.f32 %v1323_v51, %v1740_v35 }
 0x334   :  { %1326 = vtanh.f32 %v826_v36  ;;  %v827_v50 = vadd.f32 %v825_v39, %v1673_v7  ;;  %v831_v61 = vsub.f32 1.0, %v1325_v53  ;;  %v835_v9 = vmul.f32 %v1325_v53, %v1742_v56 }
 0x336   :  { %1328 = vtanh.f32 %v827_v50 }
 0x33e   :  { %v1327_v57 = vpop.eup %1326 }
 0x33f   :  { %v832_v63 = vmul.f32 %v1327_v57, %v830_v55 }
 0x340   :  { %v1329_v54 = vpop.eup %1328 }
 0x341   :  { %v833_v60 = vmul.f32 %v1329_v54, %v831_v61  ;;  %v836_v10 = vadd.f32 %v834_v2, %v832_v63 }
 0x343   :  { %v837_v0 = vadd.f32 %v835_v9, %v833_v60 }
 0x345   :  { %v838_v11 = vpack.c.bf16 %v837_v0, %v836_v10 }
 0x347   :  { %872 = vmatmul.mubr.bf16.vlgmr.msra.gmra.mrb[12].mxu0 %v838_v11  ;;  %1168 = vmatmul.mubr.bf16.vlgmr.msra.gmra.mrb[20].mxu1 %v838_v11 }
 0x41a   :  { %v873_v12 = vpop.f32.mrb[12].mxu0  ;;  %v916_v7 = vpop.f32.mrb[20].mxu1 }
 0x41b   :  { %v1196_v20 = vadd.f32 %v1675_v14, %v873_v12  ;;  %v875_v21 = vpop.f32.mrb[13].mxu0  ;;  %v1169_v23 = vpop.f32.mrb[21].mxu1  ;;  %v917_v30 = vadd.f32 %v916_v7, %v1683_v8 }
 0x41c   :  { %v877_v5 = vpop.f32.mrb[14].mxu0  ;;  %v919_v26 = vpop.f32.mrb[22].mxu1  ;;  %v1198_v35 = vadd.f32 %v1677_v18, %v875_v21 }
 0x41d   :  { %v1027_v27 = vmul.f32 -1.442695, %v1196_v20  ;;  %v1200_v31 = vadd.f32 %v1675_v14, %v877_v5  ;;  %v879_v13 = vpop.f32.mrb[15].mxu0  ;;  %v1170_v16 = vpop.f32.mrb[23].mxu1 }
 0x41e   :  { %v1202_v59 = vadd.f32 %v1677_v18, %v879_v13  ;;  %v1029_v1 = vmul.f32 -1.442695, %v1198_v35  ;;  %v920_v18 = vadd.f32 %v919_v26, %v1683_v8 }
 0x41f   :  { %1330 = vpow2.f32 %v1027_v27  ;;  %v1028_v56 = vmul.f32 -1.442695, %v1200_v31 }
 0x420   :  { %v1030_v15 = vmul.f32 -1.442695, %v1202_v59 }
 0x421   :  { %1332 = vpow2.f32 %v1028_v56 }
 0x422   :  { %1334 = vpow2.f32 %v1029_v1 }
 0x423   :  { %1336 = vpow2.f32 %v1030_v15 }
 0x429   :  { %v1331_v17 = vpop.eup %1330 }
 0x42a   :  { %v931_v19 = vadd.f32 1.0, %v1331_v17 }
 0x42b   :  { %v1333_v22 = vpop.eup %1332 }
 0x42c   :  { %1338 = vrcp.f32 %v931_v19  ;;  %v932_v24 = vadd.f32 1.0, %v1333_v22  ;;  %v1335_v14 = vpop.eup %1334 }
 0x42d   :  { %v1337_v25 = vpop.eup %1336  ;;  %v945_v28 = vadd.f32 1.0, %v1335_v14 }
 0x42e   :  { %1340 = vrcp.f32 %v932_v24  ;;  %v946_v32 = vadd.f32 1.0, %v1337_v25 }
 0x42f   :  { %1342 = vrcp.f32 %v945_v28 }
 0x430   :  { %1344 = vrcp.f32 %v946_v32 }
 0x436   :  { %v1339_v33 = vpop.eup %1338 }
 0x437   :  { %v951_v34 = vmul.f32 %v1339_v33, %v917_v30 }
 0x438   :  { %v1341_v29 = vpop.eup %1340 }
 0x439   :  { %v953_v37 = vadd.f32 %v951_v34, %v1661_v62  ;;  %v952_v38 = vmul.f32 %v1341_v29, %v920_v18  ;;  %v1343_v41 = vpop.eup %1342 }
 0x43a   :  { %v1345_v42 = vpop.eup %1344  ;;  %v957_v43 = vsub.f32 1.0, %v1343_v41  ;;  %v961_v46 = vmul.f32 %v1343_v41, %v836_v10 }
 0x43b   :  { %1346 = vtanh.f32 %v953_v37  ;;  %v954_v40 = vadd.f32 %v952_v38, %v1667_v4  ;;  %v958_v47 = vsub.f32 1.0, %v1345_v42  ;;  %v962_v8 = vmul.f32 %v1345_v42, %v837_v0 }
 0x43d   :  { %1348 = vtanh.f32 %v954_v40 }
 0x445   :  { %v1347_v44 = vpop.eup %1346 }
 0x446   :  { %v959_v45 = vmul.f32 %v1347_v44, %v957_v43 }
 0x447   :  { %v1349_v48 = vpop.eup %1348 }
 0x448   :  { %v963_v49 = vadd.f32 %v961_v46, %v959_v45  ;;  %v960_v58 = vmul.f32 %v1349_v48, %v958_v47 }
 0x44a   :  { %965 = vst [vmem:[%s1808_s5] sm:$0xff] %v963_v49  ;;  %v964_v62 = vadd.f32 %v962_v8, %v960_v58 }
 0x44c   :  { %966 = vst [vmem:[%s1808_s5 + $0x8] sm:$0xff] %v964_v62 }

// kernel: gcn_forward.3
= control target key start
LH: loop header
LB: loop body
LE: loop exit
PB: predicated region body
PF: predicated region fallthrough
CT: control target
= control target key end

     0   :  { %vm72_vm0 = vcmask 523264   ;;  %vm170_vm1 = vcmask 1043456   ;;  %vm157_vm2 = vcmask 64512   ;;  %vm582_vm3 = vcmask 130048   ;;  %s2092_s0 = inlined_call_operand.vmem [shape: f32[64,8], index: 0, kind: input, shape index: {}]   ;;  %s2093_s1 = inlined_call_operand.vmem [shape: bf16[64,64], index: 1, kind: input, shape index: {}]   ;;  %s2094_s2 = inlined_call_operand.vmem [shape: f32[3,8,16], index: 2, kind: input, shape index: {}]   ;;  %s2095_s3 = inlined_call_operand.vmem [shape: f32[1,16], index: 3, kind: input, shape index: {}]   ;;  %s2096_s4 = inlined_call_operand.vmem [shape: f32[3,16,32], index: 4, kind: input, shape index: {}]   ;;  %s2097_s5 = inlined_call_operand.vmem [shape: f32[1,32], index: 5, kind: input, shape index: {}]   ;;  %s2098_s6 = inlined_call_operand.vmem [shape: f32[3,32,64], index: 6, kind: input, shape index: {}]   ;;  %s2099_s7 = inlined_call_operand.vmem [shape: f32[1,64], index: 7, kind: input, shape index: {}]   ;;  %s2100_s8 = inlined_call_operand.vmem [shape: f32[64,64], index: 8, kind: output, shape index: {}]  }
   0x1   :  { %v38_v0 = vld [vmem:[%s2092_s0] sm:$0xff]  ;;  %v39_v1 = vld [vmem:[%s2092_s0 + $0x8] sm:$0xff]  ;;  %v40_v2 = vld [vmem:[%s2092_s0 + $0x10] sm:$0xff]  ;;  %vm1004_vm4 = vcmask 261120  }
   0x2   :  { %v46_v3 = vpack.c.bf16 %v39_v1, %v38_v0  ;;  %v41_v4 = vld [vmem:[%s2092_s0 + $0x18] sm:$0xff]  ;;  %v42_v6 = vld [vmem:[%s2092_s0 + $0x20] sm:$0xff]  ;;  %v43_v7 = vld [vmem:[%s2092_s0 + $0x28] sm:$0xff] }
   0x3   :  { %v47_v5 = vpack.c.bf16 %v41_v4, %v40_v2  ;;  %v1845_v8 = vld [vmem:[%s2093_s1] sm:$0xff]   ;;  %v48_v9 = vpack.c.bf16 %v43_v7, %v42_v6  ;;  %v44_v10 = vld [vmem:[%s2092_s0 + $0x30] sm:$0xff]  ;;  %v45_v11 = vld [vmem:[%s2092_s0 + $0x38] sm:$0xff] }
   0x4   :  { %1532 = vmatprep.subr.bf16.mxu0 %v46_v3  ;;  %1540 = vmatprep.mubr.msk.bf16.mxu0 %vm72_vm0, %v1845_v8  ;;  %v49_v12 = vpack.c.bf16 %v45_v11, %v44_v10  ;;  %v1858_v13 = vld [vmem:[%s2093_s1 + $0x8] sm:$0xff]   ;;  %v1863_v14 = vld [vmem:[%s2093_s1 + $0x10] sm:$0xff]   ;;  %v1872_v15 = vld [vmem:[%s2093_s1 + $0x18] sm:$0xff]  }
   0x5   :  { %1533 = vmatpush3.bf16.msra.mxu0 %v46_v3  ;;  %v1363_v16 = vld [vmem:[%s2094_s2 + $0x8] sm:$0xff]  ;;  %v50_v19 = vld [vmem:[%s2094_s2] sm:$0xff]  ;;  %v1376_v34 = vld [vmem:[%s2094_s2 + $0x10] sm:$0xff] }
   0x6   :  { %1534 = vmatprep.subr.bf16.mxu0 %v47_v5  ;;  %v156_v17 = vpack.c.bf16 %v1363_v16, %v1363_v16  ;;  %v51_v20 = vpack.c.bf16 %v50_v19, %v50_v19  ;;  %v390_v35 = vpack.c.bf16 %v1376_v34, %v1376_v34  ;;  %v1381_v49 = vld [vmem:[%s2095_s3] ss:$0 sm:$0xff]  ;;  %v1387_v19 = vld [vmem:[%s2096_s4 + $0x18] sm:$0xff] }
   0x8   :  { %1772 = vmatprep.subr.msk.bf16.mxu1 %vm170_vm1, %v156_v17  ;;  %v172_v18 = vsel %vm170_vm1, %v156_v17, 0  ;;  %v252_v27 = vsel %vm170_vm1, %v51_v20, 0  ;;  %v404_v36 = vsel %vm170_vm1, %v390_v35, 0 }
   0x9   :  { %1535 = vmatpush3.bf16.msra.mxu0 %v47_v5  ;;  %1549 = vmatpush3.bf16.msra.mxu1 %v172_v18  ;;  %v1386_v18 = vld [vmem:[%s2096_s4 + $0x10] sm:$0xff] }
   0xa   :  { %1536 = vmatprep.subr.bf16.mxu0 %v48_v9  ;;  %1773 = vmatprep.subr.msk.bf16.mxu1 %vm170_vm1, %v51_v20  ;;  %v581_v20 = vpack.c.bf16 %v1387_v19, %v1386_v18  ;;  %v1411_v19 = vld [vmem:[%s2098_s6 + $0x20] sm:$0xff] }
   0xd   :  { %1537 = vmatpush3.bf16.msra.mxu0 %v48_v9 }
   0xe   :  { %1538 = vmatprep.subr.bf16.mxu0 %v49_v12 }
  0x11   :  { %1539 = vmatpush3.bf16.msra.mxu0 %v49_v12 }
  0x14   :  { %1541 = vmatmul.mubr.msk.bf16.vlgmr.msra.gmra.mrb[0].mxu0 %vm72_vm0, %v1858_v13 }
  0x15   :  { %1544 = vmatprep.mubr.msk.bf16.mxu0 %vm72_vm0, %v1863_v14 }
  0x1c   :  { %1545 = vmatmul.mubr.msk.bf16.gmra.mrb[4].mxu0 %vm72_vm0, %v1872_v15 }
  0x1d   :  { %1602 = vmatprep.mubr.msk.bf16.mxu0 %vm72_vm0, %v1845_v8 }
  0xe7   :  { %v1542_v21 = vpop.f32.mrb[0].mxu0 }
  0xe8   :  { %v119_v22 = vpop.f32.mrb[1].mxu0 }
  0xe9   :  { %v1543_v23 = vpop.f32.mrb[2].mxu0 }
  0xea   :  { %v151_v24 = vpack.c.bf16 %v1543_v23, %v1542_v21  ;;  %v122_v25 = vpop.f32.mrb[3].mxu0  ;;  %v506_v21 = vld [vmem:[%s2096_s4] sm:$0xff] }
  0xeb   :  { %v150_v26 = vpack.c.bf16 %v122_v25, %v119_v22  ;;  %v507_v22 = vld [vmem:[%s2096_s4 + $0x8] sm:$0xff] }
  0xec   :  { %v508_v23 = vpack.c.bf16 %v507_v22, %v506_v21  ;;  %v1413_v22 = vld [vmem:[%s2098_s6 + $0x30] sm:$0xff] }
  0xed   :  { %1550 = vmatprep.mubr.msk.bf16.mxu1 %vm157_vm2, %v150_v26 }
  0xee   :  { %1551 = vmatmul.mubr.msk.bf16.vlgmr.msra.gmra.mrb[0].mxu1 %vm157_vm2, %v151_v24 }
  0xef   :  { %1559 = vmatpush3.bf16.msra.mxu1 %v252_v27  ;;  %v1546_v28 = vpop.f32.mrb[4].mxu0  ;;  %v1400_v27 = vld [vmem:[%s2096_s4 + $0x20] sm:$0xff] }
  0xf0   :  { %1568 = vmatprep.subr.bf16.mxu1 %v150_v26  ;;  %v135_v29 = vpop.f32.mrb[5].mxu0 }
  0xf1   :  { %v1547_v30 = vpop.f32.mrb[6].mxu0 }
  0xf2   :  { %v153_v31 = vpack.c.bf16 %v1547_v30, %v1546_v28  ;;  %v138_v32 = vpop.f32.mrb[7].mxu0  ;;  %v1401_v28 = vld [vmem:[%s2096_s4 + $0x28] sm:$0xff] }
  0xf3   :  { %v152_v33 = vpack.c.bf16 %v138_v32, %v135_v29  ;;  %v809_v32 = vpack.c.bf16 %v1401_v28, %v1400_v27 }
  0xf5   :  { %1554 = vmatprep.mubr.msk.bf16.mxu1 %vm157_vm2, %v152_v33 }
  0xf6   :  { %1555 = vmatmul.mubr.msk.bf16.gmra.mrb[4].mxu1 %vm157_vm2, %v153_v31 }
  0xf7   :  { %1560 = vmatprep.mubr.msk.bf16.mxu1 %vm157_vm2, %v46_v3 }
  0xfe   :  { %1561 = vmatmul.mubr.msk.bf16.vlgmr.msra.gmra.mrb[0].mxu1 %vm157_vm2, %v47_v5 }
  0xff   :  { %1569 = vmatpush3.bf16.msra.mxu1 %v150_v26  ;;  %1564 = vmatprep.mubr.msk.bf16.mxu1 %vm157_vm2, %v48_v9 }
 0x100   :  { %1570 = vmatprep.subr.bf16.mxu1 %v151_v24 }
 0x103   :  { %1571 = vmatpush3.bf16.msra.mxu1 %v151_v24 }
 0x104   :  { %1572 = vmatprep.subr.bf16.mxu1 %v152_v33 }
 0x106   :  { %1565 = vmatmul.mubr.msk.bf16.gmra.mrb[4].mxu1 %vm157_vm2, %v49_v12 }
 0x107   :  { %1573 = vmatpush3.bf16.msra.mxu1 %v152_v33  ;;  %1576 = vmatprep.mubr.msk.bf16.mxu1 %vm72_vm0, %v1845_v8 }
 0x108   :  { %1574 = vmatprep.subr.bf16.mxu1 %v153_v31 }
 0x10b   :  { %1575 = vmatpush3.bf16.msra.mxu1 %v153_v31 }
 0x10c   :  { %1774 = vmatprep.subr.msk.bf16.mxu1 %vm170_vm1, %v390_v35 }
 0x10e   :  { %1577 = vmatmul.mubr.msk.bf16.vlgmr.msra.gmra.mrb[8].mxu1 %vm72_vm0, %v1858_v13 }
 0x10f   :  { %1580 = vmatprep.mubr.msk.bf16.mxu1 %vm72_vm0, %v1863_v14  ;;  %1585 = vmatpush3.bf16.msra.mxu1 %v404_v36 }
 0x110   :  { %1610 = vmatprep.subr.bf16.mxu1 %v581_v20 }
 0x116   :  { %1581 = vmatmul.mubr.msk.bf16.gmra.mrb[12].mxu1 %vm72_vm0, %v1872_v15 }
 0x1e1   :  { %v1578_v37 = vpop.f32.mrb[8].mxu1 }
 0x1e2   :  { %v353_v38 = vpop.f32.mrb[9].mxu1 }
 0x1e3   :  { %v1579_v39 = vpop.f32.mrb[10].mxu1 }
 0x1e4   :  { %v385_v40 = vpack.c.bf16 %v1579_v39, %v1578_v37  ;;  %v356_v41 = vpop.f32.mrb[11].mxu1 }
 0x1e5   :  { %v384_v42 = vpack.c.bf16 %v356_v41, %v353_v38 }
 0x1e7   :  { %1586 = vmatprep.mubr.msk.bf16.mxu1 %vm157_vm2, %v384_v42 }
 0x1e8   :  { %1587 = vmatmul.mubr.msk.bf16.vlgmr.msra.gmra.mrb[0].mxu1 %vm157_vm2, %v385_v40 }
 0x1e9   :  { %v1582_v43 = vpop.f32.mrb[12].mxu1  ;;  %1611 = vmatpush3.bf16.msra.mxu1 %v581_v20  ;;  %v1412_v20 = vld [vmem:[%s2098_s6 + $0x28] sm:$0xff] }
 0x1ea   :  { %v369_v44 = vpop.f32.mrb[13].mxu1  ;;  %1620 = vmatprep.subr.bf16.mxu1 %v508_v23  ;;  %v1002_v21 = vpack.c.bf16 %v1412_v20, %v1411_v19 }
 0x1eb   :  { %v1583_v45 = vpop.f32.mrb[14].mxu1 }
 0x1ec   :  { %v387_v46 = vpack.c.bf16 %v1583_v45, %v1582_v43  ;;  %v372_v47 = vpop.f32.mrb[15].mxu1 }
 0x1ed   :  { %v386_v48 = vpack.c.bf16 %v372_v47, %v369_v44 }
 0x1ef   :  { %1590 = vmatprep.mubr.msk.bf16.mxu1 %vm157_vm2, %v386_v48 }
 0x1f0   :  { %1591 = vmatmul.mubr.msk.bf16.gmra.mrb[4].mxu1 %vm157_vm2, %v387_v46 }
 0x2bb   :  { %v1588_v50 = vpop.f32.mrb[0].mxu1 }
 0x2bc   :  { %v488_v51 = vadd.f32 %v1588_v50, %v1381_v49  ;;  %v440_v52 = vpop.f32.mrb[1].mxu1 }
 0x2bd   :  { %v486_v53 = vadd.f32 %v1381_v49, %v440_v52  ;;  %v1589_v54 = vpop.f32.mrb[2].mxu1 }
 0x2be   :  { %v489_v55 = vadd.f32 %v1589_v54, %v1381_v49  ;;  %v443_v56 = vpop.f32.mrb[3].mxu1  ;;  %v496_v58 = vmax.f32 %v488_v51, 0.0  ;;  %v1406_v51 = vld [vmem:[%s2097_s5] ss:$0 sm:$0xff] }
 0x2bf   :  { %v487_v57 = vadd.f32 %v1381_v49, %v443_v56  ;;  %v494_v60 = vmax.f32 %v486_v53, 0.0 }
 0x2c0   :  { %v497_v59 = vmax.f32 %v489_v55, 0.0 }
 0x2c1   :  { %v495_v61 = vmax.f32 %v487_v57, 0.0 }
 0x2c2   :  { %v1916_v62 = vpack.c.bf16 %v497_v59, %v496_v58 }
 0x2c3   :  { %v1918_v63 = vpack.c.bf16 %v495_v61, %v494_v60  ;;  %v1592_v0 = vpop.f32.mrb[4].mxu1 }
 0x2c4   :  { %v492_v1 = vadd.f32 %v1592_v0, %v1381_v49  ;;  %v456_v2 = vpop.f32.mrb[5].mxu1 }
 0x2c5   :  { %v490_v3 = vadd.f32 %v1381_v49, %v456_v2  ;;  %v1593_v4 = vpop.f32.mrb[6].mxu1  ;;  %1594 = vmatprep.subr.bf16.mxu0 %v1918_v63 }
 0x2c6   :  { %v493_v5 = vadd.f32 %v1593_v4, %v1381_v49  ;;  %v459_v6 = vpop.f32.mrb[7].mxu1  ;;  %1595 = vmatpush3.bf16.msra.mxu0 %v1918_v63  ;;  %v500_v9 = vmax.f32 %v492_v1, 0.0 }
 0x2c7   :  { %v491_v7 = vadd.f32 %v1381_v49, %v459_v6  ;;  %1596 = vmatprep.subr.bf16.mxu0 %v1916_v62  ;;  %v498_v11 = vmax.f32 %v490_v3, 0.0 }
 0x2c8   :  { %v501_v10 = vmax.f32 %v493_v5, 0.0 }
 0x2c9   :  { %v499_v12 = vmax.f32 %v491_v7, 0.0 }
 0x2ca   :  { %v505_v16 = vpack.c.bf16 %v501_v10, %v500_v9  ;;  %1597 = vmatpush3.bf16.msra.mxu0 %v1916_v62 }
 0x2cb   :  { %v504_v17 = vpack.c.bf16 %v499_v12, %v498_v11 }
 0x2cd   :  { %1598 = vmatprep.subr.bf16.mxu0 %v504_v17 }
 0x2ce   :  { %1599 = vmatpush3.bf16.msra.mxu0 %v504_v17 }
 0x2cf   :  { %1600 = vmatprep.subr.bf16.mxu0 %v505_v16 }
 0x2d2   :  { %1601 = vmatpush3.bf16.msra.mxu0 %v505_v16 }
 0x2d5   :  { %1603 = vmatmul.mubr.msk.bf16.vlgmr.msra.gmra.mrb[8].mxu0 %vm72_vm0, %v1858_v13 }
 0x2d6   :  { %1606 = vmatprep.mubr.msk.bf16.mxu0 %vm72_vm0, %v1863_v14 }
 0x2dd   :  { %1607 = vmatmul.mubr.msk.bf16.gmra.mrb[12].mxu0 %vm72_vm0, %v1872_v15 }
 0x2de   :  { %1638 = vmatprep.mubr.msk.bf16.mxu0 %vm72_vm0, %v1845_v8 }
 0x3a8   :  { %v1604_v24 = vpop.f32.mrb[8].mxu0 }
 0x3a9   :  { %v543_v25 = vpop.f32.mrb[9].mxu0 }
 0x3aa   :  { %v1605_v26 = vpop.f32.mrb[10].mxu0 }
 0x3ab   :  { %v575_v29 = vpack.c.bf16 %v1605_v26, %v1604_v24  ;;  %v546_v30 = vpop.f32.mrb[11].mxu0  ;;  %v923_v26 = vld [vmem:[%s2098_s6 + $0x8] sm:$0xff] }
 0x3ac   :  { %v574_v31 = vpack.c.bf16 %v546_v30, %v543_v25  ;;  %v922_v25 = vld [vmem:[%s2098_s6] sm:$0xff] }
 0x3ad   :  { %v926_v27 = vpack.c.bf16 %v923_v26, %v922_v25 }
 0x3ae   :  { %1612 = vmatprep.mubr.msk.bf16.mxu1 %vm582_vm3, %v574_v31  ;;  %1630 = vmatprep.subr.bf16.mxu0 %v574_v31 }
 0x3af   :  { %1613 = vmatmul.mubr.msk.bf16.vlgmr.msra.gmra.mrb[16].mxu1 %vm582_vm3, %v575_v29  ;;  %1631 = vmatpush3.bf16.msra.mxu0 %v574_v31  ;;  %v924_v31 = vld [vmem:[%s2098_s6 + $0x10] sm:$0xff] }
 0x3b0   :  { %v1608_v33 = vpop.f32.mrb[12].mxu0  ;;  %1632 = vmatprep.subr.bf16.mxu0 %v575_v29  ;;  %1621 = vmatpush3.bf16.msra.mxu1 %v508_v23  ;;  %v1414_v23 = vld [vmem:[%s2098_s6 + $0x38] sm:$0xff] }
 0x3b1   :  { %v559_v34 = vpop.f32.mrb[13].mxu0  ;;  %1646 = vmatprep.subr.bf16.mxu1 %v809_v32  ;;  %v1003_v24 = vpack.c.bf16 %v1414_v23, %v1413_v22 }
 0x3b2   :  { %v1609_v35 = vpop.f32.mrb[14].mxu0 }
 0x3b3   :  { %v577_v36 = vpack.c.bf16 %v1609_v35, %v1608_v33  ;;  %v562_v37 = vpop.f32.mrb[15].mxu0  ;;  %1633 = vmatpush3.bf16.msra.mxu0 %v575_v29 }
 0x3b4   :  { %v576_v38 = vpack.c.bf16 %v562_v37, %v559_v34  ;;  %v1427_v37 = vld [vmem:[%s2098_s6 + $0x40] sm:$0xff] }
 0x3b6   :  { %1616 = vmatprep.mubr.msk.bf16.mxu1 %vm582_vm3, %v576_v38  ;;  %1634 = vmatprep.subr.bf16.mxu0 %v576_v38 }
 0x3b7   :  { %1617 = vmatmul.mubr.msk.bf16.gmra.mrb[20].mxu1 %vm582_vm3, %v577_v36  ;;  %1635 = vmatpush3.bf16.msra.mxu0 %v576_v38  ;;  %v1428_v38 = vld [vmem:[%s2098_s6 + $0x48] sm:$0xff] }
 0x3b8   :  { %1622 = vmatprep.mubr.msk.bf16.mxu1 %vm582_vm3, %v1918_v63  ;;  %1636 = vmatprep.subr.bf16.mxu0 %v577_v36 }
 0x3bb   :  { %1637 = vmatpush3.bf16.msra.mxu0 %v577_v36 }
 0x3be   :  { %1639 = vmatmul.mubr.msk.bf16.vlgmr.msra.gmra.mrb[16].mxu0 %vm72_vm0, %v1858_v13 }
 0x3bf   :  { %1623 = vmatmul.mubr.msk.bf16.vlgmr.msra.gmra.mrb[16].mxu1 %vm582_vm3, %v1916_v62  ;;  %1642 = vmatprep.mubr.msk.bf16.mxu0 %vm72_vm0, %v1863_v14 }
 0x3c0   :  { %1626 = vmatprep.mubr.msk.bf16.mxu1 %vm582_vm3, %v504_v17  ;;  %1647 = vmatpush3.bf16.msra.mxu1 %v809_v32  ;;  %v925_v32 = vld [vmem:[%s2098_s6 + $0x18] sm:$0xff] }
 0x3c1   :  { %v927_v36 = vpack.c.bf16 %v925_v32, %v924_v31 }
 0x3c6   :  { %1643 = vmatmul.mubr.msk.bf16.gmra.mrb[20].mxu0 %vm72_vm0, %v1872_v15 }
 0x3c7   :  { %1627 = vmatmul.mubr.msk.bf16.gmra.mrb[20].mxu1 %vm582_vm3, %v505_v16  ;;  %1664 = vmatprep.mubr.msk.bf16.mxu0 %vm72_vm0, %v1845_v8 }
 0x491   :  { %v1640_v39 = vpop.f32.mrb[16].mxu0 }
 0x492   :  { %v771_v40 = vpop.f32.mrb[17].mxu0 }
 0x493   :  { %v1641_v41 = vpop.f32.mrb[18].mxu0 }
 0x494   :  { %v803_v42 = vpack.c.bf16 %v1641_v41, %v1640_v39  ;;  %v774_v43 = vpop.f32.mrb[19].mxu0  ;;  %v1233_v41 = vpack.c.bf16 %v1428_v38, %v1427_v37 }
 0x495   :  { %v802_v44 = vpack.c.bf16 %v774_v43, %v771_v40 }
 0x497   :  { %1648 = vmatprep.mubr.msk.bf16.mxu1 %vm582_vm3, %v802_v44 }
 0x498   :  { %1649 = vmatmul.mubr.msk.bf16.vlgmr.msra.gmra.mrb[16].mxu1 %vm582_vm3, %v803_v42 }
 0x499   :  { %v1644_v45 = vpop.f32.mrb[20].mxu0 }
 0x49a   :  { %v787_v46 = vpop.f32.mrb[21].mxu0 }
 0x49b   :  { %v1645_v47 = vpop.f32.mrb[22].mxu0 }
 0x49c   :  { %v805_v48 = vpack.c.bf16 %v1645_v47, %v1644_v45  ;;  %v790_v49 = vpop.f32.mrb[23].mxu0  ;;  %v1430_v47 = vld [vmem:[%s2098_s6 + $0x58] sm:$0xff] }
 0x49d   :  { %v804_v50 = vpack.c.bf16 %v790_v49, %v787_v46  ;;  %v1429_v46 = vld [vmem:[%s2098_s6 + $0x50] sm:$0xff] }
 0x49f   :  { %1652 = vmatprep.mubr.msk.bf16.mxu1 %vm582_vm3, %v804_v50 }
 0x4a0   :  { %1653 = vmatmul.mubr.msk.bf16.gmra.mrb[20].mxu1 %vm582_vm3, %v805_v48  ;;  %v1234_v48 = vpack.c.bf16 %v1430_v47, %v1429_v46 }
 0x4a1   :  { %1704 = vmatprep.mubr.msk.bf16.mxu1 %vm72_vm0, %v1845_v8 }
 0x56b   :  { %v1650_v52 = vpop.f32.mrb[16].mxu1 }
 0x56c   :  { %v904_v53 = vadd.f32 %v1650_v52, %v1406_v51  ;;  %v856_v54 = vpop.f32.mrb[17].mxu1 }
 0x56d   :  { %v902_v55 = vadd.f32 %v1406_v51, %v856_v54  ;;  %v1651_v56 = vpop.f32.mrb[18].mxu1 }
 0x56e   :  { %v905_v57 = vadd.f32 %v1651_v56, %v1406_v51  ;;  %v859_v58 = vpop.f32.mrb[19].mxu1  ;;  %v912_v60 = vmax.f32 %v904_v53, 0.0 }
 0x56f   :  { %v903_v59 = vadd.f32 %v1406_v51, %v859_v58  ;;  %v910_v62 = vmax.f32 %v902_v55, 0.0 }
 0x570   :  { %v913_v61 = vmax.f32 %v905_v57, 0.0 }
 0x571   :  { %v911_v63 = vmax.f32 %v903_v59, 0.0 }
 0x572   :  { %v1977_v0 = vpack.c.bf16 %v913_v61, %v912_v60 }
 0x573   :  { %v1979_v1 = vpack.c.bf16 %v911_v63, %v910_v62  ;;  %v1654_v8 = vpop.f32.mrb[20].mxu1 }
 0x574   :  { %v908_v2 = vadd.f32 %v1654_v8, %v1406_v51  ;;  %v872_v3 = vpop.f32.mrb[21].mxu1 }
 0x575   :  { %v906_v4 = vadd.f32 %v1406_v51, %v872_v3  ;;  %v1655_v5 = vpop.f32.mrb[22].mxu1  ;;  %1656 = vmatprep.subr.bf16.mxu0 %v1979_v1 }
 0x576   :  { %v909_v6 = vadd.f32 %v1655_v5, %v1406_v51  ;;  %v875_v7 = vpop.f32.mrb[23].mxu1  ;;  %1657 = vmatpush3.bf16.msra.mxu0 %v1979_v1  ;;  %v916_v10 = vmax.f32 %v908_v2, 0.0 }
 0x577   :  { %v907_v9 = vadd.f32 %v1406_v51, %v875_v7  ;;  %1658 = vmatprep.subr.bf16.mxu0 %v1977_v0  ;;  %v914_v12 = vmax.f32 %v906_v4, 0.0 }
 0x578   :  { %v917_v11 = vmax.f32 %v909_v6, 0.0 }
 0x579   :  { %v915_v16 = vmax.f32 %v907_v9, 0.0 }
 0x57a   :  { %v1984_v17 = vpack.c.bf16 %v917_v11, %v916_v10  ;;  %1659 = vmatpush3.bf16.msra.mxu0 %v1977_v0 }
 0x57b   :  { %v1987_v18 = vpack.c.bf16 %v915_v16, %v914_v12 }
 0x57d   :  { %1660 = vmatprep.subr.bf16.mxu0 %v1987_v18 }
 0x57e   :  { %1661 = vmatpush3.bf16.msra.mxu0 %v1987_v18 }
 0x57f   :  { %1662 = vmatprep.subr.bf16.mxu0 %v1984_v17 }
 0x582   :  { %1663 = vmatpush3.bf16.msra.mxu0 %v1984_v17 }
 0x583   :  { %1672 = vmatprep.subr.bf16.mxu0 %v1002_v21 }
 0x585   :  { %1665 = vmatmul.mubr.msk.bf16.vlgmr.msra.gmra.mrb[24].mxu0 %vm72_vm0, %v1858_v13 }
 0x586   :  { %1668 = vmatprep.mubr.msk.bf16.mxu0 %vm72_vm0, %v1863_v14  ;;  %1673 = vmatpush3.bf16.msra.mxu0 %v1002_v21 }
 0x587   :  { %1674 = vmatprep.subr.bf16.mxu0 %v1003_v24 }
 0x58a   :  { %1675 = vmatpush3.bf16.msra.mxu0 %v1003_v24 }
 0x58b   :  { %1684 = vmatprep.subr.bf16.mxu0 %v926_v27 }
 0x58d   :  { %1669 = vmatmul.mubr.msk.bf16.gmra.mrb[28].mxu0 %vm72_vm0, %v1872_v15 }
 0x658   :  { %v1666_v28 = vpop.f32.mrb[24].mxu0 }
 0x659   :  { %v962_v29 = vpop.f32.mrb[25].mxu0 }
 0x65a   :  { %v1667_v30 = vpop.f32.mrb[26].mxu0 }
 0x65b   :  { %v994_v33 = vpack.c.bf16 %v1667_v30, %v1666_v28  ;;  %v965_v34 = vpop.f32.mrb[27].mxu0 }
 0x65c   :  { %v993_v35 = vpack.c.bf16 %v965_v34, %v962_v29 }
 0x65e   :  { %1676 = vmatprep.mubr.msk.bf16.mxu0 %vm1004_vm4, %v993_v35  ;;  %1696 = vmatprep.subr.bf16.mxu1 %v993_v35 }
 0x65f   :  { %1677 = vmatmul.mubr.msk.bf16.vlgmr.msra.gmra.mrb[32].mxu0 %vm1004_vm4, %v994_v33  ;;  %1697 = vmatpush3.bf16.msra.mxu1 %v993_v35 }
 0x660   :  { %v1670_v39 = vpop.f32.mrb[28].mxu0  ;;  %1698 = vmatprep.subr.bf16.mxu1 %v994_v33  ;;  %1685 = vmatpush3.bf16.msra.mxu0 %v926_v27 }
 0x661   :  { %v978_v40 = vpop.f32.mrb[29].mxu0  ;;  %1686 = vmatprep.subr.bf16.mxu0 %v927_v36 }
 0x662   :  { %v1671_v42 = vpop.f32.mrb[30].mxu0 }
 0x663   :  { %v996_v43 = vpack.c.bf16 %v1671_v42, %v1670_v39  ;;  %v981_v44 = vpop.f32.mrb[31].mxu0  ;;  %1699 = vmatpush3.bf16.msra.mxu1 %v994_v33 }
 0x664   :  { %v995_v45 = vpack.c.bf16 %v981_v44, %v978_v40  ;;  %1687 = vmatpush3.bf16.msra.mxu0 %v927_v36 }
 0x665   :  { %1712 = vmatprep.subr.bf16.mxu0 %v1233_v41 }
 0x666   :  { %1680 = vmatprep.mubr.msk.bf16.mxu0 %vm1004_vm4, %v995_v45  ;;  %1700 = vmatprep.subr.bf16.mxu1 %v995_v45 }
 0x667   :  { %1681 = vmatmul.mubr.msk.bf16.gmra.mrb[36].mxu0 %vm1004_vm4, %v996_v43  ;;  %1701 = vmatpush3.bf16.msra.mxu1 %v995_v45 }
 0x668   :  { %1688 = vmatprep.mubr.msk.bf16.mxu0 %vm1004_vm4, %v1979_v1  ;;  %1702 = vmatprep.subr.bf16.mxu1 %v996_v43 }
 0x66b   :  { %1703 = vmatpush3.bf16.msra.mxu1 %v996_v43 }
 0x66e   :  { %1705 = vmatmul.mubr.msk.bf16.vlgmr.msra.gmra.mrb[24].mxu1 %vm72_vm0, %v1858_v13 }
 0x66f   :  { %1689 = vmatmul.mubr.msk.bf16.vlgmr.msra.gmra.mrb[32].mxu0 %vm1004_vm4, %v1977_v0  ;;  %1708 = vmatprep.mubr.msk.bf16.mxu1 %vm72_vm0, %v1863_v14 }
 0x670   :  { %1692 = vmatprep.mubr.msk.bf16.mxu0 %vm1004_vm4, %v1987_v18  ;;  %1713 = vmatpush3.bf16.msra.mxu0 %v1233_v41 }
 0x671   :  { %1714 = vmatprep.subr.bf16.mxu0 %v1234_v48 }
 0x674   :  { %1715 = vmatpush3.bf16.msra.mxu0 %v1234_v48 }
 0x676   :  { %1709 = vmatmul.mubr.msk.bf16.gmra.mrb[28].mxu1 %vm72_vm0, %v1872_v15  ;;  %v1435_v15 = vld [vmem:[%s2099_s7] ss:$0 sm:$0xff] }
 0x677   :  { %1693 = vmatmul.mubr.msk.bf16.gmra.mrb[36].mxu0 %vm1004_vm4, %v1984_v17 }
 0x741   :  { %v1706_v49 = vpop.f32.mrb[24].mxu1 }
 0x742   :  { %v1193_v13 = vpop.f32.mrb[25].mxu1 }
 0x743   :  { %v1707_v50 = vpop.f32.mrb[26].mxu1 }
 0x744   :  { %v1225_v51 = vpack.c.bf16 %v1707_v50, %v1706_v49  ;;  %v1196_v52 = vpop.f32.mrb[27].mxu1 }
 0x745   :  { %v1224_v53 = vpack.c.bf16 %v1196_v52, %v1193_v13 }
 0x747   :  { %1716 = vmatprep.mubr.msk.bf16.mxu0 %vm1004_vm4, %v1224_v53 }
 0x748   :  { %1717 = vmatmul.mubr.msk.bf16.vlgmr.msra.gmra.mrb[32].mxu0 %vm1004_vm4, %v1225_v51 }
 0x749   :  { %v1710_v14 = vpop.f32.mrb[28].mxu1 }
 0x74a   :  { %v1209_v54 = vpop.f32.mrb[29].mxu1 }
 0x74b   :  { %v1711_v55 = vpop.f32.mrb[30].mxu1 }
 0x74c   :  { %v1227_v56 = vpack.c.bf16 %v1711_v55, %v1710_v14  ;;  %v1212_v57 = vpop.f32.mrb[31].mxu1 }
 0x74d   :  { %v1226_v58 = vpack.c.bf16 %v1212_v57, %v1209_v54 }
 0x74f   :  { %1720 = vmatprep.mubr.msk.bf16.mxu0 %vm1004_vm4, %v1226_v58 }
 0x750   :  { %1721 = vmatmul.mubr.msk.bf16.gmra.mrb[36].mxu0 %vm1004_vm4, %v1227_v56 }
 0x81b   :  { %v1718_v59 = vpop.f32.mrb[32].mxu0 }
 0x81c   :  { %v1329_v60 = vadd.f32 %v1718_v59, %v1435_v15  ;;  %v1281_v61 = vpop.f32.mrb[33].mxu0 }
 0x81d   :  { %v1327_v62 = vadd.f32 %v1435_v15, %v1281_v61  ;;  %v1719_v63 = vpop.f32.mrb[34].mxu0 }
 0x81e   :  { %v1337_v0 = vmax.f32 %v1329_v60, 0.0  ;;  %v1330_v1 = vadd.f32 %v1719_v63, %v1435_v15  ;;  %v1284_v8 = vpop.f32.mrb[35].mxu0 }
 0x81f   :  { %v1335_v2 = vmax.f32 %v1327_v62, 0.0  ;;  %v1328_v3 = vadd.f32 %v1435_v15, %v1284_v8 }
 0x820   :  { %1345 = vst.msk [vmem:[%s2100_s8 + $0x10] sm:$0xff] %vm72_vm0, %v1337_v0  ;;  %v1338_v4 = vmax.f32 %v1330_v1, 0.0 }
 0x821   :  { %1343 = vst.msk [vmem:[%s2100_s8] sm:$0xff] %vm72_vm0, %v1335_v2  ;;  %v1336_v5 = vmax.f32 %v1328_v3, 0.0 }
 0x822   :  { %1346 = vst.msk [vmem:[%s2100_s8 + $0x18] sm:$0xff] %vm72_vm0, %v1338_v4 }
 0x823   :  { %1344 = vst.msk [vmem:[%s2100_s8 + $0x8] sm:$0xff] %vm72_vm0, %v1336_v5  ;;  %v1722_v6 = vpop.f32.mrb[36].mxu0 }
 0x824   :  { %v1333_v7 = vadd.f32 %v1722_v6, %v1435_v15  ;;  %v1297_v9 = vpop.f32.mrb[37].mxu0 }
 0x825   :  { %v1331_v10 = vadd.f32 %v1435_v15, %v1297_v9  ;;  %v1723_v11 = vpop.f32.mrb[38].mxu0 }
 0x826   :  { %v1341_v12 = vmax.f32 %v1333_v7, 0.0  ;;  %v1334_v16 = vadd.f32 %v1723_v11, %v1435_v15  ;;  %v1300_v17 = vpop.f32.mrb[39].mxu0 }
 0x827   :  { %v1339_v18 = vmax.f32 %v1331_v10, 0.0  ;;  %v1332_v19 = vadd.f32 %v1435_v15, %v1300_v17 }
 0x828   :  { %1349 = vst.msk [vmem:[%s2100_s8 + $0x30] sm:$0xff] %vm72_vm0, %v1341_v12  ;;  %v1342_v20 = vmax.f32 %v1334_v16, 0.0 }
 0x829   :  { %1347 = vst.msk [vmem:[%s2100_s8 + $0x20] sm:$0xff] %vm72_vm0, %v1339_v18  ;;  %v1340_v21 = vmax.f32 %v1332_v19, 0.0 }
 0x82a   :  { %1350 = vst.msk [vmem:[%s2100_s8 + $0x38] sm:$0xff] %vm72_vm0, %v1342_v20 }
 0x82b   :  { %1348 = vst.msk [vmem:[%s2100_s8 + $0x28] sm:$0xff] %vm72_vm0, %v1340_v21 }

// kernel: gcn_forward.5
= control target key start
LH: loop header
LB: loop body
LE: loop exit
PB: predicated region body
PF: predicated region fallthrough
CT: control target
= control target key end

     0   :  { %v7932_v1 = vmov 0.0   ;;  %v7930_v2 = vmov 0   ;;  %vm5688_vm0 = vmmov 0   ;;  %v61_v61 = vlaneseq  ;;  %s7923_s1 = inlined_call_operand.vmem [shape: bf16[128,384], index: 1, kind: input, shape index: {}]   ;;  %s7924_s2 = inlined_call_operand.vmem [shape: bf16[128,384], index: 2, kind: input, shape index: {}]   ;;  %s7925_s0 = inlined_call_operand.vmem [shape: f32[16,128], index: 0, kind: input, shape index: {}]   ;;  %s7926_s3 = inlined_call_operand.vmem [shape: f32[1,384], index: 3, kind: input, shape index: {}]   ;;  %s7927_s4 = inlined_call_operand.vmem [shape: f32[1,384], index: 4, kind: input, shape index: {}]   ;;  %s7928_s5 = inlined_call_operand.vmem [shape: f32[128,1], index: 5, kind: input, shape index: {}]   ;;  %s7929_s6 = inlined_call_operand.vmem [shape: f32[384,1], index: 6, kind: output, shape index: {}]  }
   0x1   :  { %v5070_v0 = vld [vmem:[%s7923_s1 + $0x4] ss:$12 sps:$4 sm:$0xff]   ;;  %4415 = vmatprep.subr.bf16.mxu1 %v7932_v1  ;;  %236 = vmatprep.mubr.bf16.mxu0 %v7930_v2  ;;  %v5072_v3 = vld [vmem:[%s7923_s1] ss:$12 sps:$4 sm:$0xff]   ;;  %v5073_v4 = vld [vmem:[%s7923_s1 + $0x1c] ss:$12 sps:$4 sm:$0xff]  }
   0x2   :  { %4431 = vmatprep.mubr.msk.bf16.mxu1 %vm5688_vm0, %v7932_v1  ;;  %204 = vmatprep.subr.bf16.mxu0 %v5070_v0  ;;  %v5075_v5 = vld [vmem:[%s7923_s1 + $0x18] ss:$12 sps:$4 sm:$0xff]   ;;  %v5076_v6 = vld [vmem:[%s7923_s1 + $0x34] ss:$12 sps:$4 sm:$0xff]   ;;  %v5078_v7 = vld [vmem:[%s7923_s1 + $0x30] ss:$12 sps:$4 sm:$0xff]  }
   0x3   :  { %205 = vmatpush1.bf16.msra.mxu0 %v5072_v3  ;;  %v5079_v8 = vld [vmem:[%s7923_s1 + $0x4c] ss:$12 sps:$4 sm:$0xff]   ;;  %v5091_v9 = vld [vmem:[%s7923_s1 + $0x8] ss:$12 sps:$4 sm:$0xff]   ;;  %v5082_v11 = vld [vmem:[%s7923_s1 + $0x64] ss:$12 sps:$4 sm:$0xff]  }
   0x4   :  { %206 = vmatprep.subr.bf16.mxu0 %v5073_v4  ;;  %v5081_v10 = vld [vmem:[%s7923_s1 + $0x48] ss:$12 sps:$4 sm:$0xff]   ;;  %4416 = vmatpush3.bf16.msra.mxu1 %v5091_v9  ;;  %v5095_v12 = vld [vmem:[%s7923_s1 + $0x20] ss:$12 sps:$4 sm:$0xff]   ;;  %v5099_v15 = vld [vmem:[%s7923_s1 + $0x38] ss:$12 sps:$4 sm:$0xff]  }
   0x5   :  { %4417 = vmatprep.subr.bf16.mxu1 %v7932_v1  ;;  %v5084_v13 = vld [vmem:[%s7923_s1 + $0x60] ss:$12 sps:$4 sm:$0xff]   ;;  %v5085_v14 = vld [vmem:[%s7923_s1 + $0x7c] ss:$12 sps:$4 sm:$0xff]   ;;  %v5087_v16 = vld [vmem:[%s7923_s1 + $0x78] ss:$12 sps:$4 sm:$0xff]  }
   0x6   :  { %v5088_v17 = vld [vmem:[%s7923_s1 + $0x94] ss:$12 sps:$4 sm:$0xff]   ;;  %v5103_v18 = vld [vmem:[%s7923_s1 + $0x50] ss:$12 sps:$4 sm:$0xff]   ;;  %v5092_v20 = vld [vmem:[%s7923_s1 + $0xac] ss:$12 sps:$4 sm:$0xff]  }
   0x7   :  { %207 = vmatpush1.bf16.msra.mxu0 %v5075_v5  ;;  %v5090_v19 = vld [vmem:[%s7923_s1 + $0x90] ss:$12 sps:$4 sm:$0xff]   ;;  %v5107_v21 = vld [vmem:[%s7923_s1 + $0x68] ss:$12 sps:$4 sm:$0xff]   ;;  %v24_v23 = vld [vmem:[%s7925_s0] sm:$0xff]  ;;  %v62_v62 = vshrl.u32 %v61_v61, 7 }
   0x8   :  { %208 = vmatprep.subr.bf16.mxu0 %v5076_v6  ;;  %4418 = vmatpush3.bf16.msra.mxu1 %v5095_v12  ;;  %v5094_v22 = vld [vmem:[%s7923_s1 + $0xa8] ss:$12 sps:$4 sm:$0xff]   ;;  %v5804_v25 = vld [vmem:[%s7924_s2 + $0x4] ss:$12 sps:$4 sm:$0xff]   ;;  %v5111_v26 = vld [vmem:[%s7923_s1 + $0x80] ss:$12 sps:$4 sm:$0xff]  }
   0x9   :  { %4419 = vmatprep.subr.bf16.mxu1 %v7932_v1  ;;  %v25_v24 = vld [vmem:[%s7925_s0 + $0x8] sm:$0xff]  ;;  %v5115_v30 = vld [vmem:[%s7923_s1 + $0x98] ss:$12 sps:$4 sm:$0xff]   ;;  %v5834_v32 = vld [vmem:[%s7924_s2 + $0x34] ss:$12 sps:$4 sm:$0xff]   ;;  %v63_v63 = vsub.s32 0, %v62_v62 }
   0xa   :  { %v26_v27 = vpack.c.bf16 %v25_v24, %v24_v23  ;;  %v5813_v28 = vld [vmem:[%s7924_s2] ss:$12 sps:$4 sm:$0xff]   ;;  %v5818_v29 = vld [vmem:[%s7924_s2 + $0x1c] ss:$12 sps:$4 sm:$0xff]   ;;  %v5828_v31 = vld [vmem:[%s7924_s2 + $0x18] ss:$12 sps:$4 sm:$0xff]  }
   0xb   :  { %209 = vmatpush1.bf16.msra.mxu0 %v5078_v7  ;;  %v5119_v33 = vld [vmem:[%s7923_s1 + $0xb0] ss:$12 sps:$4 sm:$0xff]   ;;  %v5852_v35 = vld [vmem:[%s7924_s2 + $0x4c] ss:$12 sps:$4 sm:$0xff]   ;;  %v5857_v36 = vld [vmem:[%s7924_s2 + $0x8] ss:$12 sps:$4 sm:$0xff]  }
   0xc   :  { %210 = vmatprep.subr.bf16.mxu0 %v5079_v8  ;;  %4420 = vmatpush3.bf16.msra.mxu1 %v5099_v15  ;;  %v5846_v34 = vld [vmem:[%s7924_s2 + $0x30] ss:$12 sps:$4 sm:$0xff]   ;;  %v5864_v37 = vld [vmem:[%s7924_s2 + $0x48] ss:$12 sps:$4 sm:$0xff]   ;;  %v5876_v39 = vld [vmem:[%s7924_s2 + $0x20] ss:$12 sps:$4 sm:$0xff]  }
   0xd   :  { %4421 = vmatprep.subr.bf16.mxu1 %v7932_v1  ;;  %v5870_v38 = vld [vmem:[%s7924_s2 + $0x64] ss:$12 sps:$4 sm:$0xff]   ;;  %v5885_v40 = vld [vmem:[%s7924_s2 + $0x60] ss:$12 sps:$4 sm:$0xff]   ;;  %v5891_v41 = vld [vmem:[%s7924_s2 + $0x7c] ss:$12 sps:$4 sm:$0xff]  }
   0xe   :  { %v5897_v42 = vld [vmem:[%s7924_s2 + $0x38] ss:$12 sps:$4 sm:$0xff]   ;;  %v5910_v44 = vld [vmem:[%s7924_s2 + $0x94] ss:$12 sps:$4 sm:$0xff]   ;;  %v5916_v45 = vld [vmem:[%s7924_s2 + $0x50] ss:$12 sps:$4 sm:$0xff]  }
   0xf   :  { %211 = vmatpush1.bf16.msra.mxu0 %v5081_v10  ;;  %v5904_v43 = vld [vmem:[%s7924_s2 + $0x78] ss:$12 sps:$4 sm:$0xff]   ;;  %v5923_v46 = vld [vmem:[%s7924_s2 + $0x90] ss:$12 sps:$4 sm:$0xff]   ;;  %v5935_v48 = vld [vmem:[%s7924_s2 + $0x68] ss:$12 sps:$4 sm:$0xff]  }
  0x10   :  { %212 = vmatprep.subr.bf16.mxu0 %v5082_v11  ;;  %4422 = vmatpush3.bf16.msra.mxu1 %v5103_v18  ;;  %v5929_v47 = vld [vmem:[%s7924_s2 + $0xac] ss:$12 sps:$4 sm:$0xff]   ;;  %v5942_v49 = vld [vmem:[%s7924_s2 + $0xa8] ss:$12 sps:$4 sm:$0xff]   ;;  %v5968_v52 = vld [vmem:[%s7924_s2 + $0xb0] ss:$12 sps:$4 sm:$0xff]  }
  0x11   :  { %4423 = vmatprep.subr.bf16.mxu1 %v7932_v1  ;;  %v5949_v50 = vld [vmem:[%s7924_s2 + $0x80] ss:$12 sps:$4 sm:$0xff]   ;;  %v5957_v51 = vld [vmem:[%s7924_s2 + $0x98] ss:$12 sps:$4 sm:$0xff]   ;;  %v67_v4 = vsub.s32 1, %v62_v62  ;;  %vm3929_vm1 = vcmask 7168  }
  0x12   :  { %v59_v0 = vld [vmem:[%s7926_s3] sm:$0x7] }
  0x13   :  { %213 = vmatpush1.bf16.msra.mxu0 %v5084_v13  ;;  %v320_v3 = vld [vmem:[%s7927_s4] sm:$0x7]  ;;  %v64_v5 = vrot.slane %v59_v0, %v63_v63  ;;  %v68_v8 = vrot.slane %v59_v0, %v67_v4 }
  0x14   :  { %214 = vmatprep.subr.bf16.mxu0 %v5085_v14  ;;  %4424 = vmatpush3.bf16.msra.mxu1 %v5107_v21  ;;  %v6013_v6 = vrot.slane %v320_v3, %v63_v63  ;;  %v6015_v7 = vrot.slane %v320_v3, %v67_v4  ;;  %v71_v4 = vsub.s32 2, %v62_v62 }
  0x15   :  { %4425 = vmatprep.subr.bf16.mxu1 %v7932_v1 }
  0x17   :  { %215 = vmatpush1.bf16.msra.mxu0 %v5087_v16 }
  0x18   :  { %216 = vmatprep.subr.bf16.mxu0 %v5088_v17  ;;  %4426 = vmatpush3.bf16.msra.mxu1 %v5111_v26 }
  0x19   :  { %4427 = vmatprep.subr.bf16.mxu1 %v7932_v1 }
  0x1b   :  { %217 = vmatpush1.bf16.msra.mxu0 %v5090_v19 }
  0x1c   :  { %218 = vmatprep.subr.bf16.mxu0 %v5092_v20  ;;  %4428 = vmatpush3.bf16.msra.mxu1 %v5115_v30 }
  0x1d   :  { %4429 = vmatprep.subr.bf16.mxu1 %v7932_v1 }
  0x1f   :  { %219 = vmatpush1.bf16.msra.mxu0 %v5094_v22 }
  0x20   :  { %465 = vmatprep.subr.bf16.mxu0 %v5804_v25  ;;  %4430 = vmatpush3.bf16.msra.mxu1 %v5119_v33 }
  0x21   :  { %4435 = vmatprep.subr.bf16.mxu1 %v7932_v1 }
  0x22   :  { %237 = vmatmul.mubr.bf16.vlgmr.msra.gmra.mrb[0].mxu0 %v26_v27 }
  0x23   :  { %466 = vmatpush1.bf16.msra.mxu0 %v5813_v28  ;;  %497 = vmatprep.mubr.bf16.mxu0 %v7930_v2 }
  0x24   :  { %467 = vmatprep.subr.bf16.mxu0 %v5818_v29  ;;  %4432 = vmatmul.mubr.bf16.vlgmr.msra.gmra.mrb[0].mxu1 %v26_v27 }
  0x25   :  { %4436 = vmatpush3.bf16.msra.mxu1 %v5857_v36  ;;  %4451 = vmatprep.mubr.msk.bf16.mxu1 %vm5688_vm0, %v7932_v1 }
  0x26   :  { %4437 = vmatprep.subr.bf16.mxu1 %v7932_v1 }
  0x27   :  { %468 = vmatpush1.bf16.msra.mxu0 %v5828_v31 }
  0x28   :  { %469 = vmatprep.subr.bf16.mxu0 %v5834_v32 }
  0x29   :  { %4438 = vmatpush3.bf16.msra.mxu1 %v5876_v39 }
  0x2a   :  { %4439 = vmatprep.subr.bf16.mxu1 %v7932_v1 }
  0x2b   :  { %470 = vmatpush1.bf16.msra.mxu0 %v5846_v34 }
  0x2c   :  { %471 = vmatprep.subr.bf16.mxu0 %v5852_v35 }
  0x2d   :  { %4440 = vmatpush3.bf16.msra.mxu1 %v5897_v42 }
  0x2e   :  { %4441 = vmatprep.subr.bf16.mxu1 %v7932_v1 }
  0x2f   :  { %472 = vmatpush1.bf16.msra.mxu0 %v5864_v37 }
  0x30   :  { %473 = vmatprep.subr.bf16.mxu0 %v5870_v38 }
  0x31   :  { %4442 = vmatpush3.bf16.msra.mxu1 %v5916_v45 }
  0x32   :  { %4443 = vmatprep.subr.bf16.mxu1 %v7932_v1 }
  0x33   :  { %474 = vmatpush1.bf16.msra.mxu0 %v5885_v40 }
  0x34   :  { %475 = vmatprep.subr.bf16.mxu0 %v5891_v41 }
  0x35   :  { %4444 = vmatpush3.bf16.msra.mxu1 %v5935_v48 }
  0x36   :  { %4445 = vmatprep.subr.bf16.mxu1 %v7932_v1 }
  0x37   :  { %476 = vmatpush1.bf16.msra.mxu0 %v5904_v43 }
  0x38   :  { %477 = vmatprep.subr.bf16.mxu0 %v5910_v44 }
  0x39   :  { %4446 = vmatpush3.bf16.msra.mxu1 %v5949_v50 }
  0x3a   :  { %4447 = vmatprep.subr.bf16.mxu1 %v7932_v1 }
  0x3b   :  { %478 = vmatpush1.bf16.msra.mxu0 %v5923_v46 }
  0x3c   :  { %479 = vmatprep.subr.bf16.mxu0 %v5929_v47 }
  0x3d   :  { %4448 = vmatpush3.bf16.msra.mxu1 %v5957_v51 }
  0x3e   :  { %4449 = vmatprep.subr.bf16.mxu1 %v7932_v1 }
  0x3f   :  { %480 = vmatpush1.bf16.msra.mxu0 %v5942_v49 }
  0x40   :  { %594 = vmatprep.subr.bf16.mxu0 %v5804_v25 }
  0x41   :  { %4450 = vmatpush3.bf16.msra.mxu1 %v5968_v52 }
  0x42   :  { %498 = vmatmul.mubr.bf16.vlgmr.msra.gmra.mrb[4].mxu0 %v7930_v2  ;;  %4455 = vmatprep.subr.bf16.mxu1 %v7932_v1 }
  0x43   :  { %595 = vmatpush1.bf16.msra.mxu0 %v5813_v28  ;;  %626 = vmatprep.mubr.bf16.mxu0 %v7930_v2 }
  0x44   :  { %596 = vmatprep.subr.bf16.mxu0 %v5818_v29  ;;  %4452 = vmatmul.mubr.bf16.vlgmr.msra.gmra.mrb[4].mxu1 %v7930_v2 }
  0x45   :  { %4456 = vmatpush3.bf16.msra.mxu1 %v5857_v36  ;;  %4471 = vmatprep.mubr.msk.bf16.mxu1 %vm5688_vm0, %v7932_v1 }
  0x46   :  { %4457 = vmatprep.subr.bf16.mxu1 %v7932_v1 }
  0x47   :  { %597 = vmatpush1.bf16.msra.mxu0 %v5828_v31 }
  0x48   :  { %598 = vmatprep.subr.bf16.mxu0 %v5834_v32 }
  0x49   :  { %4458 = vmatpush3.bf16.msra.mxu1 %v5876_v39 }
  0x4a   :  { %4459 = vmatprep.subr.bf16.mxu1 %v7932_v1 }
  0x4b   :  { %599 = vmatpush1.bf16.msra.mxu0 %v5846_v34 }
  0x4c   :  { %600 = vmatprep.subr.bf16.mxu0 %v5852_v35 }
  0x4d   :  { %4460 = vmatpush3.bf16.msra.mxu1 %v5897_v42 }
  0x4e   :  { %4461 = vmatprep.subr.bf16.mxu1 %v7932_v1 }
  0x4f   :  { %601 = vmatpush1.bf16.msra.mxu0 %v5864_v37 }
  0x50   :  { %602 = vmatprep.subr.bf16.mxu0 %v5870_v38 }
  0x51   :  { %4462 = vmatpush3.bf16.msra.mxu1 %v5916_v45 }
  0x52   :  { %4463 = vmatprep.subr.bf16.mxu1 %v7932_v1 }
  0x53   :  { %603 = vmatpush1.bf16.msra.mxu0 %v5885_v40 }
  0x54   :  { %604 = vmatprep.subr.bf16.mxu0 %v5891_v41 }
  0x55   :  { %4464 = vmatpush3.bf16.msra.mxu1 %v5935_v48 }
  0x56   :  { %4465 = vmatprep.subr.bf16.mxu1 %v7932_v1 }
  0x57   :  { %605 = vmatpush1.bf16.msra.mxu0 %v5904_v43 }
  0x58   :  { %606 = vmatprep.subr.bf16.mxu0 %v5910_v44 }
  0x59   :  { %4466 = vmatpush3.bf16.msra.mxu1 %v5949_v50 }
  0x5a   :  { %4467 = vmatprep.subr.bf16.mxu1 %v7932_v1 }
  0x5b   :  { %607 = vmatpush1.bf16.msra.mxu0 %v5923_v46 }
  0x5c   :  { %608 = vmatprep.subr.bf16.mxu0 %v5929_v47 }
  0x5d   :  { %4468 = vmatpush3.bf16.msra.mxu1 %v5957_v51 }
  0x5e   :  { %4469 = vmatprep.subr.bf16.mxu1 %v7932_v1 }
  0x5f   :  { %609 = vmatpush1.bf16.msra.mxu0 %v5942_v49 }
  0x60   :  { %723 = vmatprep.subr.bf16.mxu0 %v5804_v25 }
  0x61   :  { %4470 = vmatpush3.bf16.msra.mxu1 %v5968_v52 }
  0x62   :  { %4475 = vmatprep.subr.bf16.mxu1 %v7932_v1 }
  0xf5   :  { %v238_v53 = vpop.f32.mrb[0].mxu0 }
  0xf6   :  { %v240_v54 = vpop.f32.mrb[1].mxu0  ;;  %v6017_v10 = vadd.f32 %v238_v53, %v64_v5 }
  0xf7   :  { %v242_v55 = vpop.f32.mrb[2].mxu0  ;;  %v281_v57 = vpop.f32.mrb[0].mxu1  ;;  %v6025_v19 = vadd.f32 %v240_v54, %v68_v8 }
  0xf8   :  { %v244_v56 = vpop.f32.mrb[3].mxu0  ;;  %v4433_v58 = vpop.f32.mrb[1].mxu1  ;;  %v6021_v15 = vadd.f32 %v242_v55, %v64_v5  ;;  %v6033_v5 = vrot.slane %v320_v3, %v71_v4 }
  0xf9   :  { %v284_v59 = vpop.f32.mrb[2].mxu1  ;;  %v6029_v23 = vadd.f32 %v244_v56, %v68_v8 }
  0xfa   :  { %v4434_v60 = vpop.f32.mrb[3].mxu1 }
 0x115   :  { %v499_v9 = vpop.f32.mrb[4].mxu0 }
 0x116   :  { %v500_v11 = vadd.f32 %v499_v9, %v6013_v6  ;;  %v501_v12 = vpop.f32.mrb[5].mxu0 }
 0x117   :  { %v502_v13 = vadd.f32 %v501_v12, %v6015_v7  ;;  %v503_v14 = vpop.f32.mrb[6].mxu0  ;;  %v542_v30 = vpop.f32.mrb[4].mxu1 }
 0x118   :  { %v549_v16 = vadd.f32 %v500_v11, %v6017_v10  ;;  %v504_v17 = vadd.f32 %v503_v14, %v6013_v6  ;;  %v505_v18 = vpop.f32.mrb[7].mxu0  ;;  %v4453_v53 = vpop.f32.mrb[5].mxu1  ;;  %v72_v11 = vrot.slane %v59_v0, %v71_v4 }
 0x119   :  { %v506_v20 = vadd.f32 %v505_v18, %v6015_v7  ;;  %v563_v24 = vadd.f32 %v502_v13, %v6025_v19  ;;  %v545_v55 = vpop.f32.mrb[6].mxu1  ;;  %v543_v13 = vadd.f32 %v542_v30, %v6033_v5 }
 0x11a   :  { %v4030_v21 = vmul.f32 -1.442695, %v549_v16  ;;  %v550_v22 = vadd.f32 %v504_v17, %v6021_v15  ;;  %v4454_v58 = vpop.f32.mrb[7].mxu1  ;;  %v6036_v17 = vadd.f32 %v281_v57, %v72_v11 }
 0x11b   :  { %v564_v27 = vadd.f32 %v506_v20, %v6029_v23  ;;  %v4032_v33 = vmul.f32 -1.442695, %v563_v24  ;;  %v546_v20 = vadd.f32 %v545_v55, %v6033_v5 }
 0x11c   :  { %5134 = vpow2.f32 %v4030_v21  ;;  %v4031_v26 = vmul.f32 -1.442695, %v550_v22  ;;  %v6039_v22 = vadd.f32 %v284_v59, %v72_v11 }
 0x11d   :  { %v4033_v54 = vmul.f32 -1.442695, %v564_v27 }
 0x11e   :  { %5136 = vpow2.f32 %v4031_v26 }
 0x11f   :  { %5138 = vpow2.f32 %v4032_v33 }
 0x120   :  { %5140 = vpow2.f32 %v4033_v54 }
 0x126   :  { %v5135_v60 = vpop.eup %5134 }
 0x127   :  { %v557_v61 = vadd.f32 1.0, %v5135_v60 }
 0x128   :  { %v5137_v63 = vpop.eup %5136 }
 0x129   :  { %5142 = vrcp.f32 %v557_v61  ;;  %v558_v56 = vadd.f32 1.0, %v5137_v63  ;;  %v5139_v8 = vpop.eup %5138 }
 0x12a   :  { %v5141_v9 = vpop.eup %5140  ;;  %v571_v12 = vadd.f32 1.0, %v5139_v8 }
 0x12b   :  { %5144 = vrcp.f32 %v558_v56  ;;  %v572_v14 = vadd.f32 1.0, %v5141_v9 }
 0x12c   :  { %5146 = vrcp.f32 %v571_v12 }
 0x12d   :  { %5148 = vrcp.f32 %v572_v14 }
 0x133   :  { %v5143_v16 = vpop.eup %5142 }
 0x134   :  { %v577_v18 = vmul.f32 %v5143_v16, %v543_v13 }
 0x135   :  { %v5145_v21 = vpop.eup %5144 }
 0x136   :  { %v579_v62 = vadd.f32 %v577_v18, %v6036_v17  ;;  %v578_v3 = vmul.f32 %v5145_v21, %v546_v20  ;;  %v5147_v24 = vpop.eup %5146 }
 0x137   :  { %v5149_v26 = vpop.eup %5148  ;;  %v583_v27 = vsub.f32 1.0, %v5147_v24  ;;  %v587_v53 = vmul.f32 0.0, %v5147_v24 }
 0x138   :  { %5150 = vtanh.f32 %v579_v62  ;;  %v580_v0 = vadd.f32 %v578_v3, %v6039_v22  ;;  %v584_v30 = vsub.f32 1.0, %v5149_v26  ;;  %v588_v58 = vmul.f32 0.0, %v5149_v26 }
 0x13a   :  { %5152 = vtanh.f32 %v580_v0 }
 0x142   :  { %v5151_v57 = vpop.eup %5150 }
 0x143   :  { %v585_v33 = vmul.f32 %v5151_v57, %v583_v27 }
 0x144   :  { %v5153_v54 = vpop.eup %5152 }
 0x145   :  { %v586_v55 = vmul.f32 %v5153_v54, %v584_v30  ;;  %v6043_v59 = vadd.f32 %v587_v53, %v585_v33 }
 0x147   :  { %v6045_v60 = vadd.f32 %v588_v58, %v586_v55 }
 0x149   :  { %v593_v61 = vpack.c.bf16 %v6045_v60, %v6043_v59 }
 0x14b   :  { %627 = vmatmul.mubr.bf16.vlgmr.msra.gmra.mrb[8].mxu0 %v593_v61  ;;  %4472 = vmatmul.mubr.bf16.vlgmr.msra.gmra.mrb[8].mxu1 %v593_v61 }
 0x14c   :  { %724 = vmatpush1.bf16.msra.mxu0 %v5813_v28  ;;  %4476 = vmatpush3.bf16.msra.mxu1 %v5857_v36 }
 0x14d   :  { %725 = vmatprep.subr.bf16.mxu0 %v5818_v29  ;;  %4477 = vmatprep.subr.bf16.mxu1 %v7932_v1 }
 0x14e   :  { %755 = vmatprep.mubr.bf16.mxu0 %v7930_v2  ;;  %4491 = vmatprep.mubr.msk.bf16.mxu1 %vm5688_vm0, %v7932_v1 }
 0x150   :  { %726 = vmatpush1.bf16.msra.mxu0 %v5828_v31  ;;  %4478 = vmatpush3.bf16.msra.mxu1 %v5876_v39 }
 0x151   :  { %727 = vmatprep.subr.bf16.mxu0 %v5834_v32  ;;  %4479 = vmatprep.subr.bf16.mxu1 %v7932_v1 }
 0x154   :  { %728 = vmatpush1.bf16.msra.mxu0 %v5846_v34  ;;  %4480 = vmatpush3.bf16.msra.mxu1 %v5897_v42 }
 0x155   :  { %729 = vmatprep.subr.bf16.mxu0 %v5852_v35  ;;  %4481 = vmatprep.subr.bf16.mxu1 %v7932_v1 }
 0x158   :  { %730 = vmatpush1.bf16.msra.mxu0 %v5864_v37  ;;  %4482 = vmatpush3.bf16.msra.mxu1 %v5916_v45 }
 0x159   :  { %731 = vmatprep.subr.bf16.mxu0 %v5870_v38  ;;  %4483 = vmatprep.subr.bf16.mxu1 %v7932_v1 }
 0x15c   :  { %732 = vmatpush1.bf16.msra.mxu0 %v5885_v40  ;;  %4484 = vmatpush3.bf16.msra.mxu1 %v5935_v48 }
 0x15d   :  { %733 = vmatprep.subr.bf16.mxu0 %v5891_v41  ;;  %4485 = vmatprep.subr.bf16.mxu1 %v7932_v1 }
 0x160   :  { %734 = vmatpush1.bf16.msra.mxu0 %v5904_v43  ;;  %4486 = vmatpush3.bf16.msra.mxu1 %v5949_v50 }
 0x161   :  { %735 = vmatprep.subr.bf16.mxu0 %v5910_v44  ;;  %4487 = vmatprep.subr.bf16.mxu1 %v7932_v1 }
 0x164   :  { %736 = vmatpush1.bf16.msra.mxu0 %v5923_v46  ;;  %4488 = vmatpush3.bf16.msra.mxu1 %v5957_v51 }
 0x165   :  { %737 = vmatprep.subr.bf16.mxu0 %v5929_v47  ;;  %4489 = vmatprep.subr.bf16.mxu1 %v7932_v1 }
 0x168   :  { %738 = vmatpush1.bf16.msra.mxu0 %v5942_v49  ;;  %4490 = vmatpush3.bf16.msra.mxu1 %v5968_v52 }
 0x169   :  { %852 = vmatprep.subr.bf16.mxu0 %v5804_v25  ;;  %4495 = vmatprep.subr.bf16.mxu1 %v7932_v1 }
 0x21e   :  { %v628_v63 = vpop.f32.mrb[8].mxu0  ;;  %v671_v56 = vpop.f32.mrb[8].mxu1 }
 0x21f   :  { %v629_v4 = vadd.f32 %v628_v63, %v6013_v6  ;;  %v630_v8 = vpop.f32.mrb[9].mxu0  ;;  %v4473_v9 = vpop.f32.mrb[9].mxu1  ;;  %v672_v63 = vadd.f32 %v671_v56, %v6033_v5 }
 0x220   :  { %v631_v11 = vadd.f32 %v630_v8, %v6015_v7  ;;  %v632_v12 = vpop.f32.mrb[10].mxu0  ;;  %v674_v13 = vpop.f32.mrb[10].mxu1 }
 0x221   :  { %v678_v14 = vadd.f32 %v629_v4, %v6017_v10  ;;  %v633_v16 = vadd.f32 %v632_v12, %v6013_v6  ;;  %v634_v18 = vpop.f32.mrb[11].mxu0  ;;  %v4474_v20 = vpop.f32.mrb[11].mxu1 }
 0x222   :  { %v635_v21 = vadd.f32 %v634_v18, %v6015_v7  ;;  %v692_v0 = vadd.f32 %v631_v11, %v6025_v19  ;;  %v675_v11 = vadd.f32 %v674_v13, %v6033_v5 }
 0x223   :  { %v4034_v62 = vmul.f32 -1.442695, %v678_v14  ;;  %v679_v3 = vadd.f32 %v633_v16, %v6021_v15 }
 0x224   :  { %v693_v26 = vadd.f32 %v635_v21, %v6029_v23  ;;  %v4036_v27 = vmul.f32 -1.442695, %v692_v0 }
 0x225   :  { %5154 = vpow2.f32 %v4034_v62  ;;  %v4035_v24 = vmul.f32 -1.442695, %v679_v3 }
 0x226   :  { %v4037_v57 = vmul.f32 -1.442695, %v693_v26 }
 0x227   :  { %5156 = vpow2.f32 %v4035_v24 }
 0x228   :  { %5158 = vpow2.f32 %v4036_v27 }
 0x229   :  { %5160 = vpow2.f32 %v4037_v57 }
 0x22f   :  { %v5155_v30 = vpop.eup %5154 }
 0x230   :  { %v686_v33 = vadd.f32 1.0, %v5155_v30 }
 0x231   :  { %v5157_v53 = vpop.eup %5156 }
 0x232   :  { %5162 = vrcp.f32 %v686_v33  ;;  %v687_v54 = vadd.f32 1.0, %v5157_v53  ;;  %v5159_v55 = vpop.eup %5158 }
 0x233   :  { %v5161_v58 = vpop.eup %5160  ;;  %v700_v61 = vadd.f32 1.0, %v5159_v55 }
 0x234   :  { %5164 = vrcp.f32 %v687_v54  ;;  %v701_v4 = vadd.f32 1.0, %v5161_v58 }
 0x235   :  { %5166 = vrcp.f32 %v700_v61 }
 0x236   :  { %5168 = vrcp.f32 %v701_v4 }
 0x23c   :  { %v5163_v8 = vpop.eup %5162 }
 0x23d   :  { %v706_v9 = vmul.f32 %v5163_v8, %v672_v63 }
 0x23e   :  { %v5165_v12 = vpop.eup %5164 }
 0x23f   :  { %v708_v14 = vadd.f32 %v706_v9, %v6036_v17  ;;  %v707_v16 = vmul.f32 %v5165_v12, %v675_v11  ;;  %v5167_v20 = vpop.eup %5166 }
 0x240   :  { %v5169_v21 = vpop.eup %5168  ;;  %v712_v62 = vsub.f32 1.0, %v5167_v20  ;;  %v716_v24 = vmul.f32 %v5167_v20, %v6043_v59 }
 0x241   :  { %5170 = vtanh.f32 %v708_v14  ;;  %v709_v18 = vadd.f32 %v707_v16, %v6039_v22  ;;  %v713_v56 = vsub.f32 1.0, %v5169_v21  ;;  %v717_v13 = vmul.f32 %v5169_v21, %v6045_v60 }
 0x243   :  { %5172 = vtanh.f32 %v709_v18 }
 0x24b   :  { %v5171_v3 = vpop.eup %5170 }
 0x24c   :  { %v714_v0 = vmul.f32 %v5171_v3, %v712_v62 }
 0x24d   :  { %v5173_v26 = vpop.eup %5172 }
 0x24e   :  { %v715_v27 = vmul.f32 %v5173_v26, %v713_v56  ;;  %v6098_v57 = vadd.f32 %v716_v24, %v714_v0 }
 0x250   :  { %v6100_v30 = vadd.f32 %v717_v13, %v715_v27 }
 0x252   :  { %v722_v33 = vpack.c.bf16 %v6100_v30, %v6098_v57 }
 0x254   :  { %756 = vmatmul.mubr.bf16.vlgmr.msra.gmra.mrb[12].mxu0 %v722_v33  ;;  %4492 = vmatmul.mubr.bf16.vlgmr.msra.gmra.mrb[12].mxu1 %v722_v33 }
 0x255   :  { %853 = vmatpush1.bf16.msra.mxu0 %v5813_v28  ;;  %4496 = vmatpush3.bf16.msra.mxu1 %v5857_v36 }
 0x256   :  { %854 = vmatprep.subr.bf16.mxu0 %v5818_v29  ;;  %4497 = vmatprep.subr.bf16.mxu1 %v7932_v1 }
 0x257   :  { %884 = vmatprep.mubr.bf16.mxu0 %v7930_v2  ;;  %4511 = vmatprep.mubr.msk.bf16.mxu1 %vm5688_vm0, %v7932_v1 }
 0x259   :  { %855 = vmatpush1.bf16.msra.mxu0 %v5828_v31  ;;  %4498 = vmatpush3.bf16.msra.mxu1 %v5876_v39 }
 0x25a   :  { %856 = vmatprep.subr.bf16.mxu0 %v5834_v32  ;;  %4499 = vmatprep.subr.bf16.mxu1 %v7932_v1 }
 0x25d   :  { %857 = vmatpush1.bf16.msra.mxu0 %v5846_v34  ;;  %4500 = vmatpush3.bf16.msra.mxu1 %v5897_v42 }
 0x25e   :  { %858 = vmatprep.subr.bf16.mxu0 %v5852_v35  ;;  %4501 = vmatprep.subr.bf16.mxu1 %v7932_v1 }
 0x261   :  { %859 = vmatpush1.bf16.msra.mxu0 %v5864_v37  ;;  %4502 = vmatpush3.bf16.msra.mxu1 %v5916_v45 }
 0x262   :  { %860 = vmatprep.subr.bf16.mxu0 %v5870_v38  ;;  %4503 = vmatprep.subr.bf16.mxu1 %v7932_v1 }
 0x265   :  { %861 = vmatpush1.bf16.msra.mxu0 %v5885_v40  ;;  %4504 = vmatpush3.bf16.msra.mxu1 %v5935_v48 }
 0x266   :  { %862 = vmatprep.subr.bf16.mxu0 %v5891_v41  ;;  %4505 = vmatprep.subr.bf16.mxu1 %v7932_v1 }
 0x269   :  { %863 = vmatpush1.bf16.msra.mxu0 %v5904_v43  ;;  %4506 = vmatpush3.bf16.msra.mxu1 %v5949_v50 }
 0x26a   :  { %864 = vmatprep.subr.bf16.mxu0 %v5910_v44  ;;  %4507 = vmatprep.subr.bf16.mxu1 %v7932_v1 }
 0x26d   :  { %865 = vmatpush1.bf16.msra.mxu0 %v5923_v46  ;;  %4508 = vmatpush3.bf16.msra.mxu1 %v5957_v51 }
 0x26e   :  { %866 = vmatprep.subr.bf16.mxu0 %v5929_v47  ;;  %4509 = vmatprep.subr.bf16.mxu1 %v7932_v1 }
 0x271   :  { %867 = vmatpush1.bf16.msra.mxu0 %v5942_v49  ;;  %4510 = vmatpush3.bf16.msra.mxu1 %v5968_v52 }
 0x272   :  { %981 = vmatprep.subr.bf16.mxu0 %v5804_v25  ;;  %4515 = vmatprep.subr.bf16.mxu1 %v7932_v1 }
 0x327   :  { %v757_v53 = vpop.f32.mrb[12].mxu0  ;;  %v800_v54 = vpop.f32.mrb[12].mxu1 }
 0x328   :  { %v758_v55 = vadd.f32 %v757_v53, %v6013_v6  ;;  %v759_v58 = vpop.f32.mrb[13].mxu0  ;;  %v4493_v61 = vpop.f32.mrb[13].mxu1 }
 0x329   :  { %v760_v63 = vadd.f32 %v759_v58, %v6015_v7  ;;  %v761_v4 = vpop.f32.mrb[14].mxu0  ;;  %v803_v8 = vpop.f32.mrb[14].mxu1  ;;  %v801_v58 = vadd.f32 %v800_v54, %v6033_v5 }
 0x32a   :  { %v807_v9 = vadd.f32 %v758_v55, %v6017_v10  ;;  %v762_v11 = vadd.f32 %v761_v4, %v6013_v6  ;;  %v763_v12 = vpop.f32.mrb[15].mxu0  ;;  %v4494_v14 = vpop.f32.mrb[15].mxu1 }
 0x32b   :  { %v764_v16 = vadd.f32 %v763_v12, %v6015_v7  ;;  %v821_v21 = vadd.f32 %v760_v63, %v6025_v19 }
 0x32c   :  { %v4038_v18 = vmul.f32 -1.442695, %v807_v9  ;;  %v808_v20 = vadd.f32 %v762_v11, %v6021_v15  ;;  %v804_v9 = vadd.f32 %v803_v8, %v6033_v5 }
 0x32d   :  { %v822_v3 = vadd.f32 %v764_v16, %v6029_v23  ;;  %v4040_v56 = vmul.f32 -1.442695, %v821_v21 }
 0x32e   :  { %5174 = vpow2.f32 %v4038_v18  ;;  %v4039_v62 = vmul.f32 -1.442695, %v808_v20 }
 0x32f   :  { %v4041_v0 = vmul.f32 -1.442695, %v822_v3 }
 0x330   :  { %5176 = vpow2.f32 %v4039_v62 }
 0x331   :  { %5178 = vpow2.f32 %v4040_v56 }
 0x332   :  { %5180 = vpow2.f32 %v4041_v0 }
 0x338   :  { %v5175_v24 = vpop.eup %5174 }
 0x339   :  { %v815_v26 = vadd.f32 1.0, %v5175_v24 }
 0x33a   :  { %v5177_v27 = vpop.eup %5176 }
 0x33b   :  { %5182 = vrcp.f32 %v815_v26  ;;  %v816_v13 = vadd.f32 1.0, %v5177_v27  ;;  %v5179_v33 = vpop.eup %5178 }
 0x33c   :  { %v5181_v53 = vpop.eup %5180  ;;  %v829_v55 = vadd.f32 1.0, %v5179_v33 }
 0x33d   :  { %5184 = vrcp.f32 %v816_v13  ;;  %v830_v61 = vadd.f32 1.0, %v5181_v53 }
 0x33e   :  { %5186 = vrcp.f32 %v829_v55 }
 0x33f   :  { %5188 = vrcp.f32 %v830_v61 }
 0x345   :  { %v5183_v63 = vpop.eup %5182 }
 0x346   :  { %v835_v4 = vmul.f32 %v5183_v63, %v801_v58 }
 0x347   :  { %v5185_v11 = vpop.eup %5184 }
 0x348   :  { %v837_v12 = vadd.f32 %v835_v4, %v6036_v17  ;;  %v836_v14 = vmul.f32 %v5185_v11, %v804_v9  ;;  %v5187_v18 = vpop.eup %5186 }
 0x349   :  { %v5189_v20 = vpop.eup %5188  ;;  %v841_v21 = vsub.f32 1.0, %v5187_v18  ;;  %v845_v56 = vmul.f32 %v5187_v18, %v6098_v57 }
 0x34a   :  { %5190 = vtanh.f32 %v837_v12  ;;  %v838_v16 = vadd.f32 %v836_v14, %v6039_v22  ;;  %v842_v54 = vsub.f32 1.0, %v5189_v20  ;;  %v846_v8 = vmul.f32 %v5189_v20, %v6100_v30 }
 0x34c   :  { %5192 = vtanh.f32 %v838_v16 }
 0x354   :  { %v5191_v62 = vpop.eup %5190 }
 0x355   :  { %v843_v3 = vmul.f32 %v5191_v62, %v841_v21 }
 0x356   :  { %v5193_v0 = vpop.eup %5192 }
 0x357   :  { %v844_v24 = vmul.f32 %v5193_v0, %v842_v54  ;;  %v6153_v26 = vadd.f32 %v845_v56, %v843_v3 }
 0x359   :  { %7965 = vst [vmem:[#allocation3_spill] sm:$0xff] %v6153_v26  ;;  %v6155_v27 = vadd.f32 %v846_v8, %v844_v24 }
 0x35b   :  { %7966 = vst [vmem:[#allocation4_spill] sm:$0xff] %v6155_v27  ;;  %v851_v13 = vpack.c.bf16 %v6155_v27, %v6153_v26 }
 0x35d   :  { %885 = vmatmul.mubr.bf16.vlgmr.msra.gmra.mrb[16].mxu0 %v851_v13  ;;  %4512 = vmatmul.mubr.bf16.vlgmr.msra.gmra.mrb[16].mxu1 %v851_v13 }
 0x35e   :  { %982 = vmatpush1.bf16.msra.mxu0 %v5813_v28  ;;  %4516 = vmatpush3.bf16.msra.mxu1 %v5857_v36 }
 0x35f   :  { %983 = vmatprep.subr.bf16.mxu0 %v5818_v29  ;;  %4517 = vmatprep.subr.bf16.mxu1 %v7932_v1 }
 0x360   :  { %1013 = vmatprep.mubr.bf16.mxu0 %v7930_v2  ;;  %4531 = vmatprep.mubr.msk.bf16.mxu1 %vm5688_vm0, %v7932_v1 }
 0x362   :  { %984 = vmatpush1.bf16.msra.mxu0 %v5828_v31  ;;  %4518 = vmatpush3.bf16.msra.mxu1 %v5876_v39 }
 0x363   :  { %985 = vmatprep.subr.bf16.mxu0 %v5834_v32  ;;  %4519 = vmatprep.subr.bf16.mxu1 %v7932_v1 }
 0x366   :  { %986 = vmatpush1.bf16.msra.mxu0 %v5846_v34  ;;  %4520 = vmatpush3.bf16.msra.mxu1 %v5897_v42 }
 0x367   :  { %987 = vmatprep.subr.bf16.mxu0 %v5852_v35  ;;  %4521 = vmatprep.subr.bf16.mxu1 %v7932_v1 }
 0x36a   :  { %988 = vmatpush1.bf16.msra.mxu0 %v5864_v37  ;;  %4522 = vmatpush3.bf16.msra.mxu1 %v5916_v45 }
 0x36b   :  { %989 = vmatprep.subr.bf16.mxu0 %v5870_v38  ;;  %4523 = vmatprep.subr.bf16.mxu1 %v7932_v1 }
 0x36e   :  { %990 = vmatpush1.bf16.msra.mxu0 %v5885_v40  ;;  %4524 = vmatpush3.bf16.msra.mxu1 %v5935_v48 }
 0x36f   :  { %991 = vmatprep.subr.bf16.mxu0 %v5891_v41  ;;  %4525 = vmatprep.subr.bf16.mxu1 %v7932_v1 }
 0x372   :  { %992 = vmatpush1.bf16.msra.mxu0 %v5904_v43  ;;  %4526 = vmatpush3.bf16.msra.mxu1 %v5949_v50 }
 0x373   :  { %993 = vmatprep.subr.bf16.mxu0 %v5910_v44  ;;  %4527 = vmatprep.subr.bf16.mxu1 %v7932_v1 }
 0x376   :  { %994 = vmatpush1.bf16.msra.mxu0 %v5923_v46  ;;  %4528 = vmatpush3.bf16.msra.mxu1 %v5957_v51 }
 0x377   :  { %995 = vmatprep.subr.bf16.mxu0 %v5929_v47  ;;  %4529 = vmatprep.subr.bf16.mxu1 %v7932_v1 }
 0x37a   :  { %996 = vmatpush1.bf16.msra.mxu0 %v5942_v49  ;;  %4530 = vmatpush3.bf16.msra.mxu1 %v5968_v52 }
 0x37b   :  { %1110 = vmatprep.subr.bf16.mxu0 %v5804_v25  ;;  %4535 = vmatprep.subr.bf16.mxu1 %v7932_v1 }
 0x430   :  { %v886_v33 = vpop.f32.mrb[16].mxu0  ;;  %v929_v53 = vpop.f32.mrb[16].mxu1 }
 0x431   :  { %v887_v55 = vadd.f32 %v886_v33, %v6013_v6  ;;  %v888_v58 = vpop.f32.mrb[17].mxu0  ;;  %v4513_v61 = vpop.f32.mrb[17].mxu1 }
 0x432   :  { %v889_v63 = vadd.f32 %v888_v58, %v6015_v7  ;;  %v890_v4 = vpop.f32.mrb[18].mxu0  ;;  %v932_v9 = vpop.f32.mrb[18].mxu1  ;;  %v930_v61 = vadd.f32 %v929_v53, %v6033_v5 }
 0x433   :  { %v936_v11 = vadd.f32 %v887_v55, %v6017_v10  ;;  %v891_v12 = vadd.f32 %v890_v4, %v6013_v6  ;;  %v892_v14 = vpop.f32.mrb[19].mxu0  ;;  %v4514_v16 = vpop.f32.mrb[19].mxu1 }
 0x434   :  { %v893_v25 = vadd.f32 %v892_v14, %v6015_v7  ;;  %v950_v21 = vadd.f32 %v889_v63, %v6025_v19 }
 0x435   :  { %v4042_v18 = vmul.f32 -1.442695, %v936_v11  ;;  %v937_v20 = vadd.f32 %v891_v12, %v6021_v15  ;;  %v933_v12 = vadd.f32 %v932_v9, %v6033_v5 }
 0x436   :  { %v951_v54 = vadd.f32 %v893_v25, %v6029_v23  ;;  %v4044_v3 = vmul.f32 -1.442695, %v950_v21 }
 0x437   :  { %5194 = vpow2.f32 %v4042_v18  ;;  %v4043_v62 = vmul.f32 -1.442695, %v937_v20 }
 0x438   :  { %v4045_v56 = vmul.f32 -1.442695, %v951_v54 }
 0x439   :  { %5196 = vpow2.f32 %v4043_v62 }
 0x43a   :  { %5198 = vpow2.f32 %v4044_v3 }
 0x43b   :  { %5200 = vpow2.f32 %v4045_v56 }
 0x441   :  { %v5195_v0 = vpop.eup %5194 }
 0x442   :  { %v944_v24 = vadd.f32 1.0, %v5195_v0 }
 0x443   :  { %v5197_v8 = vpop.eup %5196 }
 0x444   :  { %5202 = vrcp.f32 %v944_v24  ;;  %v945_v13 = vadd.f32 1.0, %v5197_v8  ;;  %v5199_v33 = vpop.eup %5198 }
 0x445   :  { %v5201_v55 = vpop.eup %5200  ;;  %v958_v58 = vadd.f32 1.0, %v5199_v33 }
 0x446   :  { %5204 = vrcp.f32 %v945_v13  ;;  %v959_v63 = vadd.f32 1.0, %v5201_v55 }
 0x447   :  { %5206 = vrcp.f32 %v958_v58 }
 0x448   :  { %5208 = vrcp.f32 %v959_v63 }
 0x44e   :  { %v5203_v4 = vpop.eup %5202 }
 0x44f   :  { %v964_v11 = vmul.f32 %v5203_v4, %v930_v61 }
 0x450   :  { %v5205_v14 = vpop.eup %5204 }
 0x451   :  { %v966_v16 = vadd.f32 %v964_v11, %v6036_v17  ;;  %v965_v25 = vmul.f32 %v5205_v14, %v933_v12  ;;  %v5207_v20 = vpop.eup %5206 }
 0x452   :  { %v5209_v21 = vpop.eup %5208  ;;  %v970_v62 = vsub.f32 1.0, %v5207_v20  ;;  %v974_v56 = vmul.f32 %v5207_v20, %v6153_v26 }
 0x453   :  { %5210 = vtanh.f32 %v966_v16  ;;  %v967_v18 = vadd.f32 %v965_v25, %v6039_v22  ;;  %v971_v53 = vsub.f32 1.0, %v5209_v21  ;;  %v975_v9 = vmul.f32 %v5209_v21, %v6155_v27 }
 0x455   :  { %5212 = vtanh.f32 %v967_v18 }
 0x45d   :  { %v5211_v54 = vpop.eup %5210 }
 0x45e   :  { %v972_v3 = vmul.f32 %v5211_v54, %v970_v62 }
 0x45f   :  { %v5213_v0 = vpop.eup %5212 }
 0x460   :  { %v973_v24 = vmul.f32 %v5213_v0, %v971_v53  ;;  %v6208_v8 = vadd.f32 %v974_v56, %v972_v3 }
 0x462   :  { %7967 = vst [vmem:[#allocation5_spill] sm:$0xff] %v6208_v8  ;;  %v6210_v13 = vadd.f32 %v975_v9, %v973_v24 }
 0x464   :  { %7968 = vst [vmem:[#allocation6_spill] sm:$0xff] %v6210_v13  ;;  %v980_v33 = vpack.c.bf16 %v6210_v13, %v6208_v8 }
 0x466   :  { %1014 = vmatmul.mubr.bf16.vlgmr.msra.gmra.mrb[20].mxu0 %v980_v33  ;;  %4532 = vmatmul.mubr.bf16.vlgmr.msra.gmra.mrb[20].mxu1 %v980_v33 }
 0x467   :  { %1111 = vmatpush1.bf16.msra.mxu0 %v5813_v28  ;;  %4536 = vmatpush3.bf16.msra.mxu1 %v5857_v36  ;;  %v6250_v28 = vld [vmem:[%s7924_s2 + $0x4] ss:$12 sps:$4 sm:$0xff]  }
 0x468   :  { %1112 = vmatprep.subr.bf16.mxu0 %v5818_v29  ;;  %4537 = vmatprep.subr.bf16.mxu1 %v7932_v1 }
 0x469   :  { %1142 = vmatprep.mubr.bf16.mxu0 %v7930_v2  ;;  %4551 = vmatprep.mubr.msk.bf16.mxu1 %vm5688_vm0, %v7932_v1 }
 0x46b   :  { %1113 = vmatpush1.bf16.msra.mxu0 %v5828_v31  ;;  %4538 = vmatpush3.bf16.msra.mxu1 %v5876_v39 }
 0x46c   :  { %1114 = vmatprep.subr.bf16.mxu0 %v5834_v32  ;;  %4539 = vmatprep.subr.bf16.mxu1 %v7932_v1 }
 0x46f   :  { %1115 = vmatpush1.bf16.msra.mxu0 %v5846_v34  ;;  %4540 = vmatpush3.bf16.msra.mxu1 %v5897_v42 }
 0x470   :  { %1116 = vmatprep.subr.bf16.mxu0 %v5852_v35  ;;  %4541 = vmatprep.subr.bf16.mxu1 %v7932_v1 }
 0x473   :  { %1117 = vmatpush1.bf16.msra.mxu0 %v5864_v37  ;;  %4542 = vmatpush3.bf16.msra.mxu1 %v5916_v45 }
 0x474   :  { %1118 = vmatprep.subr.bf16.mxu0 %v5870_v38  ;;  %4543 = vmatprep.subr.bf16.mxu1 %v7932_v1 }
 0x477   :  { %1119 = vmatpush1.bf16.msra.mxu0 %v5885_v40  ;;  %4544 = vmatpush3.bf16.msra.mxu1 %v5935_v48 }
 0x478   :  { %1120 = vmatprep.subr.bf16.mxu0 %v5891_v41  ;;  %4545 = vmatprep.subr.bf16.mxu1 %v7932_v1 }
 0x47b   :  { %1121 = vmatpush1.bf16.msra.mxu0 %v5904_v43  ;;  %4546 = vmatpush3.bf16.msra.mxu1 %v5949_v50 }
 0x47c   :  { %1122 = vmatprep.subr.bf16.mxu0 %v5910_v44  ;;  %4547 = vmatprep.subr.bf16.mxu1 %v7932_v1 }
 0x47f   :  { %1123 = vmatpush1.bf16.msra.mxu0 %v5923_v46  ;;  %4548 = vmatpush3.bf16.msra.mxu1 %v5957_v51 }
 0x480   :  { %1124 = vmatprep.subr.bf16.mxu0 %v5929_v47  ;;  %4549 = vmatprep.subr.bf16.mxu1 %v7932_v1 }
 0x483   :  { %1125 = vmatpush1.bf16.msra.mxu0 %v5942_v49  ;;  %4550 = vmatpush3.bf16.msra.mxu1 %v5968_v52 }
 0x484   :  { %1239 = vmatprep.subr.bf16.mxu0 %v6250_v28  ;;  %4555 = vmatprep.subr.bf16.mxu1 %v7932_v1 }
 0x539   :  { %v1015_v29 = vpop.f32.mrb[20].mxu0  ;;  %v1058_v31 = vpop.f32.mrb[20].mxu1 }
 0x53a   :  { %v1016_v32 = vadd.f32 %v1015_v29, %v6013_v6  ;;  %v1017_v34 = vpop.f32.mrb[21].mxu0  ;;  %v4533_v35 = vpop.f32.mrb[21].mxu1  ;;  %v1059_v11 = vadd.f32 %v1058_v31, %v6033_v5 }
 0x53b   :  { %v1018_v36 = vadd.f32 %v1017_v34, %v6015_v7  ;;  %v1019_v37 = vpop.f32.mrb[22].mxu0  ;;  %v1061_v38 = vpop.f32.mrb[22].mxu1 }
 0x53c   :  { %v1065_v39 = vadd.f32 %v1016_v32, %v6017_v10  ;;  %v1020_v40 = vadd.f32 %v1019_v37, %v6013_v6  ;;  %v1021_v41 = vpop.f32.mrb[23].mxu0  ;;  %v4534_v42 = vpop.f32.mrb[23].mxu1  ;;  %v1062_v25 = vadd.f32 %v1061_v38, %v6033_v5  ;;  %v6283_v37 = vld [vmem:[%s7924_s2 + $0x8] ss:$12 sps:$4 sm:$0xff]  }
 0x53d   :  { %v1022_v43 = vadd.f32 %v1021_v41, %v6015_v7  ;;  %v1079_v46 = vadd.f32 %v1018_v36, %v6025_v19  ;;  %v6277_v36 = vld [vmem:[%s7924_s2] ss:$12 sps:$4 sm:$0xff]   ;;  %v6289_v38 = vld [vmem:[%s7924_s2 + $0x1c] ss:$12 sps:$4 sm:$0xff]  }
 0x53e   :  { %v4046_v44 = vmul.f32 -1.442695, %v1065_v39  ;;  %v1066_v45 = vadd.f32 %v1020_v40, %v6021_v15  ;;  %v6299_v39 = vld [vmem:[%s7924_s2 + $0x18] ss:$12 sps:$4 sm:$0xff]   ;;  %v6305_v40 = vld [vmem:[%s7924_s2 + $0x20] ss:$12 sps:$4 sm:$0xff]  }
 0x53f   :  { %v1080_v48 = vadd.f32 %v1022_v43, %v6029_v23  ;;  %v4048_v49 = vmul.f32 -1.442695, %v1079_v46  ;;  %v6311_v41 = vld [vmem:[%s7924_s2 + $0x34] ss:$12 sps:$4 sm:$0xff]   ;;  %v6318_v42 = vld [vmem:[%s7924_s2 + $0x30] ss:$12 sps:$4 sm:$0xff]  }
 0x540   :  { %5214 = vpow2.f32 %v4046_v44  ;;  %v4047_v47 = vmul.f32 -1.442695, %v1066_v45  ;;  %v6324_v43 = vld [vmem:[%s7924_s2 + $0x38] ss:$12 sps:$4 sm:$0xff]   ;;  %v6337_v45 = vld [vmem:[%s7924_s2 + $0x48] ss:$12 sps:$4 sm:$0xff]  }
 0x541   :  { %v4049_v50 = vmul.f32 -1.442695, %v1080_v48  ;;  %v6330_v44 = vld [vmem:[%s7924_s2 + $0x4c] ss:$12 sps:$4 sm:$0xff]   ;;  %v6343_v46 = vld [vmem:[%s7924_s2 + $0x50] ss:$12 sps:$4 sm:$0xff]  }
 0x542   :  { %5216 = vpow2.f32 %v4047_v47  ;;  %v6349_v47 = vld [vmem:[%s7924_s2 + $0x64] ss:$12 sps:$4 sm:$0xff]   ;;  %v6356_v48 = vld [vmem:[%s7924_s2 + $0x60] ss:$12 sps:$4 sm:$0xff]  }
 0x543   :  { %5218 = vpow2.f32 %v4048_v49  ;;  %v6362_v49 = vld [vmem:[%s7924_s2 + $0x68] ss:$12 sps:$4 sm:$0xff]  }
 0x544   :  { %5220 = vpow2.f32 %v4049_v50  ;;  %v6368_v50 = vld [vmem:[%s7924_s2 + $0x7c] ss:$12 sps:$4 sm:$0xff]  }
 0x54a   :  { %v5215_v51 = vpop.eup %5214 }
 0x54b   :  { %v1073_v52 = vadd.f32 1.0, %v5215_v51  ;;  %v6375_v51 = vld [vmem:[%s7924_s2 + $0x78] ss:$12 sps:$4 sm:$0xff]  }
 0x54c   :  { %v5217_v55 = vpop.eup %5216 }
 0x54d   :  { %5222 = vrcp.f32 %v1073_v52  ;;  %v1074_v58 = vadd.f32 1.0, %v5217_v55  ;;  %v5219_v61 = vpop.eup %5218  ;;  %v6381_v52 = vld [vmem:[%s7924_s2 + $0x80] ss:$12 sps:$4 sm:$0xff]  }
 0x54e   :  { %v5221_v63 = vpop.eup %5220  ;;  %v1087_v4 = vadd.f32 1.0, %v5219_v61  ;;  %v6387_v55 = vld [vmem:[%s7924_s2 + $0x94] ss:$12 sps:$4 sm:$0xff]   ;;  %v6400_v61 = vld [vmem:[%s7924_s2 + $0x98] ss:$12 sps:$4 sm:$0xff]  }
 0x54f   :  { %5224 = vrcp.f32 %v1074_v58  ;;  %v1088_v12 = vadd.f32 1.0, %v5221_v63  ;;  %v6394_v58 = vld [vmem:[%s7924_s2 + $0x90] ss:$12 sps:$4 sm:$0xff]   ;;  %v6406_v63 = vld [vmem:[%s7924_s2 + $0xac] ss:$12 sps:$4 sm:$0xff]  }
 0x550   :  { %5226 = vrcp.f32 %v1087_v4  ;;  %v6413_v4 = vld [vmem:[%s7924_s2 + $0xa8] ss:$12 sps:$4 sm:$0xff]  }
 0x551   :  { %5228 = vrcp.f32 %v1088_v12 }
 0x557   :  { %v5223_v14 = vpop.eup %5222 }
 0x558   :  { %v1093_v16 = vmul.f32 %v5223_v14, %v1059_v11  ;;  %v6419_v11 = vld [vmem:[%s7924_s2 + $0xb0] ss:$12 sps:$4 sm:$0xff]  }
 0x559   :  { %v5225_v18 = vpop.eup %5224 }
 0x55a   :  { %v1095_v20 = vadd.f32 %v1093_v16, %v6036_v17  ;;  %v1094_v21 = vmul.f32 %v5225_v18, %v1062_v25  ;;  %v5227_v54 = vpop.eup %5226 }
 0x55b   :  { %v5229_v53 = vpop.eup %5228  ;;  %v1099_v3 = vsub.f32 1.0, %v5227_v54  ;;  %v1103_v9 = vmul.f32 %v5227_v54, %v6208_v8 }
 0x55c   :  { %5230 = vtanh.f32 %v1095_v20  ;;  %v1096_v62 = vadd.f32 %v1094_v21, %v6039_v22  ;;  %v1100_v0 = vsub.f32 1.0, %v5229_v53  ;;  %v1104_v31 = vmul.f32 %v5229_v53, %v6210_v13 }
 0x55e   :  { %5232 = vtanh.f32 %v1096_v62 }
 0x566   :  { %v5231_v56 = vpop.eup %5230 }
 0x567   :  { %v1101_v24 = vmul.f32 %v5231_v56, %v1099_v3 }
 0x568   :  { %v5233_v33 = vpop.eup %5232 }
 0x569   :  { %v1102_v29 = vmul.f32 %v5233_v33, %v1100_v0  ;;  %v6268_v32 = vadd.f32 %v1103_v9, %v1101_v24 }
 0x56b   :  { %7969 = vst [vmem:[#allocation7_spill] sm:$0xff] %v6268_v32  ;;  %v6270_v34 = vadd.f32 %v1104_v31, %v1102_v29 }
 0x56d   :  { %7970 = vst [vmem:[#allocation8_spill] sm:$0xff] %v6270_v34  ;;  %v1109_v35 = vpack.c.bf16 %v6270_v34, %v6268_v32 }
 0x56f   :  { %1143 = vmatmul.mubr.bf16.vlgmr.msra.gmra.mrb[24].mxu0 %v1109_v35  ;;  %4552 = vmatmul.mubr.bf16.vlgmr.msra.gmra.mrb[24].mxu1 %v1109_v35 }
 0x570   :  { %1240 = vmatpush1.bf16.msra.mxu0 %v6277_v36  ;;  %4556 = vmatpush3.bf16.msra.mxu1 %v6283_v37 }
 0x571   :  { %1241 = vmatprep.subr.bf16.mxu0 %v6289_v38  ;;  %4557 = vmatprep.subr.bf16.mxu1 %v7932_v1 }
 0x572   :  { %1271 = vmatprep.mubr.bf16.mxu0 %v7930_v2  ;;  %4571 = vmatprep.mubr.msk.bf16.mxu1 %vm5688_vm0, %v7932_v1 }
 0x574   :  { %1242 = vmatpush1.bf16.msra.mxu0 %v6299_v39  ;;  %4558 = vmatpush3.bf16.msra.mxu1 %v6305_v40 }
 0x575   :  { %1243 = vmatprep.subr.bf16.mxu0 %v6311_v41  ;;  %4559 = vmatprep.subr.bf16.mxu1 %v7932_v1 }
 0x578   :  { %1244 = vmatpush1.bf16.msra.mxu0 %v6318_v42  ;;  %4560 = vmatpush3.bf16.msra.mxu1 %v6324_v43 }
 0x579   :  { %1245 = vmatprep.subr.bf16.mxu0 %v6330_v44  ;;  %4561 = vmatprep.subr.bf16.mxu1 %v7932_v1 }
 0x57c   :  { %1246 = vmatpush1.bf16.msra.mxu0 %v6337_v45  ;;  %4562 = vmatpush3.bf16.msra.mxu1 %v6343_v46 }
 0x57d   :  { %1247 = vmatprep.subr.bf16.mxu0 %v6349_v47  ;;  %4563 = vmatprep.subr.bf16.mxu1 %v7932_v1 }
 0x580   :  { %1248 = vmatpush1.bf16.msra.mxu0 %v6356_v48  ;;  %4564 = vmatpush3.bf16.msra.mxu1 %v6362_v49 }
 0x581   :  { %1249 = vmatprep.subr.bf16.mxu0 %v6368_v50  ;;  %4565 = vmatprep.subr.bf16.mxu1 %v7932_v1 }
 0x584   :  { %1250 = vmatpush1.bf16.msra.mxu0 %v6375_v51  ;;  %4566 = vmatpush3.bf16.msra.mxu1 %v6381_v52 }
 0x585   :  { %1251 = vmatprep.subr.bf16.mxu0 %v6387_v55  ;;  %4567 = vmatprep.subr.bf16.mxu1 %v7932_v1 }
 0x588   :  { %1252 = vmatpush1.bf16.msra.mxu0 %v6394_v58  ;;  %4568 = vmatpush3.bf16.msra.mxu1 %v6400_v61 }
 0x589   :  { %1253 = vmatprep.subr.bf16.mxu0 %v6406_v63  ;;  %4569 = vmatprep.subr.bf16.mxu1 %v7932_v1 }
 0x58c   :  { %1254 = vmatpush1.bf16.msra.mxu0 %v6413_v4  ;;  %4570 = vmatpush3.bf16.msra.mxu1 %v6419_v11 }
 0x58d   :  { %1368 = vmatprep.subr.bf16.mxu0 %v6250_v28  ;;  %4575 = vmatprep.subr.bf16.mxu1 %v7932_v1 }
 0x642   :  { %v1144_v12 = vpop.f32.mrb[24].mxu0  ;;  %v1187_v14 = vpop.f32.mrb[24].mxu1 }
 0x643   :  { %v1145_v16 = vadd.f32 %v1144_v12, %v6013_v6  ;;  %v1146_v25 = vpop.f32.mrb[25].mxu0  ;;  %v4553_v18 = vpop.f32.mrb[25].mxu1 }
 0x644   :  { %v1147_v20 = vadd.f32 %v1146_v25, %v6015_v7  ;;  %v1148_v21 = vpop.f32.mrb[26].mxu0  ;;  %v1190_v62 = vpop.f32.mrb[26].mxu1 }
 0x645   :  { %v1194_v54 = vadd.f32 %v1145_v16, %v6017_v10  ;;  %v1149_v53 = vadd.f32 %v1148_v21, %v6013_v6  ;;  %v1150_v3 = vpop.f32.mrb[27].mxu0  ;;  %v4554_v56 = vpop.f32.mrb[27].mxu1 }
 0x646   :  { %v1151_v0 = vadd.f32 %v1150_v3, %v6015_v7  ;;  %v1208_v33 = vadd.f32 %v1147_v20, %v6025_v19  ;;  %v1188_v20 = vadd.f32 %v1187_v14, %v6033_v5 }
 0x647   :  { %v4050_v24 = vmul.f32 -1.442695, %v1194_v54  ;;  %v1195_v9 = vadd.f32 %v1149_v53, %v6021_v15 }
 0x648   :  { %v1209_v31 = vadd.f32 %v1151_v0, %v6029_v23  ;;  %v4052_v35 = vmul.f32 -1.442695, %v1208_v33  ;;  %v1191_v0 = vadd.f32 %v1190_v62, %v6033_v5 }
 0x649   :  { %5234 = vpow2.f32 %v4050_v24  ;;  %v4051_v29 = vmul.f32 -1.442695, %v1195_v9 }
 0x64a   :  { %v4053_v12 = vmul.f32 -1.442695, %v1209_v31 }
 0x64b   :  { %5236 = vpow2.f32 %v4051_v29 }
 0x64c   :  { %5238 = vpow2.f32 %v4052_v35 }
 0x64d   :  { %5240 = vpow2.f32 %v4053_v12 }
 0x653   :  { %v5235_v16 = vpop.eup %5234 }
 0x654   :  { %v1202_v25 = vadd.f32 1.0, %v5235_v16 }
 0x655   :  { %v5237_v18 = vpop.eup %5236 }
 0x656   :  { %5242 = vrcp.f32 %v1202_v25  ;;  %v1203_v21 = vadd.f32 1.0, %v5237_v18  ;;  %v5239_v54 = vpop.eup %5238 }
 0x657   :  { %v5241_v3 = vpop.eup %5240  ;;  %v1216_v53 = vadd.f32 1.0, %v5239_v54 }
 0x658   :  { %5244 = vrcp.f32 %v1203_v21  ;;  %v1217_v56 = vadd.f32 1.0, %v5241_v3 }
 0x659   :  { %5246 = vrcp.f32 %v1216_v53 }
 0x65a   :  { %5248 = vrcp.f32 %v1217_v56 }
 0x660   :  { %v5243_v24 = vpop.eup %5242 }
 0x661   :  { %v1222_v9 = vmul.f32 %v5243_v24, %v1188_v20 }
 0x662   :  { %v5245_v33 = vpop.eup %5244 }
 0x663   :  { %v1224_v29 = vadd.f32 %v1222_v9, %v6036_v17  ;;  %v1223_v31 = vmul.f32 %v5245_v33, %v1191_v0  ;;  %v5247_v12 = vpop.eup %5246 }
 0x664   :  { %v5249_v16 = vpop.eup %5248  ;;  %v1228_v25 = vsub.f32 1.0, %v5247_v12  ;;  %v1232_v54 = vmul.f32 %v5247_v12, %v6268_v32 }
 0x665   :  { %5250 = vtanh.f32 %v1224_v29  ;;  %v1225_v35 = vadd.f32 %v1223_v31, %v6039_v22  ;;  %v1229_v14 = vsub.f32 1.0, %v5249_v16  ;;  %v1233_v62 = vmul.f32 %v5249_v16, %v6270_v34 }
 0x667   :  { %5252 = vtanh.f32 %v1225_v35 }
 0x66f   :  { %v5251_v18 = vpop.eup %5250 }
 0x670   :  { %v1230_v21 = vmul.f32 %v5251_v18, %v1228_v25 }
 0x671   :  { %v5253_v3 = vpop.eup %5252 }
 0x672   :  { %v1231_v53 = vmul.f32 %v5253_v3, %v1229_v14  ;;  %v6438_v20 = vadd.f32 %v1232_v54, %v1230_v21 }
 0x674   :  { %7971 = vst [vmem:[#allocation9_spill] sm:$0xff] %v6438_v20  ;;  %v6440_v24 = vadd.f32 %v1233_v62, %v1231_v53 }
 0x676   :  { %7972 = vst [vmem:[#allocation10_spill] sm:$0xff] %v6440_v24  ;;  %v1238_v56 = vpack.c.bf16 %v6440_v24, %v6438_v20 }
 0x678   :  { %1272 = vmatmul.mubr.bf16.vlgmr.msra.gmra.mrb[28].mxu0 %v1238_v56  ;;  %4572 = vmatmul.mubr.bf16.vlgmr.msra.gmra.mrb[28].mxu1 %v1238_v56 }
 0x679   :  { %1369 = vmatpush1.bf16.msra.mxu0 %v6277_v36  ;;  %4576 = vmatpush3.bf16.msra.mxu1 %v6283_v37 }
 0x67a   :  { %1370 = vmatprep.subr.bf16.mxu0 %v6289_v38  ;;  %4577 = vmatprep.subr.bf16.mxu1 %v7932_v1 }
 0x67b   :  { %1400 = vmatprep.mubr.bf16.mxu0 %v7930_v2  ;;  %4591 = vmatprep.mubr.msk.bf16.mxu1 %vm5688_vm0, %v7932_v1 }
 0x67d   :  { %1371 = vmatpush1.bf16.msra.mxu0 %v6299_v39  ;;  %4578 = vmatpush3.bf16.msra.mxu1 %v6305_v40 }
 0x67e   :  { %1372 = vmatprep.subr.bf16.mxu0 %v6311_v41  ;;  %4579 = vmatprep.subr.bf16.mxu1 %v7932_v1 }
 0x681   :  { %1373 = vmatpush1.bf16.msra.mxu0 %v6318_v42  ;;  %4580 = vmatpush3.bf16.msra.mxu1 %v6324_v43 }
 0x682   :  { %1374 = vmatprep.subr.bf16.mxu0 %v6330_v44  ;;  %4581 = vmatprep.subr.bf16.mxu1 %v7932_v1 }
 0x685   :  { %1375 = vmatpush1.bf16.msra.mxu0 %v6337_v45  ;;  %4582 = vmatpush3.bf16.msra.mxu1 %v6343_v46 }
 0x686   :  { %1376 = vmatprep.subr.bf16.mxu0 %v6349_v47  ;;  %4583 = vmatprep.subr.bf16.mxu1 %v7932_v1 }
 0x689   :  { %1377 = vmatpush1.bf16.msra.mxu0 %v6356_v48  ;;  %4584 = vmatpush3.bf16.msra.mxu1 %v6362_v49 }
 0x68a   :  { %1378 = vmatprep.subr.bf16.mxu0 %v6368_v50  ;;  %4585 = vmatprep.subr.bf16.mxu1 %v7932_v1 }
 0x68d   :  { %1379 = vmatpush1.bf16.msra.mxu0 %v6375_v51  ;;  %4586 = vmatpush3.bf16.msra.mxu1 %v6381_v52 }
 0x68e   :  { %1380 = vmatprep.subr.bf16.mxu0 %v6387_v55  ;;  %4587 = vmatprep.subr.bf16.mxu1 %v7932_v1 }
 0x691   :  { %1381 = vmatpush1.bf16.msra.mxu0 %v6394_v58  ;;  %4588 = vmatpush3.bf16.msra.mxu1 %v6400_v61 }
 0x692   :  { %1382 = vmatprep.subr.bf16.mxu0 %v6406_v63  ;;  %4589 = vmatprep.subr.bf16.mxu1 %v7932_v1 }
 0x695   :  { %1383 = vmatpush1.bf16.msra.mxu0 %v6413_v4  ;;  %4590 = vmatpush3.bf16.msra.mxu1 %v6419_v11 }
 0x696   :  { %1497 = vmatprep.subr.bf16.mxu0 %v6250_v28  ;;  %4595 = vmatprep.subr.bf16.mxu1 %v7932_v1 }
 0x74b   :  { %v1273_v9 = vpop.f32.mrb[28].mxu0  ;;  %v1316_v0 = vpop.f32.mrb[28].mxu1 }
 0x74c   :  { %v1274_v33 = vadd.f32 %v1273_v9, %v6013_v6  ;;  %v1275_v29 = vpop.f32.mrb[29].mxu0  ;;  %v4573_v31 = vpop.f32.mrb[29].mxu1 }
 0x74d   :  { %v1276_v35 = vadd.f32 %v1275_v29, %v6015_v7  ;;  %v1277_v12 = vpop.f32.mrb[30].mxu0  ;;  %v1319_v16 = vpop.f32.mrb[30].mxu1 }
 0x74e   :  { %v1323_v25 = vadd.f32 %v1274_v33, %v6017_v10  ;;  %v1278_v18 = vadd.f32 %v1277_v12, %v6013_v6  ;;  %v1279_v14 = vpop.f32.mrb[31].mxu0  ;;  %v4574_v21 = vpop.f32.mrb[31].mxu1 }
 0x74f   :  { %v1280_v54 = vadd.f32 %v1279_v14, %v6015_v7  ;;  %v1337_v62 = vadd.f32 %v1276_v35, %v6025_v19  ;;  %v1317_v35 = vadd.f32 %v1316_v0, %v6033_v5 }
 0x750   :  { %v4054_v3 = vmul.f32 -1.442695, %v1323_v25  ;;  %v1324_v53 = vadd.f32 %v1278_v18, %v6021_v15 }
 0x751   :  { %v1338_v9 = vadd.f32 %v1280_v54, %v6029_v23  ;;  %v4056_v29 = vmul.f32 -1.442695, %v1337_v62  ;;  %v1320_v54 = vadd.f32 %v1319_v16, %v6033_v5 }
 0x752   :  { %5254 = vpow2.f32 %v4054_v3  ;;  %v4055_v56 = vmul.f32 -1.442695, %v1324_v53 }
 0x753   :  { %v4057_v31 = vmul.f32 -1.442695, %v1338_v9 }
 0x754   :  { %5256 = vpow2.f32 %v4055_v56 }
 0x755   :  { %5258 = vpow2.f32 %v4056_v29 }
 0x756   :  { %5260 = vpow2.f32 %v4057_v31 }
 0x75c   :  { %v5255_v33 = vpop.eup %5254 }
 0x75d   :  { %v1331_v12 = vadd.f32 1.0, %v5255_v33 }
 0x75e   :  { %v5257_v2 = vpop.eup %5256 }
 0x75f   :  { %5262 = vrcp.f32 %v1331_v12  ;;  %v1332_v21 = vadd.f32 1.0, %v5257_v2  ;;  %v5259_v25 = vpop.eup %5258 }
 0x760   :  { %v5261_v14 = vpop.eup %5260  ;;  %v1345_v18 = vadd.f32 1.0, %v5259_v25 }
 0x761   :  { %5264 = vrcp.f32 %v1332_v21  ;;  %v1346_v3 = vadd.f32 1.0, %v5261_v14 }
 0x762   :  { %5266 = vrcp.f32 %v1345_v18 }
 0x763   :  { %5268 = vrcp.f32 %v1346_v3 }
 0x769   :  { %v5263_v53 = vpop.eup %5262 }
 0x76a   :  { %v1351_v1 = vmul.f32 %v5263_v53, %v1317_v35  ;;  %v7975_v53 = vmov 0.0  }
 0x76b   :  { %v5265_v62 = vpop.eup %5264 }
 0x76c   :  { %v1353_v56 = vadd.f32 %v1351_v1, %v6036_v17  ;;  %v1352_v9 = vmul.f32 %v5265_v62, %v1320_v54  ;;  %v5267_v29 = vpop.eup %5266  ;;  %v7976_v54 = vmov 0  }
 0x76d   :  { %v5269_v31 = vpop.eup %5268  ;;  %v1357_v33 = vsub.f32 1.0, %v5267_v29  ;;  %v1361_v25 = vmul.f32 %v5267_v29, %v6438_v20 }
 0x76e   :  { %5270 = vtanh.f32 %v1353_v56  ;;  %v1354_v2 = vadd.f32 %v1352_v9, %v6039_v22  ;;  %v1358_v0 = vsub.f32 1.0, %v5269_v31  ;;  %v1362_v16 = vmul.f32 %v5269_v31, %v6440_v24 }
 0x770   :  { %5272 = vtanh.f32 %v1354_v2 }
 0x778   :  { %v5271_v12 = vpop.eup %5270 }
 0x779   :  { %v1359_v21 = vmul.f32 %v5271_v12, %v1357_v33 }
 0x77a   :  { %v5273_v14 = vpop.eup %5272 }
 0x77b   :  { %v1360_v18 = vmul.f32 %v5273_v14, %v1358_v0  ;;  %v6493_v35 = vadd.f32 %v1361_v25, %v1359_v21 }
 0x77d   :  { %7973 = vst [vmem:[#allocation11_spill] sm:$0xff] %v6493_v35  ;;  %v6495_v1 = vadd.f32 %v1362_v16, %v1360_v18 }
 0x77f   :  { %7974 = vst [vmem:[#allocation12_spill] sm:$0xff] %v6495_v1  ;;  %v1367_v3 = vpack.c.bf16 %v6495_v1, %v6493_v35 }
 0x781   :  { %1401 = vmatmul.mubr.bf16.vlgmr.msra.gmra.mrb[32].mxu0 %v1367_v3  ;;  %4592 = vmatmul.mubr.bf16.vlgmr.msra.gmra.mrb[32].mxu1 %v1367_v3 }
 0x782   :  { %1498 = vmatpush1.bf16.msra.mxu0 %v6277_v36  ;;  %4596 = vmatpush3.bf16.msra.mxu1 %v6283_v37 }
 0x783   :  { %1499 = vmatprep.subr.bf16.mxu0 %v6289_v38  ;;  %4597 = vmatprep.subr.bf16.mxu1 %v7975_v53 }
 0x784   :  { %1529 = vmatprep.mubr.bf16.mxu0 %v7976_v54  ;;  %4611 = vmatprep.mubr.msk.bf16.mxu1 %vm5688_vm0, %v7975_v53 }
 0x786   :  { %1500 = vmatpush1.bf16.msra.mxu0 %v6299_v39  ;;  %4598 = vmatpush3.bf16.msra.mxu1 %v6305_v40 }
 0x787   :  { %1501 = vmatprep.subr.bf16.mxu0 %v6311_v41  ;;  %4599 = vmatprep.subr.bf16.mxu1 %v7975_v53 }
 0x78a   :  { %1502 = vmatpush1.bf16.msra.mxu0 %v6318_v42  ;;  %4600 = vmatpush3.bf16.msra.mxu1 %v6324_v43 }
 0x78b   :  { %1503 = vmatprep.subr.bf16.mxu0 %v6330_v44  ;;  %4601 = vmatprep.subr.bf16.mxu1 %v7975_v53 }
 0x78e   :  { %1504 = vmatpush1.bf16.msra.mxu0 %v6337_v45  ;;  %4602 = vmatpush3.bf16.msra.mxu1 %v6343_v46 }
 0x78f   :  { %1505 = vmatprep.subr.bf16.mxu0 %v6349_v47  ;;  %4603 = vmatprep.subr.bf16.mxu1 %v7975_v53 }
 0x792   :  { %1506 = vmatpush1.bf16.msra.mxu0 %v6356_v48  ;;  %4604 = vmatpush3.bf16.msra.mxu1 %v6362_v49 }
 0x793   :  { %1507 = vmatprep.subr.bf16.mxu0 %v6368_v50  ;;  %4605 = vmatprep.subr.bf16.mxu1 %v7975_v53 }
 0x796   :  { %1508 = vmatpush1.bf16.msra.mxu0 %v6375_v51  ;;  %4606 = vmatpush3.bf16.msra.mxu1 %v6381_v52 }
 0x797   :  { %1509 = vmatprep.subr.bf16.mxu0 %v6387_v55  ;;  %4607 = vmatprep.subr.bf16.mxu1 %v7975_v53 }
 0x79a   :  { %1510 = vmatpush1.bf16.msra.mxu0 %v6394_v58  ;;  %4608 = vmatpush3.bf16.msra.mxu1 %v6400_v61 }
 0x79b   :  { %1511 = vmatprep.subr.bf16.mxu0 %v6406_v63  ;;  %4609 = vmatprep.subr.bf16.mxu1 %v7975_v53 }
 0x79e   :  { %1512 = vmatpush1.bf16.msra.mxu0 %v6413_v4  ;;  %4610 = vmatpush3.bf16.msra.mxu1 %v6419_v11 }
 0x79f   :  { %1626 = vmatprep.subr.bf16.mxu0 %v6250_v28  ;;  %4615 = vmatprep.subr.bf16.mxu1 %v7975_v53 }
 0x854   :  { %v1402_v62 = vpop.f32.mrb[32].mxu0  ;;  %v1445_v56 = vpop.f32.mrb[32].mxu1 }
 0x855   :  { %v1403_v9 = vadd.f32 %v1402_v62, %v6013_v6  ;;  %v1404_v2 = vpop.f32.mrb[33].mxu0  ;;  %v4593_v29 = vpop.f32.mrb[33].mxu1 }
 0x856   :  { %v1405_v31 = vadd.f32 %v1404_v2, %v6015_v7  ;;  %v1406_v33 = vpop.f32.mrb[34].mxu0  ;;  %v1448_v12 = vpop.f32.mrb[34].mxu1 }
 0x857   :  { %v1452_v0 = vadd.f32 %v1403_v9, %v6017_v10  ;;  %v1407_v21 = vadd.f32 %v1406_v33, %v6013_v6  ;;  %v1408_v25 = vpop.f32.mrb[35].mxu0  ;;  %v4594_v14 = vpop.f32.mrb[35].mxu1 }
 0x858   :  { %v1409_v18 = vadd.f32 %v1408_v25, %v6015_v7  ;;  %v1466_v24 = vadd.f32 %v1405_v31, %v6025_v19  ;;  %v1446_v31 = vadd.f32 %v1445_v56, %v6033_v5 }
 0x859   :  { %v4058_v16 = vmul.f32 -1.442695, %v1452_v0  ;;  %v1453_v3 = vadd.f32 %v1407_v21, %v6021_v15 }
 0x85a   :  { %v1467_v29 = vadd.f32 %v1409_v18, %v6029_v23  ;;  %v4060_v2 = vmul.f32 -1.442695, %v1466_v24  ;;  %v1449_v24 = vadd.f32 %v1448_v12, %v6033_v5 }
 0x85b   :  { %5274 = vpow2.f32 %v4058_v16  ;;  %v4059_v62 = vmul.f32 -1.442695, %v1453_v3 }
 0x85c   :  { %v4061_v20 = vmul.f32 -1.442695, %v1467_v29 }
 0x85d   :  { %5276 = vpow2.f32 %v4059_v62 }
 0x85e   :  { %5278 = vpow2.f32 %v4060_v2 }
 0x85f   :  { %5280 = vpow2.f32 %v4061_v20 }
 0x865   :  { %v5275_v9 = vpop.eup %5274 }
 0x866   :  { %v1460_v33 = vadd.f32 1.0, %v5275_v9 }
 0x867   :  { %v5277_v34 = vpop.eup %5276 }
 0x868   :  { %5282 = vrcp.f32 %v1460_v33  ;;  %v1461_v14 = vadd.f32 1.0, %v5277_v34  ;;  %v5279_v0 = vpop.eup %5278 }
 0x869   :  { %v5281_v25 = vpop.eup %5280  ;;  %v1474_v21 = vadd.f32 1.0, %v5279_v0 }
 0x86a   :  { %5284 = vrcp.f32 %v1461_v14  ;;  %v1475_v16 = vadd.f32 1.0, %v5281_v25 }
 0x86b   :  { %5286 = vrcp.f32 %v1474_v21 }
 0x86c   :  { %5288 = vrcp.f32 %v1475_v16 }
 0x872   :  { %v5283_v3 = vpop.eup %5282 }
 0x873   :  { %v1480_v32 = vmul.f32 %v5283_v3, %v1446_v31 }
 0x874   :  { %v5285_v18 = vpop.eup %5284 }
 0x875   :  { %v1482_v20 = vadd.f32 %v1480_v32, %v6036_v17  ;;  %v1481_v62 = vmul.f32 %v5285_v18, %v1449_v24  ;;  %v5287_v29 = vpop.eup %5286 }
 0x876   :  { %v5289_v2 = vpop.eup %5288  ;;  %v1486_v9 = vsub.f32 1.0, %v5287_v29  ;;  %v1490_v0 = vmul.f32 %v5287_v29, %v6493_v35 }
 0x877   :  { %5290 = vtanh.f32 %v1482_v20  ;;  %v1483_v34 = vadd.f32 %v1481_v62, %v6039_v22  ;;  %v1487_v56 = vsub.f32 1.0, %v5289_v2  ;;  %v1491_v12 = vmul.f32 %v5289_v2, %v6495_v1 }
 0x879   :  { %5292 = vtanh.f32 %v1483_v34 }
 0x881   :  { %v5291_v33 = vpop.eup %5290 }
 0x882   :  { %v1488_v14 = vmul.f32 %v5291_v33, %v1486_v9 }
 0x883   :  { %v5293_v25 = vpop.eup %5292 }
 0x884   :  { %v1489_v21 = vmul.f32 %v5293_v25, %v1487_v56  ;;  %v6548_v31 = vadd.f32 %v1490_v0, %v1488_v14 }
 0x886   :  { %7977 = vst [vmem:[#allocation13_spill] sm:$0xff] %v6548_v31  ;;  %v6550_v32 = vadd.f32 %v1491_v12, %v1489_v21 }
 0x888   :  { %7978 = vst [vmem:[#allocation14_spill] sm:$0xff] %v6550_v32  ;;  %v1496_v16 = vpack.c.bf16 %v6550_v32, %v6548_v31 }
 0x88a   :  { %1530 = vmatmul.mubr.bf16.vlgmr.msra.gmra.mrb[36].mxu0 %v1496_v16  ;;  %4612 = vmatmul.mubr.bf16.vlgmr.msra.gmra.mrb[36].mxu1 %v1496_v16 }
 0x88b   :  { %1627 = vmatpush1.bf16.msra.mxu0 %v6277_v36  ;;  %4616 = vmatpush3.bf16.msra.mxu1 %v6283_v37 }
 0x88c   :  { %1628 = vmatprep.subr.bf16.mxu0 %v6289_v38  ;;  %4617 = vmatprep.subr.bf16.mxu1 %v7975_v53 }
 0x88d   :  { %1658 = vmatprep.mubr.bf16.mxu0 %v7976_v54  ;;  %4631 = vmatprep.mubr.msk.bf16.mxu1 %vm5688_vm0, %v7975_v53 }
 0x88f   :  { %1629 = vmatpush1.bf16.msra.mxu0 %v6299_v39  ;;  %4618 = vmatpush3.bf16.msra.mxu1 %v6305_v40 }
 0x890   :  { %1630 = vmatprep.subr.bf16.mxu0 %v6311_v41  ;;  %4619 = vmatprep.subr.bf16.mxu1 %v7975_v53 }
 0x893   :  { %1631 = vmatpush1.bf16.msra.mxu0 %v6318_v42  ;;  %4620 = vmatpush3.bf16.msra.mxu1 %v6324_v43 }
 0x894   :  { %1632 = vmatprep.subr.bf16.mxu0 %v6330_v44  ;;  %4621 = vmatprep.subr.bf16.mxu1 %v7975_v53 }
 0x897   :  { %1633 = vmatpush1.bf16.msra.mxu0 %v6337_v45  ;;  %4622 = vmatpush3.bf16.msra.mxu1 %v6343_v46 }
 0x898   :  { %1634 = vmatprep.subr.bf16.mxu0 %v6349_v47  ;;  %4623 = vmatprep.subr.bf16.mxu1 %v7975_v53 }
 0x89b   :  { %1635 = vmatpush1.bf16.msra.mxu0 %v6356_v48  ;;  %4624 = vmatpush3.bf16.msra.mxu1 %v6362_v49 }
 0x89c   :  { %1636 = vmatprep.subr.bf16.mxu0 %v6368_v50  ;;  %4625 = vmatprep.subr.bf16.mxu1 %v7975_v53 }
 0x89f   :  { %1637 = vmatpush1.bf16.msra.mxu0 %v6375_v51  ;;  %4626 = vmatpush3.bf16.msra.mxu1 %v6381_v52 }
 0x8a0   :  { %1638 = vmatprep.subr.bf16.mxu0 %v6387_v55  ;;  %4627 = vmatprep.subr.bf16.mxu1 %v7975_v53 }
 0x8a3   :  { %1639 = vmatpush1.bf16.msra.mxu0 %v6394_v58  ;;  %4628 = vmatpush3.bf16.msra.mxu1 %v6400_v61 }
 0x8a4   :  { %1640 = vmatprep.subr.bf16.mxu0 %v6406_v63  ;;  %4629 = vmatprep.subr.bf16.mxu1 %v7975_v53 }
 0x8a7   :  { %1641 = vmatpush1.bf16.msra.mxu0 %v6413_v4  ;;  %4630 = vmatpush3.bf16.msra.mxu1 %v6419_v11 }
 0x8a8   :  { %1755 = vmatprep.subr.bf16.mxu0 %v6250_v28  ;;  %4635 = vmatprep.subr.bf16.mxu1 %v7975_v53 }
 0x95d   :  { %v1531_v3 = vpop.f32.mrb[36].mxu0  ;;  %v1574_v24 = vpop.f32.mrb[36].mxu1 }
 0x95e   :  { %v1532_v18 = vadd.f32 %v1531_v3, %v6013_v6  ;;  %v1533_v20 = vpop.f32.mrb[37].mxu0  ;;  %v4613_v62 = vpop.f32.mrb[37].mxu1 }
 0x95f   :  { %v1534_v34 = vadd.f32 %v1533_v20, %v6015_v7  ;;  %v1535_v29 = vpop.f32.mrb[38].mxu0  ;;  %v1577_v2 = vpop.f32.mrb[38].mxu1 }
 0x960   :  { %v1581_v9 = vadd.f32 %v1532_v18, %v6017_v10  ;;  %v1536_v33 = vadd.f32 %v1535_v29, %v6013_v6  ;;  %v1537_v56 = vpop.f32.mrb[39].mxu0  ;;  %v4614_v14 = vpop.f32.mrb[39].mxu1 }
 0x961   :  { %v1538_v0 = vadd.f32 %v1537_v56, %v6015_v7  ;;  %v1595_v12 = vadd.f32 %v1534_v34, %v6025_v19  ;;  %v1575_v34 = vadd.f32 %v1574_v24, %v6033_v5 }
 0x962   :  { %v4062_v25 = vmul.f32 -1.442695, %v1581_v9  ;;  %v1582_v21 = vadd.f32 %v1536_v33, %v6021_v15 }
 0x963   :  { %v1596_v3 = vadd.f32 %v1538_v0, %v6029_v23  ;;  %v4064_v20 = vmul.f32 -1.442695, %v1595_v12  ;;  %v1578_v0 = vadd.f32 %v1577_v2, %v6033_v5 }
 0x964   :  { %5294 = vpow2.f32 %v4062_v25  ;;  %v4063_v16 = vmul.f32 -1.442695, %v1582_v21 }
 0x965   :  { %v4065_v62 = vmul.f32 -1.442695, %v1596_v3 }
 0x966   :  { %5296 = vpow2.f32 %v4063_v16 }
 0x967   :  { %5298 = vpow2.f32 %v4064_v20 }
 0x968   :  { %5300 = vpow2.f32 %v4065_v62 }
 0x96e   :  { %v5295_v18 = vpop.eup %5294 }
 0x96f   :  { %v1589_v29 = vadd.f32 1.0, %v5295_v18 }
 0x970   :  { %v5297_v1 = vpop.eup %5296 }
 0x971   :  { %5302 = vrcp.f32 %v1589_v29  ;;  %v1590_v14 = vadd.f32 1.0, %v5297_v1  ;;  %v5299_v9 = vpop.eup %5298 }
 0x972   :  { %v5301_v56 = vpop.eup %5300  ;;  %v1603_v33 = vadd.f32 1.0, %v5299_v9 }
 0x973   :  { %5304 = vrcp.f32 %v1590_v14  ;;  %v1604_v25 = vadd.f32 1.0, %v5301_v56 }
 0x974   :  { %5306 = vrcp.f32 %v1603_v33 }
 0x975   :  { %5308 = vrcp.f32 %v1604_v25 }
 0x97b   :  { %v5303_v21 = vpop.eup %5302 }
 0x97c   :  { %v1609_v35 = vmul.f32 %v5303_v21, %v1575_v34 }
 0x97d   :  { %v5305_v12 = vpop.eup %5304 }
 0x97e   :  { %v1611_v16 = vadd.f32 %v1609_v35, %v6036_v17  ;;  %v1610_v3 = vmul.f32 %v5305_v12, %v1578_v0  ;;  %v5307_v20 = vpop.eup %5306 }
 0x97f   :  { %v5309_v62 = vpop.eup %5308  ;;  %v1615_v18 = vsub.f32 1.0, %v5307_v20  ;;  %v1619_v9 = vmul.f32 %v5307_v20, %v6548_v31 }
 0x980   :  { %5310 = vtanh.f32 %v1611_v16  ;;  %v1612_v1 = vadd.f32 %v1610_v3, %v6039_v22  ;;  %v1616_v24 = vsub.f32 1.0, %v5309_v62  ;;  %v1620_v2 = vmul.f32 %v5309_v62, %v6550_v32 }
 0x982   :  { %5312 = vtanh.f32 %v1612_v1 }
 0x98a   :  { %v5311_v29 = vpop.eup %5310 }
 0x98b   :  { %v1617_v14 = vmul.f32 %v5311_v29, %v1615_v18 }
 0x98c   :  { %v5313_v56 = vpop.eup %5312 }
 0x98d   :  { %v1618_v33 = vmul.f32 %v5313_v56, %v1616_v24  ;;  %v6603_v34 = vadd.f32 %v1619_v9, %v1617_v14 }
 0x98f   :  { %7979 = vst [vmem:[#allocation15_spill] sm:$0xff] %v6603_v34  ;;  %v6605_v35 = vadd.f32 %v1620_v2, %v1618_v33 }
 0x991   :  { %7980 = vst [vmem:[#allocation16_spill] sm:$0xff] %v6605_v35  ;;  %v1625_v25 = vpack.c.bf16 %v6605_v35, %v6603_v34 }
 0x993   :  { %1659 = vmatmul.mubr.bf16.vlgmr.msra.gmra.mrb[40].mxu0 %v1625_v25  ;;  %4632 = vmatmul.mubr.bf16.vlgmr.msra.gmra.mrb[40].mxu1 %v1625_v25 }
 0x994   :  { %1756 = vmatpush1.bf16.msra.mxu0 %v6277_v36  ;;  %4636 = vmatpush3.bf16.msra.mxu1 %v6283_v37 }
 0x995   :  { %1757 = vmatprep.subr.bf16.mxu0 %v6289_v38  ;;  %4637 = vmatprep.subr.bf16.mxu1 %v7975_v53 }
 0x996   :  { %1787 = vmatprep.mubr.bf16.mxu0 %v7976_v54  ;;  %4651 = vmatprep.mubr.msk.bf16.mxu1 %vm5688_vm0, %v7975_v53 }
 0x998   :  { %1758 = vmatpush1.bf16.msra.mxu0 %v6299_v39  ;;  %4638 = vmatpush3.bf16.msra.mxu1 %v6305_v40 }
 0x999   :  { %1759 = vmatprep.subr.bf16.mxu0 %v6311_v41  ;;  %4639 = vmatprep.subr.bf16.mxu1 %v7975_v53 }
 0x99c   :  { %1760 = vmatpush1.bf16.msra.mxu0 %v6318_v42  ;;  %4640 = vmatpush3.bf16.msra.mxu1 %v6324_v43 }
 0x99d   :  { %1761 = vmatprep.subr.bf16.mxu0 %v6330_v44  ;;  %4641 = vmatprep.subr.bf16.mxu1 %v7975_v53 }
 0x9a0   :  { %1762 = vmatpush1.bf16.msra.mxu0 %v6337_v45  ;;  %4642 = vmatpush3.bf16.msra.mxu1 %v6343_v46 }
 0x9a1   :  { %1763 = vmatprep.subr.bf16.mxu0 %v6349_v47  ;;  %4643 = vmatprep.subr.bf16.mxu1 %v7975_v53 }
 0x9a4   :  { %1764 = vmatpush1.bf16.msra.mxu0 %v6356_v48  ;;  %4644 = vmatpush3.bf16.msra.mxu1 %v6362_v49 }
 0x9a5   :  { %1765 = vmatprep.subr.bf16.mxu0 %v6368_v50  ;;  %4645 = vmatprep.subr.bf16.mxu1 %v7975_v53 }
 0x9a8   :  { %1766 = vmatpush1.bf16.msra.mxu0 %v6375_v51  ;;  %4646 = vmatpush3.bf16.msra.mxu1 %v6381_v52 }
 0x9a9   :  { %1767 = vmatprep.subr.bf16.mxu0 %v6387_v55  ;;  %4647 = vmatprep.subr.bf16.mxu1 %v7975_v53 }
 0x9ac   :  { %1768 = vmatpush1.bf16.msra.mxu0 %v6394_v58  ;;  %4648 = vmatpush3.bf16.msra.mxu1 %v6400_v61 }
 0x9ad   :  { %1769 = vmatprep.subr.bf16.mxu0 %v6406_v63  ;;  %4649 = vmatprep.subr.bf16.mxu1 %v7975_v53 }
 0x9b0   :  { %1770 = vmatpush1.bf16.msra.mxu0 %v6413_v4  ;;  %4650 = vmatpush3.bf16.msra.mxu1 %v6419_v11 }
 0x9b1   :  { %1884 = vmatprep.subr.bf16.mxu0 %v6250_v28  ;;  %4655 = vmatprep.subr.bf16.mxu1 %v7975_v53 }
 0xa66   :  { %v1660_v21 = vpop.f32.mrb[40].mxu0  ;;  %v1703_v0 = vpop.f32.mrb[40].mxu1 }
 0xa67   :  { %v1661_v12 = vadd.f32 %v1660_v21, %v6013_v6  ;;  %v1662_v16 = vpop.f32.mrb[41].mxu0  ;;  %v4633_v3 = vpop.f32.mrb[41].mxu1 }
 0xa68   :  { %v1663_v1 = vadd.f32 %v1662_v16, %v6015_v7  ;;  %v1664_v20 = vpop.f32.mrb[42].mxu0  ;;  %v1706_v62 = vpop.f32.mrb[42].mxu1 }
 0xa69   :  { %v1710_v18 = vadd.f32 %v1661_v12, %v6017_v10  ;;  %v1665_v29 = vadd.f32 %v1664_v20, %v6013_v6  ;;  %v1666_v24 = vpop.f32.mrb[43].mxu0  ;;  %v4634_v14 = vpop.f32.mrb[43].mxu1 }
 0xa6a   :  { %v1667_v28 = vadd.f32 %v1666_v24, %v6015_v7  ;;  %v1724_v33 = vadd.f32 %v1663_v1, %v6025_v19  ;;  %v1704_v1 = vadd.f32 %v1703_v0, %v6033_v5 }
 0xa6b   :  { %v4066_v9 = vmul.f32 -1.442695, %v1710_v18  ;;  %v1711_v56 = vadd.f32 %v1665_v29, %v6021_v15 }
 0xa6c   :  { %v1725_v25 = vadd.f32 %v1667_v28, %v6029_v23  ;;  %v4068_v21 = vmul.f32 -1.442695, %v1724_v33  ;;  %v1707_v28 = vadd.f32 %v1706_v62, %v6033_v5 }
 0xa6d   :  { %5314 = vpow2.f32 %v4066_v9  ;;  %v4067_v2 = vmul.f32 -1.442695, %v1711_v56 }
 0xa6e   :  { %v4069_v16 = vmul.f32 -1.442695, %v1725_v25 }
 0xa6f   :  { %5316 = vpow2.f32 %v4067_v2 }
 0xa70   :  { %5318 = vpow2.f32 %v4068_v21 }
 0xa71   :  { %5320 = vpow2.f32 %v4069_v16 }
 0xa77   :  { %v5315_v12 = vpop.eup %5314 }
 0xa78   :  { %v1718_v3 = vadd.f32 1.0, %v5315_v12 }
 0xa79   :  { %v5317_v20 = vpop.eup %5316 }
 0xa7a   :  { %5322 = vrcp.f32 %v1718_v3  ;;  %v1719_v14 = vadd.f32 1.0, %v5317_v20  ;;  %v5319_v18 = vpop.eup %5318 }
 0xa7b   :  { %v5321_v24 = vpop.eup %5320  ;;  %v1732_v29 = vadd.f32 1.0, %v5319_v18 }
 0xa7c   :  { %5324 = vrcp.f32 %v1719_v14  ;;  %v1733_v9 = vadd.f32 1.0, %v5321_v24 }
 0xa7d   :  { %5326 = vrcp.f32 %v1732_v29 }
 0xa7e   :  { %5328 = vrcp.f32 %v1733_v9 }
 0xa84   :  { %v5323_v56 = vpop.eup %5322 }
 0xa85   :  { %v1738_v32 = vmul.f32 %v5323_v56, %v1704_v1 }
 0xa86   :  { %v5325_v33 = vpop.eup %5324 }
 0xa87   :  { %v1740_v2 = vadd.f32 %v1738_v32, %v6036_v17  ;;  %v1739_v25 = vmul.f32 %v5325_v33, %v1707_v28  ;;  %v5327_v16 = vpop.eup %5326 }
 0xa88   :  { %v5329_v12 = vpop.eup %5328  ;;  %v1744_v3 = vsub.f32 1.0, %v5327_v16  ;;  %v1748_v18 = vmul.f32 %v5327_v16, %v6603_v34 }
 0xa89   :  { %5330 = vtanh.f32 %v1740_v2  ;;  %v1741_v21 = vadd.f32 %v1739_v25, %v6039_v22  ;;  %v1745_v0 = vsub.f32 1.0, %v5329_v12  ;;  %v1749_v62 = vmul.f32 %v5329_v12, %v6605_v35 }
 0xa8b   :  { %5332 = vtanh.f32 %v1741_v21 }
 0xa93   :  { %v5331_v20 = vpop.eup %5330 }
 0xa94   :  { %v1746_v14 = vmul.f32 %v5331_v20, %v1744_v3 }
 0xa95   :  { %v5333_v24 = vpop.eup %5332 }
 0xa96   :  { %v1747_v29 = vmul.f32 %v5333_v24, %v1745_v0  ;;  %v6658_v1 = vadd.f32 %v1748_v18, %v1746_v14 }
 0xa98   :  { %7981 = vst [vmem:[#allocation17_spill] sm:$0xff] %v6658_v1  ;;  %v6660_v32 = vadd.f32 %v1749_v62, %v1747_v29 }
 0xa9a   :  { %7982 = vst [vmem:[#allocation18_spill] sm:$0xff] %v6660_v32  ;;  %v1754_v9 = vpack.c.bf16 %v6660_v32, %v6658_v1 }
 0xa9c   :  { %1788 = vmatmul.mubr.bf16.vlgmr.msra.gmra.mrb[44].mxu0 %v1754_v9  ;;  %4652 = vmatmul.mubr.bf16.vlgmr.msra.gmra.mrb[44].mxu1 %v1754_v9 }
 0xa9d   :  { %1885 = vmatpush1.bf16.msra.mxu0 %v6277_v36  ;;  %4656 = vmatpush3.bf16.msra.mxu1 %v6283_v37  ;;  %v6700_v36 = vld [vmem:[%s7924_s2 + $0x4] ss:$12 sps:$4 sm:$0xff]  }
 0xa9e   :  { %1886 = vmatprep.subr.bf16.mxu0 %v6289_v38  ;;  %4657 = vmatprep.subr.bf16.mxu1 %v7975_v53 }
 0xa9f   :  { %1916 = vmatprep.mubr.bf16.mxu0 %v7976_v54  ;;  %4671 = vmatprep.mubr.msk.bf16.mxu1 %vm5688_vm0, %v7975_v53 }
 0xaa1   :  { %1887 = vmatpush1.bf16.msra.mxu0 %v6299_v39  ;;  %4658 = vmatpush3.bf16.msra.mxu1 %v6305_v40 }
 0xaa2   :  { %1888 = vmatprep.subr.bf16.mxu0 %v6311_v41  ;;  %4659 = vmatprep.subr.bf16.mxu1 %v7975_v53 }
 0xaa5   :  { %1889 = vmatpush1.bf16.msra.mxu0 %v6318_v42  ;;  %4660 = vmatpush3.bf16.msra.mxu1 %v6324_v43 }
 0xaa6   :  { %1890 = vmatprep.subr.bf16.mxu0 %v6330_v44  ;;  %4661 = vmatprep.subr.bf16.mxu1 %v7975_v53 }
 0xaa9   :  { %1891 = vmatpush1.bf16.msra.mxu0 %v6337_v45  ;;  %4662 = vmatpush3.bf16.msra.mxu1 %v6343_v46 }
 0xaaa   :  { %1892 = vmatprep.subr.bf16.mxu0 %v6349_v47  ;;  %4663 = vmatprep.subr.bf16.mxu1 %v7975_v53 }
 0xaad   :  { %1893 = vmatpush1.bf16.msra.mxu0 %v6356_v48  ;;  %4664 = vmatpush3.bf16.msra.mxu1 %v6362_v49 }
 0xaae   :  { %1894 = vmatprep.subr.bf16.mxu0 %v6368_v50  ;;  %4665 = vmatprep.subr.bf16.mxu1 %v7975_v53 }
 0xab1   :  { %1895 = vmatpush1.bf16.msra.mxu0 %v6375_v51  ;;  %4666 = vmatpush3.bf16.msra.mxu1 %v6381_v52 }
 0xab2   :  { %1896 = vmatprep.subr.bf16.mxu0 %v6387_v55  ;;  %4667 = vmatprep.subr.bf16.mxu1 %v7975_v53 }
 0xab5   :  { %1897 = vmatpush1.bf16.msra.mxu0 %v6394_v58  ;;  %4668 = vmatpush3.bf16.msra.mxu1 %v6400_v61 }
 0xab6   :  { %1898 = vmatprep.subr.bf16.mxu0 %v6406_v63  ;;  %4669 = vmatprep.subr.bf16.mxu1 %v7975_v53 }
 0xab9   :  { %1899 = vmatpush1.bf16.msra.mxu0 %v6413_v4  ;;  %4670 = vmatpush3.bf16.msra.mxu1 %v6419_v11 }
 0xaba   :  { %2013 = vmatprep.subr.bf16.mxu0 %v6700_v36  ;;  %4675 = vmatprep.subr.bf16.mxu1 %v7975_v53 }
 0xb6f   :  { %v1789_v37 = vpop.f32.mrb[44].mxu0  ;;  %v1832_v38 = vpop.f32.mrb[44].mxu1 }
 0xb70   :  { %v1790_v39 = vadd.f32 %v1789_v37, %v6013_v6  ;;  %v1791_v40 = vpop.f32.mrb[45].mxu0  ;;  %v4653_v41 = vpop.f32.mrb[45].mxu1  ;;  %v1833_v21 = vadd.f32 %v1832_v38, %v6033_v5 }
 0xb71   :  { %v1792_v42 = vadd.f32 %v1791_v40, %v6015_v7  ;;  %v1793_v43 = vpop.f32.mrb[46].mxu0  ;;  %v1835_v44 = vpop.f32.mrb[46].mxu1 }
 0xb72   :  { %v1839_v45 = vadd.f32 %v1790_v39, %v6017_v10  ;;  %v1794_v46 = vadd.f32 %v1793_v43, %v6013_v6  ;;  %v1795_v47 = vpop.f32.mrb[47].mxu0  ;;  %v4654_v48 = vpop.f32.mrb[47].mxu1  ;;  %v1836_v20 = vadd.f32 %v1835_v44, %v6033_v5 }
 0xb73   :  { %v1796_v49 = vadd.f32 %v1795_v47, %v6015_v7  ;;  %v1853_v52 = vadd.f32 %v1792_v42, %v6025_v19  ;;  %v6727_v47 = vld [vmem:[%s7924_s2] ss:$12 sps:$4 sm:$0xff]   ;;  %v6733_v48 = vld [vmem:[%s7924_s2 + $0x8] ss:$12 sps:$4 sm:$0xff]  }
 0xb74   :  { %v4070_v50 = vmul.f32 -1.442695, %v1839_v45  ;;  %v1840_v51 = vadd.f32 %v1794_v46, %v6021_v15 }
 0xb75   :  { %v1854_v58 = vadd.f32 %v1796_v49, %v6029_v23  ;;  %v4072_v61 = vmul.f32 -1.442695, %v1853_v52  ;;  %v6739_v49 = vld [vmem:[%s7924_s2 + $0x1c] ss:$12 sps:$4 sm:$0xff]   ;;  %v6761_v52 = vld [vmem:[%s7924_s2 + $0x34] ss:$12 sps:$4 sm:$0xff]  }
 0xb76   :  { %5334 = vpow2.f32 %v4070_v50  ;;  %v4071_v55 = vmul.f32 -1.442695, %v1840_v51  ;;  %v6749_v50 = vld [vmem:[%s7924_s2 + $0x18] ss:$12 sps:$4 sm:$0xff]   ;;  %v6755_v51 = vld [vmem:[%s7924_s2 + $0x20] ss:$12 sps:$4 sm:$0xff]  }
 0xb77   :  { %v4073_v63 = vmul.f32 -1.442695, %v1854_v58  ;;  %v6774_v58 = vld [vmem:[%s7924_s2 + $0x38] ss:$12 sps:$4 sm:$0xff]  }
 0xb78   :  { %5336 = vpow2.f32 %v4071_v55  ;;  %v6768_v55 = vld [vmem:[%s7924_s2 + $0x30] ss:$12 sps:$4 sm:$0xff]  }
 0xb79   :  { %5338 = vpow2.f32 %v4072_v61  ;;  %v6780_v61 = vld [vmem:[%s7924_s2 + $0x4c] ss:$12 sps:$4 sm:$0xff]  }
 0xb7a   :  { %5340 = vpow2.f32 %v4073_v63  ;;  %v6787_v63 = vld [vmem:[%s7924_s2 + $0x48] ss:$12 sps:$4 sm:$0xff]  }
 0xb80   :  { %v5335_v4 = vpop.eup %5334 }
 0xb81   :  { %v1847_v11 = vadd.f32 1.0, %v5335_v4  ;;  %v6793_v4 = vld [vmem:[%s7924_s2 + $0x50] ss:$12 sps:$4 sm:$0xff]  }
 0xb82   :  { %v5337_v56 = vpop.eup %5336 }
 0xb83   :  { %5342 = vrcp.f32 %v1847_v11  ;;  %v1848_v28 = vadd.f32 1.0, %v5337_v56  ;;  %v5339_v33 = vpop.eup %5338  ;;  %v6799_v11 = vld [vmem:[%s7924_s2 + $0x64] ss:$12 sps:$4 sm:$0xff]   ;;  %v6806_v56 = vld [vmem:[%s7924_s2 + $0x60] ss:$12 sps:$4 sm:$0xff]  }
 0xb84   :  { %v5341_v2 = vpop.eup %5340  ;;  %v1861_v25 = vadd.f32 1.0, %v5339_v33  ;;  %v6818_v33 = vld [vmem:[%s7924_s2 + $0x7c] ss:$12 sps:$4 sm:$0xff]  }
 0xb85   :  { %5344 = vrcp.f32 %v1848_v28  ;;  %v1862_v16 = vadd.f32 1.0, %v5341_v2  ;;  %v6812_v28 = vld [vmem:[%s7924_s2 + $0x68] ss:$12 sps:$4 sm:$0xff]   ;;  %v6825_v2 = vld [vmem:[%s7924_s2 + $0x78] ss:$12 sps:$4 sm:$0xff]  }
 0xb86   :  { %5346 = vrcp.f32 %v1861_v25  ;;  %v6831_v25 = vld [vmem:[%s7924_s2 + $0x80] ss:$12 sps:$4 sm:$0xff]  }
 0xb87   :  { %5348 = vrcp.f32 %v1862_v16  ;;  %v6844_v16 = vld [vmem:[%s7924_s2 + $0x90] ss:$12 sps:$4 sm:$0xff]  }
 0xb8d   :  { %v5343_v12 = vpop.eup %5342 }
 0xb8e   :  { %v1867_v3 = vmul.f32 %v5343_v12, %v1833_v21  ;;  %v6837_v21 = vld [vmem:[%s7924_s2 + $0x94] ss:$12 sps:$4 sm:$0xff]   ;;  %v6850_v12 = vld [vmem:[%s7924_s2 + $0x98] ss:$12 sps:$4 sm:$0xff]  }
 0xb8f   :  { %v5345_v0 = vpop.eup %5344 }
 0xb90   :  { %v1869_v14 = vadd.f32 %v1867_v3, %v6036_v17  ;;  %v1868_v18 = vmul.f32 %v5345_v0, %v1836_v20  ;;  %v5347_v29 = vpop.eup %5346  ;;  %v6856_v3 = vld [vmem:[%s7924_s2 + $0xac] ss:$12 sps:$4 sm:$0xff]   ;;  %v6863_v20 = vld [vmem:[%s7924_s2 + $0xa8] ss:$12 sps:$4 sm:$0xff]   ;;  %v6869_v0 = vld [vmem:[%s7924_s2 + $0xb0] ss:$12 sps:$4 sm:$0xff]  }
 0xb91   :  { %v5349_v62 = vpop.eup %5348  ;;  %v1873_v9 = vsub.f32 1.0, %v5347_v29  ;;  %v1877_v40 = vmul.f32 %v5347_v29, %v6658_v1 }
 0xb92   :  { %5350 = vtanh.f32 %v1869_v14  ;;  %v1870_v24 = vadd.f32 %v1868_v18, %v6039_v22  ;;  %v1874_v38 = vsub.f32 1.0, %v5349_v62  ;;  %v1878_v43 = vmul.f32 %v5349_v62, %v6660_v32 }
 0xb94   :  { %5352 = vtanh.f32 %v1870_v24 }
 0xb9c   :  { %v5351_v37 = vpop.eup %5350 }
 0xb9d   :  { %v1875_v39 = vmul.f32 %v5351_v37, %v1873_v9 }
 0xb9e   :  { %v5353_v41 = vpop.eup %5352 }
 0xb9f   :  { %v1876_v42 = vmul.f32 %v5353_v41, %v1874_v38  ;;  %v6718_v44 = vadd.f32 %v1877_v40, %v1875_v39 }
 0xba1   :  { %7983 = vst [vmem:[#allocation19_spill] sm:$0xff] %v6718_v44  ;;  %v6720_v45 = vadd.f32 %v1878_v43, %v1876_v42 }
 0xba3   :  { %7984 = vst [vmem:[#allocation20_spill] sm:$0xff] %v6720_v45  ;;  %v1883_v46 = vpack.c.bf16 %v6720_v45, %v6718_v44 }
 0xba5   :  { %1917 = vmatmul.mubr.bf16.vlgmr.msra.gmra.mrb[48].mxu0 %v1883_v46  ;;  %4672 = vmatmul.mubr.bf16.vlgmr.msra.gmra.mrb[48].mxu1 %v1883_v46 }
 0xba6   :  { %2014 = vmatpush1.bf16.msra.mxu0 %v6727_v47  ;;  %4676 = vmatpush3.bf16.msra.mxu1 %v6733_v48 }
 0xba7   :  { %2015 = vmatprep.subr.bf16.mxu0 %v6739_v49  ;;  %4677 = vmatprep.subr.bf16.mxu1 %v7975_v53 }
 0xba8   :  { %2045 = vmatprep.mubr.bf16.mxu0 %v7976_v54  ;;  %4691 = vmatprep.mubr.msk.bf16.mxu1 %vm5688_vm0, %v7975_v53 }
 0xbaa   :  { %2016 = vmatpush1.bf16.msra.mxu0 %v6749_v50  ;;  %4678 = vmatpush3.bf16.msra.mxu1 %v6755_v51 }
 0xbab   :  { %2017 = vmatprep.subr.bf16.mxu0 %v6761_v52  ;;  %4679 = vmatprep.subr.bf16.mxu1 %v7975_v53 }
 0xbae   :  { %2018 = vmatpush1.bf16.msra.mxu0 %v6768_v55  ;;  %4680 = vmatpush3.bf16.msra.mxu1 %v6774_v58 }
 0xbaf   :  { %2019 = vmatprep.subr.bf16.mxu0 %v6780_v61  ;;  %4681 = vmatprep.subr.bf16.mxu1 %v7975_v53 }
 0xbb2   :  { %2020 = vmatpush1.bf16.msra.mxu0 %v6787_v63  ;;  %4682 = vmatpush3.bf16.msra.mxu1 %v6793_v4 }
 0xbb3   :  { %2021 = vmatprep.subr.bf16.mxu0 %v6799_v11  ;;  %4683 = vmatprep.subr.bf16.mxu1 %v7975_v53 }
 0xbb6   :  { %2022 = vmatpush1.bf16.msra.mxu0 %v6806_v56  ;;  %4684 = vmatpush3.bf16.msra.mxu1 %v6812_v28 }
 0xbb7   :  { %2023 = vmatprep.subr.bf16.mxu0 %v6818_v33  ;;  %4685 = vmatprep.subr.bf16.mxu1 %v7975_v53 }
 0xbba   :  { %2024 = vmatpush1.bf16.msra.mxu0 %v6825_v2  ;;  %4686 = vmatpush3.bf16.msra.mxu1 %v6831_v25 }
 0xbbb   :  { %2025 = vmatprep.subr.bf16.mxu0 %v6837_v21  ;;  %4687 = vmatprep.subr.bf16.mxu1 %v7975_v53 }
 0xbbe   :  { %2026 = vmatpush1.bf16.msra.mxu0 %v6844_v16  ;;  %4688 = vmatpush3.bf16.msra.mxu1 %v6850_v12 }
 0xbbf   :  { %2027 = vmatprep.subr.bf16.mxu0 %v6856_v3  ;;  %4689 = vmatprep.subr.bf16.mxu1 %v7975_v53 }
 0xbc2   :  { %2028 = vmatpush1.bf16.msra.mxu0 %v6863_v20  ;;  %4690 = vmatpush3.bf16.msra.mxu1 %v6869_v0 }
 0xbc3   :  { %2142 = vmatprep.subr.bf16.mxu0 %v6700_v36  ;;  %4695 = vmatprep.subr.bf16.mxu1 %v7975_v53 }
 0xc78   :  { %v1918_v14 = vpop.f32.mrb[48].mxu0  ;;  %v1961_v18 = vpop.f32.mrb[48].mxu1 }
 0xc79   :  { %v1919_v24 = vadd.f32 %v1918_v14, %v6013_v6  ;;  %v1920_v29 = vpop.f32.mrb[49].mxu0  ;;  %v4673_v62 = vpop.f32.mrb[49].mxu1 }
 0xc7a   :  { %v1921_v9 = vadd.f32 %v1920_v29, %v6015_v7  ;;  %v1922_v37 = vpop.f32.mrb[50].mxu0  ;;  %v1964_v38 = vpop.f32.mrb[50].mxu1 }
 0xc7b   :  { %v1968_v39 = vadd.f32 %v1919_v24, %v6017_v10  ;;  %v1923_v40 = vadd.f32 %v1922_v37, %v6013_v6  ;;  %v1924_v41 = vpop.f32.mrb[51].mxu0  ;;  %v4674_v42 = vpop.f32.mrb[51].mxu1 }
 0xc7c   :  { %v1925_v43 = vadd.f32 %v1924_v41, %v6015_v7  ;;  %v1982_v1 = vadd.f32 %v1921_v9, %v6025_v19  ;;  %v1962_v9 = vadd.f32 %v1961_v18, %v6033_v5 }
 0xc7d   :  { %v4074_v46 = vmul.f32 -1.442695, %v1968_v39  ;;  %v1969_v32 = vadd.f32 %v1923_v40, %v6021_v15 }
 0xc7e   :  { %v1983_v62 = vadd.f32 %v1925_v43, %v6029_v23  ;;  %v4076_v29 = vmul.f32 -1.442695, %v1982_v1  ;;  %v1965_v1 = vadd.f32 %v1964_v38, %v6033_v5 }
 0xc7f   :  { %5354 = vpow2.f32 %v4074_v46  ;;  %v4075_v14 = vmul.f32 -1.442695, %v1969_v32 }
 0xc80   :  { %v4077_v35 = vmul.f32 -1.442695, %v1983_v62 }
 0xc81   :  { %5356 = vpow2.f32 %v4075_v14 }
 0xc82   :  { %5358 = vpow2.f32 %v4076_v29 }
 0xc83   :  { %5360 = vpow2.f32 %v4077_v35 }
 0xc89   :  { %v5355_v24 = vpop.eup %5354 }
 0xc8a   :  { %v1976_v37 = vadd.f32 1.0, %v5355_v24 }
 0xc8b   :  { %v5357_v34 = vpop.eup %5356 }
 0xc8c   :  { %5362 = vrcp.f32 %v1976_v37  ;;  %v1977_v42 = vadd.f32 1.0, %v5357_v34  ;;  %v5359_v39 = vpop.eup %5358 }
 0xc8d   :  { %v5361_v41 = vpop.eup %5360  ;;  %v1990_v40 = vadd.f32 1.0, %v5359_v39 }
 0xc8e   :  { %5364 = vrcp.f32 %v1977_v42  ;;  %v1991_v46 = vadd.f32 1.0, %v5361_v41 }
 0xc8f   :  { %5366 = vrcp.f32 %v1990_v40 }
 0xc90   :  { %5368 = vrcp.f32 %v1991_v46 }
 0xc96   :  { %v5363_v32 = vpop.eup %5362 }
 0xc97   :  { %v1996_v31 = vmul.f32 %v5363_v32, %v1962_v9 }
 0xc98   :  { %v5365_v43 = vpop.eup %5364 }
 0xc99   :  { %v1998_v35 = vadd.f32 %v1996_v31, %v6036_v17  ;;  %v1997_v14 = vmul.f32 %v5365_v43, %v1965_v1  ;;  %v5367_v62 = vpop.eup %5366 }
 0xc9a   :  { %v5369_v29 = vpop.eup %5368  ;;  %v2002_v24 = vsub.f32 1.0, %v5367_v62  ;;  %v2006_v39 = vmul.f32 %v5367_v62, %v6718_v44 }
 0xc9b   :  { %5370 = vtanh.f32 %v1998_v35  ;;  %v1999_v34 = vadd.f32 %v1997_v14, %v6039_v22  ;;  %v2003_v18 = vsub.f32 1.0, %v5369_v29  ;;  %v2007_v38 = vmul.f32 %v5369_v29, %v6720_v45 }
 0xc9d   :  { %5372 = vtanh.f32 %v1999_v34 }
 0xca5   :  { %v5371_v37 = vpop.eup %5370 }
 0xca6   :  { %v2004_v42 = vmul.f32 %v5371_v37, %v2002_v24 }
 0xca7   :  { %v5373_v41 = vpop.eup %5372 }
 0xca8   :  { %v2005_v40 = vmul.f32 %v5373_v41, %v2003_v18  ;;  %v6888_v9 = vadd.f32 %v2006_v39, %v2004_v42 }
 0xcaa   :  { %7985 = vst [vmem:[#allocation21_spill] sm:$0xff] %v6888_v9  ;;  %v6890_v31 = vadd.f32 %v2007_v38, %v2005_v40 }
 0xcac   :  { %7986 = vst [vmem:[#allocation22_spill] sm:$0xff] %v6890_v31  ;;  %v2012_v46 = vpack.c.bf16 %v6890_v31, %v6888_v9 }
 0xcae   :  { %2046 = vmatmul.mubr.bf16.vlgmr.msra.gmra.mrb[52].mxu0 %v2012_v46  ;;  %4692 = vmatmul.mubr.bf16.vlgmr.msra.gmra.mrb[52].mxu1 %v2012_v46 }
 0xcaf   :  { %2143 = vmatpush1.bf16.msra.mxu0 %v6727_v47  ;;  %4696 = vmatpush3.bf16.msra.mxu1 %v6733_v48 }
 0xcb0   :  { %2144 = vmatprep.subr.bf16.mxu0 %v6739_v49  ;;  %4697 = vmatprep.subr.bf16.mxu1 %v7975_v53 }
 0xcb1   :  { %2174 = vmatprep.mubr.bf16.mxu0 %v7976_v54  ;;  %4711 = vmatprep.mubr.msk.bf16.mxu1 %vm5688_vm0, %v7975_v53 }
 0xcb3   :  { %2145 = vmatpush1.bf16.msra.mxu0 %v6749_v50  ;;  %4698 = vmatpush3.bf16.msra.mxu1 %v6755_v51 }
 0xcb4   :  { %2146 = vmatprep.subr.bf16.mxu0 %v6761_v52  ;;  %4699 = vmatprep.subr.bf16.mxu1 %v7975_v53 }
 0xcb7   :  { %2147 = vmatpush1.bf16.msra.mxu0 %v6768_v55  ;;  %4700 = vmatpush3.bf16.msra.mxu1 %v6774_v58 }
 0xcb8   :  { %2148 = vmatprep.subr.bf16.mxu0 %v6780_v61  ;;  %4701 = vmatprep.subr.bf16.mxu1 %v7975_v53 }
 0xcbb   :  { %2149 = vmatpush1.bf16.msra.mxu0 %v6787_v63  ;;  %4702 = vmatpush3.bf16.msra.mxu1 %v6793_v4 }
 0xcbc   :  { %2150 = vmatprep.subr.bf16.mxu0 %v6799_v11  ;;  %4703 = vmatprep.subr.bf16.mxu1 %v7975_v53 }
 0xcbf   :  { %2151 = vmatpush1.bf16.msra.mxu0 %v6806_v56  ;;  %4704 = vmatpush3.bf16.msra.mxu1 %v6812_v28 }
 0xcc0   :  { %2152 = vmatprep.subr.bf16.mxu0 %v6818_v33  ;;  %4705 = vmatprep.subr.bf16.mxu1 %v7975_v53 }
 0xcc3   :  { %2153 = vmatpush1.bf16.msra.mxu0 %v6825_v2  ;;  %4706 = vmatpush3.bf16.msra.mxu1 %v6831_v25 }
 0xcc4   :  { %2154 = vmatprep.subr.bf16.mxu0 %v6837_v21  ;;  %4707 = vmatprep.subr.bf16.mxu1 %v7975_v53 }
 0xcc7   :  { %2155 = vmatpush1.bf16.msra.mxu0 %v6844_v16  ;;  %4708 = vmatpush3.bf16.msra.mxu1 %v6850_v12 }
 0xcc8   :  { %2156 = vmatprep.subr.bf16.mxu0 %v6856_v3  ;;  %4709 = vmatprep.subr.bf16.mxu1 %v7975_v53 }
 0xccb   :  { %2157 = vmatpush1.bf16.msra.mxu0 %v6863_v20  ;;  %4710 = vmatpush3.bf16.msra.mxu1 %v6869_v0 }
 0xccc   :  { %2271 = vmatprep.subr.bf16.mxu0 %v6700_v36  ;;  %4715 = vmatprep.subr.bf16.mxu1 %v7975_v53 }
 0xd81   :  { %v2047_v32 = vpop.f32.mrb[52].mxu0  ;;  %v2090_v1 = vpop.f32.mrb[52].mxu1 }
 0xd82   :  { %v2048_v43 = vadd.f32 %v2047_v32, %v6013_v6  ;;  %v2049_v35 = vpop.f32.mrb[53].mxu0  ;;  %v4693_v14 = vpop.f32.mrb[53].mxu1 }
 0xd83   :  { %v2050_v34 = vadd.f32 %v2049_v35, %v6015_v7  ;;  %v2051_v62 = vpop.f32.mrb[54].mxu0  ;;  %v2093_v29 = vpop.f32.mrb[54].mxu1 }
 0xd84   :  { %v2097_v24 = vadd.f32 %v2048_v43, %v6017_v10  ;;  %v2052_v37 = vadd.f32 %v2051_v62, %v6013_v6  ;;  %v2053_v18 = vpop.f32.mrb[55].mxu0  ;;  %v4694_v42 = vpop.f32.mrb[55].mxu1 }
 0xd85   :  { %v2054_v39 = vadd.f32 %v2053_v18, %v6015_v7  ;;  %v2111_v38 = vadd.f32 %v2050_v34, %v6025_v19  ;;  %v2091_v34 = vadd.f32 %v2090_v1, %v6033_v5 }
 0xd86   :  { %v4078_v41 = vmul.f32 -1.442695, %v2097_v24  ;;  %v2098_v40 = vadd.f32 %v2052_v37, %v6021_v15 }
 0xd87   :  { %v2112_v32 = vadd.f32 %v2054_v39, %v6029_v23  ;;  %v4080_v35 = vmul.f32 -1.442695, %v2111_v38  ;;  %v2094_v39 = vadd.f32 %v2093_v29, %v6033_v5 }
 0xd88   :  { %5374 = vpow2.f32 %v4078_v41  ;;  %v4079_v46 = vmul.f32 -1.442695, %v2098_v40 }
 0xd89   :  { %v4081_v14 = vmul.f32 -1.442695, %v2112_v32 }
 0xd8a   :  { %5376 = vpow2.f32 %v4079_v46 }
 0xd8b   :  { %5378 = vpow2.f32 %v4080_v35 }
 0xd8c   :  { %5380 = vpow2.f32 %v4081_v14 }
 0xd92   :  { %v5375_v43 = vpop.eup %5374 }
 0xd93   :  { %v2105_v62 = vadd.f32 1.0, %v5375_v43 }
 0xd94   :  { %v5377_v45 = vpop.eup %5376 }
 0xd95   :  { %5382 = vrcp.f32 %v2105_v62  ;;  %v2106_v42 = vadd.f32 1.0, %v5377_v45  ;;  %v5379_v24 = vpop.eup %5378 }
 0xd96   :  { %v5381_v18 = vpop.eup %5380  ;;  %v2119_v37 = vadd.f32 1.0, %v5379_v24 }
 0xd97   :  { %5384 = vrcp.f32 %v2106_v42  ;;  %v2120_v41 = vadd.f32 1.0, %v5381_v18 }
 0xd98   :  { %5386 = vrcp.f32 %v2119_v37 }
 0xd99   :  { %5388 = vrcp.f32 %v2120_v41 }
 0xd9f   :  { %v5383_v40 = vpop.eup %5382 }
 0xda0   :  { %v2125_v44 = vmul.f32 %v5383_v40, %v2091_v34 }
 0xda1   :  { %v5385_v38 = vpop.eup %5384 }
 0xda2   :  { %v2127_v46 = vadd.f32 %v2125_v44, %v6036_v17  ;;  %v2126_v32 = vmul.f32 %v5385_v38, %v2094_v39  ;;  %v5387_v35 = vpop.eup %5386 }
 0xda3   :  { %v5389_v14 = vpop.eup %5388  ;;  %v2131_v43 = vsub.f32 1.0, %v5387_v35  ;;  %v2135_v24 = vmul.f32 %v5387_v35, %v6888_v9 }
 0xda4   :  { %5390 = vtanh.f32 %v2127_v46  ;;  %v2128_v45 = vadd.f32 %v2126_v32, %v6039_v22  ;;  %v2132_v1 = vsub.f32 1.0, %v5389_v14  ;;  %v2136_v29 = vmul.f32 %v5389_v14, %v6890_v31 }
 0xda6   :  { %5392 = vtanh.f32 %v2128_v45 }
 0xdae   :  { %v5391_v62 = vpop.eup %5390 }
 0xdaf   :  { %v2133_v42 = vmul.f32 %v5391_v62, %v2131_v43 }
 0xdb0   :  { %v5393_v18 = vpop.eup %5392 }
 0xdb1   :  { %v2134_v37 = vmul.f32 %v5393_v18, %v2132_v1  ;;  %v6943_v34 = vadd.f32 %v2135_v24, %v2133_v42 }
 0xdb3   :  { %v6945_v44 = vadd.f32 %v2136_v29, %v2134_v37 }
 0xdb5   :  { %v2141_v41 = vpack.c.bf16 %v6945_v44, %v6943_v34 }
 0xdb7   :  { %2175 = vmatmul.mubr.bf16.vlgmr.msra.gmra.mrb[56].mxu0 %v2141_v41  ;;  %4712 = vmatmul.mubr.bf16.vlgmr.msra.gmra.mrb[56].mxu1 %v2141_v41 }
 0xdb8   :  { %2272 = vmatpush1.bf16.msra.mxu0 %v6727_v47  ;;  %4716 = vmatpush3.bf16.msra.mxu1 %v6733_v48 }
 0xdb9   :  { %2273 = vmatprep.subr.bf16.mxu0 %v6739_v49  ;;  %4717 = vmatprep.subr.bf16.mxu1 %v7975_v53 }
 0xdba   :  { %2303 = vmatprep.mubr.bf16.mxu0 %v7976_v54  ;;  %4731 = vmatprep.mubr.msk.bf16.mxu1 %vm5688_vm0, %v7975_v53 }
 0xdbc   :  { %2274 = vmatpush1.bf16.msra.mxu0 %v6749_v50  ;;  %4718 = vmatpush3.bf16.msra.mxu1 %v6755_v51 }
 0xdbd   :  { %2275 = vmatprep.subr.bf16.mxu0 %v6761_v52  ;;  %4719 = vmatprep.subr.bf16.mxu1 %v7975_v53 }
 0xdc0   :  { %2276 = vmatpush1.bf16.msra.mxu0 %v6768_v55  ;;  %4720 = vmatpush3.bf16.msra.mxu1 %v6774_v58 }
 0xdc1   :  { %2277 = vmatprep.subr.bf16.mxu0 %v6780_v61  ;;  %4721 = vmatprep.subr.bf16.mxu1 %v7975_v53 }
 0xdc4   :  { %2278 = vmatpush1.bf16.msra.mxu0 %v6787_v63  ;;  %4722 = vmatpush3.bf16.msra.mxu1 %v6793_v4 }
 0xdc5   :  { %2279 = vmatprep.subr.bf16.mxu0 %v6799_v11  ;;  %4723 = vmatprep.subr.bf16.mxu1 %v7975_v53 }
 0xdc8   :  { %2280 = vmatpush1.bf16.msra.mxu0 %v6806_v56  ;;  %4724 = vmatpush3.bf16.msra.mxu1 %v6812_v28 }
 0xdc9   :  { %2281 = vmatprep.subr.bf16.mxu0 %v6818_v33  ;;  %4725 = vmatprep.subr.bf16.mxu1 %v7975_v53 }
 0xdcc   :  { %2282 = vmatpush1.bf16.msra.mxu0 %v6825_v2  ;;  %4726 = vmatpush3.bf16.msra.mxu1 %v6831_v25 }
 0xdcd   :  { %2283 = vmatprep.subr.bf16.mxu0 %v6837_v21  ;;  %4727 = vmatprep.subr.bf16.mxu1 %v7975_v53 }
 0xdd0   :  { %2284 = vmatpush1.bf16.msra.mxu0 %v6844_v16  ;;  %4728 = vmatpush3.bf16.msra.mxu1 %v6850_v12 }
 0xdd1   :  { %2285 = vmatprep.subr.bf16.mxu0 %v6856_v3  ;;  %4729 = vmatprep.subr.bf16.mxu1 %v7975_v53 }
 0xdd4   :  { %2286 = vmatpush1.bf16.msra.mxu0 %v6863_v20  ;;  %4730 = vmatpush3.bf16.msra.mxu1 %v6869_v0 }
 0xdd5   :  { %2400 = vmatprep.subr.bf16.mxu0 %v6700_v36  ;;  %4735 = vmatprep.subr.bf16.mxu1 %v7975_v53 }
 0xe8a   :  { %v2176_v40 = vpop.f32.mrb[56].mxu0  ;;  %v2219_v39 = vpop.f32.mrb[56].mxu1 }
 0xe8b   :  { %v2177_v38 = vadd.f32 %v2176_v40, %v6013_v6  ;;  %v2178_v46 = vpop.f32.mrb[57].mxu0  ;;  %v4713_v32 = vpop.f32.mrb[57].mxu1 }
 0xe8c   :  { %v2179_v45 = vadd.f32 %v2178_v46, %v6015_v7  ;;  %v2180_v35 = vpop.f32.mrb[58].mxu0  ;;  %v2222_v14 = vpop.f32.mrb[58].mxu1 }
 0xe8d   :  { %v2226_v43 = vadd.f32 %v2177_v38, %v6017_v10  ;;  %v2181_v62 = vadd.f32 %v2180_v35, %v6013_v6  ;;  %v2182_v1 = vpop.f32.mrb[59].mxu0  ;;  %v4714_v42 = vpop.f32.mrb[59].mxu1 }
 0xe8e   :  { %v2183_v24 = vadd.f32 %v2182_v1, %v6015_v7  ;;  %v2240_v29 = vadd.f32 %v2179_v45, %v6025_v19  ;;  %v2220_v45 = vadd.f32 %v2219_v39, %v6033_v5 }
 0xe8f   :  { %v4082_v18 = vmul.f32 -1.442695, %v2226_v43  ;;  %v2227_v37 = vadd.f32 %v2181_v62, %v6021_v15 }
 0xe90   :  { %v2241_v40 = vadd.f32 %v2183_v24, %v6029_v23  ;;  %v4084_v46 = vmul.f32 -1.442695, %v2240_v29  ;;  %v2223_v24 = vadd.f32 %v2222_v14, %v6033_v5 }
 0xe91   :  { %5394 = vpow2.f32 %v4082_v18  ;;  %v4083_v41 = vmul.f32 -1.442695, %v2227_v37 }
 0xe92   :  { %v4085_v32 = vmul.f32 -1.442695, %v2241_v40 }
 0xe93   :  { %5396 = vpow2.f32 %v4083_v41 }
 0xe94   :  { %5398 = vpow2.f32 %v4084_v46 }
 0xe95   :  { %5400 = vpow2.f32 %v4085_v32 }
 0xe9b   :  { %v5395_v38 = vpop.eup %5394 }
 0xe9c   :  { %v2234_v35 = vadd.f32 1.0, %v5395_v38 }
 0xe9d   :  { %v5397_v31 = vpop.eup %5396 }
 0xe9e   :  { %5402 = vrcp.f32 %v2234_v35  ;;  %v2235_v42 = vadd.f32 1.0, %v5397_v31  ;;  %v5399_v43 = vpop.eup %5398 }
 0xe9f   :  { %v5401_v1 = vpop.eup %5400  ;;  %v2248_v62 = vadd.f32 1.0, %v5399_v43 }
 0xea0   :  { %5404 = vrcp.f32 %v2235_v42  ;;  %v2249_v18 = vadd.f32 1.0, %v5401_v1 }
 0xea1   :  { %5406 = vrcp.f32 %v2248_v62 }
 0xea2   :  { %5408 = vrcp.f32 %v2249_v18 }
 0xea8   :  { %v5403_v37 = vpop.eup %5402 }
 0xea9   :  { %v2254_v9 = vmul.f32 %v5403_v37, %v2220_v45 }
 0xeaa   :  { %v5405_v29 = vpop.eup %5404 }
 0xeab   :  { %v2256_v41 = vadd.f32 %v2254_v9, %v6036_v17  ;;  %v2255_v40 = vmul.f32 %v5405_v29, %v2223_v24  ;;  %v5407_v46 = vpop.eup %5406 }
 0xeac   :  { %v5409_v32 = vpop.eup %5408  ;;  %v2260_v38 = vsub.f32 1.0, %v5407_v46  ;;  %v2264_v43 = vmul.f32 %v5407_v46, %v6943_v34 }
 0xead   :  { %5410 = vtanh.f32 %v2256_v41  ;;  %v2257_v31 = vadd.f32 %v2255_v40, %v6039_v22  ;;  %v2261_v39 = vsub.f32 1.0, %v5409_v32  ;;  %v2265_v14 = vmul.f32 %v5409_v32, %v6945_v44 }
 0xeaf   :  { %5412 = vtanh.f32 %v2257_v31 }
 0xeb7   :  { %v5411_v35 = vpop.eup %5410 }
 0xeb8   :  { %v2262_v42 = vmul.f32 %v5411_v35, %v2260_v38 }
 0xeb9   :  { %v5413_v1 = vpop.eup %5412 }
 0xeba   :  { %v2263_v62 = vmul.f32 %v5413_v1, %v2261_v39  ;;  %v6998_v45 = vadd.f32 %v2264_v43, %v2262_v42 }
 0xebc   :  { %v7000_v9 = vadd.f32 %v2265_v14, %v2263_v62 }
 0xebe   :  { %v2270_v18 = vpack.c.bf16 %v7000_v9, %v6998_v45 }
 0xec0   :  { %2304 = vmatmul.mubr.bf16.vlgmr.msra.gmra.mrb[60].mxu0 %v2270_v18  ;;  %4732 = vmatmul.mubr.bf16.vlgmr.msra.gmra.mrb[60].mxu1 %v2270_v18 }
 0xec1   :  { %2401 = vmatpush1.bf16.msra.mxu0 %v6727_v47  ;;  %4736 = vmatpush3.bf16.msra.mxu1 %v6733_v48 }
 0xec2   :  { %2402 = vmatprep.subr.bf16.mxu0 %v6739_v49  ;;  %4737 = vmatprep.subr.bf16.mxu1 %v7975_v53 }
 0xec3   :  { %2432 = vmatprep.mubr.bf16.mxu0 %v7976_v54  ;;  %4751 = vmatprep.mubr.msk.bf16.mxu1 %vm5688_vm0, %v7975_v53 }
 0xec5   :  { %2403 = vmatpush1.bf16.msra.mxu0 %v6749_v50  ;;  %4738 = vmatpush3.bf16.msra.mxu1 %v6755_v51 }
 0xec6   :  { %2404 = vmatprep.subr.bf16.mxu0 %v6761_v52  ;;  %4739 = vmatprep.subr.bf16.mxu1 %v7975_v53 }
 0xec9   :  { %2405 = vmatpush1.bf16.msra.mxu0 %v6768_v55  ;;  %4740 = vmatpush3.bf16.msra.mxu1 %v6774_v58 }
 0xeca   :  { %2406 = vmatprep.subr.bf16.mxu0 %v6780_v61  ;;  %4741 = vmatprep.subr.bf16.mxu1 %v7975_v53 }
 0xecd   :  { %2407 = vmatpush1.bf16.msra.mxu0 %v6787_v63  ;;  %4742 = vmatpush3.bf16.msra.mxu1 %v6793_v4 }
 0xece   :  { %2408 = vmatprep.subr.bf16.mxu0 %v6799_v11  ;;  %4743 = vmatprep.subr.bf16.mxu1 %v7975_v53 }
 0xed1   :  { %2409 = vmatpush1.bf16.msra.mxu0 %v6806_v56  ;;  %4744 = vmatpush3.bf16.msra.mxu1 %v6812_v28 }
 0xed2   :  { %2410 = vmatprep.subr.bf16.mxu0 %v6818_v33  ;;  %4745 = vmatprep.subr.bf16.mxu1 %v7975_v53 }
 0xed5   :  { %2411 = vmatpush1.bf16.msra.mxu0 %v6825_v2  ;;  %4746 = vmatpush3.bf16.msra.mxu1 %v6831_v25 }
 0xed6   :  { %2412 = vmatprep.subr.bf16.mxu0 %v6837_v21  ;;  %4747 = vmatprep.subr.bf16.mxu1 %v7975_v53 }
 0xed9   :  { %2413 = vmatpush1.bf16.msra.mxu0 %v6844_v16  ;;  %4748 = vmatpush3.bf16.msra.mxu1 %v6850_v12 }
 0xeda   :  { %2414 = vmatprep.subr.bf16.mxu0 %v6856_v3  ;;  %4749 = vmatprep.subr.bf16.mxu1 %v7975_v53 }
 0xedd   :  { %2415 = vmatpush1.bf16.msra.mxu0 %v6863_v20  ;;  %4750 = vmatpush3.bf16.msra.mxu1 %v6869_v0 }
 0xede   :  { %2529 = vmatprep.subr.bf16.mxu0 %v6700_v36  ;;  %4755 = vmatprep.subr.bf16.mxu1 %v7975_v53 }
 0xf93   :  { %v2305_v37 = vpop.f32.mrb[60].mxu0  ;;  %v2348_v24 = vpop.f32.mrb[60].mxu1 }
 0xf94   :  { %v2306_v29 = vadd.f32 %v2305_v37, %v6013_v6  ;;  %v2307_v41 = vpop.f32.mrb[61].mxu0  ;;  %v4733_v40 = vpop.f32.mrb[61].mxu1 }
 0xf95   :  { %v2308_v31 = vadd.f32 %v2307_v41, %v6015_v7  ;;  %v2309_v46 = vpop.f32.mrb[62].mxu0  ;;  %v2351_v32 = vpop.f32.mrb[62].mxu1 }
 0xf96   :  { %v2355_v38 = vadd.f32 %v2306_v29, %v6017_v10  ;;  %v2310_v35 = vadd.f32 %v2309_v46, %v6013_v6  ;;  %v2311_v39 = vpop.f32.mrb[63].mxu0  ;;  %v4734_v42 = vpop.f32.mrb[63].mxu1 }
 0xf97   :  { %v2312_v43 = vadd.f32 %v2311_v39, %v6015_v7  ;;  %v2369_v14 = vadd.f32 %v2308_v31, %v6025_v19  ;;  %v2349_v31 = vadd.f32 %v2348_v24, %v6033_v5 }
 0xf98   :  { %v4086_v1 = vmul.f32 -1.442695, %v2355_v38  ;;  %v2356_v62 = vadd.f32 %v2310_v35, %v6021_v15 }
 0xf99   :  { %v2370_v37 = vadd.f32 %v2312_v43, %v6029_v23  ;;  %v4088_v41 = vmul.f32 -1.442695, %v2369_v14  ;;  %v2352_v43 = vadd.f32 %v2351_v32, %v6033_v5 }
 0xf9a   :  { %5414 = vpow2.f32 %v4086_v1  ;;  %v4087_v18 = vmul.f32 -1.442695, %v2356_v62 }
 0xf9b   :  { %v4089_v40 = vmul.f32 -1.442695, %v2370_v37 }
 0xf9c   :  { %5416 = vpow2.f32 %v4087_v18 }
 0xf9d   :  { %5418 = vpow2.f32 %v4088_v41 }
 0xf9e   :  { %5420 = vpow2.f32 %v4089_v40 }
 0xfa4   :  { %v5415_v29 = vpop.eup %5414 }
 0xfa5   :  { %v2363_v46 = vadd.f32 1.0, %v5415_v29 }
 0xfa6   :  { %v5417_v13 = vpop.eup %5416 }
 0xfa7   :  { %5422 = vrcp.f32 %v2363_v46  ;;  %v2364_v42 = vadd.f32 1.0, %v5417_v13  ;;  %v5419_v38 = vpop.eup %5418 }
 0xfa8   :  { %v5421_v39 = vpop.eup %5420  ;;  %v2377_v35 = vadd.f32 1.0, %v5419_v38 }
 0xfa9   :  { %5424 = vrcp.f32 %v2364_v42  ;;  %v2378_v1 = vadd.f32 1.0, %v5421_v39 }
 0xfaa   :  { %5426 = vrcp.f32 %v2377_v35 }
 0xfab   :  { %5428 = vrcp.f32 %v2378_v1 }
 0xfb1   :  { %v5423_v62 = vpop.eup %5422 }
 0xfb2   :  { %v2383_v8 = vmul.f32 %v5423_v62, %v2349_v31 }
 0xfb3   :  { %v5425_v14 = vpop.eup %5424 }
 0xfb4   :  { %v2385_v18 = vadd.f32 %v2383_v8, %v6036_v17  ;;  %v2384_v37 = vmul.f32 %v5425_v14, %v2352_v43  ;;  %v5427_v41 = vpop.eup %5426 }
 0xfb5   :  { %v5429_v40 = vpop.eup %5428  ;;  %v2389_v29 = vsub.f32 1.0, %v5427_v41  ;;  %v2393_v38 = vmul.f32 %v5427_v41, %v6998_v45 }
 0xfb6   :  { %5430 = vtanh.f32 %v2385_v18  ;;  %v2386_v13 = vadd.f32 %v2384_v37, %v6039_v22  ;;  %v2390_v24 = vsub.f32 1.0, %v5429_v40  ;;  %v2394_v32 = vmul.f32 %v5429_v40, %v7000_v9 }
 0xfb8   :  { %5432 = vtanh.f32 %v2386_v13 }
 0xfc0   :  { %v5431_v46 = vpop.eup %5430 }
 0xfc1   :  { %v2391_v42 = vmul.f32 %v5431_v46, %v2389_v29 }
 0xfc2   :  { %v5433_v39 = vpop.eup %5432 }
 0xfc3   :  { %v2392_v35 = vmul.f32 %v5433_v39, %v2390_v24  ;;  %v7053_v31 = vadd.f32 %v2393_v38, %v2391_v42 }
 0xfc5   :  { %7987 = vst [vmem:[#allocation23_spill] sm:$0xff] %v7053_v31  ;;  %v7055_v8 = vadd.f32 %v2394_v32, %v2392_v35 }
 0xfc7   :  { %7988 = vst [vmem:[#allocation24_spill] sm:$0xff] %v7055_v8  ;;  %v2399_v1 = vpack.c.bf16 %v7055_v8, %v7053_v31 }
 0xfc9   :  { %2433 = vmatmul.mubr.bf16.vlgmr.msra.gmra.mrb[64].mxu0 %v2399_v1  ;;  %4752 = vmatmul.mubr.bf16.vlgmr.msra.gmra.mrb[64].mxu1 %v2399_v1 }
 0xfca   :  { %2530 = vmatpush1.bf16.msra.mxu0 %v6727_v47  ;;  %4756 = vmatpush3.bf16.msra.mxu1 %v6733_v48 }
 0xfcb   :  { %2531 = vmatprep.subr.bf16.mxu0 %v6739_v49  ;;  %4757 = vmatprep.subr.bf16.mxu1 %v7975_v53 }
 0xfcc   :  { %2561 = vmatprep.mubr.bf16.mxu0 %v7976_v54  ;;  %4771 = vmatprep.mubr.msk.bf16.mxu1 %vm5688_vm0, %v7975_v53 }
 0xfce   :  { %2532 = vmatpush1.bf16.msra.mxu0 %v6749_v50  ;;  %4758 = vmatpush3.bf16.msra.mxu1 %v6755_v51 }
 0xfcf   :  { %2533 = vmatprep.subr.bf16.mxu0 %v6761_v52  ;;  %4759 = vmatprep.subr.bf16.mxu1 %v7975_v53 }
 0xfd2   :  { %2534 = vmatpush1.bf16.msra.mxu0 %v6768_v55  ;;  %4760 = vmatpush3.bf16.msra.mxu1 %v6774_v58 }
 0xfd3   :  { %2535 = vmatprep.subr.bf16.mxu0 %v6780_v61  ;;  %4761 = vmatprep.subr.bf16.mxu1 %v7975_v53 }
 0xfd6   :  { %2536 = vmatpush1.bf16.msra.mxu0 %v6787_v63  ;;  %4762 = vmatpush3.bf16.msra.mxu1 %v6793_v4 }
 0xfd7   :  { %2537 = vmatprep.subr.bf16.mxu0 %v6799_v11  ;;  %4763 = vmatprep.subr.bf16.mxu1 %v7975_v53 }
 0xfda   :  { %2538 = vmatpush1.bf16.msra.mxu0 %v6806_v56  ;;  %4764 = vmatpush3.bf16.msra.mxu1 %v6812_v28 }
 0xfdb   :  { %2539 = vmatprep.subr.bf16.mxu0 %v6818_v33  ;;  %4765 = vmatprep.subr.bf16.mxu1 %v7975_v53 }
 0xfde   :  { %2540 = vmatpush1.bf16.msra.mxu0 %v6825_v2  ;;  %4766 = vmatpush3.bf16.msra.mxu1 %v6831_v25 }
 0xfdf   :  { %2541 = vmatprep.subr.bf16.mxu0 %v6837_v21  ;;  %4767 = vmatprep.subr.bf16.mxu1 %v7975_v53 }
 0xfe2   :  { %2542 = vmatpush1.bf16.msra.mxu0 %v6844_v16  ;;  %4768 = vmatpush3.bf16.msra.mxu1 %v6850_v12 }
 0xfe3   :  { %2543 = vmatprep.subr.bf16.mxu0 %v6856_v3  ;;  %4769 = vmatprep.subr.bf16.mxu1 %v7975_v53 }
 0xfe6   :  { %2544 = vmatpush1.bf16.msra.mxu0 %v6863_v20  ;;  %4770 = vmatpush3.bf16.msra.mxu1 %v6869_v0 }
 0xfe7   :  { %2658 = vmatprep.subr.bf16.mxu0 %v6700_v36  ;;  %4775 = vmatprep.subr.bf16.mxu1 %v7975_v53 }
0x109c   :  { %v2434_v62 = vpop.f32.mrb[64].mxu0  ;;  %v2477_v43 = vpop.f32.mrb[64].mxu1 }
0x109d   :  { %v2435_v14 = vadd.f32 %v2434_v62, %v6013_v6  ;;  %v2436_v18 = vpop.f32.mrb[65].mxu0  ;;  %v4753_v37 = vpop.f32.mrb[65].mxu1 }
0x109e   :  { %v2437_v13 = vadd.f32 %v2436_v18, %v6015_v7  ;;  %v2438_v41 = vpop.f32.mrb[66].mxu0  ;;  %v2480_v40 = vpop.f32.mrb[66].mxu1 }
0x109f   :  { %v2484_v29 = vadd.f32 %v2435_v14, %v6017_v10  ;;  %v2439_v46 = vadd.f32 %v2438_v41, %v6013_v6  ;;  %v2440_v24 = vpop.f32.mrb[67].mxu0  ;;  %v4754_v42 = vpop.f32.mrb[67].mxu1 }
0x10a0   :  { %v2441_v36 = vadd.f32 %v2440_v24, %v6015_v7  ;;  %v2498_v35 = vadd.f32 %v2437_v13, %v6025_v19  ;;  %v2478_v13 = vadd.f32 %v2477_v43, %v6033_v5 }
0x10a1   :  { %v4090_v38 = vmul.f32 -1.442695, %v2484_v29  ;;  %v2485_v39 = vadd.f32 %v2439_v46, %v6021_v15 }
0x10a2   :  { %v2499_v1 = vadd.f32 %v2441_v36, %v6029_v23  ;;  %v4092_v62 = vmul.f32 -1.442695, %v2498_v35  ;;  %v2481_v36 = vadd.f32 %v2480_v40, %v6033_v5 }
0x10a3   :  { %5434 = vpow2.f32 %v4090_v38  ;;  %v4091_v32 = vmul.f32 -1.442695, %v2485_v39 }
0x10a4   :  { %v4093_v18 = vmul.f32 -1.442695, %v2499_v1 }
0x10a5   :  { %5436 = vpow2.f32 %v4091_v32 }
0x10a6   :  { %5438 = vpow2.f32 %v4092_v62 }
0x10a7   :  { %5440 = vpow2.f32 %v4093_v18 }
0x10ad   :  { %v5435_v14 = vpop.eup %5434 }
0x10ae   :  { %v2492_v37 = vadd.f32 1.0, %v5435_v14 }
0x10af   :  { %v5437_v41 = vpop.eup %5436 }
0x10b0   :  { %5442 = vrcp.f32 %v2492_v37  ;;  %v2493_v42 = vadd.f32 1.0, %v5437_v41  ;;  %v5439_v29 = vpop.eup %5438 }
0x10b1   :  { %v5441_v24 = vpop.eup %5440  ;;  %v2506_v46 = vadd.f32 1.0, %v5439_v29 }
0x10b2   :  { %5444 = vrcp.f32 %v2493_v42  ;;  %v2507_v38 = vadd.f32 1.0, %v5441_v24 }
0x10b3   :  { %5446 = vrcp.f32 %v2506_v46 }
0x10b4   :  { %5448 = vrcp.f32 %v2507_v38 }
0x10ba   :  { %v5443_v39 = vpop.eup %5442 }
0x10bb   :  { %v2512_v27 = vmul.f32 %v5443_v39, %v2478_v13 }
0x10bc   :  { %v5445_v35 = vpop.eup %5444 }
0x10bd   :  { %v2514_v32 = vadd.f32 %v2512_v27, %v6036_v17  ;;  %v2513_v1 = vmul.f32 %v5445_v35, %v2481_v36  ;;  %v5447_v18 = vpop.eup %5446 }
0x10be   :  { %v5449_v14 = vpop.eup %5448  ;;  %v2518_v37 = vsub.f32 1.0, %v5447_v18  ;;  %v2522_v29 = vmul.f32 %v5447_v18, %v7053_v31 }
0x10bf   :  { %5450 = vtanh.f32 %v2514_v32  ;;  %v2515_v62 = vadd.f32 %v2513_v1, %v6039_v22  ;;  %v2519_v43 = vsub.f32 1.0, %v5449_v14  ;;  %v2523_v40 = vmul.f32 %v5449_v14, %v7055_v8 }
0x10c1   :  { %5452 = vtanh.f32 %v2515_v62 }
0x10c9   :  { %v5451_v41 = vpop.eup %5450 }
0x10ca   :  { %v2520_v42 = vmul.f32 %v5451_v41, %v2518_v37 }
0x10cb   :  { %v5453_v24 = vpop.eup %5452 }
0x10cc   :  { %v2521_v46 = vmul.f32 %v5453_v24, %v2519_v43  ;;  %v7108_v13 = vadd.f32 %v2522_v29, %v2520_v42 }
0x10ce   :  { %7989 = vst [vmem:[#allocation25_spill] sm:$0xff] %v7108_v13  ;;  %v7110_v27 = vadd.f32 %v2523_v40, %v2521_v46 }
0x10d0   :  { %7990 = vst [vmem:[#allocation26_spill] sm:$0xff] %v7110_v27  ;;  %v2528_v38 = vpack.c.bf16 %v7110_v27, %v7108_v13 }
0x10d2   :  { %2562 = vmatmul.mubr.bf16.vlgmr.msra.gmra.mrb[68].mxu0 %v2528_v38  ;;  %4772 = vmatmul.mubr.bf16.vlgmr.msra.gmra.mrb[68].mxu1 %v2528_v38 }
0x10d3   :  { %2659 = vmatpush1.bf16.msra.mxu0 %v6727_v47  ;;  %4776 = vmatpush3.bf16.msra.mxu1 %v6733_v48  ;;  %v7150_v47 = vld [vmem:[%s7924_s2 + $0x4] ss:$12 sps:$4 sm:$0xff]  }
0x10d4   :  { %2660 = vmatprep.subr.bf16.mxu0 %v6739_v49  ;;  %4777 = vmatprep.subr.bf16.mxu1 %v7975_v53 }
0x10d5   :  { %2690 = vmatprep.mubr.bf16.mxu0 %v7976_v54  ;;  %4791 = vmatprep.mubr.msk.bf16.mxu1 %vm5688_vm0, %v7975_v53 }
0x10d7   :  { %2661 = vmatpush1.bf16.msra.mxu0 %v6749_v50  ;;  %4778 = vmatpush3.bf16.msra.mxu1 %v6755_v51 }
0x10d8   :  { %2662 = vmatprep.subr.bf16.mxu0 %v6761_v52  ;;  %4779 = vmatprep.subr.bf16.mxu1 %v7975_v53 }
0x10db   :  { %2663 = vmatpush1.bf16.msra.mxu0 %v6768_v55  ;;  %4780 = vmatpush3.bf16.msra.mxu1 %v6774_v58 }
0x10dc   :  { %2664 = vmatprep.subr.bf16.mxu0 %v6780_v61  ;;  %4781 = vmatprep.subr.bf16.mxu1 %v7975_v53 }
0x10df   :  { %2665 = vmatpush1.bf16.msra.mxu0 %v6787_v63  ;;  %4782 = vmatpush3.bf16.msra.mxu1 %v6793_v4 }
0x10e0   :  { %2666 = vmatprep.subr.bf16.mxu0 %v6799_v11  ;;  %4783 = vmatprep.subr.bf16.mxu1 %v7975_v53 }
0x10e3   :  { %2667 = vmatpush1.bf16.msra.mxu0 %v6806_v56  ;;  %4784 = vmatpush3.bf16.msra.mxu1 %v6812_v28 }
0x10e4   :  { %2668 = vmatprep.subr.bf16.mxu0 %v6818_v33  ;;  %4785 = vmatprep.subr.bf16.mxu1 %v7975_v53 }
0x10e7   :  { %2669 = vmatpush1.bf16.msra.mxu0 %v6825_v2  ;;  %4786 = vmatpush3.bf16.msra.mxu1 %v6831_v25 }
0x10e8   :  { %2670 = vmatprep.subr.bf16.mxu0 %v6837_v21  ;;  %4787 = vmatprep.subr.bf16.mxu1 %v7975_v53 }
0x10eb   :  { %2671 = vmatpush1.bf16.msra.mxu0 %v6844_v16  ;;  %4788 = vmatpush3.bf16.msra.mxu1 %v6850_v12 }
0x10ec   :  { %2672 = vmatprep.subr.bf16.mxu0 %v6856_v3  ;;  %4789 = vmatprep.subr.bf16.mxu1 %v7975_v53 }
0x10ef   :  { %2673 = vmatpush1.bf16.msra.mxu0 %v6863_v20  ;;  %4790 = vmatpush3.bf16.msra.mxu1 %v6869_v0 }
0x10f0   :  { %2787 = vmatprep.subr.bf16.mxu0 %v7150_v47  ;;  %4795 = vmatprep.subr.bf16.mxu1 %v7975_v53 }
0x11a5   :  { %v2563_v48 = vpop.f32.mrb[68].mxu0  ;;  %v2606_v49 = vpop.f32.mrb[68].mxu1 }
0x11a6   :  { %v2564_v50 = vadd.f32 %v2563_v48, %v6013_v6  ;;  %v2565_v51 = vpop.f32.mrb[69].mxu0  ;;  %v4773_v52 = vpop.f32.mrb[69].mxu1  ;;  %v2607_v62 = vadd.f32 %v2606_v49, %v6033_v5 }
0x11a7   :  { %v2566_v55 = vadd.f32 %v2565_v51, %v6015_v7  ;;  %v2567_v58 = vpop.f32.mrb[70].mxu0  ;;  %v2609_v61 = vpop.f32.mrb[70].mxu1 }
0x11a8   :  { %v2613_v63 = vadd.f32 %v2564_v50, %v6017_v10  ;;  %v2568_v4 = vadd.f32 %v2567_v58, %v6013_v6  ;;  %v2569_v11 = vpop.f32.mrb[71].mxu0  ;;  %v4774_v56 = vpop.f32.mrb[71].mxu1  ;;  %v2610_v41 = vadd.f32 %v2609_v61, %v6033_v5 }
0x11a9   :  { %v2570_v28 = vadd.f32 %v2569_v11, %v6015_v7  ;;  %v2627_v25 = vadd.f32 %v2566_v55, %v6025_v19  ;;  %v7177_v11 = vld [vmem:[%s7924_s2] ss:$12 sps:$4 sm:$0xff]   ;;  %v7183_v56 = vld [vmem:[%s7924_s2 + $0x8] ss:$12 sps:$4 sm:$0xff]  }
0x11aa   :  { %v4094_v33 = vmul.f32 -1.442695, %v2613_v63  ;;  %v2614_v2 = vadd.f32 %v2568_v4, %v6021_v15 }
0x11ab   :  { %v2628_v16 = vadd.f32 %v2570_v28, %v6029_v23  ;;  %v4096_v12 = vmul.f32 -1.442695, %v2627_v25  ;;  %v7189_v28 = vld [vmem:[%s7924_s2 + $0x1c] ss:$12 sps:$4 sm:$0xff]   ;;  %v7211_v25 = vld [vmem:[%s7924_s2 + $0x34] ss:$12 sps:$4 sm:$0xff]  }
0x11ac   :  { %5454 = vpow2.f32 %v4094_v33  ;;  %v4095_v21 = vmul.f32 -1.442695, %v2614_v2  ;;  %v7199_v33 = vld [vmem:[%s7924_s2 + $0x18] ss:$12 sps:$4 sm:$0xff]   ;;  %v7205_v2 = vld [vmem:[%s7924_s2 + $0x20] ss:$12 sps:$4 sm:$0xff]  }
0x11ad   :  { %v4097_v3 = vmul.f32 -1.442695, %v2628_v16  ;;  %v7224_v16 = vld [vmem:[%s7924_s2 + $0x38] ss:$12 sps:$4 sm:$0xff]  }
0x11ae   :  { %5456 = vpow2.f32 %v4095_v21  ;;  %v7218_v21 = vld [vmem:[%s7924_s2 + $0x30] ss:$12 sps:$4 sm:$0xff]  }
0x11af   :  { %5458 = vpow2.f32 %v4096_v12  ;;  %v7230_v12 = vld [vmem:[%s7924_s2 + $0x4c] ss:$12 sps:$4 sm:$0xff]  }
0x11b0   :  { %5460 = vpow2.f32 %v4097_v3  ;;  %v7237_v3 = vld [vmem:[%s7924_s2 + $0x48] ss:$12 sps:$4 sm:$0xff]  }
0x11b6   :  { %v5455_v20 = vpop.eup %5454 }
0x11b7   :  { %v2621_v0 = vadd.f32 1.0, %v5455_v20  ;;  %v7243_v20 = vld [vmem:[%s7924_s2 + $0x50] ss:$12 sps:$4 sm:$0xff]  }
0x11b8   :  { %v5457_v39 = vpop.eup %5456 }
0x11b9   :  { %5462 = vrcp.f32 %v2621_v0  ;;  %v2622_v36 = vadd.f32 1.0, %v5457_v39  ;;  %v5459_v35 = vpop.eup %5458  ;;  %v7249_v0 = vld [vmem:[%s7924_s2 + $0x64] ss:$12 sps:$4 sm:$0xff]   ;;  %v7256_v39 = vld [vmem:[%s7924_s2 + $0x60] ss:$12 sps:$4 sm:$0xff]  }
0x11ba   :  { %v5461_v32 = vpop.eup %5460  ;;  %v2635_v1 = vadd.f32 1.0, %v5459_v35  ;;  %v7268_v35 = vld [vmem:[%s7924_s2 + $0x7c] ss:$12 sps:$4 sm:$0xff]  }
0x11bb   :  { %5464 = vrcp.f32 %v2622_v36  ;;  %v2636_v18 = vadd.f32 1.0, %v5461_v32  ;;  %v7262_v36 = vld [vmem:[%s7924_s2 + $0x68] ss:$12 sps:$4 sm:$0xff]   ;;  %v7275_v32 = vld [vmem:[%s7924_s2 + $0x78] ss:$12 sps:$4 sm:$0xff]  }
0x11bc   :  { %5466 = vrcp.f32 %v2635_v1  ;;  %v7281_v1 = vld [vmem:[%s7924_s2 + $0x80] ss:$12 sps:$4 sm:$0xff]  }
0x11bd   :  { %5468 = vrcp.f32 %v2636_v18  ;;  %v7294_v18 = vld [vmem:[%s7924_s2 + $0x90] ss:$12 sps:$4 sm:$0xff]  }
0x11c3   :  { %v5463_v14 = vpop.eup %5462 }
0x11c4   :  { %v2641_v37 = vmul.f32 %v5463_v14, %v2607_v62  ;;  %v7287_v62 = vld [vmem:[%s7924_s2 + $0x94] ss:$12 sps:$4 sm:$0xff]   ;;  %v7300_v14 = vld [vmem:[%s7924_s2 + $0x98] ss:$12 sps:$4 sm:$0xff]  }
0x11c5   :  { %v5465_v43 = vpop.eup %5464 }
0x11c6   :  { %v2643_v42 = vadd.f32 %v2641_v37, %v6036_v17  ;;  %v2642_v29 = vmul.f32 %v5465_v43, %v2610_v41  ;;  %v5467_v46 = vpop.eup %5466  ;;  %v7306_v37 = vld [vmem:[%s7924_s2 + $0xac] ss:$12 sps:$4 sm:$0xff]   ;;  %v7313_v41 = vld [vmem:[%s7924_s2 + $0xa8] ss:$12 sps:$4 sm:$0xff]   ;;  %v7319_v43 = vld [vmem:[%s7924_s2 + $0xb0] ss:$12 sps:$4 sm:$0xff]  }
0x11c7   :  { %v5469_v40 = vpop.eup %5468  ;;  %v2647_v38 = vsub.f32 1.0, %v5467_v46  ;;  %v2651_v51 = vmul.f32 %v5467_v46, %v7108_v13 }
0x11c8   :  { %5470 = vtanh.f32 %v2643_v42  ;;  %v2644_v24 = vadd.f32 %v2642_v29, %v6039_v22  ;;  %v2648_v49 = vsub.f32 1.0, %v5469_v40  ;;  %v2652_v58 = vmul.f32 %v5469_v40, %v7110_v27 }
0x11ca   :  { %5472 = vtanh.f32 %v2644_v24 }
0x11d2   :  { %v5471_v48 = vpop.eup %5470 }
0x11d3   :  { %v2649_v50 = vmul.f32 %v5471_v48, %v2647_v38 }
0x11d4   :  { %v5473_v52 = vpop.eup %5472 }
0x11d5   :  { %v2650_v55 = vmul.f32 %v5473_v52, %v2648_v49  ;;  %v7168_v61 = vadd.f32 %v2651_v51, %v2649_v50 }
0x11d7   :  { %7991 = vst [vmem:[#allocation27_spill] sm:$0xff] %v7168_v61  ;;  %v7170_v63 = vadd.f32 %v2652_v58, %v2650_v55 }
0x11d9   :  { %7992 = vst [vmem:[#allocation28_spill] sm:$0xff] %v7170_v63  ;;  %v2657_v4 = vpack.c.bf16 %v7170_v63, %v7168_v61 }
0x11db   :  { %2691 = vmatmul.mubr.bf16.vlgmr.msra.gmra.mrb[72].mxu0 %v2657_v4  ;;  %4792 = vmatmul.mubr.bf16.vlgmr.msra.gmra.mrb[72].mxu1 %v2657_v4 }
0x11dc   :  { %2788 = vmatpush1.bf16.msra.mxu0 %v7177_v11  ;;  %4796 = vmatpush3.bf16.msra.mxu1 %v7183_v56 }
0x11dd   :  { %2789 = vmatprep.subr.bf16.mxu0 %v7189_v28  ;;  %4797 = vmatprep.subr.bf16.mxu1 %v7975_v53 }
0x11de   :  { %2819 = vmatprep.mubr.bf16.mxu0 %v7976_v54  ;;  %4811 = vmatprep.mubr.msk.bf16.mxu1 %vm5688_vm0, %v7975_v53 }
0x11e0   :  { %2790 = vmatpush1.bf16.msra.mxu0 %v7199_v33  ;;  %4798 = vmatpush3.bf16.msra.mxu1 %v7205_v2 }
0x11e1   :  { %2791 = vmatprep.subr.bf16.mxu0 %v7211_v25  ;;  %4799 = vmatprep.subr.bf16.mxu1 %v7975_v53 }
0x11e4   :  { %2792 = vmatpush1.bf16.msra.mxu0 %v7218_v21  ;;  %4800 = vmatpush3.bf16.msra.mxu1 %v7224_v16 }
0x11e5   :  { %2793 = vmatprep.subr.bf16.mxu0 %v7230_v12  ;;  %4801 = vmatprep.subr.bf16.mxu1 %v7975_v53 }
0x11e8   :  { %2794 = vmatpush1.bf16.msra.mxu0 %v7237_v3  ;;  %4802 = vmatpush3.bf16.msra.mxu1 %v7243_v20 }
0x11e9   :  { %2795 = vmatprep.subr.bf16.mxu0 %v7249_v0  ;;  %4803 = vmatprep.subr.bf16.mxu1 %v7975_v53 }
0x11ec   :  { %2796 = vmatpush1.bf16.msra.mxu0 %v7256_v39  ;;  %4804 = vmatpush3.bf16.msra.mxu1 %v7262_v36 }
0x11ed   :  { %2797 = vmatprep.subr.bf16.mxu0 %v7268_v35  ;;  %4805 = vmatprep.subr.bf16.mxu1 %v7975_v53 }
0x11f0   :  { %2798 = vmatpush1.bf16.msra.mxu0 %v7275_v32  ;;  %4806 = vmatpush3.bf16.msra.mxu1 %v7281_v1 }
0x11f1   :  { %2799 = vmatprep.subr.bf16.mxu0 %v7287_v62  ;;  %4807 = vmatprep.subr.bf16.mxu1 %v7975_v53 }
0x11f4   :  { %2800 = vmatpush1.bf16.msra.mxu0 %v7294_v18  ;;  %4808 = vmatpush3.bf16.msra.mxu1 %v7300_v14 }
0x11f5   :  { %2801 = vmatprep.subr.bf16.mxu0 %v7306_v37  ;;  %4809 = vmatprep.subr.bf16.mxu1 %v7975_v53 }
0x11f8   :  { %2802 = vmatpush1.bf16.msra.mxu0 %v7313_v41  ;;  %4810 = vmatpush3.bf16.msra.mxu1 %v7319_v43 }
0x11f9   :  { %2916 = vmatprep.subr.bf16.mxu0 %v7150_v47  ;;  %4815 = vmatprep.subr.bf16.mxu1 %v7975_v53 }
0x12ae   :  { %v2692_v42 = vpop.f32.mrb[72].mxu0  ;;  %v2735_v29 = vpop.f32.mrb[72].mxu1 }
0x12af   :  { %v2693_v24 = vadd.f32 %v2692_v42, %v6013_v6  ;;  %v2694_v46 = vpop.f32.mrb[73].mxu0  ;;  %v4793_v40 = vpop.f32.mrb[73].mxu1 }
0x12b0   :  { %v2695_v38 = vadd.f32 %v2694_v46, %v6015_v7  ;;  %v2696_v48 = vpop.f32.mrb[74].mxu0  ;;  %v2738_v49 = vpop.f32.mrb[74].mxu1 }
0x12b1   :  { %v2742_v50 = vadd.f32 %v2693_v24, %v6017_v10  ;;  %v2697_v51 = vadd.f32 %v2696_v48, %v6013_v6  ;;  %v2698_v52 = vpop.f32.mrb[75].mxu0  ;;  %v4794_v55 = vpop.f32.mrb[75].mxu1 }
0x12b2   :  { %v2699_v58 = vadd.f32 %v2698_v52, %v6015_v7  ;;  %v2756_v13 = vadd.f32 %v2695_v38, %v6025_v19  ;;  %v2736_v38 = vadd.f32 %v2735_v29, %v6033_v5 }
0x12b3   :  { %v4098_v4 = vmul.f32 -1.442695, %v2742_v50  ;;  %v2743_v27 = vadd.f32 %v2697_v51, %v6021_v15 }
0x12b4   :  { %v2757_v40 = vadd.f32 %v2699_v58, %v6029_v23  ;;  %v4100_v46 = vmul.f32 -1.442695, %v2756_v13  ;;  %v2739_v13 = vadd.f32 %v2738_v49, %v6033_v5 }
0x12b5   :  { %5474 = vpow2.f32 %v4098_v4  ;;  %v4099_v42 = vmul.f32 -1.442695, %v2743_v27 }
0x12b6   :  { %v4101_v8 = vmul.f32 -1.442695, %v2757_v40 }
0x12b7   :  { %5476 = vpow2.f32 %v4099_v42 }
0x12b8   :  { %5478 = vpow2.f32 %v4100_v46 }
0x12b9   :  { %5480 = vpow2.f32 %v4101_v8 }
0x12bf   :  { %v5475_v24 = vpop.eup %5474 }
0x12c0   :  { %v2750_v48 = vadd.f32 1.0, %v5475_v24 }
0x12c1   :  { %v5477_v31 = vpop.eup %5476 }
0x12c2   :  { %5482 = vrcp.f32 %v2750_v48  ;;  %v2751_v55 = vadd.f32 1.0, %v5477_v31  ;;  %v5479_v50 = vpop.eup %5478 }
0x12c3   :  { %v5481_v52 = vpop.eup %5480  ;;  %v2764_v51 = vadd.f32 1.0, %v5479_v50 }
0x12c4   :  { %5484 = vrcp.f32 %v2751_v55  ;;  %v2765_v4 = vadd.f32 1.0, %v5481_v52 }
0x12c5   :  { %5486 = vrcp.f32 %v2764_v51 }
0x12c6   :  { %5488 = vrcp.f32 %v2765_v4 }
0x12cc   :  { %v5483_v27 = vpop.eup %5482 }
0x12cd   :  { %v2770_v26 = vmul.f32 %v5483_v27, %v2736_v38 }
0x12ce   :  { %v5485_v58 = vpop.eup %5484 }
0x12cf   :  { %v2772_v8 = vadd.f32 %v2770_v26, %v6036_v17  ;;  %v2771_v42 = vmul.f32 %v5485_v58, %v2739_v13  ;;  %v5487_v40 = vpop.eup %5486 }
0x12d0   :  { %v5489_v46 = vpop.eup %5488  ;;  %v2776_v24 = vsub.f32 1.0, %v5487_v40  ;;  %v2780_v50 = vmul.f32 %v5487_v40, %v7168_v61 }
0x12d1   :  { %5490 = vtanh.f32 %v2772_v8  ;;  %v2773_v31 = vadd.f32 %v2771_v42, %v6039_v22  ;;  %v2777_v29 = vsub.f32 1.0, %v5489_v46  ;;  %v2781_v49 = vmul.f32 %v5489_v46, %v7170_v63 }
0x12d3   :  { %5492 = vtanh.f32 %v2773_v31 }
0x12db   :  { %v5491_v48 = vpop.eup %5490 }
0x12dc   :  { %v2778_v55 = vmul.f32 %v5491_v48, %v2776_v24 }
0x12dd   :  { %v5493_v52 = vpop.eup %5492 }
0x12de   :  { %v2779_v51 = vmul.f32 %v5493_v52, %v2777_v29  ;;  %v7338_v38 = vadd.f32 %v2780_v50, %v2778_v55 }
0x12e0   :  { %7993 = vst [vmem:[#allocation29_spill] sm:$0xff] %v7338_v38  ;;  %v7340_v26 = vadd.f32 %v2781_v49, %v2779_v51 }
0x12e2   :  { %7994 = vst [vmem:[#allocation30_spill] sm:$0xff] %v7340_v26  ;;  %v2786_v4 = vpack.c.bf16 %v7340_v26, %v7338_v38 }
0x12e4   :  { %2820 = vmatmul.mubr.bf16.vlgmr.msra.gmra.mrb[76].mxu0 %v2786_v4  ;;  %4812 = vmatmul.mubr.bf16.vlgmr.msra.gmra.mrb[76].mxu1 %v2786_v4 }
0x12e5   :  { %2917 = vmatpush1.bf16.msra.mxu0 %v7177_v11  ;;  %4816 = vmatpush3.bf16.msra.mxu1 %v7183_v56 }
0x12e6   :  { %2918 = vmatprep.subr.bf16.mxu0 %v7189_v28  ;;  %4817 = vmatprep.subr.bf16.mxu1 %v7975_v53 }
0x12e7   :  { %2948 = vmatprep.mubr.bf16.mxu0 %v7976_v54  ;;  %4831 = vmatprep.mubr.msk.bf16.mxu1 %vm5688_vm0, %v7975_v53 }
0x12e9   :  { %2919 = vmatpush1.bf16.msra.mxu0 %v7199_v33  ;;  %4818 = vmatpush3.bf16.msra.mxu1 %v7205_v2 }
0x12ea   :  { %2920 = vmatprep.subr.bf16.mxu0 %v7211_v25  ;;  %4819 = vmatprep.subr.bf16.mxu1 %v7975_v53 }
0x12ed   :  { %2921 = vmatpush1.bf16.msra.mxu0 %v7218_v21  ;;  %4820 = vmatpush3.bf16.msra.mxu1 %v7224_v16 }
0x12ee   :  { %2922 = vmatprep.subr.bf16.mxu0 %v7230_v12  ;;  %4821 = vmatprep.subr.bf16.mxu1 %v7975_v53 }
0x12f1   :  { %2923 = vmatpush1.bf16.msra.mxu0 %v7237_v3  ;;  %4822 = vmatpush3.bf16.msra.mxu1 %v7243_v20 }
0x12f2   :  { %2924 = vmatprep.subr.bf16.mxu0 %v7249_v0  ;;  %4823 = vmatprep.subr.bf16.mxu1 %v7975_v53 }
0x12f5   :  { %2925 = vmatpush1.bf16.msra.mxu0 %v7256_v39  ;;  %4824 = vmatpush3.bf16.msra.mxu1 %v7262_v36 }
0x12f6   :  { %2926 = vmatprep.subr.bf16.mxu0 %v7268_v35  ;;  %4825 = vmatprep.subr.bf16.mxu1 %v7975_v53 }
0x12f9   :  { %2927 = vmatpush1.bf16.msra.mxu0 %v7275_v32  ;;  %4826 = vmatpush3.bf16.msra.mxu1 %v7281_v1 }
0x12fa   :  { %2928 = vmatprep.subr.bf16.mxu0 %v7287_v62  ;;  %4827 = vmatprep.subr.bf16.mxu1 %v7975_v53 }
0x12fd   :  { %2929 = vmatpush1.bf16.msra.mxu0 %v7294_v18  ;;  %4828 = vmatpush3.bf16.msra.mxu1 %v7300_v14 }
0x12fe   :  { %2930 = vmatprep.subr.bf16.mxu0 %v7306_v37  ;;  %4829 = vmatprep.subr.bf16.mxu1 %v7975_v53 }
0x1301   :  { %2931 = vmatpush1.bf16.msra.mxu0 %v7313_v41  ;;  %4830 = vmatpush3.bf16.msra.mxu1 %v7319_v43 }
0x1302   :  { %3045 = vmatprep.subr.bf16.mxu0 %v7150_v47  ;;  %4835 = vmatprep.subr.bf16.mxu1 %v7975_v53 }
0x13b7   :  { %v2821_v27 = vpop.f32.mrb[76].mxu0  ;;  %v2864_v13 = vpop.f32.mrb[76].mxu1 }
0x13b8   :  { %v2822_v58 = vadd.f32 %v2821_v27, %v6013_v6  ;;  %v2823_v8 = vpop.f32.mrb[77].mxu0  ;;  %v4813_v42 = vpop.f32.mrb[77].mxu1 }
0x13b9   :  { %v2824_v31 = vadd.f32 %v2823_v8, %v6015_v7  ;;  %v2825_v40 = vpop.f32.mrb[78].mxu0  ;;  %v2867_v46 = vpop.f32.mrb[78].mxu1 }
0x13ba   :  { %v2871_v24 = vadd.f32 %v2822_v58, %v6017_v10  ;;  %v2826_v48 = vadd.f32 %v2825_v40, %v6013_v6  ;;  %v2827_v29 = vpop.f32.mrb[79].mxu0  ;;  %v4814_v55 = vpop.f32.mrb[79].mxu1 }
0x13bb   :  { %v2828_v50 = vadd.f32 %v2827_v29, %v6015_v7  ;;  %v2885_v49 = vadd.f32 %v2824_v31, %v6025_v19  ;;  %v2865_v31 = vadd.f32 %v2864_v13, %v6033_v5 }
0x13bc   :  { %v4102_v52 = vmul.f32 -1.442695, %v2871_v24  ;;  %v2872_v51 = vadd.f32 %v2826_v48, %v6021_v15 }
0x13bd   :  { %v2886_v27 = vadd.f32 %v2828_v50, %v6029_v23  ;;  %v4104_v8 = vmul.f32 -1.442695, %v2885_v49  ;;  %v2868_v50 = vadd.f32 %v2867_v46, %v6033_v5 }
0x13be   :  { %5494 = vpow2.f32 %v4102_v52  ;;  %v4103_v4 = vmul.f32 -1.442695, %v2872_v51 }
0x13bf   :  { %v4105_v42 = vmul.f32 -1.442695, %v2886_v27 }
0x13c0   :  { %5496 = vpow2.f32 %v4103_v4 }
0x13c1   :  { %5498 = vpow2.f32 %v4104_v8 }
0x13c2   :  { %5500 = vpow2.f32 %v4105_v42 }
0x13c8   :  { %v5495_v58 = vpop.eup %5494 }
0x13c9   :  { %v2879_v40 = vadd.f32 1.0, %v5495_v58 }
0x13ca   :  { %v5497_v63 = vpop.eup %5496 }
0x13cb   :  { %5502 = vrcp.f32 %v2879_v40  ;;  %v2880_v55 = vadd.f32 1.0, %v5497_v63  ;;  %v5499_v24 = vpop.eup %5498 }
0x13cc   :  { %v5501_v29 = vpop.eup %5500  ;;  %v2893_v48 = vadd.f32 1.0, %v5499_v24 }
0x13cd   :  { %5504 = vrcp.f32 %v2880_v55  ;;  %v2894_v52 = vadd.f32 1.0, %v5501_v29 }
0x13ce   :  { %5506 = vrcp.f32 %v2893_v48 }
0x13cf   :  { %5508 = vrcp.f32 %v2894_v52 }
0x13d5   :  { %v5503_v51 = vpop.eup %5502 }
0x13d6   :  { %v2899_v61 = vmul.f32 %v5503_v51, %v2865_v31 }
0x13d7   :  { %v5505_v49 = vpop.eup %5504 }
0x13d8   :  { %v2901_v4 = vadd.f32 %v2899_v61, %v6036_v17  ;;  %v2900_v27 = vmul.f32 %v5505_v49, %v2868_v50  ;;  %v5507_v8 = vpop.eup %5506 }
0x13d9   :  { %v5509_v42 = vpop.eup %5508  ;;  %v2905_v58 = vsub.f32 1.0, %v5507_v8  ;;  %v2909_v24 = vmul.f32 %v5507_v8, %v7338_v38 }
0x13da   :  { %5510 = vtanh.f32 %v2901_v4  ;;  %v2902_v63 = vadd.f32 %v2900_v27, %v6039_v22  ;;  %v2906_v13 = vsub.f32 1.0, %v5509_v42  ;;  %v2910_v46 = vmul.f32 %v5509_v42, %v7340_v26 }
0x13dc   :  { %5512 = vtanh.f32 %v2902_v63 }
0x13e4   :  { %v5511_v40 = vpop.eup %5510 }
0x13e5   :  { %v2907_v55 = vmul.f32 %v5511_v40, %v2905_v58 }
0x13e6   :  { %v5513_v29 = vpop.eup %5512 }
0x13e7   :  { %v2908_v48 = vmul.f32 %v5513_v29, %v2906_v13  ;;  %v7393_v31 = vadd.f32 %v2909_v24, %v2907_v55 }
0x13e9   :  { %7995 = vst [vmem:[#allocation31_spill] sm:$0xff] %v7393_v31  ;;  %v7395_v61 = vadd.f32 %v2910_v46, %v2908_v48 }
0x13eb   :  { %7996 = vst [vmem:[#allocation32_spill] sm:$0xff] %v7395_v61  ;;  %v2915_v52 = vpack.c.bf16 %v7395_v61, %v7393_v31 }
0x13ed   :  { %2949 = vmatmul.mubr.bf16.vlgmr.msra.gmra.mrb[80].mxu0 %v2915_v52  ;;  %4832 = vmatmul.mubr.bf16.vlgmr.msra.gmra.mrb[80].mxu1 %v2915_v52 }
0x13ee   :  { %3046 = vmatpush1.bf16.msra.mxu0 %v7177_v11  ;;  %4836 = vmatpush3.bf16.msra.mxu1 %v7183_v56 }
0x13ef   :  { %3047 = vmatprep.subr.bf16.mxu0 %v7189_v28  ;;  %4837 = vmatprep.subr.bf16.mxu1 %v7975_v53 }
0x13f0   :  { %3077 = vmatprep.mubr.bf16.mxu0 %v7976_v54  ;;  %4851 = vmatprep.mubr.msk.bf16.mxu1 %vm5688_vm0, %v7975_v53 }
0x13f2   :  { %3048 = vmatpush1.bf16.msra.mxu0 %v7199_v33  ;;  %4838 = vmatpush3.bf16.msra.mxu1 %v7205_v2 }
0x13f3   :  { %3049 = vmatprep.subr.bf16.mxu0 %v7211_v25  ;;  %4839 = vmatprep.subr.bf16.mxu1 %v7975_v53 }
0x13f6   :  { %3050 = vmatpush1.bf16.msra.mxu0 %v7218_v21  ;;  %4840 = vmatpush3.bf16.msra.mxu1 %v7224_v16 }
0x13f7   :  { %3051 = vmatprep.subr.bf16.mxu0 %v7230_v12  ;;  %4841 = vmatprep.subr.bf16.mxu1 %v7975_v53 }
0x13fa   :  { %3052 = vmatpush1.bf16.msra.mxu0 %v7237_v3  ;;  %4842 = vmatpush3.bf16.msra.mxu1 %v7243_v20 }
0x13fb   :  { %3053 = vmatprep.subr.bf16.mxu0 %v7249_v0  ;;  %4843 = vmatprep.subr.bf16.mxu1 %v7975_v53 }
0x13fe   :  { %3054 = vmatpush1.bf16.msra.mxu0 %v7256_v39  ;;  %4844 = vmatpush3.bf16.msra.mxu1 %v7262_v36 }
0x13ff   :  { %3055 = vmatprep.subr.bf16.mxu0 %v7268_v35  ;;  %4845 = vmatprep.subr.bf16.mxu1 %v7975_v53 }
0x1402   :  { %3056 = vmatpush1.bf16.msra.mxu0 %v7275_v32  ;;  %4846 = vmatpush3.bf16.msra.mxu1 %v7281_v1 }
0x1403   :  { %3057 = vmatprep.subr.bf16.mxu0 %v7287_v62  ;;  %4847 = vmatprep.subr.bf16.mxu1 %v7975_v53 }
0x1406   :  { %3058 = vmatpush1.bf16.msra.mxu0 %v7294_v18  ;;  %4848 = vmatpush3.bf16.msra.mxu1 %v7300_v14 }
0x1407   :  { %3059 = vmatprep.subr.bf16.mxu0 %v7306_v37  ;;  %4849 = vmatprep.subr.bf16.mxu1 %v7975_v53 }
0x140a   :  { %3060 = vmatpush1.bf16.msra.mxu0 %v7313_v41  ;;  %4850 = vmatpush3.bf16.msra.mxu1 %v7319_v43 }
0x140b   :  { %3174 = vmatprep.subr.bf16.mxu0 %v7150_v47  ;;  %4855 = vmatprep.subr.bf16.mxu1 %v7975_v53 }
0x14c0   :  { %v2950_v51 = vpop.f32.mrb[80].mxu0  ;;  %v2993_v50 = vpop.f32.mrb[80].mxu1 }
0x14c1   :  { %v2951_v49 = vadd.f32 %v2950_v51, %v6013_v6  ;;  %v2952_v4 = vpop.f32.mrb[81].mxu0  ;;  %v4833_v27 = vpop.f32.mrb[81].mxu1 }
0x14c2   :  { %v2953_v63 = vadd.f32 %v2952_v4, %v6015_v7  ;;  %v2954_v8 = vpop.f32.mrb[82].mxu0  ;;  %v2996_v42 = vpop.f32.mrb[82].mxu1 }
0x14c3   :  { %v3000_v58 = vadd.f32 %v2951_v49, %v6017_v10  ;;  %v2955_v40 = vadd.f32 %v2954_v8, %v6013_v6  ;;  %v2956_v13 = vpop.f32.mrb[83].mxu0  ;;  %v4834_v55 = vpop.f32.mrb[83].mxu1 }
0x14c4   :  { %v2957_v24 = vadd.f32 %v2956_v13, %v6015_v7  ;;  %v3014_v46 = vadd.f32 %v2953_v63, %v6025_v19  ;;  %v2994_v63 = vadd.f32 %v2993_v50, %v6033_v5 }
0x14c5   :  { %v4106_v29 = vmul.f32 -1.442695, %v3000_v58  ;;  %v3001_v48 = vadd.f32 %v2955_v40, %v6021_v15 }
0x14c6   :  { %v3015_v51 = vadd.f32 %v2957_v24, %v6029_v23  ;;  %v4108_v4 = vmul.f32 -1.442695, %v3014_v46  ;;  %v2997_v24 = vadd.f32 %v2996_v42, %v6033_v5 }
0x14c7   :  { %5514 = vpow2.f32 %v4106_v29  ;;  %v4107_v52 = vmul.f32 -1.442695, %v3001_v48 }
0x14c8   :  { %v4109_v27 = vmul.f32 -1.442695, %v3015_v51 }
0x14c9   :  { %5516 = vpow2.f32 %v4107_v52 }
0x14ca   :  { %5518 = vpow2.f32 %v4108_v4 }
0x14cb   :  { %5520 = vpow2.f32 %v4109_v27 }
0x14d1   :  { %v5515_v49 = vpop.eup %5514 }
0x14d2   :  { %v3008_v8 = vadd.f32 1.0, %v5515_v49 }
0x14d3   :  { %v5517_v26 = vpop.eup %5516 }
0x14d4   :  { %5522 = vrcp.f32 %v3008_v8  ;;  %v3009_v55 = vadd.f32 1.0, %v5517_v26  ;;  %v5519_v58 = vpop.eup %5518 }
0x14d5   :  { %v5521_v13 = vpop.eup %5520  ;;  %v3022_v40 = vadd.f32 1.0, %v5519_v58 }
0x14d6   :  { %5524 = vrcp.f32 %v3009_v55  ;;  %v3023_v29 = vadd.f32 1.0, %v5521_v13 }
0x14d7   :  { %5526 = vrcp.f32 %v3022_v40 }
0x14d8   :  { %5528 = vrcp.f32 %v3023_v29 }
0x14de   :  { %v5523_v48 = vpop.eup %5522 }
0x14df   :  { %v3028_v38 = vmul.f32 %v5523_v48, %v2994_v63 }
0x14e0   :  { %v5525_v46 = vpop.eup %5524 }
0x14e1   :  { %v3030_v52 = vadd.f32 %v3028_v38, %v6036_v17  ;;  %v3029_v51 = vmul.f32 %v5525_v46, %v2997_v24  ;;  %v5527_v4 = vpop.eup %5526 }
0x14e2   :  { %v5529_v27 = vpop.eup %5528  ;;  %v3034_v49 = vsub.f32 1.0, %v5527_v4  ;;  %v3038_v58 = vmul.f32 %v5527_v4, %v7393_v31 }
0x14e3   :  { %5530 = vtanh.f32 %v3030_v52  ;;  %v3031_v26 = vadd.f32 %v3029_v51, %v6039_v22  ;;  %v3035_v50 = vsub.f32 1.0, %v5529_v27  ;;  %v3039_v42 = vmul.f32 %v5529_v27, %v7395_v61 }
0x14e5   :  { %5532 = vtanh.f32 %v3031_v26 }
0x14ed   :  { %v5531_v8 = vpop.eup %5530 }
0x14ee   :  { %v3036_v55 = vmul.f32 %v5531_v8, %v3034_v49 }
0x14ef   :  { %v5533_v13 = vpop.eup %5532 }
0x14f0   :  { %v3037_v40 = vmul.f32 %v5533_v13, %v3035_v50  ;;  %v7448_v63 = vadd.f32 %v3038_v58, %v3036_v55 }
0x14f2   :  { %v7450_v38 = vadd.f32 %v3039_v42, %v3037_v40 }
0x14f4   :  { %7997 = vst [vmem:[#allocation33_spill] sm:$0xff] %v7450_v38  ;;  %v3044_v29 = vpack.c.bf16 %v7450_v38, %v7448_v63 }
0x14f6   :  { %3078 = vmatmul.mubr.bf16.vlgmr.msra.gmra.mrb[84].mxu0 %v3044_v29  ;;  %4852 = vmatmul.mubr.bf16.vlgmr.msra.gmra.mrb[84].mxu1 %v3044_v29 }
0x14f7   :  { %3175 = vmatpush1.bf16.msra.mxu0 %v7177_v11  ;;  %4856 = vmatpush3.bf16.msra.mxu1 %v7183_v56 }
0x14f8   :  { %3176 = vmatprep.subr.bf16.mxu0 %v7189_v28  ;;  %4857 = vmatprep.subr.bf16.mxu1 %v7975_v53 }
0x14f9   :  { %3206 = vmatprep.mubr.bf16.mxu0 %v7976_v54  ;;  %4871 = vmatprep.mubr.msk.bf16.mxu1 %vm5688_vm0, %v7975_v53 }
0x14fb   :  { %3177 = vmatpush1.bf16.msra.mxu0 %v7199_v33  ;;  %4858 = vmatpush3.bf16.msra.mxu1 %v7205_v2 }
0x14fc   :  { %3178 = vmatprep.subr.bf16.mxu0 %v7211_v25  ;;  %4859 = vmatprep.subr.bf16.mxu1 %v7975_v53 }
0x14ff   :  { %3179 = vmatpush1.bf16.msra.mxu0 %v7218_v21  ;;  %4860 = vmatpush3.bf16.msra.mxu1 %v7224_v16 }
0x1500   :  { %3180 = vmatprep.subr.bf16.mxu0 %v7230_v12  ;;  %4861 = vmatprep.subr.bf16.mxu1 %v7975_v53 }
0x1503   :  { %3181 = vmatpush1.bf16.msra.mxu0 %v7237_v3  ;;  %4862 = vmatpush3.bf16.msra.mxu1 %v7243_v20 }
0x1504   :  { %3182 = vmatprep.subr.bf16.mxu0 %v7249_v0  ;;  %4863 = vmatprep.subr.bf16.mxu1 %v7975_v53 }
0x1507   :  { %3183 = vmatpush1.bf16.msra.mxu0 %v7256_v39  ;;  %4864 = vmatpush3.bf16.msra.mxu1 %v7262_v36 }
0x1508   :  { %3184 = vmatprep.subr.bf16.mxu0 %v7268_v35  ;;  %4865 = vmatprep.subr.bf16.mxu1 %v7975_v53 }
0x150b   :  { %3185 = vmatpush1.bf16.msra.mxu0 %v7275_v32  ;;  %4866 = vmatpush3.bf16.msra.mxu1 %v7281_v1 }
0x150c   :  { %3186 = vmatprep.subr.bf16.mxu0 %v7287_v62  ;;  %4867 = vmatprep.subr.bf16.mxu1 %v7975_v53 }
0x150f   :  { %3187 = vmatpush1.bf16.msra.mxu0 %v7294_v18  ;;  %4868 = vmatpush3.bf16.msra.mxu1 %v7300_v14 }
0x1510   :  { %3188 = vmatprep.subr.bf16.mxu0 %v7306_v37  ;;  %4869 = vmatprep.subr.bf16.mxu1 %v7975_v53 }
0x1513   :  { %3189 = vmatpush1.bf16.msra.mxu0 %v7313_v41  ;;  %4870 = vmatpush3.bf16.msra.mxu1 %v7319_v43 }
0x1514   :  { %3303 = vmatprep.subr.bf16.mxu0 %v7150_v47  ;;  %4875 = vmatprep.subr.bf16.mxu1 %v7975_v53 }
0x15c9   :  { %v3079_v48 = vpop.f32.mrb[84].mxu0  ;;  %v3122_v24 = vpop.f32.mrb[84].mxu1 }
0x15ca   :  { %v3080_v46 = vadd.f32 %v3079_v48, %v6013_v6  ;;  %v3081_v52 = vpop.f32.mrb[85].mxu0  ;;  %v4853_v51 = vpop.f32.mrb[85].mxu1 }
0x15cb   :  { %v3082_v26 = vadd.f32 %v3081_v52, %v6015_v7  ;;  %v3083_v4 = vpop.f32.mrb[86].mxu0  ;;  %v3125_v27 = vpop.f32.mrb[86].mxu1 }
0x15cc   :  { %v3129_v49 = vadd.f32 %v3080_v46, %v6017_v10  ;;  %v3084_v8 = vadd.f32 %v3083_v4, %v6013_v6  ;;  %v3085_v50 = vpop.f32.mrb[87].mxu0  ;;  %v4854_v55 = vpop.f32.mrb[87].mxu1 }
0x15cd   :  { %v3086_v58 = vadd.f32 %v3085_v50, %v6015_v7  ;;  %v3143_v42 = vadd.f32 %v3082_v26, %v6025_v19  ;;  %v3123_v26 = vadd.f32 %v3122_v24, %v6033_v5 }
0x15ce   :  { %v4110_v13 = vmul.f32 -1.442695, %v3129_v49  ;;  %v3130_v40 = vadd.f32 %v3084_v8, %v6021_v15 }
0x15cf   :  { %v3144_v48 = vadd.f32 %v3086_v58, %v6029_v23  ;;  %v4112_v52 = vmul.f32 -1.442695, %v3143_v42  ;;  %v3126_v58 = vadd.f32 %v3125_v27, %v6033_v5 }
0x15d0   :  { %5534 = vpow2.f32 %v4110_v13  ;;  %v4111_v29 = vmul.f32 -1.442695, %v3130_v40 }
0x15d1   :  { %v4113_v51 = vmul.f32 -1.442695, %v3144_v48 }
0x15d2   :  { %5536 = vpow2.f32 %v4111_v29 }
0x15d3   :  { %5538 = vpow2.f32 %v4112_v52 }
0x15d4   :  { %5540 = vpow2.f32 %v4113_v51 }
0x15da   :  { %v5535_v46 = vpop.eup %5534 }
0x15db   :  { %v3137_v4 = vadd.f32 1.0, %v5535_v46 }
0x15dc   :  { %v5537_v61 = vpop.eup %5536 }
0x15dd   :  { %5542 = vrcp.f32 %v3137_v4  ;;  %v3138_v55 = vadd.f32 1.0, %v5537_v61  ;;  %v5539_v49 = vpop.eup %5538 }
0x15de   :  { %v5541_v50 = vpop.eup %5540  ;;  %v3151_v8 = vadd.f32 1.0, %v5539_v49 }
0x15df   :  { %5544 = vrcp.f32 %v3138_v55  ;;  %v3152_v13 = vadd.f32 1.0, %v5541_v50 }
0x15e0   :  { %5546 = vrcp.f32 %v3151_v8 }
0x15e1   :  { %5548 = vrcp.f32 %v3152_v13 }
0x15e7   :  { %v5543_v40 = vpop.eup %5542 }
0x15e8   :  { %v3157_v31 = vmul.f32 %v5543_v40, %v3123_v26 }
0x15e9   :  { %v5545_v42 = vpop.eup %5544 }
0x15ea   :  { %v3159_v29 = vadd.f32 %v3157_v31, %v6036_v17  ;;  %v3158_v48 = vmul.f32 %v5545_v42, %v3126_v58  ;;  %v5547_v52 = vpop.eup %5546 }
0x15eb   :  { %v5549_v51 = vpop.eup %5548  ;;  %v3163_v46 = vsub.f32 1.0, %v5547_v52  ;;  %v3167_v49 = vmul.f32 %v5547_v52, %v7448_v63 }
0x15ec   :  { %5550 = vtanh.f32 %v3159_v29  ;;  %v3160_v61 = vadd.f32 %v3158_v48, %v6039_v22  ;;  %v3164_v24 = vsub.f32 1.0, %v5549_v51  ;;  %v3168_v27 = vmul.f32 %v5549_v51, %v7450_v38 }
0x15ee   :  { %5552 = vtanh.f32 %v3160_v61 }
0x15f6   :  { %v5551_v4 = vpop.eup %5550 }
0x15f7   :  { %v3165_v55 = vmul.f32 %v5551_v4, %v3163_v46 }
0x15f8   :  { %v5553_v50 = vpop.eup %5552 }
0x15f9   :  { %v3166_v8 = vmul.f32 %v5553_v50, %v3164_v24  ;;  %v7503_v26 = vadd.f32 %v3167_v49, %v3165_v55 }
0x15fb   :  { %v7505_v31 = vadd.f32 %v3168_v27, %v3166_v8 }
0x15fd   :  { %v3173_v13 = vpack.c.bf16 %v7505_v31, %v7503_v26 }
0x15ff   :  { %3207 = vmatmul.mubr.bf16.vlgmr.msra.gmra.mrb[88].mxu0 %v3173_v13  ;;  %4872 = vmatmul.mubr.bf16.vlgmr.msra.gmra.mrb[88].mxu1 %v3173_v13 }
0x1600   :  { %3304 = vmatpush1.bf16.msra.mxu0 %v7177_v11  ;;  %4876 = vmatpush3.bf16.msra.mxu1 %v7183_v56 }
0x1601   :  { %3305 = vmatprep.subr.bf16.mxu0 %v7189_v28  ;;  %4877 = vmatprep.subr.bf16.mxu1 %v7975_v53 }
0x1602   :  { %3335 = vmatprep.mubr.bf16.mxu0 %v7976_v54  ;;  %4891 = vmatprep.mubr.msk.bf16.mxu1 %vm5688_vm0, %v7975_v53 }
0x1604   :  { %3306 = vmatpush1.bf16.msra.mxu0 %v7199_v33  ;;  %4878 = vmatpush3.bf16.msra.mxu1 %v7205_v2 }
0x1605   :  { %3307 = vmatprep.subr.bf16.mxu0 %v7211_v25  ;;  %4879 = vmatprep.subr.bf16.mxu1 %v7975_v53 }
0x1608   :  { %3308 = vmatpush1.bf16.msra.mxu0 %v7218_v21  ;;  %4880 = vmatpush3.bf16.msra.mxu1 %v7224_v16 }
0x1609   :  { %3309 = vmatprep.subr.bf16.mxu0 %v7230_v12  ;;  %4881 = vmatprep.subr.bf16.mxu1 %v7975_v53 }
0x160c   :  { %3310 = vmatpush1.bf16.msra.mxu0 %v7237_v3  ;;  %4882 = vmatpush3.bf16.msra.mxu1 %v7243_v20 }
0x160d   :  { %3311 = vmatprep.subr.bf16.mxu0 %v7249_v0  ;;  %4883 = vmatprep.subr.bf16.mxu1 %v7975_v53 }
0x1610   :  { %3312 = vmatpush1.bf16.msra.mxu0 %v7256_v39  ;;  %4884 = vmatpush3.bf16.msra.mxu1 %v7262_v36 }
0x1611   :  { %3313 = vmatprep.subr.bf16.mxu0 %v7268_v35  ;;  %4885 = vmatprep.subr.bf16.mxu1 %v7975_v53 }
0x1614   :  { %3314 = vmatpush1.bf16.msra.mxu0 %v7275_v32  ;;  %4886 = vmatpush3.bf16.msra.mxu1 %v7281_v1 }
0x1615   :  { %3315 = vmatprep.subr.bf16.mxu0 %v7287_v62  ;;  %4887 = vmatprep.subr.bf16.mxu1 %v7975_v53 }
0x1618   :  { %3316 = vmatpush1.bf16.msra.mxu0 %v7294_v18  ;;  %4888 = vmatpush3.bf16.msra.mxu1 %v7300_v14 }
0x1619   :  { %3317 = vmatprep.subr.bf16.mxu0 %v7306_v37  ;;  %4889 = vmatprep.subr.bf16.mxu1 %v7975_v53 }
0x161c   :  { %3318 = vmatpush1.bf16.msra.mxu0 %v7313_v41  ;;  %4890 = vmatpush3.bf16.msra.mxu1 %v7319_v43 }
0x161d   :  { %3432 = vmatprep.subr.bf16.mxu0 %v7150_v47  ;;  %4895 = vmatprep.subr.bf16.mxu1 %v7975_v53 }
0x16d2   :  { %v3208_v40 = vpop.f32.mrb[88].mxu0  ;;  %v3251_v58 = vpop.f32.mrb[88].mxu1 }
0x16d3   :  { %v3209_v42 = vadd.f32 %v3208_v40, %v6013_v6  ;;  %v3210_v29 = vpop.f32.mrb[89].mxu0  ;;  %v4873_v48 = vpop.f32.mrb[89].mxu1 }
0x16d4   :  { %v3211_v61 = vadd.f32 %v3210_v29, %v6015_v7  ;;  %v3212_v52 = vpop.f32.mrb[90].mxu0  ;;  %v3254_v51 = vpop.f32.mrb[90].mxu1 }
0x16d5   :  { %v3258_v46 = vadd.f32 %v3209_v42, %v6017_v10  ;;  %v3213_v4 = vadd.f32 %v3212_v52, %v6013_v6  ;;  %v3214_v24 = vpop.f32.mrb[91].mxu0  ;;  %v4874_v55 = vpop.f32.mrb[91].mxu1 }
0x16d6   :  { %v3215_v47 = vadd.f32 %v3214_v24, %v6015_v7  ;;  %v3272_v8 = vadd.f32 %v3211_v61, %v6025_v19  ;;  %v3252_v61 = vadd.f32 %v3251_v58, %v6033_v5 }
0x16d7   :  { %v4114_v49 = vmul.f32 -1.442695, %v3258_v46  ;;  %v3259_v50 = vadd.f32 %v3213_v4, %v6021_v15 }
0x16d8   :  { %v3273_v13 = vadd.f32 %v3215_v47, %v6029_v23  ;;  %v4116_v40 = vmul.f32 -1.442695, %v3272_v8  ;;  %v3255_v47 = vadd.f32 %v3254_v51, %v6033_v5 }
0x16d9   :  { %5554 = vpow2.f32 %v4114_v49  ;;  %v4115_v27 = vmul.f32 -1.442695, %v3259_v50 }
0x16da   :  { %v4117_v29 = vmul.f32 -1.442695, %v3273_v13 }
0x16db   :  { %5556 = vpow2.f32 %v4115_v27 }
0x16dc   :  { %5558 = vpow2.f32 %v4116_v40 }
0x16dd   :  { %5560 = vpow2.f32 %v4117_v29 }
0x16e3   :  { %v5555_v42 = vpop.eup %5554 }
0x16e4   :  { %v3266_v48 = vadd.f32 1.0, %v5555_v42 }
0x16e5   :  { %v5557_v52 = vpop.eup %5556 }
0x16e6   :  { %5562 = vrcp.f32 %v3266_v48  ;;  %v3267_v55 = vadd.f32 1.0, %v5557_v52  ;;  %v5559_v46 = vpop.eup %5558 }
0x16e7   :  { %v5561_v24 = vpop.eup %5560  ;;  %v3280_v4 = vadd.f32 1.0, %v5559_v46 }
0x16e8   :  { %5564 = vrcp.f32 %v3267_v55  ;;  %v3281_v49 = vadd.f32 1.0, %v5561_v24 }
0x16e9   :  { %5566 = vrcp.f32 %v3280_v4 }
0x16ea   :  { %5568 = vrcp.f32 %v3281_v49 }
0x16f0   :  { %v5563_v50 = vpop.eup %5562 }
0x16f1   :  { %v3286_v38 = vmul.f32 %v5563_v50, %v3252_v61 }
0x16f2   :  { %v5565_v8 = vpop.eup %5564 }
0x16f3   :  { %v3288_v27 = vadd.f32 %v3286_v38, %v6036_v17  ;;  %v3287_v13 = vmul.f32 %v5565_v8, %v3255_v47  ;;  %v5567_v29 = vpop.eup %5566 }
0x16f4   :  { %v5569_v42 = vpop.eup %5568  ;;  %v3292_v48 = vsub.f32 1.0, %v5567_v29  ;;  %v3296_v46 = vmul.f32 %v5567_v29, %v7503_v26 }
0x16f5   :  { %5570 = vtanh.f32 %v3288_v27  ;;  %v3289_v40 = vadd.f32 %v3287_v13, %v6039_v22  ;;  %v3293_v58 = vsub.f32 1.0, %v5569_v42  ;;  %v3297_v51 = vmul.f32 %v5569_v42, %v7505_v31 }
0x16f7   :  { %5572 = vtanh.f32 %v3289_v40 }
0x16ff   :  { %v5571_v52 = vpop.eup %5570 }
0x1700   :  { %v3294_v55 = vmul.f32 %v5571_v52, %v3292_v48 }
0x1701   :  { %v5573_v24 = vpop.eup %5572 }
0x1702   :  { %v3295_v4 = vmul.f32 %v5573_v24, %v3293_v58  ;;  %v7558_v61 = vadd.f32 %v3296_v46, %v3294_v55 }
0x1704   :  { %v7560_v38 = vadd.f32 %v3297_v51, %v3295_v4 }
0x1706   :  { %v3302_v49 = vpack.c.bf16 %v7560_v38, %v7558_v61 }
0x1708   :  { %3336 = vmatmul.mubr.bf16.vlgmr.msra.gmra.mrb[92].mxu0 %v3302_v49  ;;  %4892 = vmatmul.mubr.bf16.vlgmr.msra.gmra.mrb[92].mxu1 %v3302_v49 }
0x1709   :  { %3433 = vmatpush1.bf16.msra.mxu0 %v7177_v11  ;;  %4896 = vmatpush3.bf16.msra.mxu1 %v7183_v56  ;;  %v3609_v11 = vld [vmem:[%s7928_s5 + $0x8] sm:$0xff] }
0x170a   :  { %3434 = vmatprep.subr.bf16.mxu0 %v7189_v28  ;;  %4897 = vmatprep.subr.bf16.mxu1 %v7975_v53 }
0x170b   :  { %3464 = vmatprep.mubr.bf16.mxu0 %v7976_v54  ;;  %4911 = vmatprep.mubr.msk.bf16.mxu1 %vm5688_vm0, %v7975_v53  ;;  %v3608_v54 = vld [vmem:[%s7928_s5] sm:$0xff] }
0x170c   :  { %v7603_v56 = vpack.c.bf16 %v3609_v11, %v3608_v54 }
0x170d   :  { %3435 = vmatpush1.bf16.msra.mxu0 %v7199_v33  ;;  %4898 = vmatpush3.bf16.msra.mxu1 %v7205_v2 }
0x170e   :  { %3436 = vmatprep.subr.bf16.mxu0 %v7211_v25  ;;  %4899 = vmatprep.subr.bf16.mxu1 %v7975_v53 }
0x1711   :  { %3437 = vmatpush1.bf16.msra.mxu0 %v7218_v21  ;;  %4900 = vmatpush3.bf16.msra.mxu1 %v7224_v16 }
0x1712   :  { %3438 = vmatprep.subr.bf16.mxu0 %v7230_v12  ;;  %4901 = vmatprep.subr.bf16.mxu1 %v7975_v53 }
0x1715   :  { %3439 = vmatpush1.bf16.msra.mxu0 %v7237_v3  ;;  %4902 = vmatpush3.bf16.msra.mxu1 %v7243_v20 }
0x1716   :  { %3440 = vmatprep.subr.bf16.mxu0 %v7249_v0  ;;  %4903 = vmatprep.subr.bf16.mxu1 %v7975_v53 }
0x1719   :  { %3441 = vmatpush1.bf16.msra.mxu0 %v7256_v39  ;;  %4904 = vmatpush3.bf16.msra.mxu1 %v7262_v36 }
0x171a   :  { %3442 = vmatprep.subr.bf16.mxu0 %v7268_v35  ;;  %4905 = vmatprep.subr.bf16.mxu1 %v7975_v53 }
0x171d   :  { %3443 = vmatpush1.bf16.msra.mxu0 %v7275_v32  ;;  %4906 = vmatpush3.bf16.msra.mxu1 %v7281_v1 }
0x171e   :  { %3444 = vmatprep.subr.bf16.mxu0 %v7287_v62  ;;  %4907 = vmatprep.subr.bf16.mxu1 %v7975_v53 }
0x1721   :  { %3445 = vmatpush1.bf16.msra.mxu0 %v7294_v18  ;;  %4908 = vmatpush3.bf16.msra.mxu1 %v7300_v14 }
0x1722   :  { %3446 = vmatprep.subr.bf16.mxu0 %v7306_v37  ;;  %4909 = vmatprep.subr.bf16.mxu1 %v7975_v53 }
0x1725   :  { %3447 = vmatpush1.bf16.msra.mxu0 %v7313_v41  ;;  %4910 = vmatpush3.bf16.msra.mxu1 %v7319_v43 }
0x1726   :  { %5020 = vmatprep.subr.bf16.mxu0 %v7603_v56  ;;  %5051 = vmatprep.subr.bf16.mxu1 %v7603_v56 }
0x17db   :  { %v3337_v28 = vpop.f32.mrb[92].mxu0  ;;  %v3380_v53 = vpop.f32.mrb[92].mxu1 }
0x17dc   :  { %v3338_v33 = vadd.f32 %v3337_v28, %v6013_v6  ;;  %v3339_v2 = vpop.f32.mrb[93].mxu0  ;;  %v4893_v25 = vpop.f32.mrb[93].mxu1  ;;  %v3381_v40 = vadd.f32 %v3380_v53, %v6033_v5 }
0x17dd   :  { %v3340_v21 = vadd.f32 %v3339_v2, %v6015_v7  ;;  %v3341_v16 = vpop.f32.mrb[94].mxu0  ;;  %v3383_v12 = vpop.f32.mrb[94].mxu1 }
0x17de   :  { %v3387_v3 = vadd.f32 %v3338_v33, %v6017_v10  ;;  %v3342_v20 = vadd.f32 %v3341_v16, %v6013_v6  ;;  %v3343_v0 = vpop.f32.mrb[95].mxu0  ;;  %v4894_v39 = vpop.f32.mrb[95].mxu1  ;;  %v3384_v52 = vadd.f32 %v3383_v12, %v6033_v5  ;;  %v3610_v12 = vld [vmem:[%s7928_s5 + $0x10] sm:$0xff] }
0x17df   :  { %v3344_v36 = vadd.f32 %v3343_v0, %v6015_v7  ;;  %v3401_v1 = vadd.f32 %v3340_v21, %v6025_v19  ;;  %v3612_v39 = vld [vmem:[%s7928_s5 + $0x20] sm:$0xff] }
0x17e0   :  { %v4118_v35 = vmul.f32 -1.442695, %v3387_v3  ;;  %v3388_v32 = vadd.f32 %v3342_v20, %v6021_v15  ;;  %v3611_v3 = vld [vmem:[%s7928_s5 + $0x18] sm:$0xff] }
0x17e1   :  { %v3402_v18 = vadd.f32 %v3344_v36, %v6029_v23  ;;  %v4120_v14 = vmul.f32 -1.442695, %v3401_v1  ;;  %v5023_v0 = vpack.c.bf16 %v3611_v3, %v3610_v12  ;;  %v3613_v36 = vld [vmem:[%s7928_s5 + $0x28] sm:$0xff]  ;;  %v3615_v1 = vld [vmem:[%s7928_s5 + $0x38] sm:$0xff] }
0x17e2   :  { %5574 = vpow2.f32 %v4118_v35  ;;  %v4119_v62 = vmul.f32 -1.442695, %v3388_v32  ;;  %v5027_v35 = vpack.c.bf16 %v3613_v36, %v3612_v39  ;;  %v3614_v32 = vld [vmem:[%s7928_s5 + $0x30] sm:$0xff]  ;;  %v8024_v12 = vld [vmem:[#allocation18_spill] sm:$0xff]  ;;  %v8026_v3 = vld [vmem:[#allocation20_spill] sm:$0xff] }
0x17e3   :  { %v4121_v37 = vmul.f32 -1.442695, %v3402_v18  ;;  %v3618_v18 = vld [vmem:[%s7928_s5 + $0x50] sm:$0xff] }
0x17e4   :  { %5576 = vpow2.f32 %v4119_v62 }
0x17e5   :  { %5578 = vpow2.f32 %v4120_v14  ;;  %v3619_v14 = vld [vmem:[%s7928_s5 + $0x58] sm:$0xff] }
0x17e6   :  { %5580 = vpow2.f32 %v4121_v37  ;;  %v5039_v37 = vpack.c.bf16 %v3619_v14, %v3618_v18 }
0x17ec   :  { %v5575_v41 = vpop.eup %5574 }
0x17ed   :  { %v3395_v43 = vadd.f32 1.0, %v5575_v41  ;;  %v3620_v41 = vld [vmem:[%s7928_s5 + $0x60] sm:$0xff] }
0x17ee   :  { %v5577_v50 = vpop.eup %5576 }
0x17ef   :  { %5582 = vrcp.f32 %v3395_v43  ;;  %v3396_v47 = vadd.f32 1.0, %v5577_v50  ;;  %v5579_v8 = vpop.eup %5578  ;;  %v3621_v43 = vld [vmem:[%s7928_s5 + $0x68] sm:$0xff] }
0x17f0   :  { %v5581_v27 = vpop.eup %5580  ;;  %v3409_v13 = vadd.f32 1.0, %v5579_v8  ;;  %v5043_v50 = vpack.c.bf16 %v3621_v43, %v3620_v41  ;;  %v3623_v8 = vld [vmem:[%s7928_s5 + $0x78] sm:$0xff] }
0x17f1   :  { %5584 = vrcp.f32 %v3396_v47  ;;  %v3410_v29 = vadd.f32 1.0, %v5581_v27  ;;  %v3622_v47 = vld [vmem:[%s7928_s5 + $0x70] sm:$0xff] }
0x17f2   :  { %5586 = vrcp.f32 %v3409_v13  ;;  %v5047_v27 = vpack.c.bf16 %v3623_v8, %v3622_v47  ;;  %v7998_v13 = vld [vmem:[#allocation3_spill] sm:$0xff] }
0x17f3   :  { %5588 = vrcp.f32 %v3410_v29  ;;  %v8000_v29 = vld [vmem:[#allocation4_spill] sm:$0xff] }
0x17f9   :  { %v5583_v42 = vpop.eup %5582 }
0x17fa   :  { %v3415_v48 = vmul.f32 %v5583_v42, %v3381_v40  ;;  %v7999_v40 = vld [vmem:[#allocation23_spill] sm:$0xff]  ;;  %v8001_v42 = vld [vmem:[#allocation24_spill] sm:$0xff] }
0x17fb   :  { %v5585_v58 = vpop.eup %5584 }
0x17fc   :  { %v3417_v55 = vadd.f32 %v3415_v48, %v6036_v17  ;;  %v3416_v46 = vmul.f32 %v5585_v58, %v3384_v52  ;;  %v5587_v4 = vpop.eup %5586  ;;  %v8002_v48 = vld [vmem:[#allocation5_spill] sm:$0xff]  ;;  %v8009_v52 = vld [vmem:[#allocation28_spill] sm:$0xff] }
0x17fd   :  { %v5589_v51 = vpop.eup %5588  ;;  %v3421_v49 = vsub.f32 1.0, %v5587_v4  ;;  %v3425_v53 = vmul.f32 %v5587_v4, %v7558_v61  ;;  %v8010_v58 = vld [vmem:[#allocation9_spill] sm:$0xff]  ;;  %v8014_v4 = vld [vmem:[#allocation11_spill] sm:$0xff] }
0x17fe   :  { %5590 = vtanh.f32 %v3417_v55  ;;  %v3418_v24 = vadd.f32 %v3416_v46, %v6039_v22  ;;  %v3422_v11 = vsub.f32 1.0, %v5589_v51  ;;  %v3426_v25 = vmul.f32 %v5589_v51, %v7560_v38  ;;  %v8011_v55 = vld [vmem:[#allocation29_spill] sm:$0xff]  ;;  %v8012_v46 = vld [vmem:[#allocation10_spill] sm:$0xff]  ;;  %v8015_v51 = vld [vmem:[#allocation31_spill] sm:$0xff] }
0x1800   :  { %5592 = vtanh.f32 %v3418_v24  ;;  %v8013_v24 = vld [vmem:[#allocation30_spill] sm:$0xff] }
0x1808   :  { %v5591_v54 = vpop.eup %5590 }
0x1809   :  { %v3423_v28 = vmul.f32 %v5591_v54, %v3421_v49  ;;  %v8016_v49 = vld [vmem:[#allocation12_spill] sm:$0xff] }
0x180a   :  { %v5593_v33 = vpop.eup %5592  ;;  %v8017_v54 = vld [vmem:[#allocation32_spill] sm:$0xff] }
0x180b   :  { %v3424_v2 = vmul.f32 %v5593_v33, %v3422_v11  ;;  %v7621_v21 = vadd.f32 %v3425_v53, %v3423_v28  ;;  %v8018_v11 = vld [vmem:[#allocation13_spill] sm:$0xff]  ;;  %v8019_v28 = vld [vmem:[#allocation14_spill] sm:$0xff]  ;;  %v8021_v33 = vld [vmem:[#allocation15_spill] sm:$0xff] }
0x180c   :  { %v8020_v53 = vld [vmem:[#allocation33_spill] sm:$0xff] }
0x180d   :  { %v7623_v16 = vadd.f32 %v3426_v25, %v3424_v2  ;;  %v8022_v2 = vld [vmem:[#allocation16_spill] sm:$0xff]  ;;  %v8023_v25 = vld [vmem:[#allocation17_spill] sm:$0xff] }
0x180f   :  { %v3431_v20 = vpack.c.bf16 %v7623_v16, %v7621_v21 }
0x1811   :  { %3465 = vmatmul.mubr.bf16.vlgmr.msra.gmra.mrb[96].mxu0 %v3431_v20  ;;  %4912 = vmatmul.mubr.bf16.vlgmr.msra.gmra.mrb[96].mxu1 %v3431_v20  ;;  %v8028_v20 = vld [vmem:[#allocation22_spill] sm:$0xff] }
0x1812   :  { %5022 = vmatpush3.bf16.msra.mxu0 %v7603_v56  ;;  %5059 = vmatpush3.bf16.msra.mxu1 %v7603_v56  ;;  %v5031_v56 = vpack.c.bf16 %v3615_v1, %v3614_v32 }
0x1813   :  { %4947 = vmatprep.mubr.f32.mxu0 %v6043_v59  ;;  %4983 = vmatprep.mubr.f32.mxu1 %v6943_v34  ;;  %v3616_v59 = vld [vmem:[%s7928_s5 + $0x40] sm:$0xff]  ;;  %v3617_v34 = vld [vmem:[%s7928_s5 + $0x48] sm:$0xff] }
0x1814   :  { %5024 = vmatprep.subr.bf16.mxu0 %v5023_v0  ;;  %5052 = vmatprep.subr.bf16.mxu1 %v5023_v0  ;;  %v5035_v62 = vpack.c.bf16 %v3617_v34, %v3616_v59 }
0x1816   :  { %5026 = vmatpush3.bf16.msra.mxu0 %v5023_v0  ;;  %5060 = vmatpush3.bf16.msra.mxu1 %v5023_v0 }
0x1817   :  { %5028 = vmatprep.subr.bf16.mxu0 %v5027_v35  ;;  %5053 = vmatprep.subr.bf16.mxu1 %v5027_v35 }
0x181a   :  { %5030 = vmatpush3.bf16.msra.mxu0 %v5027_v35  ;;  %5061 = vmatpush3.bf16.msra.mxu1 %v5027_v35 }
0x181b   :  { %5032 = vmatprep.subr.bf16.mxu0 %v5031_v56  ;;  %5054 = vmatprep.subr.bf16.mxu1 %v5031_v56 }
0x181e   :  { %5034 = vmatpush3.bf16.msra.mxu0 %v5031_v56  ;;  %5062 = vmatpush3.bf16.msra.mxu1 %v5031_v56 }
0x181f   :  { %5036 = vmatprep.subr.bf16.mxu0 %v5035_v62  ;;  %5055 = vmatprep.subr.bf16.mxu1 %v5035_v62 }
0x1822   :  { %5038 = vmatpush3.bf16.msra.mxu0 %v5035_v62  ;;  %5063 = vmatpush3.bf16.msra.mxu1 %v5035_v62 }
0x1823   :  { %5040 = vmatprep.subr.bf16.mxu0 %v5039_v37  ;;  %5056 = vmatprep.subr.bf16.mxu1 %v5039_v37 }
0x1826   :  { %5042 = vmatpush3.bf16.msra.mxu0 %v5039_v37  ;;  %5064 = vmatpush3.bf16.msra.mxu1 %v5039_v37 }
0x1827   :  { %5044 = vmatprep.subr.bf16.mxu0 %v5043_v50  ;;  %5057 = vmatprep.subr.bf16.mxu1 %v5043_v50 }
0x182a   :  { %5046 = vmatpush3.bf16.msra.mxu0 %v5043_v50  ;;  %5065 = vmatpush3.bf16.msra.mxu1 %v5043_v50 }
0x182b   :  { %5048 = vmatprep.subr.bf16.mxu0 %v5047_v27  ;;  %5058 = vmatprep.subr.bf16.mxu1 %v5047_v27 }
0x182e   :  { %5050 = vmatpush3.bf16.msra.mxu0 %v5047_v27  ;;  %5066 = vmatpush3.bf16.msra.mxu1 %v5047_v27 }
0x1831   :  { %4948 = vmatmul.mubr.f32.vlgmr.msra.gmra.mrb[100].mxu0 %v6045_v60  ;;  %4984 = vmatmul.mubr.f32.vlgmr.msra.gmra.mrb[100].mxu1 %v6945_v44  ;;  %v8003_v60 = vld [vmem:[#allocation25_spill] sm:$0xff]  ;;  %v8004_v44 = vld [vmem:[#allocation6_spill] sm:$0xff] }
0x1832   :  { %4950 = vmatprep.mubr.f32.mxu0 %v6098_v57  ;;  %4986 = vmatprep.mubr.f32.mxu1 %v6998_v45  ;;  %v8005_v57 = vld [vmem:[#allocation26_spill] sm:$0xff]  ;;  %v8006_v45 = vld [vmem:[#allocation7_spill] sm:$0xff] }
0x1835   :  { %4951 = vmatmul.mubr.f32.gmra.mrb[102].mxu0 %v6100_v30  ;;  %4987 = vmatmul.mubr.f32.gmra.mrb[102].mxu1 %v7000_v9  ;;  %v8007_v30 = vld [vmem:[#allocation27_spill] sm:$0xff]  ;;  %v8008_v9 = vld [vmem:[#allocation8_spill] sm:$0xff] }
0x1836   :  { %4953 = vmatprep.mubr.f32.mxu0 %v7998_v13  ;;  %4989 = vmatprep.mubr.f32.mxu1 %v7999_v40 }
0x1839   :  { %4954 = vmatmul.mubr.f32.gmra.mrb[104].mxu0 %v8000_v29  ;;  %4990 = vmatmul.mubr.f32.gmra.mrb[104].mxu1 %v8001_v42 }
0x183a   :  { %4956 = vmatprep.mubr.f32.mxu0 %v8002_v48  ;;  %4992 = vmatprep.mubr.f32.mxu1 %v8003_v60 }
0x183d   :  { %4957 = vmatmul.mubr.f32.gmra.mrb[106].mxu0 %v8004_v44  ;;  %4993 = vmatmul.mubr.f32.gmra.mrb[106].mxu1 %v8005_v57 }
0x183e   :  { %4959 = vmatprep.mubr.f32.mxu0 %v8006_v45  ;;  %4995 = vmatprep.mubr.f32.mxu1 %v8007_v30 }
0x1841   :  { %4960 = vmatmul.mubr.f32.gmra.mrb[108].mxu0 %v8008_v9  ;;  %4996 = vmatmul.mubr.f32.gmra.mrb[108].mxu1 %v8009_v52 }
0x1842   :  { %4962 = vmatprep.mubr.f32.mxu0 %v8010_v58  ;;  %4998 = vmatprep.mubr.f32.mxu1 %v8011_v55 }
0x1845   :  { %4963 = vmatmul.mubr.f32.gmra.mrb[110].mxu0 %v8012_v46  ;;  %4999 = vmatmul.mubr.f32.gmra.mrb[110].mxu1 %v8013_v24 }
0x1846   :  { %4965 = vmatprep.mubr.f32.mxu0 %v8014_v4  ;;  %5001 = vmatprep.mubr.f32.mxu1 %v8015_v51 }
0x1849   :  { %4966 = vmatmul.mubr.f32.gmra.mrb[112].mxu0 %v8016_v49  ;;  %5002 = vmatmul.mubr.f32.gmra.mrb[112].mxu1 %v8017_v54 }
0x184a   :  { %4968 = vmatprep.mubr.f32.mxu0 %v8018_v11  ;;  %5004 = vmatprep.mubr.f32.mxu1 %v7448_v63  ;;  %v8025_v63 = vld [vmem:[#allocation19_spill] sm:$0xff] }
0x184d   :  { %4969 = vmatmul.mubr.f32.gmra.mrb[114].mxu0 %v8019_v28  ;;  %5005 = vmatmul.mubr.f32.gmra.mrb[114].mxu1 %v8020_v53 }
0x184e   :  { %4971 = vmatprep.mubr.f32.mxu0 %v8021_v33  ;;  %5007 = vmatprep.mubr.f32.mxu1 %v7503_v26  ;;  %v8027_v26 = vld [vmem:[#allocation21_spill] sm:$0xff] }
0x1851   :  { %4972 = vmatmul.mubr.f32.gmra.mrb[116].mxu0 %v8022_v2  ;;  %5008 = vmatmul.mubr.f32.gmra.mrb[116].mxu1 %v7505_v31 }
0x1852   :  { %4974 = vmatprep.mubr.f32.mxu0 %v8023_v25  ;;  %5010 = vmatprep.mubr.f32.mxu1 %v7558_v61 }
0x1855   :  { %4975 = vmatmul.mubr.f32.gmra.mrb[118].mxu0 %v8024_v12  ;;  %5011 = vmatmul.mubr.f32.gmra.mrb[118].mxu1 %v7560_v38 }
0x1856   :  { %4977 = vmatprep.mubr.f32.mxu0 %v8025_v63  ;;  %5013 = vmatprep.mubr.f32.mxu1 %v7621_v21 }
0x1859   :  { %4978 = vmatmul.mubr.f32.gmra.mrb[120].mxu0 %v8026_v3  ;;  %5014 = vmatmul.mubr.f32.gmra.mrb[120].mxu1 %v7623_v16 }
0x185a   :  { %4980 = vmatprep.mubr.f32.mxu0 %v8027_v26 }
0x185d   :  { %4981 = vmatmul.mubr.f32.gmra.mrb[122].mxu0 %v8028_v20 }
0x18e4   :  { %v3466_v31 = vpop.f32.mrb[96].mxu0  ;;  %v3509_v0 = vpop.f32.mrb[96].mxu1 }
0x18e5   :  { %v3467_v61 = vadd.f32 %v3466_v31, %v6013_v6  ;;  %v3468_v39 = vpop.f32.mrb[97].mxu0  ;;  %v4913_v36 = vpop.f32.mrb[97].mxu1 }
0x18e6   :  { %v3469_v38 = vadd.f32 %v3468_v39, %v6015_v7  ;;  %v3470_v35 = vpop.f32.mrb[98].mxu0  ;;  %v3512_v32 = vpop.f32.mrb[98].mxu1 }
0x18e7   :  { %v3516_v1 = vadd.f32 %v3467_v61, %v6017_v10  ;;  %v3471_v56 = vadd.f32 %v3470_v35, %v6013_v6  ;;  %v3472_v59 = vpop.f32.mrb[99].mxu0  ;;  %v4914_v34 = vpop.f32.mrb[99].mxu1  ;;  %v3513_v42 = vadd.f32 %v3512_v32, %v6033_v5 }
0x18e8   :  { %v3473_v62 = vadd.f32 %v3472_v59, %v6015_v7  ;;  %v3530_v37 = vadd.f32 %v3469_v38, %v6025_v19  ;;  %v3510_v19 = vadd.f32 %v3509_v0, %v6033_v5 }
0x18e9   :  { %v4122_v18 = vmul.f32 -1.442695, %v3516_v1  ;;  %v3517_v14 = vadd.f32 %v3471_v56, %v6021_v15 }
0x18ea   :  { %v3531_v43 = vadd.f32 %v3473_v62, %v6029_v23  ;;  %v4124_v50 = vmul.f32 -1.442695, %v3530_v37 }
0x18eb   :  { %5594 = vpow2.f32 %v4122_v18  ;;  %v4123_v41 = vmul.f32 -1.442695, %v3517_v14 }
0x18ec   :  { %v4125_v47 = vmul.f32 -1.442695, %v3531_v43 }
0x18ed   :  { %5596 = vpow2.f32 %v4123_v41 }
0x18ee   :  { %5598 = vpow2.f32 %v4124_v50 }
0x18ef   :  { %5600 = vpow2.f32 %v4125_v47 }
0x18f5   :  { %v5595_v10 = vpop.eup %5594 }
0x18f6   :  { %v3524_v6 = vadd.f32 1.0, %v5595_v10 }
0x18f7   :  { %v5597_v8 = vpop.eup %5596 }
0x18f8   :  { %5602 = vrcp.f32 %v3524_v6  ;;  %v3525_v27 = vadd.f32 1.0, %v5597_v8  ;;  %v5599_v7 = vpop.eup %5598 }
0x18f9   :  { %v5601_v13 = vpop.eup %5600  ;;  %v3538_v15 = vadd.f32 1.0, %v5599_v7 }
0x18fa   :  { %5604 = vrcp.f32 %v3525_v27  ;;  %v3539_v40 = vadd.f32 1.0, %v5601_v13 }
0x18fb   :  { %5606 = vrcp.f32 %v3538_v15 }
0x18fc   :  { %5608 = vrcp.f32 %v3539_v40 }
0x1902   :  { %v5603_v29 = vpop.eup %5602 }
0x1903   :  { %v3544_v23 = vmul.f32 %v5603_v29, %v3510_v19 }
0x1904   :  { %v5605_v48 = vpop.eup %5604  ;;  %v4949_v60 = vpop.f32.mrb[100].mxu0 }
0x1905   :  { %v4985_v44 = vpop.f32.mrb[100].mxu1  ;;  %v3546_v57 = vadd.f32 %v3544_v23, %v6036_v17  ;;  %v3545_v45 = vmul.f32 %v5605_v48, %v3513_v42  ;;  %3931 = vst.msk [vmem:[%s7929_s6 + $0x8] sm:$0xff] %vm3929_vm1, %v4949_v60  ;;  %v3690_v30 = vpop.f32.mrb[101].mxu0 }
0x1906   :  { %3955 = vst.msk [vmem:[%s7929_s6 + $0xc8] sm:$0xff] %vm3929_vm1, %v4985_v44  ;;  %v3810_v9 = vpop.f32.mrb[101].mxu1  ;;  %3930 = vst.msk [vmem:[%s7929_s6] sm:$0xff] %vm3929_vm1, %v3690_v30  ;;  %v5607_v24 = vpop.eup %5606 }
0x1907   :  { %3954 = vst.msk [vmem:[%s7929_s6 + $0xc0] sm:$0xff] %vm3929_vm1, %v3810_v9  ;;  %5610 = vtanh.f32 %v3546_v57  ;;  %v3547_v5 = vadd.f32 %v3545_v45, %v6039_v22  ;;  %v5609_v49 = vpop.eup %5608  ;;  %v3550_v28 = vsub.f32 1.0, %v5607_v24  ;;  %v3554_v12 = vmul.f32 %v5607_v24, %v7621_v21 }
0x1908   :  { %v4952_v17 = vpop.f32.mrb[102].mxu0  ;;  %v4988_v52 = vpop.f32.mrb[102].mxu1  ;;  %v3551_v63 = vsub.f32 1.0, %v5609_v49  ;;  %v3555_v61 = vmul.f32 %v5609_v49, %v7623_v16 }
0x1909   :  { %5612 = vtanh.f32 %v3547_v5  ;;  %3933 = vst.msk [vmem:[%s7929_s6 + $0x18] sm:$0xff] %vm3929_vm1, %v4952_v17  ;;  %3957 = vst.msk [vmem:[%s7929_s6 + $0xd8] sm:$0xff] %vm3929_vm1, %v4988_v52  ;;  %v3700_v58 = vpop.f32.mrb[103].mxu0  ;;  %v3820_v55 = vpop.f32.mrb[103].mxu1 }
0x190a   :  { %3932 = vst.msk [vmem:[%s7929_s6 + $0x10] sm:$0xff] %vm3929_vm1, %v3700_v58  ;;  %3956 = vst.msk [vmem:[%s7929_s6 + $0xd0] sm:$0xff] %vm3929_vm1, %v3820_v55 }
0x190c   :  { %v4955_v22 = vpop.f32.mrb[104].mxu0  ;;  %v4991_v46 = vpop.f32.mrb[104].mxu1 }
0x190d   :  { %3935 = vst.msk [vmem:[%s7929_s6 + $0x28] sm:$0xff] %vm3929_vm1, %v4955_v22  ;;  %3959 = vst.msk [vmem:[%s7929_s6 + $0xe8] sm:$0xff] %vm3929_vm1, %v4991_v46  ;;  %v3710_v4 = vpop.f32.mrb[105].mxu0  ;;  %v3830_v51 = vpop.f32.mrb[105].mxu1 }
0x190e   :  { %3934 = vst.msk [vmem:[%s7929_s6 + $0x20] sm:$0xff] %vm3929_vm1, %v3710_v4  ;;  %3958 = vst.msk [vmem:[%s7929_s6 + $0xe0] sm:$0xff] %vm3929_vm1, %v3830_v51 }
0x1910   :  { %v4958_v54 = vpop.f32.mrb[106].mxu0  ;;  %v4994_v11 = vpop.f32.mrb[106].mxu1 }
0x1911   :  { %v5611_v53 = vpop.eup %5610  ;;  %3937 = vst.msk [vmem:[%s7929_s6 + $0x38] sm:$0xff] %vm3929_vm1, %v4958_v54  ;;  %3961 = vst.msk [vmem:[%s7929_s6 + $0xf8] sm:$0xff] %vm3929_vm1, %v4994_v11  ;;  %v3720_v33 = vpop.f32.mrb[107].mxu0 }
0x1912   :  { %v3840_v2 = vpop.f32.mrb[107].mxu1  ;;  %3936 = vst.msk [vmem:[%s7929_s6 + $0x30] sm:$0xff] %vm3929_vm1, %v3720_v33  ;;  %v3552_v25 = vmul.f32 %v5611_v53, %v3550_v28 }
0x1913   :  { %3960 = vst.msk [vmem:[%s7929_s6 + $0xf0] sm:$0xff] %vm3929_vm1, %v3840_v2  ;;  %v5613_v3 = vpop.eup %5612 }
0x1914   :  { %v4961_v26 = vpop.f32.mrb[108].mxu0  ;;  %v4997_v20 = vpop.f32.mrb[108].mxu1  ;;  %v3556_v31 = vadd.f32 %v3554_v12, %v3552_v25  ;;  %v3553_v0 = vmul.f32 %v5613_v3, %v3551_v63 }
0x1915   :  { %3939 = vst.msk [vmem:[%s7929_s6 + $0x48] sm:$0xff] %vm3929_vm1, %v4961_v26  ;;  %3963 = vst.msk [vmem:[%s7929_s6 + $0x108] sm:$0xff] %vm3929_vm1, %v4997_v20  ;;  %v3730_v39 = vpop.f32.mrb[109].mxu0  ;;  %v3850_v21 = vpop.f32.mrb[109].mxu1 }
0x1916   :  { %3938 = vst.msk [vmem:[%s7929_s6 + $0x40] sm:$0xff] %vm3929_vm1, %v3730_v39  ;;  %3962 = vst.msk [vmem:[%s7929_s6 + $0x100] sm:$0xff] %vm3929_vm1, %v3850_v21  ;;  %5016 = vmatprep.mubr.f32.mxu1 %v3556_v31  ;;  %v3557_v16 = vadd.f32 %v3555_v61, %v3553_v0 }
0x1918   :  { %v4964_v36 = vpop.f32.mrb[110].mxu0  ;;  %v5000_v38 = vpop.f32.mrb[110].mxu1  ;;  %5017 = vmatmul.mubr.f32.gmra.mrb[122].mxu1 %v3557_v16 }
0x1919   :  { %3941 = vst.msk [vmem:[%s7929_s6 + $0x58] sm:$0xff] %vm3929_vm1, %v4964_v36  ;;  %3965 = vst.msk [vmem:[%s7929_s6 + $0x118] sm:$0xff] %vm3929_vm1, %v5000_v38  ;;  %v3740_v35 = vpop.f32.mrb[111].mxu0  ;;  %v3860_v32 = vpop.f32.mrb[111].mxu1 }
0x191a   :  { %3940 = vst.msk [vmem:[%s7929_s6 + $0x50] sm:$0xff] %vm3929_vm1, %v3740_v35  ;;  %3964 = vst.msk [vmem:[%s7929_s6 + $0x110] sm:$0xff] %vm3929_vm1, %v3860_v32 }
0x191c   :  { %v4967_v1 = vpop.f32.mrb[112].mxu0  ;;  %v5003_v56 = vpop.f32.mrb[112].mxu1 }
0x191d   :  { %3943 = vst.msk [vmem:[%s7929_s6 + $0x68] sm:$0xff] %vm3929_vm1, %v4967_v1  ;;  %3967 = vst.msk [vmem:[%s7929_s6 + $0x128] sm:$0xff] %vm3929_vm1, %v5003_v56  ;;  %v3750_v59 = vpop.f32.mrb[113].mxu0  ;;  %v3870_v34 = vpop.f32.mrb[113].mxu1 }
0x191e   :  { %3942 = vst.msk [vmem:[%s7929_s6 + $0x60] sm:$0xff] %vm3929_vm1, %v3750_v59  ;;  %3966 = vst.msk [vmem:[%s7929_s6 + $0x120] sm:$0xff] %vm3929_vm1, %v3870_v34 }
0x1920   :  { %v4970_v62 = vpop.f32.mrb[114].mxu0  ;;  %v5006_v18 = vpop.f32.mrb[114].mxu1 }
0x1921   :  { %3945 = vst.msk [vmem:[%s7929_s6 + $0x78] sm:$0xff] %vm3929_vm1, %v4970_v62  ;;  %3969 = vst.msk [vmem:[%s7929_s6 + $0x138] sm:$0xff] %vm3929_vm1, %v5006_v18  ;;  %v3760_v14 = vpop.f32.mrb[115].mxu0  ;;  %v3880_v37 = vpop.f32.mrb[115].mxu1 }
0x1922   :  { %3944 = vst.msk [vmem:[%s7929_s6 + $0x70] sm:$0xff] %vm3929_vm1, %v3760_v14  ;;  %3968 = vst.msk [vmem:[%s7929_s6 + $0x130] sm:$0xff] %vm3929_vm1, %v3880_v37 }
0x1924   :  { %v4973_v41 = vpop.f32.mrb[116].mxu0  ;;  %v5009_v43 = vpop.f32.mrb[116].mxu1 }
0x1925   :  { %3947 = vst.msk [vmem:[%s7929_s6 + $0x88] sm:$0xff] %vm3929_vm1, %v4973_v41  ;;  %3971 = vst.msk [vmem:[%s7929_s6 + $0x148] sm:$0xff] %vm3929_vm1, %v5009_v43  ;;  %v3770_v50 = vpop.f32.mrb[117].mxu0  ;;  %v3890_v47 = vpop.f32.mrb[117].mxu1 }
0x1926   :  { %3946 = vst.msk [vmem:[%s7929_s6 + $0x80] sm:$0xff] %vm3929_vm1, %v3770_v50  ;;  %3970 = vst.msk [vmem:[%s7929_s6 + $0x140] sm:$0xff] %vm3929_vm1, %v3890_v47 }
0x1928   :  { %v4976_v10 = vpop.f32.mrb[118].mxu0  ;;  %v5012_v6 = vpop.f32.mrb[118].mxu1 }
0x1929   :  { %3949 = vst.msk [vmem:[%s7929_s6 + $0x98] sm:$0xff] %vm3929_vm1, %v4976_v10  ;;  %3973 = vst.msk [vmem:[%s7929_s6 + $0x158] sm:$0xff] %vm3929_vm1, %v5012_v6  ;;  %v3780_v8 = vpop.f32.mrb[119].mxu0  ;;  %v3900_v27 = vpop.f32.mrb[119].mxu1 }
0x192a   :  { %3948 = vst.msk [vmem:[%s7929_s6 + $0x90] sm:$0xff] %vm3929_vm1, %v3780_v8  ;;  %3972 = vst.msk [vmem:[%s7929_s6 + $0x150] sm:$0xff] %vm3929_vm1, %v3900_v27 }
0x192c   :  { %v4979_v7 = vpop.f32.mrb[120].mxu0  ;;  %v5015_v13 = vpop.f32.mrb[120].mxu1 }
0x192d   :  { %3951 = vst.msk [vmem:[%s7929_s6 + $0xa8] sm:$0xff] %vm3929_vm1, %v4979_v7  ;;  %3975 = vst.msk [vmem:[%s7929_s6 + $0x168] sm:$0xff] %vm3929_vm1, %v5015_v13  ;;  %v3790_v15 = vpop.f32.mrb[121].mxu0  ;;  %v3910_v19 = vpop.f32.mrb[121].mxu1 }
0x192e   :  { %3950 = vst.msk [vmem:[%s7929_s6 + $0xa0] sm:$0xff] %vm3929_vm1, %v3790_v15  ;;  %3974 = vst.msk [vmem:[%s7929_s6 + $0x160] sm:$0xff] %vm3929_vm1, %v3910_v19 }
0x1930   :  { %v4982_v40 = vpop.f32.mrb[122].mxu0 }
0x1931   :  { %3953 = vst.msk [vmem:[%s7929_s6 + $0xb8] sm:$0xff] %vm3929_vm1, %v4982_v40  ;;  %v3800_v29 = vpop.f32.mrb[123].mxu0 }
0x1932   :  { %3952 = vst.msk [vmem:[%s7929_s6 + $0xb0] sm:$0xff] %vm3929_vm1, %v3800_v29 }
0x19eb   :  { %v5018_v23 = vpop.f32.mrb[122].mxu1 }
0x19ec   :  { %3977 = vst.msk [vmem:[%s7929_s6 + $0x178] sm:$0xff] %vm3929_vm1, %v5018_v23  ;;  %v3920_v42 = vpop.f32.mrb[123].mxu1 }
0x19ed   :  { %3976 = vst.msk [vmem:[%s7929_s6 + $0x170] sm:$0xff] %vm3929_vm1, %v3920_v42 }

</bundles_post_ra>
